<compile_context>
chip_gen: v7x
topology: tpu7x:2x2x1
jax: 0.10.0
libtpu: 0.0.40
codegen_flags: <defaults>
</compile_context>

<pallas_src>
import jax
import jax.numpy as jnp
from jax.experimental import pallas as pl
from jax.experimental.pallas import tpu as pltpu


# ---------------------------------------------------------------------------
# Kernel 1: stacked GRU recurrence, streamed over a time grid axis.
# ---------------------------------------------------------------------------
def make_recurrence_kernel(num_layers):
    """Ref layout (positional):
      x_step, state_init,
      [w_rz_l, w_in_l, w_hn_l, b_rz_l, b_in_l, b_hn_l]  for l in range(L),
      h_top_step_out, new_state_out, h_carry_scratch
    """

    def kernel(*refs):
        x_ref, state_in_ref = refs[0], refs[1]
        idx = 2
        layer_refs = []
        for _ in range(num_layers):
            layer_refs.append(refs[idx:idx + 6])
            idx += 6
        h_top_ref = refs[idx]
        new_state_ref = refs[idx + 1]
        h_carry = refs[idx + 2]                      # VMEM scratch (L, B, H) f32

        t = pl.program_id(0)

        @pl.when(t == 0)
        def _init():
            h_carry[...] = state_in_ref[...]

        layer_in = x_ref[0]                          # (B, E) bf16
        for l, (wrz_ref, win_ref, whn_ref,
                brz_ref, bin_ref, bhn_ref) in enumerate(layer_refs):
            h = h_carry[l]                           # (B, H) f32
            H = h.shape[-1]
            h_bf = h.astype(jnp.bfloat16)

            # Fused r/z matmul: [x | h] @ [W_irz ; W_hrz], K = in_dim + H.
            xh = jnp.concatenate([layer_in, h_bf], axis=-1)     # (B, in+H) bf16
            rz = jax.nn.sigmoid(
                jnp.dot(xh, wrz_ref[...], preferred_element_type=jnp.float32)
                + brz_ref[...])
            r, z = rz[:, :H], rz[:, H:]

            # n gate: b_hn stays inside r * (...)  (PyTorch nn.GRU semantics).
            gx = jnp.dot(layer_in, win_ref[...],
                         preferred_element_type=jnp.float32)
            gh = jnp.dot(h_bf, whn_ref[...],
                         preferred_element_type=jnp.float32)
            n = jnp.tanh(gx + bin_ref[...] + r * (gh + bhn_ref[...]))

            h_new = (1.0 - z) * n + z * h            # f32 recurrent state
            h_carry[l] = h_new
            new_state_ref[l] = h_new
            layer_in = h_new.astype(jnp.bfloat16)

        h_top_ref[0] = layer_in                      # (B, H) bf16, per step

    return kernel


# ---------------------------------------------------------------------------
# Kernel 2: output head, tiled over the vocab dimension ('parallel').
# ---------------------------------------------------------------------------
def head_kernel(h_ref, w_ref, b_ref, out_ref):
    logits = jnp.dot(h_ref[...], w_ref[...],
                     preferred_element_type=jnp.float32) + b_ref[...]
    out_ref[...] = jnp.tanh(logits).astype(out_ref.dtype)


# ---------------------------------------------------------------------------
# Wrapper
# ---------------------------------------------------------------------------
def _vmem_limit_bytes(block_bytes, scratch_bytes=0):
    # block_bytes already = sum of per-operand block footprints; double-buffer,
    # add compiler-internal headroom, floor at 32 MiB (safe on every gen,
    # < v7x's 64 MiB physical VMEM at these configurations).
    est = 2 * block_bytes + scratch_bytes + 8 * 2**20
    return int(max(est, 32 * 2**20))


def _pick_head_tile(out_dim, max_tile=2048):
    assert out_dim % 128 == 0, "pad output vocab to a multiple of 128"
    t = min(out_dim, max_tile)
    while out_dim % t:
        t -= 128
    return t


def gru4rec_forward(item_ids, state, kparams, tile_o=None):
    """GRU4Rec session forward.

    item_ids : (T, B)    int32 item indices (session of length T)
    state    : (L, B, H) float32 initial hidden state
    returns  : (logits (T, B, O) bf16, new_state (L, B, H) f32)
    """
    T, B = item_ids.shape
    L, _, H = state.shape
    E = kparams["embedding"].shape[1]
    O = kparams["w_out"].shape[1]
    if tile_o is None:
        tile_o = _pick_head_tile(O)
    assert O % tile_o == 0

    # Embedding lookup (bf16 table -> bf16 activations; glue outside kernel).
    x_seq = jnp.take(kparams["embedding"], item_ids, axis=0)     # (T, B, E) bf16

    # ----------------- Kernel 1: recurrence over the session -----------------
    inputs = [x_seq, state]
    in_specs = [
        pl.BlockSpec((1, B, E), lambda t: (t, 0, 0)),            # streamed x
        pl.BlockSpec((L, B, H), lambda t: (0, 0, 0)),            # resident init
    ]
    layer_in_dims = [E] + [H] * (L - 1)
    for l in range(L):
        d0 = layer_in_dims[l]
        inputs += [kparams["w_rz"][l], kparams["w_in"][l], kparams["w_hn"][l],
                   kparams["b_rz"][l], kparams["b_in"][l], kparams["b_hn"][l]]
        in_specs += [
            pl.BlockSpec((d0 + H, 2 * H), lambda t: (0, 0)),     # resident
            pl.BlockSpec((d0, H), lambda t: (0, 0)),
            pl.BlockSpec((H, H), lambda t: (0, 0)),
            pl.BlockSpec((1, 2 * H), lambda t: (0, 0)),
            pl.BlockSpec((1, H), lambda t: (0, 0)),
            pl.BlockSpec((1, H), lambda t: (0, 0)),
        ]
    out_specs = (pl.BlockSpec((1, B, H), lambda t: (t, 0, 0)),   # h_top per step
                 pl.BlockSpec((L, B, H), lambda t: (0, 0, 0)))   # final state

    rec_blocks = (B * E * 2 + L * B * H * 4
                  + sum((d0 + H) * 2 * H * 2 + d0 * H * 2 + H * H * 2
                        + (2 * H + H + H) * 4 for d0 in layer_in_dims)
                  + B * H * 2 + L * B * H * 4)
    rec_vmem = _vmem_limit_bytes(rec_blocks, scratch_bytes=L * B * H * 4)

    h_top_seq, new_state = pl.pallas_call(
        make_recurrence_kernel(L),
        out_shape=(jax.ShapeDtypeStruct((T, B, H), jnp.bfloat16),
                   jax.ShapeDtypeStruct((L, B, H), jnp.float32)),
        grid_spec=pltpu.PrefetchScalarGridSpec(
            num_scalar_prefetch=0,
            grid=(T,),
            in_specs=in_specs,
            out_specs=out_specs,
            scratch_shapes=[pltpu.VMEM((L, B, H), jnp.float32)]),
        compiler_params=pltpu.CompilerParams(
            dimension_semantics=("arbitrary",),       # sequential time carry
            vmem_limit_bytes=rec_vmem),
    )(*inputs)

    # ----------------- Kernel 2: output head, O-tiled ------------------------
    h_flat = h_top_seq.reshape(T * B, H)
    head_blocks = (T * B * H * 2 + H * tile_o * 2 + tile_o * 4
                   + T * B * tile_o * 2)
    head_vmem = _vmem_limit_bytes(head_blocks)

    logits_flat = pl.pallas_call(
        head_kernel,
        out_shape=jax.ShapeDtypeStruct((T * B, O), jnp.bfloat16),
        grid_spec=pltpu.PrefetchScalarGridSpec(
            num_scalar_prefetch=0,
            grid=(O // tile_o,),
            in_specs=[pl.BlockSpec((T * B, H), lambda o: (0, 0)),
                      pl.BlockSpec((H, tile_o), lambda o: (0, o)),
                      pl.BlockSpec((1, tile_o), lambda o: (0, o))],
            out_specs=pl.BlockSpec((T * B, tile_o), lambda o: (0, o))),
        compiler_params=pltpu.CompilerParams(
            dimension_semantics=("parallel",),        # shard head over cores
            vmem_limit_bytes=head_vmem),
    )(h_flat, kparams["w_out"], kparams["b_out"])

    return logits_flat.reshape(T, B, O), new_state


gru4rec_forward_jit = jax.jit(gru4rec_forward, static_argnames=("tile_o",))


# ---------------------------------------------------------------------------
# Parameter init (f32 master) + kernel-param packing (bf16 MXU weights).
# ---------------------------------------------------------------------------
def init_params(key, input_size, hidden_size, output_size, num_layers,
                embedding_dim):
    keys = jax.random.split(key, 4 + num_layers)
    params = {"embedding": 0.02 * jax.random.normal(
        keys[0], (input_size, embedding_dim), jnp.float32)}

    w_ih, w_hh, b_ih, b_hh = [], [], [], []
    for l in range(num_layers):
        in_dim = embedding_dim if l == 0 else hidden_size
        k0, k1, k2, k3 = jax.random.split(keys[1 + l], 4)
        w_ih.append(0.05 * jax.random.normal(k0, (in_dim, 3 * hidden_size), jnp.float32))
        w_hh.append(0.05 * jax.random.normal(k1, (hidden_size, 3 * hidden_size), jnp.float32))
        b_ih.append(0.01 * jax.random.normal(k2, (1, 3 * hidden_size), jnp.float32))
        b_hh.append(0.01 * jax.random.normal(k3, (1, 3 * hidden_size), jnp.float32))
    params.update(w_ih=w_ih, w_hh=w_hh, b_ih=b_ih, b_hh=b_hh)

    params["w_out"] = 0.05 * jax.random.normal(
        keys[-2], (hidden_size, output_size), jnp.float32)
    params["b_out"] = 0.01 * jax.random.normal(
        keys[-1], (1, output_size), jnp.float32)
    return params


def prepare_kernel_params(params, hidden_size):
    """Pack weights for the kernel: fused [W_irz;W_hrz] stack, bf16 MXU weights,
    pre-summed r/z bias, separate b_in / b_hn (PyTorch nn.GRU semantics)."""
    H = hidden_size
    w_rz, w_in, w_hn, b_rz, b_in, b_hn = [], [], [], [], [], []
    for wih, whh, bih, bhh in zip(params["w_ih"], params["w_hh"],
                                  params["b_ih"], params["b_hh"]):
        w_rz.append(jnp.concatenate([wih[:, :2 * H], whh[:, :2 * H]],
                                    axis=0).astype(jnp.bfloat16))
        w_in.append(wih[:, 2 * H:].astype(jnp.bfloat16))
        w_hn.append(whh[:, 2 * H:].astype(jnp.bfloat16))
        b_rz.append(bih[:, :2 * H] + bhh[:, :2 * H])      # f32 (exact pre-sum)
        b_in.append(bih[:, 2 * H:])                        # f32
        b_hn.append(bhh[:, 2 * H:])                        # f32
    return {
        "embedding": params["embedding"].astype(jnp.bfloat16),
        "w_rz": w_rz, "w_in": w_in, "w_hn": w_hn,
        "b_rz": b_rz, "b_in": b_in, "b_hn": b_hn,
        "w_out": params["w_out"].astype(jnp.bfloat16),
        "b_out": params["b_out"],                          # f32
    }


# ---------------------------------------------------------------------------
# Pure-JAX f32 reference (PyTorch nn.GRU gate semantics) for a sanity check.
# ---------------------------------------------------------------------------
def reference_forward(item_ids, state, params):
    T, _ = item_ids.shape
    L, _, H = state.shape
    h = [state[l] for l in range(L)]
    logits_all = []
    for t in range(T):
        layer_in = params["embedding"][item_ids[t]]
        for l in range(L):
            gi = layer_in @ params["w_ih"][l] + params["b_ih"][l]
            gh = h[l] @ params["w_hh"][l] + params["b_hh"][l]
            r = jax.nn.sigmoid(gi[:, :H] + gh[:, :H])
            z = jax.nn.sigmoid(gi[:, H:2 * H] + gh[:, H:2 * H])
            n = jnp.tanh(gi[:, 2 * H:] + r * gh[:, 2 * H:])
            h_new = (1.0 - z) * n + z * h[l]
            h[l] = h_new
            layer_in = h_new
        logits_all.append(jnp.tanh(layer_in @ params["w_out"] + params["b_out"]))
    return jnp.stack(logits_all, axis=0), jnp.stack(h, axis=0)


if __name__ == "__main__":
    # Small demo shapes (module defaults: batch_size=128; embedding padded to
    # 128 lanes per the alignment guidance; modest vocab / session length).
    INPUT_SIZE = 512        # item vocabulary
    HIDDEN_SIZE = 128
    OUTPUT_SIZE = 512
    NUM_LAYERS = 2
    EMBEDDING_DIM = 128     # module default is 64; pad E to 128 lanes on TPU
    BATCH = 128
    SEQ_LEN = 16            # session length streamed under the time grid axis
    TILE_O = 256            # head vocab tile (multiple of 128; exercises grid)

    key = jax.random.PRNGKey(0)
    k_param, k_items, k_state = jax.random.split(key, 3)

    params = init_params(k_param, INPUT_SIZE, HIDDEN_SIZE, OUTPUT_SIZE,
                         NUM_LAYERS, EMBEDDING_DIM)
    kparams = prepare_kernel_params(params, HIDDEN_SIZE)

    item_ids = jax.random.randint(k_items, (SEQ_LEN, BATCH), 0, INPUT_SIZE,
                                  dtype=jnp.int32)
    state = 0.1 * jax.random.normal(
        k_state, (NUM_LAYERS, BATCH, HIDDEN_SIZE), jnp.float32)

    logits, new_state = gru4rec_forward_jit(item_ids, state, kparams,
                                            tile_o=TILE_O)
    jax.block_until_ready((logits, new_state))

    assert logits.shape == (SEQ_LEN, BATCH, OUTPUT_SIZE)
    assert new_state.shape == (NUM_LAYERS, BATCH, HIDDEN_SIZE)

    # Numerical sanity check vs. f32 reference (bf16 MXU / bf16 logits tol).
    ref_logits, ref_state = reference_forward(item_ids, state, params)
    assert jnp.max(jnp.abs(logits.astype(jnp.float32) - ref_logits)) < 5e-2
    assert jnp.max(jnp.abs(new_state - ref_state)) < 5e-2

    print("KERNEL_OK")
</pallas_src>

<mosaic_0001>
module attributes {stable_mosaic.version = 11 : i64} {
  func.func @head_kernel(%arg0: i32, %arg1: memref<2048x128xbf16, #tpu.memory_space<vmem>>, %arg2: memref<128x256xbf16, #tpu.memory_space<vmem>>, %arg3: memref<1x256xf32, #tpu.memory_space<vmem>>, %arg4: memref<2048x256xbf16, #tpu.memory_space<vmem>>) attributes {dimension_semantics = [#tpu.dimension_semantics<parallel>], iteration_bounds = array<i64: 2>, scalar_prefetch = 0 : i64, scratch_operands = 0 : i64, tpu.core_type = #tpu.core_type<tc>, window_params = [{pipeline_mode = #tpu.pipeline_mode<synchronous>, transform_indices = @transform_0, window_bounds = array<i64: 2048, 128>}, {transform_indices = @transform_1, window_bounds = array<i64: 128, 256>}, {transform_indices = @transform_2, window_bounds = array<i64: 1, 256>}, {transform_indices = @transform_3, window_bounds = array<i64: 2048, 256>}]} {
    %c0 = arith.constant 0 : index
    %c0_0 = arith.constant 0 : index
    %0 = vector.load %arg1[%c0, %c0_0] : memref<2048x128xbf16, #tpu.memory_space<vmem>>, vector<2048x128xbf16>
    %c0_1 = arith.constant 0 : index
    %c0_2 = arith.constant 0 : index
    %1 = vector.load %arg2[%c0_1, %c0_2] : memref<128x256xbf16, #tpu.memory_space<vmem>>, vector<128x256xbf16>
    %cst = arith.constant dense<0.000000e+00> : vector<2048x256xf32>
    %2 = tpu.matmul %0, %1, %cst {dimension_numbers = #tpu.dot_dimension_numbers<[1], [0], [0], [1], [0, 0, 1, 1], [], []>} : vector<2048x128xbf16>, vector<128x256xbf16>, vector<2048x256xf32> -> vector<2048x256xf32>
    %c0_3 = arith.constant 0 : index
    %c0_4 = arith.constant 0 : index
    %3 = vector.load %arg3[%c0_3, %c0_4] : memref<1x256xf32, #tpu.memory_space<vmem>>, vector<1x256xf32>
    %4 = vector.broadcast %3 : vector<1x256xf32> to vector<2048x256xf32>
    %5 = arith.addf %2, %4 : vector<2048x256xf32>
    %6 = math.tanh %5 : vector<2048x256xf32>
    %7 = arith.truncf %6 : vector<2048x256xf32> to vector<2048x256xbf16>
    %c0_5 = arith.constant 0 : index
    %c0_6 = arith.constant 0 : index
    %8 = vector.load %arg4[%c0_5, %c0_6] : memref<2048x256xbf16, #tpu.memory_space<vmem>>, vector<2048x256xbf16>
    tpu.vector_store %arg4[%c0_5, %c0_6], %7 {strides = array<i32>} : memref<2048x256xbf16, #tpu.memory_space<vmem>>, vector<2048x256xbf16>,
    return
  }
  func.func @transform_0(%arg0: i32) -> (i32, i32) {
    %c0_i32 = arith.constant 0 : i32
    %c0_i32_0 = arith.constant 0 : i32
    %c0_i32_1 = arith.constant 0 : i32
    return %c0_i32, %c0_i32_0 : i32, i32
  }
  func.func @transform_1(%arg0: i32) -> (i32, i32) {
    %c0_i32 = arith.constant 0 : i32
    %c0_i32_0 = arith.constant 0 : i32
    return %c0_i32, %arg0 : i32, i32
  }
  func.func @transform_2(%arg0: i32) -> (i32, i32) {
    %c0_i32 = arith.constant 0 : i32
    %c0_i32_0 = arith.constant 0 : i32
    return %c0_i32, %arg0 : i32, i32
  }
  func.func @transform_3(%arg0: i32) -> (i32, i32) {
    %c0_i32 = arith.constant 0 : i32
    %c0_i32_0 = arith.constant 0 : i32
    return %c0_i32, %arg0 : i32, i32
  }
}

module attributes {stable_mosaic.version = 11 : i64} {
  func.func @kernel(%arg0: i32, %arg1: memref<1x128x128xbf16, #tpu.memory_space<vmem>>, %arg2: memref<2x128x128xf32, #tpu.memory_space<vmem>>, %arg3: memref<256x256xbf16, #tpu.memory_space<vmem>>, %arg4: memref<128x128xbf16, #tpu.memory_space<vmem>>, %arg5: memref<128x128xbf16, #tpu.memory_space<vmem>>, %arg6: memref<1x256xf32, #tpu.memory_space<vmem>>, %arg7: memref<1x128xf32, #tpu.memory_space<vmem>>, %arg8: memref<1x128xf32, #tpu.memory_space<vmem>>, %arg9: memref<256x256xbf16, #tpu.memory_space<vmem>>, %arg10: memref<128x128xbf16, #tpu.memory_space<vmem>>, %arg11: memref<128x128xbf16, #tpu.memory_space<vmem>>, %arg12: memref<1x256xf32, #tpu.memory_space<vmem>>, %arg13: memref<1x128xf32, #tpu.memory_space<vmem>>, %arg14: memref<1x128xf32, #tpu.memory_space<vmem>>, %arg15: memref<1x128x128xbf16, #tpu.memory_space<vmem>>, %arg16: memref<2x128x128xf32, #tpu.memory_space<vmem>>, %arg17: memref<2x128x128xf32, #tpu.memory_space<vmem>>) attributes {dimension_semantics = [#tpu.dimension_semantics<arbitrary>], iteration_bounds = array<i64: 16>, scalar_prefetch = 0 : i64, scratch_operands = 1 : i64, tpu.core_type = #tpu.core_type<tc>, window_params = [{transform_indices = @transform_0, window_bounds = array<i64: 1, 128, 128>}, {pipeline_mode = #tpu.pipeline_mode<synchronous>, transform_indices = @transform_1, window_bounds = array<i64: 2, 128, 128>}, {pipeline_mode = #tpu.pipeline_mode<synchronous>, transform_indices = @transform_2, window_bounds = array<i64: 256, 256>}, {pipeline_mode = #tpu.pipeline_mode<synchronous>, transform_indices = @transform_3, window_bounds = array<i64: 128, 128>}, {pipeline_mode = #tpu.pipeline_mode<synchronous>, transform_indices = @transform_4, window_bounds = array<i64: 128, 128>}, {pipeline_mode = #tpu.pipeline_mode<synchronous>, transform_indices = @transform_5, window_bounds = array<i64: 1, 256>}, {pipeline_mode = #tpu.pipeline_mode<synchronous>, transform_indices = @transform_6, window_bounds = array<i64: 1, 128>}, {pipeline_mode = #tpu.pipeline_mode<synchronous>, transform_indices = @transform_7, window_bounds = array<i64: 1, 128>}, {pipeline_mode = #tpu.pipeline_mode<synchronous>, transform_indices = @transform_8, window_bounds = array<i64: 256, 256>}, {pipeline_mode = #tpu.pipeline_mode<synchronous>, transform_indices = @transform_9, window_bounds = array<i64: 128, 128>}, {pipeline_mode = #tpu.pipeline_mode<synchronous>, transform_indices = @transform_10, window_bounds = array<i64: 128, 128>}, {pipeline_mode = #tpu.pipeline_mode<synchronous>, transform_indices = @transform_11, window_bounds = array<i64: 1, 256>}, {pipeline_mode = #tpu.pipeline_mode<synchronous>, transform_indices = @transform_12, window_bounds = array<i64: 1, 128>}, {pipeline_mode = #tpu.pipeline_mode<synchronous>, transform_indices = @transform_13, window_bounds = array<i64: 1, 128>}, {transform_indices = @transform_14, window_bounds = array<i64: 1, 128, 128>}, {pipeline_mode = #tpu.pipeline_mode<synchronous>, transform_indices = @transform_15, window_bounds = array<i64: 2, 128, 128>}]} {
    %c0_i32 = arith.constant 0 : i32
    %0 = arith.cmpi eq, %arg0, %c0_i32 : i32
    %1 = arith.extui %0 : i1 to i32
    %c0_i32_0 = arith.constant 0 : i32
    %2 = arith.cmpi ne, %1, %c0_i32_0 : i32
    scf.if %2 {
      %c0_56 = arith.constant 0 : index
      %c0_57 = arith.constant 0 : index
      %c0_58 = arith.constant 0 : index
      %90 = vector.load %arg2[%c0_56, %c0_57, %c0_58] : memref<2x128x128xf32, #tpu.memory_space<vmem>>, vector<2x128x128xf32>
      %c0_59 = arith.constant 0 : index
      %c0_60 = arith.constant 0 : index
      %c0_61 = arith.constant 0 : index
      %91 = vector.load %arg17[%c0_59, %c0_60, %c0_61] : memref<2x128x128xf32, #tpu.memory_space<vmem>>, vector<2x128x128xf32>
      tpu.vector_store %arg17[%c0_59, %c0_60, %c0_61], %90 {strides = array<i32>} : memref<2x128x128xf32, #tpu.memory_space<vmem>>, vector<2x128x128xf32>,
    } else {
    }
    %c0 = arith.constant 0 : index
    %c0_1 = arith.constant 0 : index
    %c0_2 = arith.constant 0 : index
    %3 = vector.load %arg1[%c0, %c0_1, %c0_2] : memref<1x128x128xbf16, #tpu.memory_space<vmem>>, vector<1x128x128xbf16>
    %4 = vector.shape_cast %3 : vector<1x128x128xbf16> to vector<128x128xbf16>
    %c0_3 = arith.constant 0 : index
    %c0_4 = arith.constant 0 : index
    %c0_5 = arith.constant 0 : index
    %5 = vector.load %arg17[%c0_3, %c0_4, %c0_5] : memref<2x128x128xf32, #tpu.memory_space<vmem>>, vector<1x128x128xf32>
    %6 = vector.shape_cast %5 : vector<1x128x128xf32> to vector<128x128xf32>
    %7 = arith.truncf %6 : vector<128x128xf32> to vector<128x128xbf16>
    %8 = tpu.concatenate %4, %7 in 1 : vector<128x128xbf16>, vector<128x128xbf16> -> vector<128x256xbf16>
    %c0_6 = arith.constant 0 : index
    %c0_7 = arith.constant 0 : index
    %9 = vector.load %arg3[%c0_6, %c0_7] : memref<256x256xbf16, #tpu.memory_space<vmem>>, vector<256x256xbf16>
    %cst = arith.constant dense<0.000000e+00> : vector<128x256xf32>
    %10 = tpu.matmul %8, %9, %cst {dimension_numbers = #tpu.dot_dimension_numbers<[1], [0], [0], [1], [0, 0, 1, 1], [], []>} : vector<128x256xbf16>, vector<256x256xbf16>, vector<128x256xf32> -> vector<128x256xf32>
    %c0_8 = arith.constant 0 : index
    %c0_9 = arith.constant 0 : index
    %11 = vector.load %arg6[%c0_8, %c0_9] : memref<1x256xf32, #tpu.memory_space<vmem>>, vector<1x256xf32>
    %12 = vector.broadcast %11 : vector<1x256xf32> to vector<128x256xf32>
    %13 = arith.addf %10, %12 : vector<128x256xf32>
    %14 = arith.negf %13 : vector<128x256xf32>
    %15 = math.exp %14 : vector<128x256xf32>
    %cst_10 = arith.constant 1.000000e+00 : f32
    %16 = vector.broadcast %cst_10 : f32 to vector<128x256xf32>
    %17 = arith.addf %16, %15 : vector<128x256xf32>
    %18 = arith.divf %16, %17 : vector<128x256xf32>
    %19 = vector.extract_strided_slice %18 {offsets = [0, 0], sizes = [128, 128], strides = [1, 1]} : vector<128x256xf32> to vector<128x128xf32>
    %20 = vector.extract_strided_slice %18 {offsets = [0, 128], sizes = [128, 128], strides = [1, 1]} : vector<128x256xf32> to vector<128x128xf32>
    %c0_11 = arith.constant 0 : index
    %c0_12 = arith.constant 0 : index
    %21 = vector.load %arg4[%c0_11, %c0_12] : memref<128x128xbf16, #tpu.memory_space<vmem>>, vector<128x128xbf16>
    %cst_13 = arith.constant dense<0.000000e+00> : vector<128x128xf32>
    %22 = tpu.matmul %4, %21, %cst_13 {dimension_numbers = #tpu.dot_dimension_numbers<[1], [0], [0], [1], [0, 0, 1, 1], [], []>} : vector<128x128xbf16>, vector<128x128xbf16>, vector<128x128xf32> -> vector<128x128xf32>
    %c0_14 = arith.constant 0 : index
    %c0_15 = arith.constant 0 : index
    %23 = vector.load %arg5[%c0_14, %c0_15] : memref<128x128xbf16, #tpu.memory_space<vmem>>, vector<128x128xbf16>
    %cst_16 = arith.constant dense<0.000000e+00> : vector<128x128xf32>
    %24 = tpu.matmul %7, %23, %cst_16 {dimension_numbers = #tpu.dot_dimension_numbers<[1], [0], [0], [1], [0, 0, 1, 1], [], []>} : vector<128x128xbf16>, vector<128x128xbf16>, vector<128x128xf32> -> vector<128x128xf32>
    %c0_17 = arith.constant 0 : index
    %c0_18 = arith.constant 0 : index
    %25 = vector.load %arg7[%c0_17, %c0_18] : memref<1x128xf32, #tpu.memory_space<vmem>>, vector<1x128xf32>
    %26 = vector.broadcast %25 : vector<1x128xf32> to vector<128x128xf32>
    %27 = arith.addf %22, %26 : vector<128x128xf32>
    %c0_19 = arith.constant 0 : index
    %c0_20 = arith.constant 0 : index
    %28 = vector.load %arg8[%c0_19, %c0_20] : memref<1x128xf32, #tpu.memory_space<vmem>>, vector<1x128xf32>
    %29 = vector.broadcast %28 : vector<1x128xf32> to vector<128x128xf32>
    %30 = arith.addf %24, %29 : vector<128x128xf32>
    %31 = arith.mulf %19, %30 : vector<128x128xf32>
    %32 = arith.addf %27, %31 : vector<128x128xf32>
    %33 = math.tanh %32 : vector<128x128xf32>
    %cst_21 = arith.constant 1.000000e+00 : f32
    %34 = vector.broadcast %cst_21 : f32 to vector<128x128xf32>
    %35 = arith.subf %34, %20 : vector<128x128xf32>
    %36 = arith.mulf %35, %33 : vector<128x128xf32>
    %37 = arith.mulf %20, %6 : vector<128x128xf32>
    %38 = arith.addf %36, %37 : vector<128x128xf32>
    %c0_22 = arith.constant 0 : index
    %c0_23 = arith.constant 0 : index
    %c0_24 = arith.constant 0 : index
    %39 = vector.load %arg17[%c0_22, %c0_23, %c0_24] : memref<2x128x128xf32, #tpu.memory_space<vmem>>, vector<1x128x128xf32>
    %40 = vector.shape_cast %39 : vector<1x128x128xf32> to vector<128x128xf32>
    %41 = vector.shape_cast %38 : vector<128x128xf32> to vector<1x128x128xf32>
    tpu.vector_store %arg17[%c0_22, %c0_23, %c0_24], %41 {strides = array<i32>} : memref<2x128x128xf32, #tpu.memory_space<vmem>>, vector<1x128x128xf32>,
    %c0_25 = arith.constant 0 : index
    %c0_26 = arith.constant 0 : index
    %c0_27 = arith.constant 0 : index
    %42 = vector.load %arg16[%c0_25, %c0_26, %c0_27] : memref<2x128x128xf32, #tpu.memory_space<vmem>>, vector<1x128x128xf32>
    %43 = vector.shape_cast %42 : vector<1x128x128xf32> to vector<128x128xf32>
    %44 = vector.shape_cast %38 : vector<128x128xf32> to vector<1x128x128xf32>
    tpu.vector_store %arg16[%c0_25, %c0_26, %c0_27], %44 {strides = array<i32>} : memref<2x128x128xf32, #tpu.memory_space<vmem>>, vector<1x128x128xf32>,
    %45 = arith.truncf %38 : vector<128x128xf32> to vector<128x128xbf16>
    %c1 = arith.constant 1 : index
    %c0_28 = arith.constant 0 : index
    %c0_29 = arith.constant 0 : index
    %46 = vector.load %arg17[%c1, %c0_28, %c0_29] : memref<2x128x128xf32, #tpu.memory_space<vmem>>, vector<1x128x128xf32>
    %47 = vector.shape_cast %46 : vector<1x128x128xf32> to vector<128x128xf32>
    %48 = arith.truncf %47 : vector<128x128xf32> to vector<128x128xbf16>
    %49 = tpu.concatenate %45, %48 in 1 : vector<128x128xbf16>, vector<128x128xbf16> -> vector<128x256xbf16>
    %c0_30 = arith.constant 0 : index
    %c0_31 = arith.constant 0 : index
    %50 = vector.load %arg9[%c0_30, %c0_31] : memref<256x256xbf16, #tpu.memory_space<vmem>>, vector<256x256xbf16>
    %cst_32 = arith.constant dense<0.000000e+00> : vector<128x256xf32>
    %51 = tpu.matmul %49, %50, %cst_32 {dimension_numbers = #tpu.dot_dimension_numbers<[1], [0], [0], [1], [0, 0, 1, 1], [], []>} : vector<128x256xbf16>, vector<256x256xbf16>, vector<128x256xf32> -> vector<128x256xf32>
    %c0_33 = arith.constant 0 : index
    %c0_34 = arith.constant 0 : index
    %52 = vector.load %arg12[%c0_33, %c0_34] : memref<1x256xf32, #tpu.memory_space<vmem>>, vector<1x256xf32>
    %53 = vector.broadcast %52 : vector<1x256xf32> to vector<128x256xf32>
    %54 = arith.addf %51, %53 : vector<128x256xf32>
    %55 = arith.negf %54 : vector<128x256xf32>
    %56 = math.exp %55 : vector<128x256xf32>
    %cst_35 = arith.constant 1.000000e+00 : f32
    %57 = vector.broadcast %cst_35 : f32 to vector<128x256xf32>
    %58 = arith.addf %57, %56 : vector<128x256xf32>
    %59 = arith.divf %57, %58 : vector<128x256xf32>
    %60 = vector.extract_strided_slice %59 {offsets = [0, 0], sizes = [128, 128], strides = [1, 1]} : vector<128x256xf32> to vector<128x128xf32>
    %61 = vector.extract_strided_slice %59 {offsets = [0, 128], sizes = [128, 128], strides = [1, 1]} : vector<128x256xf32> to vector<128x128xf32>
    %c0_36 = arith.constant 0 : index
    %c0_37 = arith.constant 0 : index
    %62 = vector.load %arg10[%c0_36, %c0_37] : memref<128x128xbf16, #tpu.memory_space<vmem>>, vector<128x128xbf16>
    %cst_38 = arith.constant dense<0.000000e+00> : vector<128x128xf32>
    %63 = tpu.matmul %45, %62, %cst_38 {dimension_numbers = #tpu.dot_dimension_numbers<[1], [0], [0], [1], [0, 0, 1, 1], [], []>} : vector<128x128xbf16>, vector<128x128xbf16>, vector<128x128xf32> -> vector<128x128xf32>
    %c0_39 = arith.constant 0 : index
    %c0_40 = arith.constant 0 : index
    %64 = vector.load %arg11[%c0_39, %c0_40] : memref<128x128xbf16, #tpu.memory_space<vmem>>, vector<128x128xbf16>
    %cst_41 = arith.constant dense<0.000000e+00> : vector<128x128xf32>
    %65 = tpu.matmul %48, %64, %cst_41 {dimension_numbers = #tpu.dot_dimension_numbers<[1], [0], [0], [1], [0, 0, 1, 1], [], []>} : vector<128x128xbf16>, vector<128x128xbf16>, vector<128x128xf32> -> vector<128x128xf32>
    %c0_42 = arith.constant 0 : index
    %c0_43 = arith.constant 0 : index
    %66 = vector.load %arg13[%c0_42, %c0_43] : memref<1x128xf32, #tpu.memory_space<vmem>>, vector<1x128xf32>
    %67 = vector.broadcast %66 : vector<1x128xf32> to vector<128x128xf32>
    %68 = arith.addf %63, %67 : vector<128x128xf32>
    %c0_44 = arith.constant 0 : index
    %c0_45 = arith.constant 0 : index
    %69 = vector.load %arg14[%c0_44, %c0_45] : memref<1x128xf32, #tpu.memory_space<vmem>>, vector<1x128xf32>
    %70 = vector.broadcast %69 : vector<1x128xf32> to vector<128x128xf32>
    %71 = arith.addf %65, %70 : vector<128x128xf32>
    %72 = arith.mulf %60, %71 : vector<128x128xf32>
    %73 = arith.addf %68, %72 : vector<128x128xf32>
    %74 = math.tanh %73 : vector<128x128xf32>
    %cst_46 = arith.constant 1.000000e+00 : f32
    %75 = vector.broadcast %cst_46 : f32 to vector<128x128xf32>
    %76 = arith.subf %75, %61 : vector<128x128xf32>
    %77 = arith.mulf %76, %74 : vector<128x128xf32>
    %78 = arith.mulf %61, %47 : vector<128x128xf32>
    %79 = arith.addf %77, %78 : vector<128x128xf32>
    %c1_47 = arith.constant 1 : index
    %c0_48 = arith.constant 0 : index
    %c0_49 = arith.constant 0 : index
    %80 = vector.load %arg17[%c1_47, %c0_48, %c0_49] : memref<2x128x128xf32, #tpu.memory_space<vmem>>, vector<1x128x128xf32>
    %81 = vector.shape_cast %80 : vector<1x128x128xf32> to vector<128x128xf32>
    %82 = vector.shape_cast %79 : vector<128x128xf32> to vector<1x128x128xf32>
    tpu.vector_store %arg17[%c1_47, %c0_48, %c0_49], %82 {strides = array<i32>} : memref<2x128x128xf32, #tpu.memory_space<vmem>>, vector<1x128x128xf32>,
    %c1_50 = arith.constant 1 : index
    %c0_51 = arith.constant 0 : index
    %c0_52 = arith.constant 0 : index
    %83 = vector.load %arg16[%c1_50, %c0_51, %c0_52] : memref<2x128x128xf32, #tpu.memory_space<vmem>>, vector<1x128x128xf32>
    %84 = vector.shape_cast %83 : vector<1x128x128xf32> to vector<128x128xf32>
    %85 = vector.shape_cast %79 : vector<128x128xf32> to vector<1x128x128xf32>
    tpu.vector_store %arg16[%c1_50, %c0_51, %c0_52], %85 {strides = array<i32>} : memref<2x128x128xf32, #tpu.memory_space<vmem>>, vector<1x128x128xf32>,
    %86 = arith.truncf %79 : vector<128x128xf32> to vector<128x128xbf16>
    %c0_53 = arith.constant 0 : index
    %c0_54 = arith.constant 0 : index
    %c0_55 = arith.constant 0 : index
    %87 = vector.load %arg15[%c0_53, %c0_54, %c0_55] : memref<1x128x128xbf16, #tpu.memory_space<vmem>>, vector<1x128x128xbf16>
    %88 = vector.shape_cast %87 : vector<1x128x128xbf16> to vector<128x128xbf16>
    %89 = vector.shape_cast %86 : vector<128x128xbf16> to vector<1x128x128xbf16>
    tpu.vector_store %arg15[%c0_53, %c0_54, %c0_55], %89 {strides = array<i32>} : memref<1x128x128xbf16, #tpu.memory_space<vmem>>, vector<1x128x128xbf16>,
    return
  }
  func.func @transform_0(%arg0: i32) -> (i32, i32, i32) {
    %c0_i32 = arith.constant 0 : i32
    %c0_i32_0 = arith.constant 0 : i32
    %c0_i32_1 = arith.constant 0 : i32
    return %arg0, %c0_i32, %c0_i32_0 : i32, i32, i32
  }
  func.func @transform_1(%arg0: i32) -> (i32, i32, i32) {
    %c0_i32 = arith.constant 0 : i32
    %c0_i32_0 = arith.constant 0 : i32
    %c0_i32_1 = arith.constant 0 : i32
    %c0_i32_2 = arith.constant 0 : i32
    return %c0_i32, %c0_i32_0, %c0_i32_1 : i32, i32, i32
  }
  func.func @transform_2(%arg0: i32) -> (i32, i32) {
    %c0_i32 = arith.constant 0 : i32
    %c0_i32_0 = arith.constant 0 : i32
    %c0_i32_1 = arith.constant 0 : i32
    return %c0_i32, %c0_i32_0 : i32, i32
  }
  func.func @transform_3(%arg0: i32) -> (i32, i32) {
    %c0_i32 = arith.constant 0 : i32
    %c0_i32_0 = arith.constant 0 : i32
    %c0_i32_1 = arith.constant 0 : i32
    return %c0_i32, %c0_i32_0 : i32, i32
  }
  func.func @transform_4(%arg0: i32) -> (i32, i32) {
    %c0_i32 = arith.constant 0 : i32
    %c0_i32_0 = arith.constant 0 : i32
    %c0_i32_1 = arith.constant 0 : i32
    return %c0_i32, %c0_i32_0 : i32, i32
  }
  func.func @transform_5(%arg0: i32) -> (i32, i32) {
    %c0_i32 = arith.constant 0 : i32
    %c0_i32_0 = arith.constant 0 : i32
    %c0_i32_1 = arith.constant 0 : i32
    return %c0_i32, %c0_i32_0 : i32, i32
  }
  func.func @transform_6(%arg0: i32) -> (i32, i32) {
    %c0_i32 = arith.constant 0 : i32
    %c0_i32_0 = arith.constant 0 : i32
    %c0_i32_1 = arith.constant 0 : i32
    return %c0_i32, %c0_i32_0 : i32, i32
  }
  func.func @transform_7(%arg0: i32) -> (i32, i32) {
    %c0_i32 = arith.constant 0 : i32
    %c0_i32_0 = arith.constant 0 : i32
    %c0_i32_1 = arith.constant 0 : i32
    return %c0_i32, %c0_i32_0 : i32, i32
  }
  func.func @transform_8(%arg0: i32) -> (i32, i32) {
    %c0_i32 = arith.constant 0 : i32
    %c0_i32_0 = arith.constant 0 : i32
    %c0_i32_1 = arith.constant 0 : i32
    return %c0_i32, %c0_i32_0 : i32, i32
  }
  func.func @transform_9(%arg0: i32) -> (i32, i32) {
    %c0_i32 = arith.constant 0 : i32
    %c0_i32_0 = arith.constant 0 : i32
    %c0_i32_1 = arith.constant 0 : i32
    return %c0_i32, %c0_i32_0 : i32, i32
  }
  func.func @transform_10(%arg0: i32) -> (i32, i32) {
    %c0_i32 = arith.constant 0 : i32
    %c0_i32_0 = arith.constant 0 : i32
    %c0_i32_1 = arith.constant 0 : i32
    return %c0_i32, %c0_i32_0 : i32, i32
  }
  func.func @transform_11(%arg0: i32) -> (i32, i32) {
    %c0_i32 = arith.constant 0 : i32
    %c0_i32_0 = arith.constant 0 : i32
    %c0_i32_1 = arith.constant 0 : i32
    return %c0_i32, %c0_i32_0 : i32, i32
  }
  func.func @transform_12(%arg0: i32) -> (i32, i32) {
    %c0_i32 = arith.constant 0 : i32
    %c0_i32_0 = arith.constant 0 : i32
    %c0_i32_1 = arith.constant 0 : i32
    return %c0_i32, %c0_i32_0 : i32, i32
  }
  func.func @transform_13(%arg0: i32) -> (i32, i32) {
    %c0_i32 = arith.constant 0 : i32
    %c0_i32_0 = arith.constant 0 : i32
    %c0_i32_1 = arith.constant 0 : i32
    return %c0_i32, %c0_i32_0 : i32, i32
  }
  func.func @transform_14(%arg0: i32) -> (i32, i32, i32) {
    %c0_i32 = arith.constant 0 : i32
    %c0_i32_0 = arith.constant 0 : i32
    %c0_i32_1 = arith.constant 0 : i32
    return %arg0, %c0_i32, %c0_i32_0 : i32, i32, i32
  }
  func.func @transform_15(%arg0: i32) -> (i32, i32, i32) {
    %c0_i32 = arith.constant 0 : i32
    %c0_i32_0 = arith.constant 0 : i32
    %c0_i32_1 = arith.constant 0 : i32
    %c0_i32_2 = arith.constant 0 : i32
    return %c0_i32, %c0_i32_0, %c0_i32_1 : i32, i32, i32
  }
}

</mosaic_0001>

<bundles_post_ra>
// kernel: gru4rec_forward.2
= control target key start
LH: loop header
LB: loop body
LE: loop exit
PB: predicated region body
PF: predicated region fallthrough
CT: control target
= control target key end

     0   :  { %21 = vsyncpa [#allocation4], 0  ;;  %s3901_s18 = smov 0   ;;  %s4974_s0 = inlined_call_operand.vmem [shape: bf16[16,128,128], index: 0, kind: input, shape index: {}]   ;;  %s4975_s1 = inlined_call_operand.vmem [shape: f32[2,128,128], index: 1, kind: input, shape index: {}]   ;;  %s4976_s2 = inlined_call_operand.vmem [shape: bf16[256,256], index: 2, kind: input, shape index: {}]   ;;  %s4977_s3 = inlined_call_operand.vmem [shape: bf16[128,128], index: 3, kind: input, shape index: {}]   ;;  %s4978_s4 = inlined_call_operand.vmem [shape: bf16[128,128], index: 4, kind: input, shape index: {}]   ;;  %s4979_s5 = inlined_call_operand.vmem [shape: f32[1,256], index: 5, kind: input, shape index: {}]   ;;  %s4980_s6 = inlined_call_operand.vmem [shape: f32[1,128], index: 6, kind: input, shape index: {}]   ;;  %s4981_s7 = inlined_call_operand.vmem [shape: f32[1,128], index: 7, kind: input, shape index: {}]   ;;  %s4982_s8 = inlined_call_operand.vmem [shape: bf16[256,256], index: 8, kind: input, shape index: {}]   ;;  %s4983_s9 = inlined_call_operand.vmem [shape: bf16[128,128], index: 9, kind: input, shape index: {}]   ;;  %s4984_s10 = inlined_call_operand.vmem [shape: bf16[128,128], index: 10, kind: input, shape index: {}]   ;;  %s4985_s11 = inlined_call_operand.vmem [shape: f32[1,256], index: 11, kind: input, shape index: {}]   ;;  %s4986_s12 = inlined_call_operand.vmem [shape: f32[1,128], index: 12, kind: input, shape index: {}]   ;;  %s4987_s13 = inlined_call_operand.vmem [shape: f32[1,128], index: 13, kind: input, shape index: {}]   ;;  %s4988_s14 = inlined_call_operand.vmem [shape: bf16[16,128,128], index: 14, kind: output, shape index: {0}]   ;;  %s4989_s15 = inlined_call_operand.hbm [shape: f32[2,128,128], index: 15, kind: output, shape index: {1}]  }
   0x1 LB: > { %s3907_s19 = sadd.s32 4294967295, %s3816_s18   ;;  %p2828_p0 = scmp.ge.s32.totalorder %s3816_s18, 1  ;;  %s3816_s18 = sphi %s3901_s18, %s27_s18  }
   0x2   : > { %p436_p1 = scmp.lt.s32.totalorder %s3816_s18, 17 }
   0x4   : > { %p437_p2 = pnand %p2828_p0, %p436_p1 }
   0x6   : > { %440 = sbr.rel (%p437_p2) target bundleno = 712 (0x2c8), region = 76 }
   0xd   : > { %p484_p3 = scmp.lt.s32.totalorder %s3907_s19, 15  ;;  %p2833_p4 = scmp.ne.s32.totalorder %s3907_s19, 0 }
   0xe   : > { %v499_v0 = vld [vmem:[%s4975_s1] sm:$0xff] (!%p2833_p4)  ;;  %v500_v1 = vld [vmem:[%s4975_s1 + $0x8] sm:$0xff] (!%p2833_p4)  ;;  %v501_v2 = vld [vmem:[%s4975_s1 + $0x10] sm:$0xff] (!%p2833_p4) }
   0xf   : > { %s485_s20 = scalar_select %p484_p3, %s3907_s19, 15 }
  0x10   : > { %498 = sbr.rel (%p2833_p4) target bundleno = 32 (0x20), region = 80  ;;  %531 = vst [vmem:[#allocation2] sm:$0xff] (!%p2833_p4), %v499_v0  ;;  %532 = vst [vmem:[#allocation2 + $0x8] sm:$0xff] (!%p2833_p4), %v500_v1  ;;  %v502_v3 = vld [vmem:[%s4975_s1 + $0x18] sm:$0xff] (!%p2833_p4)  ;;  %v503_v4 = vld [vmem:[%s4975_s1 + $0x20] sm:$0xff] (!%p2833_p4) }
  0x11   : > { %s3026_s21 = sshll.u32 %s485_s20, 6  ;;  %533 = vst [vmem:[#allocation2 + $0x10] sm:$0xff] (!%p2833_p4), %v501_v2  ;;  %v504_v5 = vld [vmem:[%s4975_s1 + $0x28] sm:$0xff] (!%p2833_p4)  ;;  %534 = vst [vmem:[#allocation2 + $0x18] sm:$0xff] (!%p2833_p4), %v502_v3  ;;  %v505_v6 = vld [vmem:[%s4975_s1 + $0x30] sm:$0xff] (!%p2833_p4) }
  0x12   : > { %s3916_s24 = scalar_lea.vmem %s4974_s0, %s3026_s21  ;;  %s3921_s27 = scalar_lea.vmem %s4988_s14, %s3026_s21  ;;  %535 = vst [vmem:[#allocation2 + $0x20] sm:$0xff] (!%p2833_p4), %v503_v4  ;;  %536 = vst [vmem:[#allocation2 + $0x28] sm:$0xff] (!%p2833_p4), %v504_v5  ;;  %v506_v7 = vld [vmem:[%s4975_s1 + $0x38] sm:$0xff] (!%p2833_p4)  ;;  %v507_v8 = vld [vmem:[%s4975_s1 + $0x40] sm:$0xff] (!%p2833_p4) }
  0x13   : > { %537 = vst [vmem:[#allocation2 + $0x30] sm:$0xff] (!%p2833_p4), %v505_v6  ;;  %538 = vst [vmem:[#allocation2 + $0x38] sm:$0xff] (!%p2833_p4), %v506_v7  ;;  %v508_v9 = vld [vmem:[%s4975_s1 + $0x48] sm:$0xff] (!%p2833_p4)  ;;  %v509_v10 = vld [vmem:[%s4975_s1 + $0x50] sm:$0xff] (!%p2833_p4) }
  0x14   : > { %539 = vst [vmem:[#allocation2 + $0x40] sm:$0xff] (!%p2833_p4), %v507_v8  ;;  %v510_v11 = vld [vmem:[%s4975_s1 + $0x58] sm:$0xff] (!%p2833_p4)  ;;  %540 = vst [vmem:[#allocation2 + $0x48] sm:$0xff] (!%p2833_p4), %v508_v9  ;;  %v511_v12 = vld [vmem:[%s4975_s1 + $0x60] sm:$0xff] (!%p2833_p4) }
  0x15   : > { %541 = vst [vmem:[#allocation2 + $0x50] sm:$0xff] (!%p2833_p4), %v509_v10  ;;  %542 = vst [vmem:[#allocation2 + $0x58] sm:$0xff] (!%p2833_p4), %v510_v11  ;;  %v512_v13 = vld [vmem:[%s4975_s1 + $0x68] sm:$0xff] (!%p2833_p4)  ;;  %v513_v14 = vld [vmem:[%s4975_s1 + $0x70] sm:$0xff] (!%p2833_p4) }
  0x16   : > { %543 = vst [vmem:[#allocation2 + $0x60] sm:$0xff] (!%p2833_p4), %v511_v12  ;;  %544 = vst [vmem:[#allocation2 + $0x68] sm:$0xff] (!%p2833_p4), %v512_v13  ;;  %v514_v15 = vld [vmem:[%s4975_s1 + $0x78] sm:$0xff] (!%p2833_p4)  ;;  %v515_v16 = vld [vmem:[%s4975_s1 + $0x80] sm:$0xff] (!%p2833_p4) }
  0x17   : > { %545 = vst [vmem:[#allocation2 + $0x70] sm:$0xff] %v513_v14  ;;  %v516_v17 = vld [vmem:[%s4975_s1 + $0x88] sm:$0xff]  ;;  %546 = vst [vmem:[#allocation2 + $0x78] sm:$0xff] %v514_v15  ;;  %v517_v18 = vld [vmem:[%s4975_s1 + $0x90] sm:$0xff] }
  0x18   : > { %547 = vst [vmem:[#allocation2 + $0x80] sm:$0xff] %v515_v16  ;;  %548 = vst [vmem:[#allocation2 + $0x88] sm:$0xff] %v516_v17  ;;  %v518_v19 = vld [vmem:[%s4975_s1 + $0x98] sm:$0xff]  ;;  %v519_v20 = vld [vmem:[%s4975_s1 + $0xa0] sm:$0xff] }
  0x19   : > { %549 = vst [vmem:[#allocation2 + $0x90] sm:$0xff] %v517_v18  ;;  %550 = vst [vmem:[#allocation2 + $0x98] sm:$0xff] %v518_v19  ;;  %v520_v21 = vld [vmem:[%s4975_s1 + $0xa8] sm:$0xff]  ;;  %v521_v22 = vld [vmem:[%s4975_s1 + $0xb0] sm:$0xff] }
  0x1a   : > { %551 = vst [vmem:[#allocation2 + $0xa0] sm:$0xff] %v519_v20  ;;  %v522_v23 = vld [vmem:[%s4975_s1 + $0xb8] sm:$0xff]  ;;  %552 = vst [vmem:[#allocation2 + $0xa8] sm:$0xff] %v520_v21  ;;  %v523_v24 = vld [vmem:[%s4975_s1 + $0xc0] sm:$0xff] }
  0x1b   : > { %553 = vst [vmem:[#allocation2 + $0xb0] sm:$0xff] %v521_v22  ;;  %554 = vst [vmem:[#allocation2 + $0xb8] sm:$0xff] %v522_v23  ;;  %v524_v25 = vld [vmem:[%s4975_s1 + $0xc8] sm:$0xff]  ;;  %v525_v26 = vld [vmem:[%s4975_s1 + $0xd0] sm:$0xff] }
  0x1c   : > { %555 = vst [vmem:[#allocation2 + $0xc0] sm:$0xff] %v523_v24  ;;  %556 = vst [vmem:[#allocation2 + $0xc8] sm:$0xff] %v524_v25  ;;  %v526_v27 = vld [vmem:[%s4975_s1 + $0xd8] sm:$0xff]  ;;  %v527_v28 = vld [vmem:[%s4975_s1 + $0xe0] sm:$0xff] }
  0x1d   : > { %557 = vst [vmem:[#allocation2 + $0xd0] sm:$0xff] %v525_v26  ;;  %v528_v29 = vld [vmem:[%s4975_s1 + $0xe8] sm:$0xff]  ;;  %558 = vst [vmem:[#allocation2 + $0xd8] sm:$0xff] %v526_v27  ;;  %v529_v30 = vld [vmem:[%s4975_s1 + $0xf0] sm:$0xff] }
  0x1e   : > { %559 = vst [vmem:[#allocation2 + $0xe0] sm:$0xff] %v527_v28  ;;  %560 = vst [vmem:[#allocation2 + $0xe8] sm:$0xff] %v528_v29  ;;  %v530_v31 = vld [vmem:[%s4975_s1 + $0xf8] sm:$0xff] }
  0x1f   : > { %561 = vst [vmem:[#allocation2 + $0xf0] sm:$0xff] %v529_v30  ;;  %562 = vst [vmem:[#allocation2 + $0xf8] sm:$0xff] %v530_v31 }
  0x20 PF: > { %v3300_v32 = vld [vmem:[%s4976_s2 + $0x4] ss:$8 sps:$4 sm:$0xff]   ;;  %v3302_v33 = vld [vmem:[%s4976_s2] ss:$8 sps:$4 sm:$0xff]   ;;  %v3303_v34 = vld [vmem:[%s4976_s2 + $0x14] ss:$8 sps:$4 sm:$0xff]  }
  0x21   : > { %855 = vmatprep.subr.bf16.mxu0 %v3300_v32  ;;  %v3305_v35 = vld [vmem:[%s4976_s2 + $0x10] ss:$8 sps:$4 sm:$0xff]   ;;  %v3306_v36 = vld [vmem:[%s4976_s2 + $0x24] ss:$8 sps:$4 sm:$0xff]   ;;  %v3308_v37 = vld [vmem:[%s4976_s2 + $0x20] ss:$8 sps:$4 sm:$0xff]  }
  0x22   : > { %856 = vmatpush1.bf16.msra.mxu0 %v3302_v33  ;;  %v3309_v38 = vld [vmem:[%s4976_s2 + $0x34] ss:$8 sps:$4 sm:$0xff]   ;;  %v3321_v39 = vld [vmem:[%s4977_s3] sm:$0xff]   ;;  %v3311_v40 = vld [vmem:[%s4976_s2 + $0x30] ss:$8 sps:$4 sm:$0xff]   ;;  %s3818_s21 = smov [#allocation3]  }
  0x23   : > { %857 = vmatprep.subr.bf16.mxu0 %v3303_v34  ;;  %v3312_v41 = vld [vmem:[%s4976_s2 + $0x44] ss:$8 sps:$4 sm:$0xff]   ;;  %3155 = vmatprep.subr.bf16.mxu1 %v3321_v39  ;;  %v3329_v43 = vld [vmem:[%s4977_s3 + $0x10] sm:$0xff]   ;;  %v3314_v44 = vld [vmem:[%s4976_s2 + $0x40] ss:$8 sps:$4 sm:$0xff]   ;;  %s2757_s22 = sshll.u32 %s3818_s21, 4  ;;  %s2758_s22 = int_to_ptr.vmem [resolvable:$true] %s2757_s22 }
  0x24   : > { %v3325_v42 = vld [vmem:[%s4977_s3 + $0x8] sm:$0xff]   ;;  %3156 = vmatpush3.bf16.msra.mxu1 %v3321_v39  ;;  %v3315_v45 = vld [vmem:[%s4976_s2 + $0x54] ss:$8 sps:$4 sm:$0xff]   ;;  %v3317_v47 = vld [vmem:[%s4976_s2 + $0x50] ss:$8 sps:$4 sm:$0xff]   ;;  %p3287_p5 = scmp.eq.s32.totalorder %s3907_s19, 15  ;;  %p3787_p9 = scmp.lt.s32.totalorder %s2758_s22, %s2758_s22 }
  0x25   : > { %3157 = vmatprep.subr.bf16.mxu1 %v3325_v42  ;;  %v3333_v46 = vld [vmem:[%s4977_s3 + $0x18] sm:$0xff]   ;;  %v3318_v48 = vld [vmem:[%s4976_s2 + $0x64] ss:$8 sps:$4 sm:$0xff]   ;;  %v3320_v50 = vld [vmem:[%s4976_s2 + $0x60] ss:$8 sps:$4 sm:$0xff]   ;;  %s3780_s23 = scalar_lea.vmem %s2758_s22, 4096 }
  0x26   : > { %858 = vmatpush1.bf16.msra.mxu0 %v3305_v35  ;;  %v3337_v49 = vld [vmem:[%s4977_s3 + $0x20] sm:$0xff]   ;;  %v3322_v51 = vld [vmem:[%s4976_s2 + $0x74] ss:$8 sps:$4 sm:$0xff]   ;;  %v3341_v52 = vld [vmem:[%s4977_s3 + $0x28] sm:$0xff]   ;;  %p3781_p6 = scmp.ne.s32.totalorder %s2758_s22, %s3780_s23  ;;  %p3788_p10 = scmp.lt.s32.totalorder %s3780_s23, %s3780_s23 }
  0x27   : > { %859 = vmatprep.subr.bf16.mxu0 %v3306_v36  ;;  %v3324_v53 = vld [vmem:[%s4976_s2 + $0x70] ss:$8 sps:$4 sm:$0xff]   ;;  %v3326_v54 = vld [vmem:[%s4976_s2 + $0x84] ss:$8 sps:$4 sm:$0xff]   ;;  %v3328_v57 = vld [vmem:[%s4976_s2 + $0x80] ss:$8 sps:$4 sm:$0xff]  }
  0x28   : > { %3158 = vmatpush3.bf16.msra.mxu1 %v3325_v42  ;;  %v4090_v55 = vld [vmem:[%s3916_s24] sm:$0xff]   ;;  %v3345_v56 = vld [vmem:[%s4977_s3 + $0x30] sm:$0xff]   ;;  %v580_v60 = vld [vmem:[#allocation2 + $0x8] sm:$0xff]  ;;  %p3782_p7 = pnand %p3781_p6, %p3287_p5  ;;  %p3789_p11 = por %p3788_p10, %p3787_p9 }
  0x29   : > { %3159 = vmatprep.subr.bf16.mxu1 %v3329_v43  ;;  %3171 = vmatprep.mubr.bf16.mxu1 %v4090_v55  ;;  %v3330_v58 = vld [vmem:[%s4976_s2 + $0x94] ss:$8 sps:$4 sm:$0xff]   ;;  %v4102_v59 = vld [vmem:[#allocation2] sm:$0xff]  ;;  %v3332_v63 = vld [vmem:[%s4976_s2 + $0x90] ss:$8 sps:$4 sm:$0xff]  }
  0x2a   : > { %860 = vmatpush1.bf16.msra.mxu0 %v3308_v37  ;;  %v3349_v61 = vld [vmem:[%s4977_s3 + $0x38] sm:$0xff]   ;;  %v4108_v62 = vpack.c.bf16 %v580_v60, %v4102_v59  ;;  %v3334_v0 = vld [vmem:[%s4976_s2 + $0xa4] ss:$8 sps:$4 sm:$0xff]   ;;  %v3336_v1 = vld [vmem:[%s4976_s2 + $0xa0] ss:$8 sps:$4 sm:$0xff]   ;;  %p3783_p8 = pneg %p3782_p7 }
  0x2b   : > { %861 = vmatprep.subr.bf16.mxu0 %v3309_v38  ;;  %v3355_v2 = vld [vmem:[%s4978_s4] sm:$0xff]   ;;  %v3338_v3 = vld [vmem:[%s4976_s2 + $0xb4] ss:$8 sps:$4 sm:$0xff]   ;;  %v4127_v4 = vld [vmem:[%s3916_s24 + $0x8] sm:$0xff]  }
  0x2c   : > { %3160 = vmatpush3.bf16.msra.mxu1 %v3329_v43  ;;  %887 = vmatprep.mubr.bf16.mxu0 %v4108_v62  ;;  %v4130_v5 = vld [vmem:[%s3916_s24 + $0x10] sm:$0xff]   ;;  %v3359_v6 = vld [vmem:[%s4978_s4 + $0x8] sm:$0xff]   ;;  %v4153_v12 = vld [vmem:[%s3916_s24 + $0x18] sm:$0xff]   ;;  %p3790_p12 = pnand %p3789_p11, %p3783_p8 }
  0x2d   : > { %3161 = vmatprep.subr.bf16.mxu1 %v3333_v46  ;;  %v3340_v7 = vld [vmem:[%s4976_s2 + $0xb0] ss:$8 sps:$4 sm:$0xff]   ;;  %v3342_v8 = vld [vmem:[%s4976_s2 + $0xc4] ss:$8 sps:$4 sm:$0xff]   ;;  %v3344_v10 = vld [vmem:[%s4976_s2 + $0xc0] ss:$8 sps:$4 sm:$0xff]  }
  0x2e   : > { %862 = vmatpush1.bf16.msra.mxu0 %v3311_v40  ;;  %v3362_v9 = vld [vmem:[%s4978_s4 + $0x10] sm:$0xff]   ;;  %v4156_v13 = vld [vmem:[%s3916_s24 + $0x20] sm:$0xff]   ;;  %v3363_v14 = vld [vmem:[%s4978_s4 + $0x18] sm:$0xff]  }
  0x2f   : > { %863 = vmatprep.subr.bf16.mxu0 %v3312_v41  ;;  %v3346_v11 = vld [vmem:[%s4976_s2 + $0xd4] ss:$8 sps:$4 sm:$0xff]   ;;  %v3348_v15 = vld [vmem:[%s4976_s2 + $0xd0] ss:$8 sps:$4 sm:$0xff]   ;;  %v3350_v16 = vld [vmem:[%s4976_s2 + $0xe4] ss:$8 sps:$4 sm:$0xff]  }
  0x30   : > { %3162 = vmatpush3.bf16.msra.mxu1 %v3333_v46  ;;  %v3353_v17 = vld [vmem:[%s4976_s2 + $0xe0] ss:$8 sps:$4 sm:$0xff]   ;;  %v3356_v18 = vld [vmem:[%s4976_s2 + $0xf4] ss:$8 sps:$4 sm:$0xff]   ;;  %v3358_v23 = vld [vmem:[%s4976_s2 + $0xf0] ss:$8 sps:$4 sm:$0xff]  }
  0x31   : > { %3163 = vmatprep.subr.bf16.mxu1 %v3337_v49  ;;  %v4176_v19 = vld [vmem:[%s3916_s24 + $0x28] sm:$0xff]   ;;  %v3366_v20 = vld [vmem:[%s4978_s4 + $0x20] sm:$0xff]   ;;  %v4182_v21 = vld [vmem:[%s3916_s24 + $0x30] sm:$0xff]  }
  0x32   : > { %864 = vmatpush1.bf16.msra.mxu0 %v3314_v44  ;;  %v3367_v22 = vld [vmem:[%s4978_s4 + $0x28] sm:$0xff]   ;;  %v4190_v24 = vld [vmem:[#allocation2 + $0x10] sm:$0xff]  ;;  %v4192_v25 = vld [vmem:[#allocation2 + $0x18] sm:$0xff] }
  0x33   : > { %865 = vmatprep.subr.bf16.mxu0 %v3315_v45  ;;  %v3374_v26 = vld [vmem:[%s4982_s8 + $0x4] ss:$8 sps:$4 sm:$0xff]   ;;  %v3370_v27 = vld [vmem:[%s4978_s4 + $0x30] sm:$0xff]   ;;  %v3372_v28 = vld [vmem:[%s4982_s8] ss:$8 sps:$4 sm:$0xff]   ;;  %v596_v31 = vpack.c.bf16 %v4192_v25, %v4190_v24 }
  0x34   : > { %3164 = vmatpush3.bf16.msra.mxu1 %v3337_v49  ;;  %v3369_v29 = vld [vmem:[%s3916_s24 + $0x38] sm:$0xff]   ;;  %v4218_v34 = vld [vmem:[#allocation2 + $0x20] sm:$0xff]  ;;  %v584_v35 = vld [vmem:[#allocation2 + $0x28] sm:$0xff] }
  0x35   : > { %3165 = vmatprep.subr.bf16.mxu1 %v3341_v52  ;;  %v3377_v30 = vld [vmem:[%s4982_s8 + $0x14] ss:$8 sps:$4 sm:$0xff]   ;;  %v3375_v33 = vld [vmem:[%s4982_s8 + $0x10] ss:$8 sps:$4 sm:$0xff]   ;;  %v3380_v36 = vld [vmem:[%s4982_s8 + $0x24] ss:$8 sps:$4 sm:$0xff]   ;;  %v597_v38 = vpack.c.bf16 %v584_v35, %v4218_v34 }
  0x36   : > { %866 = vmatpush1.bf16.msra.mxu0 %v3317_v47  ;;  %v3371_v32 = vld [vmem:[%s4978_s4 + $0x38] sm:$0xff]   ;;  %v3378_v37 = vld [vmem:[%s4982_s8 + $0x20] ss:$8 sps:$4 sm:$0xff]   ;;  %v4229_v39 = vld [vmem:[#allocation2 + $0x30] sm:$0xff] }
  0x37   : > { %867 = vmatprep.subr.bf16.mxu0 %v3318_v48  ;;  %v4231_v40 = vld [vmem:[#allocation2 + $0x38] sm:$0xff]  ;;  %v587_v42 = vld [vmem:[#allocation2 + $0x40] sm:$0xff]  ;;  %v588_v43 = vld [vmem:[#allocation2 + $0x48] sm:$0xff] }
  0x38   : > { %3166 = vmatpush3.bf16.msra.mxu1 %v3341_v52  ;;  %v598_v41 = vpack.c.bf16 %v4231_v40, %v4229_v39  ;;  %v599_v44 = vpack.c.bf16 %v588_v43, %v587_v42  ;;  %v589_v45 = vld [vmem:[#allocation2 + $0x50] sm:$0xff]  ;;  %v590_v46 = vld [vmem:[#allocation2 + $0x58] sm:$0xff]  ;;  %v591_v47 = vld [vmem:[#allocation2 + $0x60] sm:$0xff] }
  0x39   : > { %3167 = vmatprep.subr.bf16.mxu1 %v3345_v56  ;;  %v592_v48 = vld [vmem:[#allocation2 + $0x68] sm:$0xff]  ;;  %v600_v49 = vpack.c.bf16 %v590_v46, %v589_v45  ;;  %v594_v52 = vld [vmem:[#allocation2 + $0x78] sm:$0xff]  ;;  %v683_v45 = vld [vmem:[%s4979_s5] sm:$0x3] }
  0x3a   : > { %868 = vmatpush1.bf16.msra.mxu0 %v3320_v50  ;;  %v601_v50 = vpack.c.bf16 %v592_v48, %v591_v47  ;;  %v3387_v60 = vld [vmem:[%s4982_s8 + $0x50] ss:$8 sps:$4 sm:$0xff]  }
  0x3b   : > { %869 = vmatprep.subr.bf16.mxu0 %v3322_v51  ;;  %v593_v51 = vld [vmem:[#allocation2 + $0x70] sm:$0xff] }
  0x3c   : > { %3168 = vmatpush3.bf16.msra.mxu1 %v3345_v56  ;;  %v3386_v56 = vld [vmem:[%s4982_s8 + $0x44] ss:$8 sps:$4 sm:$0xff]  }
  0x3d   : > { %3169 = vmatprep.subr.bf16.mxu1 %v3349_v61 }
  0x3e   : > { %870 = vmatpush1.bf16.msra.mxu0 %v3324_v53  ;;  %v602_v53 = vpack.c.bf16 %v594_v52, %v593_v51 }
  0x3f   : > { %871 = vmatprep.subr.bf16.mxu0 %v3326_v54  ;;  %v3383_v54 = vld [vmem:[%s4982_s8 + $0x34] ss:$8 sps:$4 sm:$0xff]  }
  0x40   : > { %3170 = vmatpush3.bf16.msra.mxu1 %v3349_v61  ;;  %v3392_v61 = vld [vmem:[%s4982_s8 + $0x64] ss:$8 sps:$4 sm:$0xff]  }
  0x41   : > { %3187 = vmatprep.subr.bf16.mxu1 %v3355_v2 }
  0x42   : > { %872 = vmatpush1.bf16.msra.mxu0 %v3328_v57  ;;  %v3384_v57 = vld [vmem:[%s4982_s8 + $0x40] ss:$8 sps:$4 sm:$0xff]  }
  0x43   : > { %873 = vmatprep.subr.bf16.mxu0 %v3330_v58  ;;  %3172 = vmatmul.mubr.bf16.vlgmr.msra.gmra.mrb[0].mxu1 %v4127_v4  ;;  %v3389_v58 = vld [vmem:[%s4982_s8 + $0x54] ss:$8 sps:$4 sm:$0xff]  }
  0x44   : > { %3188 = vmatpush3.bf16.msra.mxu1 %v3355_v2  ;;  %3175 = vmatprep.mubr.bf16.mxu1 %v4130_v5  ;;  %v3396_v2 = vld [vmem:[%s4982_s8 + $0x80] ss:$8 sps:$4 sm:$0xff]  }
  0x45   : > { %3189 = vmatprep.subr.bf16.mxu1 %v3359_v6 }
  0x46   : > { %874 = vmatpush1.bf16.msra.mxu0 %v3332_v63  ;;  %v3395_v63 = vld [vmem:[%s4982_s8 + $0x74] ss:$8 sps:$4 sm:$0xff]  }
  0x47   : > { %875 = vmatprep.subr.bf16.mxu0 %v3334_v0  ;;  %v3393_v0 = vld [vmem:[%s4982_s8 + $0x70] ss:$8 sps:$4 sm:$0xff]  }
  0x48   : > { %3190 = vmatpush3.bf16.msra.mxu1 %v3359_v6  ;;  %v3405_v6 = vld [vmem:[%s4983_s9] sm:$0xff]  }
  0x49   : > { %3191 = vmatprep.subr.bf16.mxu1 %v3362_v9 }
  0x4a   : > { %876 = vmatpush1.bf16.msra.mxu0 %v3336_v1  ;;  %v3398_v1 = vld [vmem:[%s4982_s8 + $0x84] ss:$8 sps:$4 sm:$0xff]  }
  0x4b   : > { %877 = vmatprep.subr.bf16.mxu0 %v3338_v3  ;;  %3176 = vmatmul.mubr.bf16.gmra.mrb[4].mxu1 %v4153_v12  ;;  %v3401_v3 = vld [vmem:[%s4982_s8 + $0x94] ss:$8 sps:$4 sm:$0xff]  }
  0x4c   : > { %3192 = vmatpush3.bf16.msra.mxu1 %v3362_v9  ;;  %3179 = vmatprep.mubr.bf16.mxu1 %v4156_v13  ;;  %v3409_v9 = vld [vmem:[%s4983_s9 + $0x8] sm:$0xff]  }
  0x4d   : > { %3193 = vmatprep.subr.bf16.mxu1 %v3363_v14 }
  0x4e   : > { %878 = vmatpush1.bf16.msra.mxu0 %v3340_v7  ;;  %v3402_v7 = vld [vmem:[%s4982_s8 + $0xa0] ss:$8 sps:$4 sm:$0xff]  }
  0x4f   : > { %879 = vmatprep.subr.bf16.mxu0 %v3342_v8  ;;  %v3408_v8 = vld [vmem:[%s4982_s8 + $0xb4] ss:$8 sps:$4 sm:$0xff]  }
  0x50   : > { %3194 = vmatpush3.bf16.msra.mxu1 %v3363_v14  ;;  %v3416_v14 = vld [vmem:[%s4982_s8 + $0xd4] ss:$8 sps:$4 sm:$0xff]  }
  0x51   : > { %3195 = vmatprep.subr.bf16.mxu1 %v3366_v20 }
  0x52   : > { %880 = vmatpush1.bf16.msra.mxu0 %v3344_v10  ;;  %v3406_v10 = vld [vmem:[%s4982_s8 + $0xb0] ss:$8 sps:$4 sm:$0xff]  }
  0x53   : > { %881 = vmatprep.subr.bf16.mxu0 %v3346_v11  ;;  %3180 = vmatmul.mubr.bf16.gmra.mrb[8].mxu1 %v4176_v19  ;;  %v3412_v11 = vld [vmem:[%s4982_s8 + $0xc4] ss:$8 sps:$4 sm:$0xff]  }
  0x54   : > { %3196 = vmatpush3.bf16.msra.mxu1 %v3366_v20  ;;  %3183 = vmatprep.mubr.bf16.mxu1 %v4182_v21  ;;  %v3424_v20 = vld [vmem:[%s4982_s8 + $0xf4] ss:$8 sps:$4 sm:$0xff]  }
  0x55   : > { %3197 = vmatprep.subr.bf16.mxu1 %v3367_v22 }
  0x56   : > { %882 = vmatpush1.bf16.msra.mxu0 %v3348_v15  ;;  %v3417_v15 = vld [vmem:[%s4983_s9 + $0x18] sm:$0xff]  }
  0x57   : > { %883 = vmatprep.subr.bf16.mxu0 %v3350_v16  ;;  %v3414_v16 = vld [vmem:[%s4982_s8 + $0xd0] ss:$8 sps:$4 sm:$0xff]  }
  0x58   : > { %3198 = vmatpush3.bf16.msra.mxu1 %v3367_v22  ;;  %v3422_v22 = vld [vmem:[%s4982_s8 + $0xf0] ss:$8 sps:$4 sm:$0xff]  }
  0x59   : > { %3199 = vmatprep.subr.bf16.mxu1 %v3370_v27 }
  0x5a   : > { %884 = vmatpush1.bf16.msra.mxu0 %v3353_v17  ;;  %v3420_v17 = vld [vmem:[%s4982_s8 + $0xe4] ss:$8 sps:$4 sm:$0xff]  }
  0x5b   : > { %885 = vmatprep.subr.bf16.mxu0 %v3356_v18  ;;  %3184 = vmatmul.mubr.bf16.gmra.mrb[12].mxu1 %v3369_v29  ;;  %v3421_v18 = vld [vmem:[%s4983_s9 + $0x20] sm:$0xff]  }
  0x5c   : > { %3200 = vmatpush3.bf16.msra.mxu1 %v3370_v27  ;;  %3203 = vmatprep.mubr.bf16.mxu1 %v4108_v62  ;;  %v3390_v62 = vld [vmem:[%s4982_s8 + $0x60] ss:$8 sps:$4 sm:$0xff]  }
  0x5d   : > { %3201 = vmatprep.subr.bf16.mxu1 %v3371_v32 }
  0x5e   : > { %886 = vmatpush1.bf16.msra.mxu0 %v3358_v23  ;;  %v1649_v23 = vld [vmem:[#allocation2 + $0x80] sm:$0xff] }
  0x5f   : > { %1877 = vmatprep.subr.bf16.mxu0 %v3374_v26  ;;  %v1650_v26 = vld [vmem:[#allocation2 + $0x88] sm:$0xff] }
  0x60   : > { %3202 = vmatpush3.bf16.msra.mxu1 %v3371_v32  ;;  %v4336_v27 = vpack.c.bf16 %v1650_v26, %v1649_v23 }
  0x61   : > { %888 = vmatmul.mubr.bf16.vlgmr.msra.gmra.mrb[0].mxu0 %v4090_v55  ;;  %v3381_v55 = vld [vmem:[%s4982_s8 + $0x30] ss:$8 sps:$4 sm:$0xff]   ;;  %3219 = vmatprep.subr.bf16.mxu1 %v3405_v6 }
  0x62   : > { %897 = vmatprep.mubr.bf16.mxu0 %v596_v31  ;;  %1878 = vmatpush1.bf16.msra.mxu0 %v3372_v28  ;;  %4995 = vst [vmem:[#allocation6_spill] sm:$0xff] %v4336_v27  ;;  %v3426_v28 = vld [vmem:[%s4983_s9 + $0x30] sm:$0xff]  }
  0x63   : > { %1879 = vmatprep.subr.bf16.mxu0 %v3377_v30  ;;  %3204 = vmatmul.mubr.bf16.vlgmr.msra.gmra.mrb[16].mxu1 %v596_v31  ;;  %v4348_v30 = vld [vmem:[%s4984_s10] sm:$0xff]  }
  0x64   : > { %3207 = vmatprep.mubr.bf16.mxu1 %v597_v38  ;;  %3220 = vmatpush3.bf16.msra.mxu1 %v3405_v6 }
  0x65   : > { %3221 = vmatprep.subr.bf16.mxu1 %v3409_v9 }
  0x66   : > { %1880 = vmatpush1.bf16.msra.mxu0 %v3375_v33 }
  0x67   : > { %1881 = vmatprep.subr.bf16.mxu0 %v3380_v36  ;;  %v685_v36 = vlaneseq }
  0x68   : > { %3222 = vmatpush3.bf16.msra.mxu1 %v3409_v9 }
  0x69   : > { %898 = vmatmul.mubr.bf16.gmra.mrb[4].mxu0 %v4127_v4  ;;  %v3399_v4 = vld [vmem:[%s4982_s8 + $0x90] ss:$8 sps:$4 sm:$0xff]   ;;  %v4365_v42 = vshrl.u32 %v685_v36, 7 }
  0x6a   : > { %907 = vmatprep.mubr.bf16.mxu0 %v597_v38  ;;  %1882 = vmatpush1.bf16.msra.mxu0 %v3378_v37 }
  0x6b   : > { %3208 = vmatmul.mubr.bf16.gmra.mrb[20].mxu1 %v598_v41  ;;  %1883 = vmatprep.subr.bf16.mxu0 %v3383_v54  ;;  %4996 = vst [vmem:[#allocation7_spill] sm:$0xff] %v4365_v42  ;;  %v4990_v46 = vsub.s32 1, %v4365_v42 }
  0x6c   : > { %3211 = vmatprep.mubr.bf16.mxu1 %v599_v44 }
  0x6d   : > { %v4388_v52 = vrot.slane %v683_v45, %v4990_v46 }
  0x6e   : > { %1884 = vmatpush1.bf16.msra.mxu0 %v3381_v55 }
  0x6f   : > { %1885 = vmatprep.subr.bf16.mxu0 %v3386_v56  ;;  %v4394_v56 = vld [vmem:[%s4980_s6] ss:$0 sm:$0xff] }
  0x71   : > { %908 = vmatmul.mubr.bf16.gmra.mrb[8].mxu0 %v4130_v5  ;;  %v3404_v5 = vld [vmem:[%s4982_s8 + $0xa4] ss:$8 sps:$4 sm:$0xff]  }
  0x72   : > { %917 = vmatprep.mubr.bf16.mxu0 %v598_v41  ;;  %1886 = vmatpush1.bf16.msra.mxu0 %v3384_v57 }
  0x73   : > { %3212 = vmatmul.mubr.bf16.gmra.mrb[24].mxu1 %v600_v49  ;;  %1887 = vmatprep.subr.bf16.mxu0 %v3389_v58 }
  0x74   : > { %3215 = vmatprep.mubr.bf16.mxu1 %v601_v50 }
  0x76   : > { %1888 = vmatpush1.bf16.msra.mxu0 %v3387_v60 }
  0x77   : > { %1889 = vmatprep.subr.bf16.mxu0 %v3392_v61 }
  0x79   : > { %918 = vmatmul.mubr.bf16.gmra.mrb[12].mxu0 %v4153_v12  ;;  %v3413_v12 = vld [vmem:[%s4983_s9 + $0x10] sm:$0xff]  }
  0x7a   : > { %927 = vmatprep.mubr.bf16.mxu0 %v599_v44  ;;  %1890 = vmatpush1.bf16.msra.mxu0 %v3390_v62  ;;  %v4991_v44 = vsub.s32 0, %v4365_v42 }
  0x7b   : > { %3216 = vmatmul.mubr.bf16.gmra.mrb[28].mxu1 %v602_v53  ;;  %1891 = vmatprep.subr.bf16.mxu0 %v3395_v63 }
  0x7c   : > { %3223 = vmatprep.subr.bf16.mxu1 %v3413_v12 }
  0x7d   : > { %3224 = vmatpush3.bf16.msra.mxu1 %v3413_v12 }
  0x7e   : > { %1892 = vmatpush1.bf16.msra.mxu0 %v3393_v0  ;;  %3225 = vmatprep.subr.bf16.mxu1 %v3417_v15 }
  0x7f   : > { %1893 = vmatprep.subr.bf16.mxu0 %v3398_v1 }
  0x81   : > { %928 = vmatmul.mubr.bf16.gmra.mrb[16].mxu0 %v4156_v13  ;;  %v3410_v13 = vld [vmem:[%s4982_s8 + $0xc0] ss:$8 sps:$4 sm:$0xff]   ;;  %3226 = vmatpush3.bf16.msra.mxu1 %v3417_v15 }
  0x82   : > { %937 = vmatprep.mubr.bf16.mxu0 %v600_v49  ;;  %1894 = vmatpush1.bf16.msra.mxu0 %v3396_v2 }
  0x83   : > { %1895 = vmatprep.subr.bf16.mxu0 %v3401_v3  ;;  %3227 = vmatprep.subr.bf16.mxu1 %v3421_v18 }
  0x85   : > { %3228 = vmatpush3.bf16.msra.mxu1 %v3421_v18 }
  0x86   : > { %1896 = vmatpush1.bf16.msra.mxu0 %v3399_v4 }
  0x87   : > { %1897 = vmatprep.subr.bf16.mxu0 %v3404_v5 }
  0x89   : > { %938 = vmatmul.mubr.bf16.gmra.mrb[20].mxu0 %v4176_v19  ;;  %v3418_v19 = vld [vmem:[%s4982_s8 + $0xe0] ss:$8 sps:$4 sm:$0xff]  }
  0x8a   : > { %947 = vmatprep.mubr.bf16.mxu0 %v601_v50  ;;  %1898 = vmatpush1.bf16.msra.mxu0 %v3402_v7  ;;  %v4382_v50 = vrot.slane %v683_v45, %v4991_v44 }
  0x8b   : > { %1899 = vmatprep.subr.bf16.mxu0 %v3408_v8 }
  0x8e   : > { %1900 = vmatpush1.bf16.msra.mxu0 %v3406_v10 }
  0x8f   : > { %1901 = vmatprep.subr.bf16.mxu0 %v3412_v11 }
  0x91   : > { %948 = vmatmul.mubr.bf16.gmra.mrb[24].mxu0 %v4182_v21  ;;  %v3425_v21 = vld [vmem:[%s4983_s9 + $0x28] sm:$0xff]  }
  0x92   : > { %957 = vmatprep.mubr.bf16.mxu0 %v602_v53  ;;  %1902 = vmatpush1.bf16.msra.mxu0 %v3410_v13 }
  0x93   : > { %1903 = vmatprep.subr.bf16.mxu0 %v3416_v14  ;;  %3229 = vmatprep.subr.bf16.mxu1 %v3425_v21 }
  0x94   : > { %3230 = vmatpush3.bf16.msra.mxu1 %v3425_v21 }
  0x95   : > { %3231 = vmatprep.subr.bf16.mxu1 %v3426_v28 }
  0x96   : > { %1904 = vmatpush1.bf16.msra.mxu0 %v3414_v16 }
  0x97   : > { %1905 = vmatprep.subr.bf16.mxu0 %v3420_v17 }
  0x98   : > { %3232 = vmatpush3.bf16.msra.mxu1 %v3426_v28 }
  0x99   : > { %958 = vmatmul.mubr.bf16.gmra.mrb[28].mxu0 %v3369_v29  ;;  %v3427_v29 = vld [vmem:[%s4983_s9 + $0x38] sm:$0xff]  }
  0x9a   : > { %1906 = vmatpush1.bf16.msra.mxu0 %v3418_v19  ;;  %1909 = vmatprep.mubr.bf16.mxu0 %v4336_v27 }
  0x9b   : > { %1907 = vmatprep.subr.bf16.mxu0 %v3424_v20  ;;  %3233 = vmatprep.subr.bf16.mxu1 %v3427_v29 }
  0x9c   : > { %3234 = vmatpush3.bf16.msra.mxu1 %v3427_v29 }
  0x9d   : > { %3251 = vmatprep.subr.bf16.mxu1 %v4348_v30 }
  0x9e   : > { %1908 = vmatpush1.bf16.msra.mxu0 %v3422_v22 }
 0x116   : > { %v4351_v31 = vpop.f32.mrb[0].mxu1 }
 0x117   : > { %v4353_v32 = vpop.f32.mrb[1].mxu1 }
 0x118   : > { %v4355_v33 = vpop.f32.mrb[2].mxu1 }
 0x119   : > { %v4357_v35 = vpop.f32.mrb[3].mxu1 }
 0x11e   : > { %v4359_v37 = vpop.f32.mrb[4].mxu1 }
 0x11f   : > { %v4361_v38 = vpop.f32.mrb[5].mxu1 }
 0x120   : > { %v4363_v41 = vpop.f32.mrb[6].mxu1 }
 0x121   : > { %v4367_v43 = vpop.f32.mrb[7].mxu1 }
 0x126   : > { %v4374_v47 = vpop.f32.mrb[8].mxu1 }
 0x127   : > { %v4376_v48 = vpop.f32.mrb[9].mxu1 }
 0x128   : > { %v4378_v49 = vpop.f32.mrb[10].mxu1 }
 0x129   : > { %v4384_v51 = vpop.f32.mrb[11].mxu1 }
 0x12e   : > { %v3185_v60 = vpop.f32.mrb[12].mxu1 }
 0x12f   : > { %v4399_v0 = vadd.f32 %v3185_v60, %v4394_v56  ;;  %v4401_v1 = vpop.f32.mrb[13].mxu1 }
 0x130   : > { %v3186_v4 = vpop.f32.mrb[14].mxu1 }
 0x131   : > { %v4405_v6 = vadd.f32 %v3186_v4, %v4394_v56  ;;  %v4407_v7 = vpop.f32.mrb[15].mxu1 }
 0x133   : > { %4997 = vst [vmem:[#allocation8_spill] sm:$0xff] %v4405_v6 }
 0x134   : > { %v889_v53 = vpop.f32.mrb[0].mxu0 }
 0x135   : > { %v890_v54 = vadd.f32 %v889_v53, %v4382_v50  ;;  %v891_v55 = vpop.f32.mrb[1].mxu0 }
 0x136   : > { %v892_v57 = vadd.f32 %v891_v55, %v4388_v52  ;;  %v893_v58 = vpop.f32.mrb[2].mxu0  ;;  %v4411_v14 = vpop.f32.mrb[16].mxu1 }
 0x137   : > { %v2874_v61 = vmul.f32 -1.442695, %v890_v54  ;;  %v894_v62 = vadd.f32 %v893_v58, %v4382_v50  ;;  %v895_v63 = vpop.f32.mrb[3].mxu0  ;;  %v1433_v18 = vpop.f32.mrb[17].mxu1 }
 0x138   : > { %v2875_v2 = vmul.f32 -1.442695, %v892_v57  ;;  %v896_v3 = vadd.f32 %v895_v63, %v4388_v52  ;;  %v4415_v21 = vpop.f32.mrb[18].mxu1 }
 0x139   : > { %3436 = vpow2.f32 %v2874_v61  ;;  %v2876_v5 = vmul.f32 -1.442695, %v894_v62  ;;  %v1436_v23 = vpop.f32.mrb[19].mxu1 }
 0x13a   : > { %3438 = vpow2.f32 %v2875_v2  ;;  %v2877_v8 = vmul.f32 -1.442695, %v896_v3 }
 0x13b   : > { %3440 = vpow2.f32 %v2876_v5 }
 0x13c   : > { %v899_v9 = vpop.f32.mrb[4].mxu0  ;;  %3442 = vpow2.f32 %v2877_v8 }
 0x13d   : > { %v900_v10 = vadd.f32 %v899_v9, %v4382_v50  ;;  %v901_v11 = vpop.f32.mrb[5].mxu0 }
 0x13e   : > { %v902_v12 = vadd.f32 %v901_v11, %v4388_v52  ;;  %v903_v13 = vpop.f32.mrb[6].mxu0  ;;  %v4419_v62 = vpop.f32.mrb[20].mxu1 }
 0x13f   : > { %v2878_v15 = vmul.f32 -1.442695, %v900_v10  ;;  %v904_v16 = vadd.f32 %v903_v13, %v4382_v50  ;;  %v905_v17 = vpop.f32.mrb[7].mxu0  ;;  %v4422_v4 = vpop.f32.mrb[21].mxu1 }
 0x140   : > { %v2879_v19 = vmul.f32 -1.442695, %v902_v12  ;;  %v906_v20 = vadd.f32 %v905_v17, %v4388_v52  ;;  %v4425_v10 = vpop.f32.mrb[22].mxu1 }
 0x141   : > { %3444 = vpow2.f32 %v2878_v15  ;;  %v2880_v22 = vmul.f32 -1.442695, %v904_v16  ;;  %v4427_v12 = vpop.f32.mrb[23].mxu1  ;;  %v4432_v15 = vld [vmem:[%s4981_s7] ss:$0 sm:$0xff] }
 0x142   : > { %3446 = vpow2.f32 %v2879_v19  ;;  %v2881_v26 = vmul.f32 -1.442695, %v906_v20 }
 0x143   : > { %v3437_v28 = vpop.eup %3436  ;;  %3448 = vpow2.f32 %v2880_v22 }
 0x144   : > { %v3439_v29 = vpop.eup %3438  ;;  %v1064_v36 = vadd.f32 1.0, %v3437_v28  ;;  %v909_v45 = vpop.f32.mrb[8].mxu0  ;;  %3450 = vpow2.f32 %v2881_v26 }
 0x145   : > { %v3441_v53 = vpop.eup %3440  ;;  %v1065_v54 = vadd.f32 1.0, %v3439_v29  ;;  %v910_v55 = vadd.f32 %v909_v45, %v4382_v50  ;;  %v911_v57 = vpop.f32.mrb[9].mxu0  ;;  %v1434_v45 = vadd.f32 %v4432_v15, %v1433_v18 }
 0x146   : > { %3452 = vrcp.f32 %v1064_v36  ;;  %v1066_v58 = vadd.f32 1.0, %v3441_v53  ;;  %v912_v60 = vadd.f32 %v911_v57, %v4388_v52  ;;  %v913_v61 = vpop.f32.mrb[10].mxu0  ;;  %v3443_v5 = vpop.eup %3442 }
 0x147   : > { %v2882_v63 = vmul.f32 -1.442695, %v910_v55  ;;  %v914_v2 = vadd.f32 %v913_v61, %v4382_v50  ;;  %v915_v3 = vpop.f32.mrb[11].mxu0  ;;  %v1067_v17 = vadd.f32 1.0, %v3443_v5  ;;  %v4437_v57 = vpop.f32.mrb[24].mxu1 }
 0x148   : > { %3454 = vrcp.f32 %v1066_v58  ;;  %v2883_v8 = vmul.f32 -1.442695, %v912_v60  ;;  %v916_v9 = vadd.f32 %v915_v3, %v4388_v52  ;;  %v4441_v3 = vpop.f32.mrb[25].mxu1 }
 0x149   : > { %3456 = vrcp.f32 %v1065_v54  ;;  %v2884_v11 = vmul.f32 -1.442695, %v914_v2  ;;  %v1437_v2 = vadd.f32 %v4432_v15, %v1436_v23 }
 0x14a   : > { %3458 = vpow2.f32 %v2882_v63  ;;  %v2885_v13 = vmul.f32 -1.442695, %v916_v9  ;;  %v4444_v9 = vpop.f32.mrb[26].mxu1 }
 0x14b   : > { %v3445_v16 = vpop.eup %3444  ;;  %3460 = vpow2.f32 %v2883_v8 }
 0x14c   : > { %v3447_v19 = vpop.eup %3446  ;;  %v1068_v20 = vadd.f32 1.0, %v3445_v16  ;;  %3462 = vpow2.f32 %v2884_v11  ;;  %v919_v22 = vpop.f32.mrb[12].mxu0  ;;  %v1282_v11 = vadd.f32 %v4394_v56, %v4353_v32 }
 0x14d   : > { %v3449_v26 = vpop.eup %3448  ;;  %v1069_v28 = vadd.f32 1.0, %v3447_v19  ;;  %3464 = vpow2.f32 %v2885_v13  ;;  %v920_v29 = vadd.f32 %v919_v22, %v4382_v50  ;;  %v921_v36 = vpop.f32.mrb[13].mxu0  ;;  %v1285_v22 = vadd.f32 %v4394_v56, %v4357_v35 }
 0x14e   : > { %3466 = vrcp.f32 %v1068_v20  ;;  %v1070_v53 = vadd.f32 1.0, %v3449_v26  ;;  %v922_v54 = vadd.f32 %v921_v36, %v4388_v52  ;;  %v923_v55 = vpop.f32.mrb[14].mxu0  ;;  %v3451_v58 = vpop.eup %3450 }
 0x14f   : > { %3468 = vrcp.f32 %v1067_v17  ;;  %v2886_v60 = vmul.f32 -1.442695, %v920_v29  ;;  %v924_v61 = vadd.f32 %v923_v55, %v4382_v50  ;;  %v925_v63 = vpop.f32.mrb[15].mxu0  ;;  %v4448_v17 = vpop.f32.mrb[27].mxu1  ;;  %v1071_v20 = vadd.f32 1.0, %v3451_v58 }
 0x150   : > { %v3453_v5 = vpop.eup %3452  ;;  %3470 = vrcp.f32 %v1070_v53  ;;  %v2887_v18 = vmul.f32 -1.442695, %v922_v54  ;;  %v926_v8 = vadd.f32 %v925_v63, %v4388_v52  ;;  %v1652_v54 = vld [vmem:[#allocation2 + $0x98] sm:$0xff] }
 0x151   : > { %3472 = vrcp.f32 %v1069_v28  ;;  %v2888_v13 = vmul.f32 -1.442695, %v924_v61  ;;  %v1496_v16 = vmul.f32 %v3453_v5, %v1434_v45  ;;  %v1651_v28 = vld [vmem:[#allocation2 + $0x90] sm:$0xff] }
 0x152   : > { %v3455_v19 = vpop.eup %3454  ;;  %3474 = vpow2.f32 %v2886_v60  ;;  %v2889_v53 = vmul.f32 -1.442695, %v926_v8  ;;  %v1442_v8 = vadd.f32 %v4411_v14, %v4432_v15  ;;  %v1445_v14 = vadd.f32 %v4415_v21, %v4432_v15 }
 0x153   : > { %v4450_v23 = vpop.eup %3456  ;;  %3476 = vpow2.f32 %v2887_v18  ;;  %v1512_v26 = vadd.f32 %v1496_v16, %v1282_v11  ;;  %v1497_v29 = vmul.f32 %v3455_v19, %v1437_v2  ;;  %v3217_v18 = vpop.f32.mrb[28].mxu1  ;;  %v4457_v16 = vpack.c.bf16 %v1652_v54, %v1651_v28 }
 0x154   : > { %v3459_v36 = vpop.eup %3458  ;;  %3478 = vpow2.f32 %v2888_v13  ;;  %v929_v32 = vpop.f32.mrb[16].mxu0  ;;  %v4469_v28 = vadd.f32 %v3217_v18, %v4432_v15  ;;  %v1453_v21 = vadd.f32 %v4432_v15, %v4427_v12  ;;  %v1576_v12 = vmul.f32 %v4450_v23, %v4102_v59 }
 0x155   : > { %v3461_v45 = vpop.eup %3460  ;;  %v1072_v55 = vadd.f32 1.0, %v3459_v36  ;;  %3480 = vtanh.f32 %v1512_v26  ;;  %v1513_v61 = vadd.f32 %v1497_v29, %v1285_v22  ;;  %v930_v58 = vadd.f32 %v929_v32, %v4382_v50  ;;  %v931_v60 = vpop.f32.mrb[17].mxu0 }
 0x156   : > { %v3463_v63 = vpop.eup %3462  ;;  %3482 = vrcp.f32 %v1071_v20  ;;  %v1073_v5 = vadd.f32 1.0, %v3461_v45  ;;  %v933_v35 = vpop.f32.mrb[18].mxu0  ;;  %v1290_v26 = vadd.f32 %v4351_v31, %v4394_v56  ;;  %v932_v29 = vadd.f32 %v931_v60, %v4388_v52 }
 0x157   : > { %v3465_v11 = vpop.eup %3464  ;;  %3484 = vrcp.f32 %v1072_v55  ;;  %v1074_v2 = vadd.f32 1.0, %v3463_v63  ;;  %v935_v13 = vpop.f32.mrb[19].mxu0  ;;  %v2890_v20 = vmul.f32 -1.442695, %v930_v58  ;;  %v1293_v31 = vadd.f32 %v4355_v33, %v4394_v56 }
 0x158   : > { %v4459_v19 = vpop.f32.mrb[29].mxu1  ;;  %v3467_v22 = vpop.eup %3466  ;;  %3486 = vpow2.f32 %v2889_v53  ;;  %v1075_v53 = vadd.f32 1.0, %v3465_v11  ;;  %v1450_v58 = vadd.f32 %v4432_v15, %v4422_v4  ;;  %v1298_v59 = vadd.f32 %v4394_v56, %v4361_v38 }
 0x159   : > { %v3218_v36 = vpop.f32.mrb[30].mxu1  ;;  %v4464_v32 = vpop.eup %3468  ;;  %3488 = vrcp.f32 %v1074_v2  ;;  %v1498_v45 = vmul.f32 %v3467_v22, %v1442_v8  ;;  %v2891_v8 = vmul.f32 -1.442695, %v932_v29  ;;  %v934_v22 = vadd.f32 %v933_v35, %v4382_v50 }
 0x15a   : > { %v4471_v54 = vpop.f32.mrb[31].mxu1  ;;  %v3471_v55 = vpop.eup %3470  ;;  %3490 = vrcp.f32 %v1073_v5  ;;  %v4483_v33 = vadd.f32 %v3218_v36, %v4432_v15 }
 0x15b   : > { %v4477_v60 = vpop.eup %3472  ;;  %v1514_v63 = vadd.f32 %v1498_v45, %v1290_v26  ;;  %v1499_v2 = vmul.f32 %v3471_v55, %v1445_v14  ;;  %3492 = vtanh.f32 %v1513_v61  ;;  %v936_v26 = vadd.f32 %v935_v13, %v4388_v52 }
 0x15c   : > { %v3475_v18 = vpop.eup %3474  ;;  %3494 = vpow2.f32 %v2890_v20  ;;  %v939_v46 = vpop.f32.mrb[20].mxu0  ;;  %4998 = vst [vmem:[#allocation9_spill] sm:$0xff] %v4483_v33  ;;  %v1544_v14 = vsub.f32 1.0, %v4450_v23 }
 0x15d   : > { %v3477_v5 = vpop.eup %3476  ;;  %v1076_v11 = vadd.f32 1.0, %v3475_v18  ;;  %3496 = vtanh.f32 %v1514_v63  ;;  %v1515_v4 = vadd.f32 %v1499_v2, %v1293_v31  ;;  %v941_v45 = vpop.f32.mrb[21].mxu0  ;;  %v940_v35 = vadd.f32 %v939_v46, %v4382_v50 }
 0x15e   : > { %v3479_v61 = vpop.eup %3478  ;;  %3498 = vrcp.f32 %v1075_v53  ;;  %v943_v20 = vpop.f32.mrb[22].mxu0  ;;  %v1077_v36 = vadd.f32 1.0, %v3477_v5  ;;  %v942_v63 = vadd.f32 %v941_v45, %v4388_v52  ;;  %v2892_v18 = vmul.f32 -1.442695, %v934_v22  ;;  %v1653_v53 = vld [vmem:[#allocation2 + $0xa0] sm:$0xff]  ;;  %v1656_v22 = vld [vmem:[#allocation2 + $0xb8] sm:$0xff] }
 0x15f   : > { %v3481_v29 = vpop.eup %3480  ;;  %3500 = vrcp.f32 %v1076_v11  ;;  %v1078_v55 = vadd.f32 1.0, %v3479_v61  ;;  %v945_v31 = vpop.f32.mrb[23].mxu0  ;;  %v944_v44 = vadd.f32 %v943_v20, %v4382_v50  ;;  %v1301_v46 = vadd.f32 %v4394_v56, %v4367_v43 }
 0x160   : > { %v4491_v2 = vpop.eup %3482  ;;  %v1560_v13 = vmul.f32 %v3481_v29, %v1544_v14  ;;  %3502 = vpow2.f32 %v2891_v8  ;;  %v2893_v23 = vmul.f32 -1.442695, %v936_v26  ;;  %v2894_v11 = vmul.f32 -1.442695, %v940_v35  ;;  %v1654_v14 = vld [vmem:[#allocation2 + $0xa8] sm:$0xff]  ;;  %v1655_v8 = vld [vmem:[#allocation2 + $0xb0] sm:$0xff] }
 0x161   : > { %v3485_v42 = vpop.eup %3484  ;;  %3504 = vrcp.f32 %v1078_v55  ;;  %v1545_v20 = vsub.f32 1.0, %v4464_v32  ;;  %v2895_v27 = vmul.f32 -1.442695, %v942_v63  ;;  %v946_v38 = vadd.f32 %v945_v31, %v4388_v52 }
 0x162   : > { %v3487_v5 = vpop.eup %3486  ;;  %3506 = vtanh.f32 %v1515_v4  ;;  %v1500_v45 = vmul.f32 %v3485_v42, %v1450_v58  ;;  %v1592_v61 = vadd.f32 %v1576_v12, %v1560_v13  ;;  %v2896_v43 = vmul.f32 -1.442695, %v944_v44  ;;  %v3756_v58 = vld [vmem:[#allocation2 + $0x8] sm:$0xff] }
 0x163   : > { %v3489_v29 = vpop.eup %3488  ;;  %3508 = vrcp.f32 %v1077_v36  ;;  %v1577_v12 = vmul.f32 %v3756_v58, %v4464_v32  ;;  %v4503_v13 = vpack.c.bf16 %v1654_v14, %v1653_v53  ;;  %v4505_v36 = vpack.c.bf16 %v1656_v22, %v1655_v8 }
 0x164   : > { %v4500_v6 = vpop.eup %3490  ;;  %3510 = vpow2.f32 %v2892_v18  ;;  %v1516_v26 = vadd.f32 %v1500_v45, %v1298_v59  ;;  %v1501_v55 = vmul.f32 %v3489_v29, %v1453_v21  ;;  %v949_v4 = vpop.f32.mrb[24].mxu0  ;;  %1608 = vst [vmem:[#allocation2] sm:$0xff] %v1592_v61  ;;  %1624 = vst [vmem:[#allocation3] sm:$0xff] %v1592_v61  ;;  %v1546_v21 = vsub.f32 1.0, %v4477_v60 }
 0x165   : > { %v3493_v42 = vpop.eup %3492  ;;  %3512 = vpow2.f32 %v2893_v23  ;;  %v951_v35 = vpop.f32.mrb[25].mxu0  ;;  %v1079_v45 = vadd.f32 1.0, %v3487_v5  ;;  %v950_v33 = vadd.f32 %v949_v4, %v4382_v50  ;;  %v1458_v53 = vadd.f32 %v4419_v62, %v4432_v15 }
 0x166   : > { %v3495_v63 = vpop.eup %3494  ;;  %v1561_v31 = vmul.f32 %v3493_v42, %v1545_v20  ;;  %3514 = vpow2.f32 %v2894_v11  ;;  %v1517_v18 = vadd.f32 %v1501_v55, %v1301_v46  ;;  %v953_v44 = vpop.f32.mrb[26].mxu0  ;;  %v2897_v14 = vmul.f32 -1.442695, %v946_v38 }
 0x167   : > { %v3497_v59 = vpop.eup %3496  ;;  %v1080_v29 = vadd.f32 1.0, %v3495_v63  ;;  %3516 = vpow2.f32 %v2895_v27  ;;  %v4509_v32 = vpop.f32.mrb[27].mxu0  ;;  %v1306_v8 = vadd.f32 %v4359_v37, %v4394_v56  ;;  %v1578_v27 = vmul.f32 %v4477_v60, %v4190_v24 }
 0x168   : > { %v4511_v23 = vpop.eup %3498  ;;  %3518 = vpow2.f32 %v2896_v43  ;;  %v1593_v11 = vadd.f32 %v1577_v12, %v1561_v31  ;;  %v1562_v5 = vmul.f32 %v3497_v59, %v1546_v21  ;;  %v1461_v55 = vadd.f32 %v4425_v10, %v4432_v15 }
 0x169   : > { %v3501_v46 = vpop.eup %3500  ;;  %3520 = vrcp.f32 %v1080_v29  ;;  %v2898_v43 = vmul.f32 -1.442695, %v950_v33  ;;  %v1547_v4 = vsub.f32 1.0, %v4491_v2  ;;  %v1309_v58 = vadd.f32 %v4363_v41, %v4394_v56 }
 0x16a   : > { %v3503_v22 = vpop.eup %3502  ;;  %v1502_v20 = vmul.f32 %v3501_v46, %v1458_v53  ;;  %3522 = vtanh.f32 %v1516_v26  ;;  %1609 = vst [vmem:[#allocation2 + $0x8] sm:$0xff] %v1593_v11  ;;  %1625 = vst [vmem:[#allocation3 + $0x8] sm:$0xff] %v1593_v11  ;;  %v1640_v62 = vpack.c.bf16 %v1593_v11, %v1592_v61  ;;  %v1594_v37 = vadd.f32 %v1578_v27, %v1562_v5 }
 0x16b   : > { %v3505_v38 = vpop.eup %3504  ;;  %3524 = vrcp.f32 %v1079_v45  ;;  %v1579_v63 = vmul.f32 %v4491_v2, %v4192_v25  ;;  %v952_v21 = vadd.f32 %v951_v35, %v4388_v52  ;;  %v954_v53 = vadd.f32 %v953_v44, %v4382_v50 }
 0x16c   : > { %v3507_v42 = vpop.eup %3506  ;;  %v1518_v24 = vadd.f32 %v1502_v20, %v1306_v8  ;;  %3526 = vpow2.f32 %v2897_v14  ;;  %v1503_v60 = vmul.f32 %v3505_v38, %v1461_v55  ;;  %1910 = vmatmul.mubr.bf16.vlgmr.msra.gmra.mrb[32].mxu0 %v1640_v62  ;;  %3235 = vmatprep.mubr.bf16.mxu1 %v1640_v62  ;;  %v959_v26 = vpop.f32.mrb[28].mxu0  ;;  %1610 = vst [vmem:[#allocation2 + $0x10] sm:$0xff] %v1594_v37  ;;  %1626 = vst [vmem:[#allocation3 + $0x10] sm:$0xff] %v1594_v37 }
 0x16d   : > { %v4524_v10 = vpop.eup %3508  ;;  %3528 = vtanh.f32 %v1517_v18  ;;  %v960_v61 = vadd.f32 %v959_v26, %v4382_v50  ;;  %v961_v12 = vpop.f32.mrb[29].mxu0  ;;  %1919 = vmatprep.mubr.bf16.mxu0 %v4457_v16  ;;  %v1563_v33 = vmul.f32 %v3507_v42, %v1547_v4  ;;  %v1081_v2 = vadd.f32 1.0, %v3503_v22  ;;  %v3429_v4 = vld [vmem:[%s4984_s10 + $0x8] sm:$0xff]  }
 0x16e   : > { %v3511_v41 = vpop.eup %3510  ;;  %3530 = vtanh.f32 %v1518_v24  ;;  %v1519_v31 = vadd.f32 %v1503_v60, %v1309_v58  ;;  %v4532_v59 = vadd.f32 %v961_v12, %v4388_v52  ;;  %v963_v18 = vpop.f32.mrb[30].mxu0  ;;  %v1466_v46 = vadd.f32 %v4432_v15, %v4441_v3 }
 0x16f   : > { %v3513_v45 = vpop.eup %3512  ;;  %v1082_v29 = vadd.f32 1.0, %v3511_v41  ;;  %3532 = vpow2.f32 %v2898_v43  ;;  %v964_v14 = vadd.f32 %v963_v18, %v4382_v50  ;;  %v965_v11 = vpop.f32.mrb[31].mxu0  ;;  %v1314_v5 = vadd.f32 %v4394_v56, %v4376_v48  ;;  %v3757_v18 = vld [vmem:[#allocation2 + $0x28] sm:$0xff] }
 0x170   : > { %v3515_v25 = vpop.eup %3514  ;;  %3534 = vtanh.f32 %v1519_v31  ;;  %v4539_v35 = vadd.f32 %v965_v11, %v4388_v52  ;;  %v1595_v20 = vadd.f32 %v1579_v63, %v1563_v33  ;;  %v4545_v50 = vadd.f32 %v4394_v56, %v4384_v51 }
 0x171   : > { %v3517_v8 = vpop.eup %3516  ;;  %3536 = vrcp.f32 %v1082_v29  ;;  %v1084_v27 = vadd.f32 1.0, %v3515_v25  ;;  %v2899_v22 = vmul.f32 -1.442695, %v952_v21  ;;  %v956_v55 = vadd.f32 %v4509_v32, %v4388_v52 }
 0x172   : > { %v3519_v44 = vpop.eup %3518  ;;  %v1548_v3 = vsub.f32 1.0, %v4500_v6  ;;  %v2900_v43 = vmul.f32 -1.442695, %v954_v53  ;;  %1611 = vst [vmem:[#allocation2 + $0x18] sm:$0xff] %v1595_v20  ;;  %1627 = vst [vmem:[#allocation3 + $0x18] sm:$0xff] %v1595_v20  ;;  %v1641_v48 = vpack.c.bf16 %v1595_v20, %v1594_v37  ;;  %v1083_v51 = vadd.f32 1.0, %v3513_v45 }
 0x173   : > { %v3521_v62 = vpop.eup %3520  ;;  %3538 = vrcp.f32 %v1084_v27  ;;  %v1086_v38 = vadd.f32 1.0, %v3519_v44  ;;  %v1469_v52 = vadd.f32 %v4432_v15, %v4448_v17  ;;  %v1085_v24 = vadd.f32 1.0, %v3517_v8 }
 0x174   : > { %v3523_v42 = vpop.eup %3522  ;;  %3540 = vrcp.f32 %v1081_v2  ;;  %v1504_v58 = vmul.f32 %v3521_v62, %v1466_v46  ;;  %1920 = vmatmul.mubr.bf16.gmra.mrb[36].mxu0 %v1641_v48  ;;  %3236 = vmatmul.mubr.bf16.vlgmr.msra.gmra.mrb[32].mxu1 %v1641_v48  ;;  %v1580_v37 = vmul.f32 %v4500_v6, %v4218_v34  ;;  %v2902_v12 = vmul.f32 -1.442695, %v960_v61  ;;  %v3430_v34 = vld [vmem:[%s4984_s10 + $0x10] sm:$0xff]  }
 0x175   : > { %v3525_v32 = vpop.eup %3524  ;;  %3542 = vrcp.f32 %v1086_v38  ;;  %v1564_v60 = vmul.f32 %v3523_v42, %v1548_v3  ;;  %1929 = vmatprep.mubr.bf16.mxu0 %v4503_v13  ;;  %v1549_v63 = vsub.f32 1.0, %v4511_v23  ;;  %3252 = vmatpush3.bf16.msra.mxu1 %v4348_v30  ;;  %v2901_v41 = vmul.f32 -1.442695, %v956_v55 }
 0x176   : > { %v3527_v26 = vpop.eup %3526  ;;  %3544 = vpow2.f32 %v2899_v22  ;;  %v1520_v33 = vadd.f32 %v1504_v58, %v1314_v5  ;;  %v1550_v21 = vsub.f32 1.0, %v4524_v10  ;;  %3253 = vmatprep.subr.bf16.mxu1 %v3429_v4  ;;  %v1581_v45 = vmul.f32 %v3757_v18, %v4511_v23  ;;  %v3431_v22 = vld [vmem:[%s4984_s10 + $0x18] sm:$0xff]  }
 0x177   : > { %v3529_v17 = vpop.eup %3528  ;;  %3546 = vpow2.f32 %v2900_v43  ;;  %v1596_v31 = vadd.f32 %v1580_v37, %v1564_v60  ;;  %v1582_v30 = vmul.f32 %v4524_v10, %v4229_v39  ;;  %v2904_v53 = vmul.f32 -1.442695, %v964_v14 }
 0x178   : > { %v3531_v6 = vpop.eup %3530  ;;  %3548 = vrcp.f32 %v1083_v51  ;;  %v1565_v61 = vmul.f32 %v3529_v17, %v1549_v63  ;;  %v1551_v11 = vsub.f32 1.0, %v3525_v32  ;;  %v1583_v5 = vmul.f32 %v3525_v32, %v4231_v40  ;;  %v3433_v17 = vld [vmem:[%s4984_s10 + $0x28] sm:$0xff]  }
 0x179   : > { %v3533_v29 = vpop.eup %3532  ;;  %3550 = vrcp.f32 %v1085_v24  ;;  %1612 = vst [vmem:[#allocation2 + $0x20] sm:$0xff] %v1596_v31  ;;  %1628 = vst [vmem:[#allocation3 + $0x20] sm:$0xff] %v1596_v31  ;;  %v1566_v25 = vmul.f32 %v3531_v6, %v1550_v21  ;;  %3254 = vmatpush3.bf16.msra.mxu1 %v3429_v4  ;;  %v1087_v20 = vadd.f32 1.0, %v3527_v26  ;;  %v1474_v39 = vadd.f32 %v4437_v57, %v4432_v15 }
 0x17a   : > { %v3535_v2 = vpop.eup %3534  ;;  %v1088_v46 = vadd.f32 1.0, %v3533_v29  ;;  %3552 = vpow2.f32 %v2902_v12  ;;  %v1597_v8 = vadd.f32 %v1581_v45, %v1565_v61  ;;  %3255 = vmatprep.subr.bf16.mxu1 %v3430_v34  ;;  %v1322_v55 = vadd.f32 %v4374_v47, %v4394_v56 }
 0x17b   : > { %v3537_v27 = vpop.eup %3536  ;;  %3554 = vpow2.f32 %v2901_v41  ;;  %v1567_v23 = vmul.f32 %v3535_v2, %v1551_v11  ;;  %v1598_v44 = vadd.f32 %v1582_v30, %v1566_v25  ;;  %v2903_v3 = vmul.f32 -1.442695, %v4532_v59  ;;  %v3434_v30 = vld [vmem:[%s4984_s10 + $0x30] sm:$0xff]   ;;  %v3758_v2 = vld [vmem:[#allocation2 + $0x40] sm:$0xff] }
 0x17c   : > { %3556 = vrcp.f32 %v1088_v46  ;;  %v1505_v10 = vmul.f32 %v3537_v27, %v1469_v52  ;;  %1613 = vst [vmem:[#allocation2 + $0x28] sm:$0xff] %v1597_v8  ;;  %1629 = vst [vmem:[#allocation3 + $0x28] sm:$0xff] %v1597_v8  ;;  %v1642_v14 = vpack.c.bf16 %v1597_v8, %v1596_v31  ;;  %v1477_v43 = vadd.f32 %v4444_v9, %v4432_v15  ;;  %v1658_v52 = vld [vmem:[#allocation2 + $0xc8] sm:$0xff] }
 0x17d   : > { %v3539_v40 = vpop.eup %3538  ;;  %3558 = vpow2.f32 %v2904_v53  ;;  %v1599_v62 = vadd.f32 %v1583_v5, %v1567_v23  ;;  %1614 = vst [vmem:[#allocation2 + $0x30] sm:$0xff] %v1598_v44  ;;  %1630 = vst [vmem:[#allocation3 + $0x30] sm:$0xff] %v1598_v44  ;;  %v2905_v47 = vmul.f32 -1.442695, %v4539_v35  ;;  %3256 = vmatpush3.bf16.msra.mxu1 %v3430_v34  ;;  %v1325_v51 = vadd.f32 %v4378_v49, %v4394_v56  ;;  %v3432_v35 = vld [vmem:[%s4984_s10 + $0x20] sm:$0xff]   ;;  %v3759_v5 = vld [vmem:[#allocation2 + $0x48] sm:$0xff] }
 0x17e   : > { %v4576_v38 = vpop.eup %3540  ;;  %v1506_v57 = vmul.f32 %v3539_v40, %v1474_v39  ;;  %3560 = vtanh.f32 %v1520_v33  ;;  %v1521_v48 = vadd.f32 %v1505_v10, %v4545_v50  ;;  %1930 = vmatmul.mubr.bf16.gmra.mrb[40].mxu0 %v1642_v14  ;;  %3239 = vmatprep.mubr.bf16.mxu1 %v1642_v14  ;;  %v1657_v50 = vld [vmem:[#allocation2 + $0xc0] sm:$0xff]  ;;  %v1482_v49 = vadd.f32 %v4432_v15, %v4459_v19  ;;  %v1659_v14 = vld [vmem:[#allocation2 + $0xd0] sm:$0xff] }
 0x17f   : > { %v3543_v4 = vpop.eup %3542  ;;  %3562 = vrcp.f32 %v1087_v20  ;;  %1939 = vmatprep.mubr.bf16.mxu0 %v4505_v36  ;;  %1615 = vst [vmem:[#allocation2 + $0x38] sm:$0xff] %v1599_v62  ;;  %1631 = vst [vmem:[#allocation3 + $0x38] sm:$0xff] %v1599_v62  ;;  %v1643_v59 = vpack.c.bf16 %v1599_v62, %v1598_v44  ;;  %3257 = vmatprep.subr.bf16.mxu1 %v3431_v22  ;;  %v4590_v33 = vpack.c.bf16 %v1658_v52, %v1657_v50 }
 0x180   : > { %v3545_v42 = vpop.eup %3544  ;;  %v1522_v58 = vadd.f32 %v1506_v57, %v1322_v55  ;;  %v1507_v9 = vmul.f32 %v3543_v4, %v1477_v43  ;;  %3564 = vtanh.f32 %v1521_v48  ;;  %v1330_v19 = vadd.f32 %v4394_v56, %v4401_v1  ;;  %v3435_v55 = vld [vmem:[%s4984_s10 + $0x38] sm:$0xff]  }
 0x181   : > { %v3547_v32 = vpop.eup %3546  ;;  %v1089_v24 = vadd.f32 1.0, %v3545_v42  ;;  %3566 = vpow2.f32 %v2903_v3  ;;  %3240 = vmatmul.mubr.bf16.gmra.mrb[36].mxu1 %v1643_v59  ;;  %v1552_v61 = vsub.f32 1.0, %v4576_v38  ;;  %v1584_v1 = vmul.f32 %v3758_v2, %v4576_v38 }
 0x182   : > { %v3549_v60 = vpop.eup %3548  ;;  %v1090_v37 = vadd.f32 1.0, %v3547_v32  ;;  %3568 = vtanh.f32 %v1522_v58  ;;  %v1523_v26 = vadd.f32 %v1507_v9, %v1325_v51  ;;  %3258 = vmatpush3.bf16.msra.mxu1 %v3431_v22  ;;  %v1485_v8 = vadd.f32 %v4432_v15, %v4471_v54  ;;  %v1660_v22 = vld [vmem:[#allocation2 + $0xd8] sm:$0xff]  ;;  %v3760_v54 = vld [vmem:[#allocation2 + $0x50] sm:$0xff] }
 0x183   : > { %v3551_v12 = vpop.eup %3550  ;;  %3570 = vpow2.f32 %v2905_v47  ;;  %3259 = vmatprep.subr.bf16.mxu1 %v3432_v35  ;;  %v1553_v11 = vsub.f32 1.0, %v3549_v60  ;;  %v1585_v27 = vmul.f32 %v3759_v5, %v3549_v60  ;;  %v1333_v43 = vadd.f32 %v4394_v56, %v4407_v7  ;;  %v3761_v7 = vld [vmem:[#allocation2 + $0x58] sm:$0xff] }
 0x184   : > { %v3553_v63 = vpop.eup %3552  ;;  %3572 = vrcp.f32 %v1090_v37  ;;  %v1554_v20 = vsub.f32 1.0, %v3551_v12  ;;  %v1586_v38 = vmul.f32 %v3760_v54, %v3551_v12  ;;  %v4610_v4 = vpack.c.bf16 %v1660_v22, %v1659_v14  ;;  %v1661_v37 = vld [vmem:[#allocation2 + $0xe0] sm:$0xff] }
 0x185   : > { %v3555_v41 = vpop.eup %3554  ;;  %3574 = vrcp.f32 %v1089_v24  ;;  %v1092_v31 = vadd.f32 1.0, %v3553_v63 }
 0x186   : > { %v3557_v21 = vpop.eup %3556  ;;  %3576 = vtanh.f32 %v1523_v26  ;;  %1940 = vmatmul.mubr.bf16.gmra.mrb[44].mxu0 %v1643_v59  ;;  %3260 = vmatpush3.bf16.msra.mxu1 %v3432_v35  ;;  %v1091_v44 = vadd.f32 1.0, %v3555_v41  ;;  %v1662_v26 = vld [vmem:[#allocation2 + $0xe8] sm:$0xff]  ;;  %v4999_v41 = vld [vmem:[#allocation9_spill] sm:$0xff] }
 0x187   : > { %v3559_v34 = vpop.eup %3558  ;;  %3578 = vrcp.f32 %v1092_v31  ;;  %v1508_v6 = vmul.f32 %v3557_v21, %v1482_v49  ;;  %1949 = vmatprep.mubr.bf16.mxu0 %v4590_v33  ;;  %3261 = vmatprep.subr.bf16.mxu1 %v3433_v17 }
 0x188   : > { %v3561_v18 = vpop.eup %3560  ;;  %v1094_v45 = vadd.f32 1.0, %v3559_v34 }
 0x189   : > { %v3563_v29 = vpop.eup %3562  ;;  %v1524_v53 = vadd.f32 %v1508_v6, %v1330_v19  ;;  %v1568_v25 = vmul.f32 %v3561_v18, %v1552_v61  ;;  %v3762_v19 = vld [vmem:[#allocation2 + $0x60] sm:$0xff]  ;;  %v5000_v61 = vld [vmem:[#allocation8_spill] sm:$0xff] }
 0x18a   : > { %v3565_v46 = vpop.eup %3564  ;;  %3580 = vrcp.f32 %v1094_v45  ;;  %3262 = vmatpush3.bf16.msra.mxu1 %v3433_v17  ;;  %v1555_v47 = vsub.f32 1.0, %v3563_v29  ;;  %v1587_v32 = vmul.f32 %v3761_v7, %v3563_v29 }
 0x18b   : > { %v3567_v23 = vpop.eup %3566  ;;  %3582 = vtanh.f32 %v1524_v53  ;;  %v1569_v39 = vmul.f32 %v3565_v46, %v1553_v11  ;;  %v1600_v10 = vadd.f32 %v1584_v1, %v1568_v25  ;;  %3263 = vmatprep.subr.bf16.mxu1 %v3434_v30  ;;  %v3763_v25 = vld [vmem:[#allocation2 + $0x68] sm:$0xff]  ;;  %v4617_v1 = vld [vmem:[#allocation2 + $0xf0] sm:$0xff]  ;;  %v4619_v46 = vld [vmem:[#allocation2 + $0xf8] sm:$0xff] }
 0x18c   : > { %v3569_v40 = vpop.eup %3568  ;;  %v1093_v48 = vadd.f32 1.0, %v3567_v23  ;;  %3584 = vrcp.f32 %v1091_v44  ;;  %v1672_v23 = vpack.c.bf16 %v4619_v46, %v4617_v1 }
 0x18d   : > { %v3571_v3 = vpop.eup %3570  ;;  %v1601_v62 = vadd.f32 %v1585_v27, %v1569_v39  ;;  %1616 = vst [vmem:[#allocation2 + $0x40] sm:$0xff] %v1600_v10  ;;  %1632 = vst [vmem:[#allocation3 + $0x40] sm:$0xff] %v1600_v10  ;;  %v1570_v15 = vmul.f32 %v3569_v40, %v1554_v20  ;;  %v3764_v39 = vld [vmem:[#allocation2 + $0x70] sm:$0xff] }
 0x18e   : > { %v3573_v57 = vpop.eup %3572  ;;  %3264 = vmatpush3.bf16.msra.mxu1 %v3434_v30  ;;  %v1095_v52 = vadd.f32 1.0, %v3571_v3  ;;  %3586 = vrcp.f32 %v1093_v48 }
 0x18f   : > { %v3575_v59 = vpop.eup %3574  ;;  %v1509_v42 = vmul.f32 %v3573_v57, %v1485_v8  ;;  %1617 = vst [vmem:[#allocation2 + $0x48] sm:$0xff] %v1601_v62  ;;  %1633 = vst [vmem:[#allocation3 + $0x48] sm:$0xff] %v1601_v62  ;;  %v1644_v51 = vpack.c.bf16 %v1601_v62, %v1600_v10  ;;  %v1602_v58 = vadd.f32 %v1586_v38, %v1570_v15  ;;  %3265 = vmatprep.subr.bf16.mxu1 %v3435_v55  ;;  %v3765_v62 = vld [vmem:[#allocation2 + $0x78] sm:$0xff]  ;;  %v5001_v57 = vld [vmem:[#allocation6_spill] sm:$0xff] }
 0x190   : > { %v3577_v9 = vpop.eup %3576  ;;  %v1556_v63 = vsub.f32 1.0, %v3575_v59  ;;  %v1588_v6 = vmul.f32 %v3762_v19, %v3575_v59 }
 0x191   : > { %v3579_v50 = vpop.eup %3578  ;;  %v1525_v35 = vadd.f32 %v1509_v42, %v1333_v43  ;;  %1950 = vmatmul.mubr.bf16.gmra.mrb[48].mxu0 %v1644_v51  ;;  %3243 = vmatprep.mubr.bf16.mxu1 %v1644_v51  ;;  %v1571_v56 = vmul.f32 %v3577_v9, %v1555_v47  ;;  %1618 = vst [vmem:[#allocation2 + $0x50] sm:$0xff] %v1602_v58  ;;  %1634 = vst [vmem:[#allocation3 + $0x50] sm:$0xff] %v1602_v58  ;;  %v1705_v43 = vld [vmem:[%s4985_s11] sm:$0x3]  ;;  %v5002_v47 = vld [vmem:[#allocation7_spill] sm:$0xff] }
 0x192   : > { %v1510_v24 = vmul.f32 %v3579_v50, %v4469_v28  ;;  %1959 = vmatprep.mubr.bf16.mxu0 %v4610_v4  ;;  %3266 = vmatpush3.bf16.msra.mxu1 %v3435_v55  ;;  %v1671_v28 = vpack.c.bf16 %v1662_v26, %v1661_v37  ;;  %v5003_v59 = vsub.s32 0, %v5002_v47 }
 0x193   : > { %3588 = vtanh.f32 %v1525_v35  ;;  %v1603_v60 = vadd.f32 %v1587_v32, %v1571_v56 }
 0x194   : > { %v3581_v12 = vpop.eup %3580  ;;  %v1526_v49 = vadd.f32 %v1510_v24, %v4399_v0  ;;  %3590 = vrcp.f32 %v1095_v52  ;;  %v4634_v42 = vrot.slane %v1705_v43, %v5003_v59 }
 0x195   : > { %v3583_v17 = vpop.eup %3582  ;;  %v1511_v31 = vmul.f32 %v3581_v12, %v4999_v41  ;;  %1619 = vst [vmem:[#allocation2 + $0x58] sm:$0xff] %v1603_v60  ;;  %1635 = vst [vmem:[#allocation3 + $0x58] sm:$0xff] %v1603_v60  ;;  %v1645_v21 = vpack.c.bf16 %v1603_v60, %v1602_v58 }
 0x196   : > { %3592 = vtanh.f32 %v1526_v49  ;;  %v1572_v34 = vmul.f32 %v3583_v17, %v1556_v63  ;;  %v3585_v30 = vpop.eup %3584 }
 0x197   : > { %v1527_v18 = vadd.f32 %v1511_v31, %v5000_v61  ;;  %3244 = vmatmul.mubr.bf16.gmra.mrb[40].mxu1 %v1645_v21  ;;  %v1557_v29 = vsub.f32 1.0, %v3585_v30  ;;  %v1589_v2 = vmul.f32 %v3763_v25, %v3585_v30 }
 0x198   : > { %v1604_v45 = vadd.f32 %v1588_v6, %v1572_v34  ;;  %v3587_v0 = vpop.eup %3586 }
 0x199   : > { %3594 = vtanh.f32 %v1527_v18  ;;  %1960 = vmatmul.mubr.bf16.gmra.mrb[52].mxu0 %v1645_v21  ;;  %v1558_v5 = vsub.f32 1.0, %v3587_v0  ;;  %v1590_v10 = vmul.f32 %v3764_v39, %v3587_v0 }
 0x19a   : > { %1969 = vmatprep.mubr.bf16.mxu0 %v1671_v28  ;;  %1620 = vst [vmem:[#allocation2 + $0x60] sm:$0xff] %v1604_v45  ;;  %1636 = vst [vmem:[#allocation3 + $0x60] sm:$0xff] %v1604_v45 }
 0x19d   : > { %v3589_v53 = vpop.eup %3588 }
 0x19e   : > { %v1573_v11 = vmul.f32 %v3589_v53, %v1557_v29  ;;  %v3591_v8 = vpop.eup %3590 }
 0x19f   : > { %v1559_v22 = vsub.f32 1.0, %v3591_v8  ;;  %v1591_v15 = vmul.f32 %v3765_v62, %v3591_v8 }
 0x1a0   : > { %v3593_v27 = vpop.eup %3592  ;;  %v1605_v20 = vadd.f32 %v1589_v2, %v1573_v11 }
 0x1a1   : > { %v1574_v44 = vmul.f32 %v3593_v27, %v1558_v5 }
 0x1a2   : > { %1621 = vst [vmem:[#allocation2 + $0x68] sm:$0xff] %v1605_v20  ;;  %1637 = vst [vmem:[#allocation3 + $0x68] sm:$0xff] %v1605_v20  ;;  %v1646_v14 = vpack.c.bf16 %v1605_v20, %v1604_v45 }
 0x1a3   : > { %v3595_v40 = vpop.eup %3594  ;;  %v1606_v55 = vadd.f32 %v1590_v10, %v1574_v44 }
 0x1a4   : > { %1970 = vmatmul.mubr.bf16.gmra.mrb[56].mxu0 %v1646_v14  ;;  %3247 = vmatprep.mubr.bf16.mxu1 %v1646_v14  ;;  %v1575_v3 = vmul.f32 %v3595_v40, %v1559_v22 }
 0x1a5   : > { %1979 = vmatprep.mubr.bf16.mxu0 %v1672_v23  ;;  %1622 = vst [vmem:[#allocation2 + $0x70] sm:$0xff] %v1606_v55  ;;  %1638 = vst [vmem:[#allocation3 + $0x70] sm:$0xff] %v1606_v55 }
 0x1a6   : > { %v1607_v54 = vadd.f32 %v1591_v15, %v1575_v3 }
 0x1a8   : > { %1623 = vst [vmem:[#allocation2 + $0x78] sm:$0xff] %v1607_v54  ;;  %1639 = vst [vmem:[#allocation3 + $0x78] sm:$0xff] %v1607_v54  ;;  %v1647_v38 = vpack.c.bf16 %v1607_v54, %v1606_v55 }
 0x1aa   : > { %3248 = vmatmul.mubr.bf16.gmra.mrb[44].mxu1 %v1647_v38 }
 0x1ab   : > { %3267 = vmatprep.mubr.bf16.mxu1 %v5001_v57 }
 0x1ac   : > { %1980 = vmatmul.mubr.bf16.gmra.mrb[60].mxu0 %v1647_v38 }
 0x1b2   : > { %3268 = vmatmul.mubr.bf16.vlgmr.msra.gmra.mrb[48].mxu1 %v4457_v16 }
 0x1b3   : > { %3271 = vmatprep.mubr.bf16.mxu1 %v4503_v13  ;;  %v5004_v13 = vsub.s32 1, %v5002_v47 }
 0x1b5   : > { %v4638_v51 = vrot.slane %v1705_v43, %v5004_v13 }
 0x1ba   : > { %3272 = vmatmul.mubr.bf16.gmra.mrb[52].mxu1 %v4505_v36 }
 0x1bb   : > { %3275 = vmatprep.mubr.bf16.mxu1 %v4590_v33 }
 0x1c2   : > { %3276 = vmatmul.mubr.bf16.gmra.mrb[56].mxu1 %v4610_v4 }
 0x1c3   : > { %3279 = vmatprep.mubr.bf16.mxu1 %v1671_v28 }
 0x1ca   : > { %3280 = vmatmul.mubr.bf16.gmra.mrb[60].mxu1 %v1672_v23 }
 0x23f   : > { %v1911_v48 = vpop.f32.mrb[32].mxu0 }
 0x240   : > { %v1913_v16 = vpop.f32.mrb[33].mxu0  ;;  %v1912_v4 = vadd.f32 %v1911_v48, %v4634_v42 }
 0x241   : > { %v1915_v36 = vpop.f32.mrb[34].mxu0  ;;  %v1914_v58 = vadd.f32 %v1913_v16, %v4638_v51 }
 0x242   : > { %v1917_v33 = vpop.f32.mrb[35].mxu0  ;;  %v1916_v9 = vadd.f32 %v1915_v36, %v4634_v42  ;;  %v2956_v50 = vmul.f32 -1.442695, %v1912_v4 }
 0x243   : > { %v2957_v56 = vmul.f32 -1.442695, %v1914_v58  ;;  %v1918_v7 = vadd.f32 %v1917_v33, %v4638_v51 }
 0x244   : > { %v2958_v26 = vmul.f32 -1.442695, %v1916_v9  ;;  %3596 = vpow2.f32 %v2956_v50 }
 0x245   : > { %3598 = vpow2.f32 %v2957_v56  ;;  %v2959_v17 = vmul.f32 -1.442695, %v1918_v7 }
 0x246   : > { %3600 = vpow2.f32 %v2958_v26 }
 0x247   : > { %v1921_v52 = vpop.f32.mrb[36].mxu0  ;;  %v4643_v35 = vpop.f32.mrb[32].mxu1  ;;  %3602 = vpow2.f32 %v2959_v17 }
 0x248   : > { %v1923_v32 = vpop.f32.mrb[37].mxu0  ;;  %v4646_v24 = vpop.f32.mrb[33].mxu1  ;;  %v1922_v63 = vadd.f32 %v1921_v52, %v4634_v42 }
 0x249   : > { %v1925_v60 = vpop.f32.mrb[38].mxu0  ;;  %v4648_v37 = vpop.f32.mrb[34].mxu1  ;;  %v1924_v41 = vadd.f32 %v1923_v32, %v4638_v51 }
 0x24a   : > { %v1927_v12 = vpop.f32.mrb[39].mxu0  ;;  %v4650_v49 = vpop.f32.mrb[35].mxu1  ;;  %v2960_v31 = vmul.f32 -1.442695, %v1922_v63  ;;  %v1926_v34 = vadd.f32 %v1925_v60, %v4634_v42 }
 0x24b   : > { %v2961_v21 = vmul.f32 -1.442695, %v1924_v41  ;;  %v1928_v61 = vadd.f32 %v1927_v12, %v4638_v51 }
 0x24c   : > { %3604 = vpow2.f32 %v2960_v31  ;;  %v2962_v29 = vmul.f32 -1.442695, %v1926_v34 }
 0x24d   : > { %3606 = vpow2.f32 %v2961_v21  ;;  %v2963_v8 = vmul.f32 -1.442695, %v1928_v61 }
 0x24e   : > { %v3597_v0 = vpop.eup %3596  ;;  %3608 = vpow2.f32 %v2962_v29 }
 0x24f   : > { %v3599_v11 = vpop.eup %3598  ;;  %v2086_v27 = vadd.f32 1.0, %v3597_v0  ;;  %3610 = vpow2.f32 %v2963_v8 }
 0x250   : > { %v3601_v5 = vpop.eup %3600  ;;  %v2087_v44 = vadd.f32 1.0, %v3599_v11 }
 0x251   : > { %v1931_v28 = vpop.f32.mrb[40].mxu0  ;;  %v3603_v10 = vpop.eup %3602  ;;  %v2088_v55 = vadd.f32 1.0, %v3601_v5  ;;  %3612 = vrcp.f32 %v2086_v27 }
 0x252   : > { %v1933_v19 = vpop.f32.mrb[41].mxu0  ;;  %v1932_v25 = vadd.f32 %v1931_v28, %v4634_v42  ;;  %3614 = vrcp.f32 %v2087_v44  ;;  %v2089_v38 = vadd.f32 1.0, %v3603_v10 }
 0x253   : > { %v1935_v6 = vpop.f32.mrb[42].mxu0  ;;  %v1934_v20 = vadd.f32 %v1933_v19, %v4638_v51 }
 0x254   : > { %v1937_v18 = vpop.f32.mrb[43].mxu0  ;;  %v4656_v45 = vpop.f32.mrb[36].mxu1  ;;  %v2964_v14 = vmul.f32 -1.442695, %v1932_v25  ;;  %v1936_v22 = vadd.f32 %v1935_v6, %v4634_v42 }
 0x255   : > { %v4658_v30 = vpop.f32.mrb[37].mxu1  ;;  %v1938_v3 = vadd.f32 %v1937_v18, %v4638_v51  ;;  %v2965_v15 = vmul.f32 -1.442695, %v1934_v20 }
 0x256   : > { %v4660_v53 = vpop.f32.mrb[38].mxu1  ;;  %v3605_v54 = vpop.eup %3604  ;;  %3616 = vpow2.f32 %v2964_v14  ;;  %v2966_v43 = vmul.f32 -1.442695, %v1936_v22 }
 0x257   : > { %v4663_v2 = vpop.f32.mrb[39].mxu1  ;;  %v3607_v57 = vpop.eup %3606  ;;  %3618 = vrcp.f32 %v2088_v55  ;;  %v2967_v47 = vmul.f32 -1.442695, %v1938_v3  ;;  %v2090_v16 = vadd.f32 1.0, %v3605_v54 }
 0x258   : > { %3620 = vpow2.f32 %v2965_v15  ;;  %v2091_v36 = vadd.f32 1.0, %v3607_v57  ;;  %v3609_v58 = vpop.eup %3608 }
 0x259   : > { %v1941_v23 = vpop.f32.mrb[44].mxu0  ;;  %3622 = vrcp.f32 %v2089_v38  ;;  %v3611_v32 = vpop.eup %3610  ;;  %v2092_v17 = vadd.f32 1.0, %v3609_v58 }
 0x25a   : > { %v1943_v39 = vpop.f32.mrb[45].mxu0  ;;  %v1942_v48 = vadd.f32 %v1941_v23, %v4634_v42  ;;  %3624 = vpow2.f32 %v2966_v43  ;;  %v2093_v11 = vadd.f32 1.0, %v3611_v32 }
 0x25b   : > { %v1945_v40 = vpop.f32.mrb[46].mxu0  ;;  %v1944_v59 = vadd.f32 %v1943_v39, %v4638_v51  ;;  %3626 = vpow2.f32 %v2967_v47  ;;  %v4674_v63 = vpop.eup %3612 }
 0x25c   : > { %v1947_v62 = vpop.f32.mrb[47].mxu0  ;;  %v1946_v13 = vadd.f32 %v1945_v40, %v4634_v42  ;;  %v2968_v4 = vmul.f32 -1.442695, %v1942_v48  ;;  %3628 = vrcp.f32 %v2090_v16  ;;  %v4677_v21 = vpop.eup %3614 }
 0x25d   : > { %v1948_v33 = vadd.f32 %v1947_v62, %v4638_v51  ;;  %v2969_v9 = vmul.f32 -1.442695, %v1944_v59  ;;  %3630 = vrcp.f32 %v2091_v36 }
 0x25e   : > { %v2970_v52 = vmul.f32 -1.442695, %v1946_v13  ;;  %3632 = vpow2.f32 %v2968_v4 }
 0x25f   : > { %v2971_v60 = vmul.f32 -1.442695, %v1948_v33  ;;  %3634 = vpow2.f32 %v2969_v9 }
 0x260   : > { %v3617_v34 = vpop.eup %3616  ;;  %3636 = vpow2.f32 %v2970_v52 }
 0x261   : > { %v4680_v61 = vpop.eup %3618  ;;  %3638 = vpow2.f32 %v2971_v60  ;;  %v2094_v5 = vadd.f32 1.0, %v3617_v34 }
 0x262   : > { %v3621_v29 = vpop.eup %3620  ;;  %3640 = vrcp.f32 %v2092_v17 }
 0x263   : > { %v4686_v8 = vpop.eup %3622  ;;  %v2095_v40 = vadd.f32 1.0, %v3621_v29 }
 0x264   : > { %v1951_v50 = vpop.f32.mrb[48].mxu0  ;;  %v3625_v23 = vpop.eup %3624 }
 0x265   : > { %v1952_v56 = vadd.f32 %v1951_v50, %v4634_v42  ;;  %v1953_v7 = vpop.f32.mrb[49].mxu0  ;;  %v3627_v22 = vpop.eup %3626  ;;  %v2096_v57 = vadd.f32 1.0, %v3625_v23 }
 0x266   : > { %v1954_v26 = vadd.f32 %v1953_v7, %v4638_v51  ;;  %v1955_v12 = vpop.f32.mrb[50].mxu0  ;;  %v4694_v62 = vpop.eup %3628  ;;  %v2097_v16 = vadd.f32 1.0, %v3627_v22 }
 0x267   : > { %v1956_v41 = vadd.f32 %v1955_v12, %v4634_v42  ;;  %v1957_v31 = vpop.f32.mrb[51].mxu0  ;;  %v2972_v28 = vmul.f32 -1.442695, %v1952_v56  ;;  %v4696_v38 = vpop.eup %3630 }
 0x268   : > { %v2973_v19 = vmul.f32 -1.442695, %v1954_v26  ;;  %v1958_v6 = vadd.f32 %v1957_v31, %v4638_v51  ;;  %v3633_v48 = vpop.eup %3632 }
 0x269   : > { %v2974_v18 = vmul.f32 -1.442695, %v1956_v41  ;;  %3642 = vpow2.f32 %v2972_v28  ;;  %v3635_v59 = vpop.eup %3634  ;;  %v2098_v4 = vadd.f32 1.0, %v3633_v48 }
 0x26a   : > { %v4682_v0 = vpop.f32.mrb[40].mxu1  ;;  %3644 = vpow2.f32 %v2973_v19  ;;  %v2975_v44 = vmul.f32 -1.442695, %v1958_v6  ;;  %v3637_v13 = vpop.eup %3636  ;;  %v2099_v50 = vadd.f32 1.0, %v3635_v59 }
 0x26b   : > { %v4684_v25 = vpop.f32.mrb[41].mxu1  ;;  %3646 = vpow2.f32 %v2974_v18  ;;  %v3639_v33 = vpop.eup %3638  ;;  %v2100_v56 = vadd.f32 1.0, %v3637_v13 }
 0x26c   : > { %v1961_v27 = vpop.f32.mrb[52].mxu0  ;;  %v4688_v20 = vpop.f32.mrb[42].mxu1  ;;  %3648 = vrcp.f32 %v2093_v11  ;;  %v2101_v32 = vadd.f32 1.0, %v3639_v33 }
 0x26d   : > { %v1962_v39 = vadd.f32 %v1961_v27, %v4634_v42  ;;  %v1963_v10 = vpop.f32.mrb[53].mxu0  ;;  %v4691_v14 = vpop.f32.mrb[43].mxu1  ;;  %3650 = vrcp.f32 %v2094_v5 }
 0x26e   : > { %v1964_v55 = vadd.f32 %v1963_v10, %v4638_v51  ;;  %v1965_v3 = vpop.f32.mrb[54].mxu0  ;;  %3652 = vpow2.f32 %v2975_v44  ;;  %v4700_v9 = vpop.eup %3640  ;;  %v4714_v44 = vld [vmem:[%s4986_s12] ss:$0 sm:$0xff] }
 0x26f   : > { %v2976_v15 = vmul.f32 -1.442695, %v1962_v39  ;;  %v1967_v54 = vpop.f32.mrb[55].mxu0  ;;  %v1966_v43 = vadd.f32 %v1965_v3, %v4634_v42  ;;  %3654 = vrcp.f32 %v2095_v40 }
 0x270   : > { %v2977_v47 = vmul.f32 -1.442695, %v1964_v55  ;;  %v1968_v58 = vadd.f32 %v1967_v54, %v4638_v51 }
 0x271   : > { %3656 = vpow2.f32 %v2976_v15  ;;  %v2978_v36 = vmul.f32 -1.442695, %v1966_v43 }
 0x272   : > { %3658 = vrcp.f32 %v2096_v57  ;;  %v2979_v12 = vmul.f32 -1.442695, %v1968_v58  ;;  %v4724_v57 = vadd.f32 %v4643_v35, %v4714_v44  ;;  %v4739_v58 = vadd.f32 %v4648_v37, %v4714_v44 }
 0x273   : > { %3660 = vpow2.f32 %v2977_v47  ;;  %v3643_v52 = vpop.eup %3642 }
 0x274   : > { %3662 = vrcp.f32 %v2097_v16  ;;  %v3645_v7 = vpop.eup %3644  ;;  %v2102_v28 = vadd.f32 1.0, %v3643_v52  ;;  %v4732_v16 = vadd.f32 %v4714_v44, %v4646_v24  ;;  %v4747_v24 = vadd.f32 %v4656_v45, %v4714_v44 }
 0x275   : > { %3664 = vpow2.f32 %v2978_v36  ;;  %v3647_v26 = vpop.eup %3646  ;;  %v2103_v18 = vadd.f32 1.0, %v3645_v7 }
 0x276   : > { %3666 = vrcp.f32 %v2098_v4  ;;  %v4703_v31 = vpop.eup %3648  ;;  %v2104_v5 = vadd.f32 1.0, %v3647_v26 }
 0x277   : > { %v1971_v60 = vpop.f32.mrb[56].mxu0  ;;  %3668 = vrcp.f32 %v2099_v50  ;;  %v4706_v6 = vpop.eup %3650  ;;  %v4743_v50 = vadd.f32 %v4714_v44, %v4650_v49  ;;  %v4756_v49 = vadd.f32 %v4714_v44, %v4658_v30  ;;  %v4773_v30 = vadd.f32 %v4714_v44, %v4663_v2 }
 0x278   : > { %v1972_v17 = vadd.f32 %v1971_v60, %v4634_v42  ;;  %v1973_v41 = vpop.f32.mrb[57].mxu0  ;;  %3670 = vrcp.f32 %v2100_v56  ;;  %v3653_v11 = vpop.eup %3652 }
 0x279   : > { %v1974_v34 = vadd.f32 %v1973_v41, %v4638_v51  ;;  %v1975_v19 = vpop.f32.mrb[58].mxu0  ;;  %3672 = vrcp.f32 %v2101_v32  ;;  %v4709_v23 = vpop.eup %3654  ;;  %v2105_v3 = vadd.f32 1.0, %v3653_v11 }
 0x27a   : > { %v1977_v29 = vpop.f32.mrb[59].mxu0  ;;  %v1976_v27 = vadd.f32 %v1975_v19, %v4634_v42  ;;  %3674 = vpow2.f32 %v2979_v12  ;;  %v2980_v39 = vmul.f32 -1.442695, %v1972_v17  ;;  %v4763_v17 = vld [vmem:[%s4987_s13] ss:$0 sm:$0xff] }
 0x27b   : > { %v3657_v10 = vpop.eup %3656  ;;  %3676 = vrcp.f32 %v2102_v28  ;;  %v2981_v22 = vmul.f32 -1.442695, %v1974_v34  ;;  %v1978_v32 = vadd.f32 %v1977_v29, %v4638_v51  ;;  %v4769_v28 = vadd.f32 %v4660_v53, %v4714_v44 }
 0x27c   : > { %v4718_v55 = vpop.eup %3658  ;;  %3678 = vrcp.f32 %v2103_v18  ;;  %v2982_v43 = vmul.f32 -1.442695, %v1976_v27  ;;  %v2106_v13 = vadd.f32 1.0, %v3657_v10  ;;  %v3766_v27 = vld [vmem:[#allocation2 + $0x80] sm:$0xff] }
 0x27d   : > { %v4716_v40 = vpop.f32.mrb[44].mxu1  ;;  %v3661_v54 = vpop.eup %3660  ;;  %3680 = vrcp.f32 %v2104_v5  ;;  %v4780_v53 = vmul.f32 %v3766_v27, %v4677_v21  ;;  %v2569_v27 = vsub.f32 1.0, %v4703_v31 }
 0x27e   : > { %v4720_v15 = vpop.f32.mrb[45].mxu1  ;;  %v4728_v59 = vpop.eup %3662  ;;  %3682 = vpow2.f32 %v2980_v39  ;;  %v2107_v7 = vadd.f32 1.0, %v3661_v54  ;;  %v2983_v39 = vmul.f32 -1.442695, %v1978_v32 }
 0x27f   : > { %v1981_v48 = vpop.f32.mrb[60].mxu0  ;;  %v4726_v47 = vpop.f32.mrb[46].mxu1  ;;  %3684 = vpow2.f32 %v2981_v22 }
 0x280   : > { %v1982_v36 = vadd.f32 %v1981_v48, %v4634_v42  ;;  %v1983_v33 = vpop.f32.mrb[61].mxu0  ;;  %v4735_v4 = vpop.f32.mrb[47].mxu1  ;;  %3686 = vrcp.f32 %v2105_v3  ;;  %v2567_v3 = vsub.f32 1.0, %v4686_v8 }
 0x281   : > { %v3665_v35 = vpop.eup %3664  ;;  %v1985_v52 = vpop.f32.mrb[62].mxu0  ;;  %3688 = vpow2.f32 %v2982_v43  ;;  %v1984_v45 = vadd.f32 %v1983_v33, %v4638_v51  ;;  %v2568_v33 = vsub.f32 1.0, %v4696_v38 }
 0x282   : > { %v4749_v56 = vpop.eup %3666  ;;  %v2984_v60 = vmul.f32 -1.442695, %v1982_v36  ;;  %v1987_v26 = vpop.f32.mrb[63].mxu0  ;;  %v1986_v12 = vadd.f32 %v1985_v52, %v4634_v42  ;;  %3690 = vrcp.f32 %v2106_v13  ;;  %v2108_v34 = vadd.f32 1.0, %v3665_v35  ;;  %v3767_v13 = vld [vmem:[#allocation2 + $0x88] sm:$0xff] }
 0x283   : > { %v4752_v37 = vpop.eup %3668  ;;  %v2566_v42 = vsub.f32 1.0, %v4677_v21  ;;  %v1988_v29 = vadd.f32 %v1987_v26, %v4638_v51  ;;  %v2985_v54 = vmul.f32 -1.442695, %v1984_v45  ;;  %v4790_v36 = vmul.f32 %v3767_v13, %v4686_v8 }
 0x284   : > { %v4765_v41 = vpop.eup %3670  ;;  %3692 = vpow2.f32 %v2984_v60  ;;  %v2986_v18 = vmul.f32 -1.442695, %v1986_v12  ;;  %v4814_v13 = vadd.f32 %v4682_v0, %v4714_v44 }
 0x285   : > { %v4775_v19 = vpop.eup %3672  ;;  %v3269_v11 = vpop.f32.mrb[48].mxu1  ;;  %3694 = vrcp.f32 %v2107_v7  ;;  %v2987_v32 = vmul.f32 -1.442695, %v1988_v29 }
 0x286   : > { %v3675_v5 = vpop.eup %3674  ;;  %v2464_v2 = vadd.f32 %v3269_v11, %v4763_v17  ;;  %v2455_v10 = vpop.f32.mrb[49].mxu1  ;;  %3696 = vpow2.f32 %v2986_v18  ;;  %v3768_v18 = vld [vmem:[#allocation2 + $0x90] sm:$0xff] }
 0x287   : > { %v4783_v22 = vpop.eup %3676  ;;  %v2456_v43 = vadd.f32 %v4763_v17, %v2455_v10  ;;  %v3270_v51 = vpop.f32.mrb[50].mxu1  ;;  %3698 = vrcp.f32 %v2108_v34  ;;  %v4800_v11 = vmul.f32 %v3768_v18, %v4696_v38 }
 0x288   : > { %v4787_v48 = vpop.eup %3678  ;;  %v2520_v35 = vmul.f32 %v4694_v62, %v2464_v2  ;;  %v2458_v52 = vpop.f32.mrb[51].mxu1  ;;  %v2467_v26 = vadd.f32 %v3270_v51, %v4763_v17  ;;  %3700 = vpow2.f32 %v2983_v39  ;;  %v2109_v39 = vadd.f32 1.0, %v3675_v5 }
 0x289   : > { %v4794_v7 = vpop.eup %3680  ;;  %v2518_v60 = vmul.f32 %v4674_v63, %v2456_v43  ;;  %v2459_v45 = vadd.f32 %v4763_v17, %v2458_v52  ;;  %3702 = vpow2.f32 %v2985_v54  ;;  %v3769_v43 = vld [vmem:[#allocation2 + $0x98] sm:$0xff] }
 0x28a   : > { %v3683_v12 = vpop.eup %3682  ;;  %v2536_v62 = vadd.f32 %v2520_v35, %v4724_v57  ;;  %v2521_v63 = vmul.f32 %v4700_v9, %v2467_v26  ;;  %v4810_v51 = vmul.f32 %v3769_v43, %v4703_v31  ;;  %v2352_v31 = vadd.f32 %v4714_v44, %v4720_v15 }
 0x28b   : > { %v3685_v34 = vpop.eup %3684  ;;  %v2534_v29 = vadd.f32 %v2518_v60, %v4732_v16  ;;  %v2519_v2 = vmul.f32 %v4680_v61, %v2459_v45  ;;  %v4818_v16 = vadd.f32 %v4714_v44, %v4684_v25  ;;  %v2110_v9 = vadd.f32 1.0, %v3683_v12 }
 0x28c   : > { %v4807_v10 = vpop.eup %3686  ;;  %3704 = vtanh.f32 %v2536_v62  ;;  %v2537_v61 = vadd.f32 %v2521_v63, %v4739_v58  ;;  %v2111_v52 = vadd.f32 1.0, %v3685_v34  ;;  %v4827_v45 = vadd.f32 %v4688_v20, %v4714_v44 }
 0x28d   : > { %v3689_v57 = vpop.eup %3688  ;;  %3706 = vpow2.f32 %v2987_v32  ;;  %v3273_v54 = vpop.f32.mrb[52].mxu1  ;;  %v2535_v60 = vadd.f32 %v2519_v2, %v4743_v50  ;;  %v4836_v63 = vadd.f32 %v4714_v44, %v4691_v14  ;;  %v2355_v15 = vadd.f32 %v4714_v44, %v4735_v4 }
 0x28e   : > { %v4821_v35 = vpop.eup %3690  ;;  %3708 = vtanh.f32 %v2534_v29  ;;  %v2480_v0 = vadd.f32 %v3273_v54, %v4763_v17  ;;  %v2471_v5 = vpop.f32.mrb[53].mxu1  ;;  %v2112_v25 = vadd.f32 1.0, %v3689_v57 }
 0x28f   : > { %v3693_v26 = vpop.eup %3692  ;;  %3710 = vtanh.f32 %v2537_v61  ;;  %v2472_v32 = vadd.f32 %v4763_v17, %v2471_v5  ;;  %v3274_v58 = vpop.f32.mrb[54].mxu1  ;;  %v2570_v61 = vsub.f32 1.0, %v4709_v23  ;;  %v2571_v5 = vsub.f32 1.0, %v4728_v59 }
 0x290   : > { %v4830_v12 = vpop.eup %3694  ;;  %3712 = vrcp.f32 %v2109_v39  ;;  %v2114_v18 = vadd.f32 1.0, %v3693_v26  ;;  %v2524_v62 = vmul.f32 %v4749_v56, %v2480_v0  ;;  %v2483_v50 = vadd.f32 %v3274_v58, %v4763_v17  ;;  %v2474_v34 = vpop.f32.mrb[55].mxu1  ;;  %v3770_v0 = vld [vmem:[#allocation2 + $0xa0] sm:$0xff]  ;;  %v3771_v26 = vld [vmem:[#allocation2 + $0xa8] sm:$0xff]  ;;  %v3772_v58 = vld [vmem:[#allocation2 + $0xb0] sm:$0xff] }
 0x291   : > { %v3697_v29 = vpop.eup %3696  ;;  %3714 = vrcp.f32 %v2110_v9  ;;  %v2522_v20 = vmul.f32 %v4706_v6, %v2472_v32  ;;  %v2475_v2 = vadd.f32 %v4763_v17, %v2474_v34  ;;  %v4848_v6 = vmul.f32 %v3770_v0, %v4709_v23 }
 0x292   : > { %v4840_v43 = vpop.eup %3698  ;;  %3716 = vrcp.f32 %v2111_v52  ;;  %v2116_v39 = vadd.f32 1.0, %v3697_v29  ;;  %v2540_v57 = vadd.f32 %v2524_v62, %v4747_v24  ;;  %v2525_v56 = vmul.f32 %v4765_v41, %v2483_v50  ;;  %v3773_v29 = vld [vmem:[#allocation2 + $0xb8] sm:$0xff] }
 0x293   : > { %3718 = vrcp.f32 %v2112_v25  ;;  %v2538_v54 = vadd.f32 %v2522_v20, %v4756_v49  ;;  %v2523_v14 = vmul.f32 %v4718_v55, %v2475_v2  ;;  %v3701_v9 = vpop.eup %3700  ;;  %v4853_v41 = vmul.f32 %v3771_v26, %v4728_v59 }
 0x294   : > { %3720 = vrcp.f32 %v2114_v18  ;;  %v2541_v52 = vadd.f32 %v2525_v56, %v4769_v28  ;;  %v3703_v24 = vpop.eup %3702  ;;  %v2572_v25 = vsub.f32 1.0, %v4752_v37  ;;  %v4858_v62 = vmul.f32 %v3772_v58, %v4752_v37 }
 0x295   : > { %3722 = vrcp.f32 %v2116_v39  ;;  %v2539_v55 = vadd.f32 %v2523_v14, %v4773_v30  ;;  %v3277_v49 = vpop.f32.mrb[56].mxu1  ;;  %v2573_v18 = vsub.f32 1.0, %v4775_v19  ;;  %v4863_v20 = vmul.f32 %v3773_v29, %v4775_v19 }
 0x296   : > { %v3705_v32 = vpop.eup %3704  ;;  %3724 = vtanh.f32 %v2535_v60  ;;  %v2496_v28 = vadd.f32 %v3277_v49, %v4763_v17  ;;  %v2487_v50 = vpop.f32.mrb[57].mxu1  ;;  %v2113_v14 = vadd.f32 1.0, %v3701_v9  ;;  %v4870_v60 = vadd.f32 %v4716_v40, %v4714_v44 }
 0x297   : > { %v3707_v34 = vpop.eup %3706  ;;  %v2584_v30 = vmul.f32 %v3705_v32, %v2568_v33  ;;  %3726 = vtanh.f32 %v2540_v57  ;;  %v2488_v2 = vadd.f32 %v4763_v17, %v2487_v50  ;;  %v3278_v39 = vpop.f32.mrb[58].mxu1  ;;  %v2115_v32 = vadd.f32 1.0, %v3703_v24 }
 0x298   : > { %v3709_v56 = vpop.eup %3708  ;;  %3728 = vtanh.f32 %v2538_v54  ;;  %v2528_v0 = vmul.f32 %v4821_v35, %v2496_v28  ;;  %v2490_v26 = vpop.f32.mrb[59].mxu1  ;;  %v2499_v35 = vadd.f32 %v3278_v39, %v4763_v17  ;;  %v2363_v24 = vadd.f32 %v4726_v47, %v4714_v44 }
 0x299   : > { %v3711_v49 = vpop.eup %3710  ;;  %v2616_v58 = vadd.f32 %v4800_v11, %v2584_v30  ;;  %v2582_v38 = vmul.f32 %v3709_v56, %v2566_v42  ;;  %3730 = vtanh.f32 %v2541_v52  ;;  %v2526_v33 = vmul.f32 %v4783_v22, %v2488_v2 }
 0x29a   : > { %v4877_v57 = vpop.eup %3712  ;;  %v2585_v9 = vmul.f32 %v3711_v49, %v2569_v27  ;;  %3732 = vtanh.f32 %v2539_v55  ;;  %v2544_v40 = vadd.f32 %v2528_v0, %v4814_v13  ;;  %v2491_v22 = vadd.f32 %v4763_v17, %v2490_v26 }
 0x29b   : > { %v3715_v54 = vpop.eup %3714  ;;  %2632 = vst [vmem:[#allocation2 + $0x90] sm:$0xff] %v2616_v58  ;;  %2649 = vst [vmem:[#allocation3 + $0x90] sm:$0xff] %v2616_v58  ;;  %v4884_v21 = vadd.f32 %v4780_v53, %v2582_v38  ;;  %v2542_v42 = vadd.f32 %v2526_v33, %v4818_v16  ;;  %v2117_v27 = vadd.f32 1.0, %v3707_v34  ;;  %v2529_v53 = vmul.f32 %v4840_v43, %v2499_v35 }
 0x29c   : > { %v4888_v11 = vpop.eup %3716  ;;  %v2617_v13 = vadd.f32 %v4810_v51, %v2585_v9  ;;  %3734 = vtanh.f32 %v2544_v40  ;;  %v2527_v16 = vmul.f32 %v4794_v7, %v2491_v22  ;;  %v2576_v39 = vsub.f32 1.0, %v4830_v12 }
 0x29d   : > { %v3719_v52 = vpop.eup %3718  ;;  %2630 = vst [vmem:[#allocation2 + $0x80] sm:$0xff] %v4884_v21  ;;  %2647 = vst [vmem:[#allocation3 + $0x80] sm:$0xff] %v4884_v21  ;;  %3736 = vtanh.f32 %v2542_v42  ;;  %v3281_v55 = vpop.f32.mrb[60].mxu1  ;;  %v2545_v29 = vadd.f32 %v2529_v53, %v4827_v45 }
 0x29e   : > { %v3721_v28 = vpop.eup %3720  ;;  %3738 = vrcp.f32 %v2113_v14  ;;  %2633 = vst [vmem:[#allocation2 + $0x98] sm:$0xff] %v2617_v13  ;;  %2650 = vst [vmem:[#allocation3 + $0x98] sm:$0xff] %v2617_v13  ;;  %v3052_v51 = vpack.c.bf16 %v2617_v13, %v2616_v58  ;;  %v2512_v47 = vadd.f32 %v3281_v55, %v4763_v17  ;;  %v2503_v50 = vpop.f32.mrb[61].mxu1  ;;  %v2543_v43 = vadd.f32 %v2527_v16, %v4836_v63  ;;  %v3776_v55 = vld [vmem:[#allocation2 + $0xd8] sm:$0xff] }
 0x29f   : > { %v3723_v34 = vpop.eup %3722  ;;  %3740 = vrcp.f32 %v2115_v32  ;;  %v2504_v7 = vadd.f32 %v4763_v17, %v2503_v50  ;;  %v3282_v30 = vpop.f32.mrb[62].mxu1  ;;  %v3774_v32 = vld [vmem:[#allocation2 + $0xd0] sm:$0xff]  ;;  %v2575_v16 = vsub.f32 1.0, %v4807_v10 }
 0x2a0   : > { %v3725_v2 = vpop.eup %3724  ;;  %3742 = vrcp.f32 %v2117_v27  ;;  %3084 = vst [vmem:[%s3921_s27 + $0x8] sm:$0xff] %v3052_v51   ;;  %v2532_v44 = vmul.f32 %v3721_v28, %v2512_v47  ;;  %v2515_v4 = vadd.f32 %v3282_v30, %v4763_v17  ;;  %v2506_v56 = vpop.f32.mrb[63].mxu1  ;;  %v2608_v42 = vmul.f32 %v3774_v32, %v4830_v12  ;;  %v3777_v51 = vld [vmem:[#allocation2 + $0xc8] sm:$0xff] }
 0x2a1   : > { %v3727_v14 = vpop.eup %3726  ;;  %v2583_v0 = vmul.f32 %v3725_v2, %v2567_v3  ;;  %3744 = vtanh.f32 %v2545_v29  ;;  %v2530_v45 = vmul.f32 %v3715_v54, %v2504_v7  ;;  %v2507_v63 = vadd.f32 %v4763_v17, %v2506_v56  ;;  %v3778_v56 = vld [vmem:[#allocation2 + $0xe0] sm:$0xff] }
 0x2a2   : > { %v3729_v26 = vpop.eup %3728  ;;  %v2588_v49 = vmul.f32 %v3727_v14, %v2572_v25  ;;  %3746 = vtanh.f32 %v2543_v43  ;;  %v2548_v58 = vadd.f32 %v2532_v44, %v4870_v60  ;;  %v2533_v38 = vmul.f32 %v3723_v34, %v2515_v4 }
 0x2a3   : > { %v3731_v33 = vpop.eup %3730  ;;  %v2615_v9 = vadd.f32 %v4790_v36, %v2583_v0  ;;  %v2586_v40 = vmul.f32 %v3729_v26, %v2570_v61  ;;  %v2546_v8 = vadd.f32 %v2530_v45, %v2352_v31  ;;  %v2531_v3 = vmul.f32 %v3719_v52, %v2507_v63 }
 0x2a4   : > { %v3733_v35 = vpop.eup %3732  ;;  %v2620_v54 = vadd.f32 %v4858_v62, %v2588_v49  ;;  %v2589_v17 = vmul.f32 %v3731_v33, %v2573_v18  ;;  %3748 = vtanh.f32 %v2548_v58  ;;  %v2549_v37 = vadd.f32 %v2533_v38, %v2363_v24 }
 0x2a5   : > { %2631 = vst [vmem:[#allocation2 + $0x88] sm:$0xff] %v2615_v9  ;;  %2648 = vst [vmem:[#allocation3 + $0x88] sm:$0xff] %v2615_v9  ;;  %v3047_v25 = vpack.c.bf16 %v2615_v9, %v4884_v21  ;;  %v2618_v36 = vadd.f32 %v4848_v6, %v2586_v40  ;;  %v2587_v23 = vmul.f32 %v3733_v35, %v2571_v5  ;;  %3750 = vtanh.f32 %v2546_v8  ;;  %v3775_v21 = vld [vmem:[#allocation2 + $0xc0] sm:$0xff] }
 0x2a6   : > { %v3735_v61 = vpop.eup %3734  ;;  %v2574_v60 = vsub.f32 1.0, %v4787_v48  ;;  %2636 = vst [vmem:[#allocation2 + $0xb0] sm:$0xff] %v2620_v54  ;;  %2653 = vst [vmem:[#allocation3 + $0xb0] sm:$0xff] %v2620_v54  ;;  %v2621_v19 = vadd.f32 %v4863_v20, %v2589_v17  ;;  %3752 = vtanh.f32 %v2549_v37  ;;  %v2547_v62 = vadd.f32 %v2531_v3, %v2355_v15 }
 0x2a7   : > { %v3737_v18 = vpop.eup %3736  ;;  %3048 = vst [vmem:[%s3921_s27] sm:$0xff] %v3047_v25   ;;  %2634 = vst [vmem:[#allocation2 + $0xa0] sm:$0xff] %v2618_v36  ;;  %v2619_v59 = vadd.f32 %v4853_v41, %v2587_v23  ;;  %v2592_v6 = vmul.f32 %v3735_v61, %v2576_v39  ;;  %v2606_v22 = vmul.f32 %v3775_v21, %v4787_v48  ;;  %v2577_v41 = vsub.f32 1.0, %v4877_v57 }
 0x2a8   : > { %2651 = vst [vmem:[#allocation3 + $0xa0] sm:$0xff] %v2618_v36  ;;  %v4929_v5 = vpop.eup %3738  ;;  %2637 = vst [vmem:[#allocation2 + $0xb8] sm:$0xff] %v2621_v19  ;;  %v3062_v20 = vpack.c.bf16 %v2621_v19, %v2620_v54  ;;  %v2590_v31 = vmul.f32 %v3737_v18, %v2574_v60  ;;  %3754 = vtanh.f32 %v2547_v62  ;;  %v2609_v28 = vmul.f32 %v3776_v55, %v4877_v57 }
 0x2a9   : > { %2654 = vst [vmem:[#allocation3 + $0xb8] sm:$0xff] %v2621_v19  ;;  %v3741_v27 = vpop.eup %3740  ;;  %2635 = vst [vmem:[#allocation2 + $0xa8] sm:$0xff] %v2619_v59  ;;  %v3057_v12 = vpack.c.bf16 %v2619_v59, %v2618_v36  ;;  %v2624_v13 = vadd.f32 %v2608_v42, %v2592_v6  ;;  %v2607_v47 = vmul.f32 %v3777_v51, %v4807_v10  ;;  %v2578_v43 = vsub.f32 1.0, %v4888_v11 }
 0x2aa   : > { %2652 = vst [vmem:[#allocation3 + $0xa8] sm:$0xff] %v2619_v59  ;;  %v3743_v52 = vpop.eup %3742  ;;  %3086 = vst [vmem:[%s3921_s27 + $0x18] sm:$0xff] %v3062_v20   ;;  %v2622_v24 = vadd.f32 %v2606_v22, %v2590_v31  ;;  %v2580_v50 = vsub.f32 1.0, %v3741_v27  ;;  %v2612_v2 = vmul.f32 %v3741_v27, %v4617_v1  ;;  %v2610_v14 = vmul.f32 %v3778_v56, %v4888_v11  ;;  %v3779_v11 = vld [vmem:[#allocation2 + $0xe8] sm:$0xff] }
 0x2ab   : > { %v3745_v53 = vpop.eup %3744  ;;  %3085 = vst [vmem:[%s3921_s27 + $0x10] sm:$0xff] %v3057_v12   ;;  %2640 = vst [vmem:[#allocation2 + $0xd0] sm:$0xff] %v2624_v13  ;;  %v2581_v39 = vsub.f32 1.0, %v3743_v52  ;;  %v2579_v0 = vsub.f32 1.0, %v4929_v5  ;;  %v2613_v63 = vmul.f32 %v3743_v52, %v4619_v46  ;;  %v2611_v33 = vmul.f32 %v3779_v11, %v4929_v5 }
 0x2ac   : > { %2657 = vst [vmem:[#allocation3 + $0xd0] sm:$0xff] %v2624_v13  ;;  %v3747_v48 = vpop.eup %3746  ;;  %2638 = vst [vmem:[#allocation2 + $0xc0] sm:$0xff] %v2622_v24  ;;  %v2593_v15 = vmul.f32 %v3745_v53, %v2577_v41 }
 0x2ad   : > { %2655 = vst [vmem:[#allocation3 + $0xc0] sm:$0xff] %v2622_v24  ;;  %v2591_v34 = vmul.f32 %v3747_v48, %v2575_v16 }
 0x2ae   : > { %v3749_v29 = vpop.eup %3748  ;;  %v2625_v7 = vadd.f32 %v2609_v28, %v2593_v15 }
 0x2af   : > { %v3751_v30 = vpop.eup %3750  ;;  %v2623_v44 = vadd.f32 %v2607_v47, %v2591_v34  ;;  %v2596_v4 = vmul.f32 %v3749_v29, %v2580_v50 }
 0x2b0   : > { %v3753_v57 = vpop.eup %3752  ;;  %2641 = vst [vmem:[#allocation2 + $0xd8] sm:$0xff] %v2625_v7  ;;  %2658 = vst [vmem:[#allocation3 + $0xd8] sm:$0xff] %v2625_v7  ;;  %v3072_v10 = vpack.c.bf16 %v2625_v7, %v2624_v13  ;;  %v2594_v45 = vmul.f32 %v3751_v30, %v2578_v43 }
 0x2b1   : > { %2639 = vst [vmem:[#allocation2 + $0xc8] sm:$0xff] %v2623_v44  ;;  %2656 = vst [vmem:[#allocation3 + $0xc8] sm:$0xff] %v2623_v44  ;;  %v3067_v1 = vpack.c.bf16 %v2623_v44, %v2622_v24  ;;  %v2628_v26 = vadd.f32 %v2612_v2, %v2596_v4  ;;  %v2597_v49 = vmul.f32 %v3753_v57, %v2581_v39 }
 0x2b2   : > { %v3755_v58 = vpop.eup %3754  ;;  %3088 = vst [vmem:[%s3921_s27 + $0x28] sm:$0xff] %v3072_v10   ;;  %v2626_v38 = vadd.f32 %v2610_v14, %v2594_v45 }
 0x2b3   : > { %3087 = vst [vmem:[%s3921_s27 + $0x20] sm:$0xff] %v3067_v1   ;;  %2644 = vst [vmem:[#allocation2 + $0xf0] sm:$0xff] %v2628_v26  ;;  %v2629_v9 = vadd.f32 %v2613_v63, %v2597_v49  ;;  %v2595_v46 = vmul.f32 %v3755_v58, %v2579_v0 }
 0x2b4   : > { %2661 = vst [vmem:[#allocation3 + $0xf0] sm:$0xff] %v2628_v26  ;;  %2642 = vst [vmem:[#allocation2 + $0xe0] sm:$0xff] %v2626_v38 }
 0x2b5   : > { %2659 = vst [vmem:[#allocation3 + $0xe0] sm:$0xff] %v2626_v38  ;;  %2645 = vst [vmem:[#allocation2 + $0xf8] sm:$0xff] %v2629_v9  ;;  %v3082_v40 = vpack.c.bf16 %v2629_v9, %v2628_v26  ;;  %v2627_v8 = vadd.f32 %v2611_v33, %v2595_v46 }
 0x2b6   : > { %2662 = vst [vmem:[#allocation3 + $0xf8] sm:$0xff] %v2629_v9 }
 0x2b7   : > { %3090 = vst [vmem:[%s3921_s27 + $0x38] sm:$0xff] %v3082_v40   ;;  %2643 = vst [vmem:[#allocation2 + $0xe8] sm:$0xff] %v2627_v8  ;;  %v3077_v3 = vpack.c.bf16 %v2627_v8, %v2626_v38 }
 0x2b8   : > { %2660 = vst [vmem:[#allocation3 + $0xe8] sm:$0xff] %v2627_v8 }
 0x2b9   : > { %3793 = shalt.err (!%p3790_p12)
}
 0x2ba   : > { %s3794_s28 = scalar_lea.hbm %s4989_s15, 4096 }
 0x2bb   : > { %p3795_p13 = scmp.ne.s32.totalorder %s4989_s15, %s3794_s28  ;;  %p3800_p2 = scmp.lt.u32.totalorder %s3794_s28, %s4989_s15 }
 0x2bd   : > { %p3796_p0 = pnand %p3795_p13, %p3287_p5 }
 0x2bf   : > { %p3797_p1 = pneg %p3796_p0 }
 0x2c1   : > { %p3802_p3 = pnand %p3800_p2, %p3797_p1 }
 0x2c3   : > { %3805 = shalt.err (!%p3802_p3)
}
 0x2c4   : > { %s3819_s17 = smov 128   ;;  %s3820_s20 = smov 8   ;;  %3089 = vst [vmem:[%s3921_s27 + $0x30] sm:$0xff] %v3077_v3  }
 0x2c5   : > { %3284 = dma.vmem_to_hbm [thread:$0]  (%p3287_p5), %s2758_s22, 4096, %s4989_s15, [#allocation4], %s3819_s17, %s3819_s17, %s3820_s20  }
 0x2c6   : > { %3811 = dma.done.wait (%p3287_p5), [#allocation4], 4096  }
 0x2c7   : > { %3813 = vsyncadd (%p3287_p5), [#allocation4], 4294963200 }
 0x2c8 PF: > { %s27_s18 = sadd.s32 1, %s3816_s18  }
 0x2c9   : > { %p24_p4 = scmp.ge.s32.totalorder %s27_s18, 18  }
 0x2cb   :  { %26 = sbr.rel (!%p24_p4) target bundleno = 1 (0x1), region = 121 }
 0x2d2   :  { %2781 = vsyncpa [#allocation4], 1 }
 0x2d3   :  { %2783 = vsyncpa [#allocation4 + $0x1], 1 }

// kernel: gru4rec_forward.3
= control target key start
LH: loop header
LB: loop body
LE: loop exit
PB: predicated region body
PF: predicated region fallthrough
CT: control target
= control target key end

     0   :  { %8 = vsyncpa [#allocation4], 0  ;;  %s8562_s0 = inlined_call_operand.vmem [shape: bf16[2048,128], index: 0, kind: input, shape index: {}]   ;;  %s8563_s1 = inlined_call_operand.vmem [shape: bf16[128,512], index: 1, kind: input, shape index: {}]   ;;  %s8564_s2 = inlined_call_operand.vmem [shape: f32[1,512], index: 2, kind: input, shape index: {}]   ;;  %s8565_s3 = inlined_call_operand.hbm [shape: bf16[2048,512], index: 3, kind: output, shape index: {}]  }
   0x1   :  { %10 = vsyncpa [#allocation4 + $0x1], 0  ;;  %s7123_s12 = smov 0   ;;  %s7125_s13 = smov 0  }
   0x2   :  { %s7127_s14 = smov 0   ;;  %s7129_s15 = smov 0  }
   0x3 LB: > { %s7144_s16 = sadd.s32 4294967295, %s7096_s15   ;;  %s5126_s17 = sadd.s32 4294967294, %s7096_s15   ;;  %s7096_s15 = sphi %s7129_s15, %s8571_s15   ;;  %s7092_s14 = sphi %s7127_s14, %s8570_s14   ;;  %s7088_s13 = sphi %s7125_s13, %s8569_s13   ;;  %s7084_s12 = sphi %s7123_s12, %s8568_s12  }
   0x4   : > { %s7148_s18 = sadd.s32 1, %s7096_s15   ;;  %s44_s19 = sadd.s32 1, %s7092_s14 }
   0x5   : > { %s41_s20 = ssub.s32 %s7096_s15, %s7148_s18  ;;  %p51_p0 = scmp.ne.s32.totalorder %s7092_s14, %s7088_s13 }
   0x6   : > { %p42_p1 = scmp.eq.s32.totalorder %s41_s20, 0  ;;  %p52_p2 = scmp.eq.s32.totalorder %s7096_s15, 0 }
   0x7   : > { %p107_p3 = scmp.eq.s32.totalorder %s7144_s16, 1  ;;  %p112_p4 = scmp.ne.s32.totalorder %s7088_s13, %s7084_s12 }
   0x8   : > { %s7160_s21 = scalar_select %p42_p1, %s7092_s14, %s44_s19  }
   0x9   : > { %p53_p5 = por %p52_p2, %p51_p0  ;;  %p7162_p6 = por %p107_p3, %p51_p0 }
   0xa   : > { %p113_p7 = scmp.eq.s32.totalorder %s5126_s17, 1  ;;  %p5128_p9 = scmp.ge.s32.totalorder %s7096_s15, 2 }
   0xc   : > { %p7166_p8 = por %p113_p7, %p112_p4  ;;  %132 = sbr.rel (%p5128_p9) target bundleno = 31 (0x1f), region = 20 }
  0x13   : > { %135 = sbr.rel (!%p53_p5) target bundleno = 31 (0x1f), region = 24  ;;  %s137_s24 = sand.u32 (%p53_p5), 1, %s7092_s14  }
  0x14   : > { %s5541_s25 = sshll.u32 (%p53_p5), %s7096_s15, 3  ;;  %s5129_s26 = sshll.u32 (%p53_p5), %s137_s24, 7 }
  0x15   : > { %s7178_s29 = scalar_lea.vmem (%p53_p5), %s8563_s1, %s5541_s25  ;;  %s139_s30 = scalar_lea.vmem (%p53_p5), [#allocation2], %s5129_s26 }
  0x16   : > { %v200_v0 = vld [vmem:[%s7178_s29] sm:$0xff] (%p53_p5)  ;;  %v202_v1 = vld [vmem:[%s7178_s29 + $0x10] sm:$0xff] (%p53_p5) }
  0x17   : > { %v204_v2 = vld [vmem:[%s7178_s29 + $0x20] sm:$0xff] (%p53_p5)  ;;  %201 = vst [vmem:[%s139_s30] sm:$0xff] (%p53_p5), %v200_v0  ;;  %203 = vst [vmem:[%s139_s30 + $0x8] sm:$0xff] (%p53_p5), %v202_v1  ;;  %v206_v3 = vld [vmem:[%s7178_s29 + $0x30] sm:$0xff] (%p53_p5) }
  0x18   : > { %205 = vst [vmem:[%s139_s30 + $0x10] sm:$0xff] (%p53_p5), %v204_v2  ;;  %v208_v4 = vld [vmem:[%s7178_s29 + $0x40] sm:$0xff] (%p53_p5)  ;;  %v210_v5 = vld [vmem:[%s7178_s29 + $0x50] sm:$0xff] (%p53_p5)  ;;  %207 = vst [vmem:[%s139_s30 + $0x18] sm:$0xff] (%p53_p5), %v206_v3 }
  0x19   : > { %209 = vst [vmem:[%s139_s30 + $0x20] sm:$0xff] (%p53_p5), %v208_v4  ;;  %211 = vst [vmem:[%s139_s30 + $0x28] sm:$0xff] (%p53_p5), %v210_v5  ;;  %v212_v6 = vld [vmem:[%s7178_s29 + $0x60] sm:$0xff] (%p53_p5)  ;;  %v214_v7 = vld [vmem:[%s7178_s29 + $0x70] sm:$0xff] (%p53_p5) }
  0x1a   : > { %v216_v8 = vld [vmem:[%s7178_s29 + $0x80] sm:$0xff]  ;;  %213 = vst [vmem:[%s139_s30 + $0x30] sm:$0xff] %v212_v6  ;;  %215 = vst [vmem:[%s139_s30 + $0x38] sm:$0xff] %v214_v7  ;;  %v218_v9 = vld [vmem:[%s7178_s29 + $0x90] sm:$0xff] }
  0x1b   : > { %217 = vst [vmem:[%s139_s30 + $0x40] sm:$0xff] %v216_v8  ;;  %v220_v10 = vld [vmem:[%s7178_s29 + $0xa0] sm:$0xff]  ;;  %v222_v11 = vld [vmem:[%s7178_s29 + $0xb0] sm:$0xff]  ;;  %219 = vst [vmem:[%s139_s30 + $0x48] sm:$0xff] %v218_v9 }
  0x1c   : > { %221 = vst [vmem:[%s139_s30 + $0x50] sm:$0xff] %v220_v10  ;;  %223 = vst [vmem:[%s139_s30 + $0x58] sm:$0xff] %v222_v11  ;;  %v224_v12 = vld [vmem:[%s7178_s29 + $0xc0] sm:$0xff]  ;;  %v226_v13 = vld [vmem:[%s7178_s29 + $0xd0] sm:$0xff] }
  0x1d   : > { %v228_v14 = vld [vmem:[%s7178_s29 + $0xe0] sm:$0xff]  ;;  %225 = vst [vmem:[%s139_s30 + $0x60] sm:$0xff] %v224_v12  ;;  %227 = vst [vmem:[%s139_s30 + $0x68] sm:$0xff] %v226_v13  ;;  %v230_v15 = vld [vmem:[%s7178_s29 + $0xf0] sm:$0xff] }
  0x1e   : > { %229 = vst [vmem:[%s139_s30 + $0x70] sm:$0xff] %v228_v14  ;;  %231 = vst [vmem:[%s139_s30 + $0x78] sm:$0xff] %v230_v15 }
  0x1f PF: > { %p5132_p10 = scmp.ge.s32.totalorder %s7096_s15, 1  ;;  %p244_p11 = scmp.lt.s32.totalorder %s7096_s15, 3 }
  0x21   : > { %p245_p12 = pnand %p5132_p10, %p244_p11 }
  0x22   : > { %s7199_s4 = sand.u32 (!%p245_p12), 1, %s7088_s13   ;;  %v7098_v16 = vmov (!%p245_p12), 0   ;;  %v5882_v33 = vld [vmem:[%s8562_s0] sm:$0xff] (!%p245_p12)   ;;  %v5884_v35 = vld [vmem:[%s8562_s0 + $0x8] sm:$0xff] (!%p245_p12)   ;;  %v5886_v37 = vld [vmem:[%s8562_s0 + $0x10] sm:$0xff] (!%p245_p12)   ;;  %s7099_s11 = smov (!%p245_p12), [#allocation3]  }
  0x23   : > { %248 = sbr.rel (%p245_p12) target bundleno = 827 (0x33b), region = 66  ;;  %s5133_s5 = sshll.u32 (!%p245_p12), %s7199_s4, 7  ;;  %1450 = vmatprep.mubr.bf16.mxu0 (!%p245_p12), %v7098_v16  ;;  %2090 = vmatprep.mubr.bf16.mxu1 (!%p245_p12), %v7098_v16  ;;  %v5883_v34 = vld [vmem:[%s8562_s0 + $0x200] sm:$0xff] (!%p245_p12)   ;;  %v5885_v36 = vld [vmem:[%s8562_s0 + $0x208] sm:$0xff] (!%p245_p12)   ;;  %v5887_v38 = vld [vmem:[%s8562_s0 + $0x210] sm:$0xff] (!%p245_p12)  }
  0x24   : > { %s7204_s6 = scalar_lea.vmem (!%p245_p12), [#allocation2], %s5133_s5  ;;  %v5888_v39 = vld [vmem:[%s8562_s0 + $0x18] sm:$0xff] (!%p245_p12)   ;;  %v5890_v41 = vld [vmem:[%s8562_s0 + $0x20] sm:$0xff] (!%p245_p12)   ;;  %v5892_v43 = vld [vmem:[%s8562_s0 + $0x28] sm:$0xff] (!%p245_p12)   ;;  %s5135_s5 = sshll.u32 (!%p245_p12), %s7144_s16, 1 }
  0x25   : > { %v5858_v17 = vld [vmem:[%s7204_s6 + $0x4] ss:$8 sps:$4 sm:$0xff] (!%p245_p12)   ;;  %v5860_v18 = vld [vmem:[%s7204_s6] ss:$8 sps:$4 sm:$0xff] (!%p245_p12)   ;;  %v5861_v19 = vld [vmem:[%s7204_s6 + $0x14] ss:$8 sps:$4 sm:$0xff] (!%p245_p12)  }
  0x26   : > { %1418 = vmatprep.subr.bf16.mxu0 (!%p245_p12), %v5858_v17  ;;  %5799 = vmatprep.subr.bf16.mxu1 (!%p245_p12), %v5858_v17  ;;  %v5863_v20 = vld [vmem:[%s7204_s6 + $0x10] ss:$8 sps:$4 sm:$0xff] (!%p245_p12)   ;;  %v5864_v21 = vld [vmem:[%s7204_s6 + $0x24] ss:$8 sps:$4 sm:$0xff] (!%p245_p12)   ;;  %v5866_v22 = vld [vmem:[%s7204_s6 + $0x20] ss:$8 sps:$4 sm:$0xff] (!%p245_p12)  }
  0x27   : > { %1419 = vmatpush1.bf16.msra.mxu0 (!%p245_p12), %v5860_v18  ;;  %5807 = vmatpush1.bf16.msra.mxu1 (!%p245_p12), %v5860_v18  ;;  %v5867_v23 = vld [vmem:[%s7204_s6 + $0x34] ss:$8 sps:$4 sm:$0xff] (!%p245_p12)   ;;  %v5869_v24 = vld [vmem:[%s7204_s6 + $0x30] ss:$8 sps:$4 sm:$0xff] (!%p245_p12)   ;;  %v5870_v25 = vld [vmem:[%s7204_s6 + $0x44] ss:$8 sps:$4 sm:$0xff] (!%p245_p12)  }
  0x28   : > { %1420 = vmatprep.subr.bf16.mxu0 (!%p245_p12), %v5861_v19  ;;  %5800 = vmatprep.subr.bf16.mxu1 (!%p245_p12), %v5861_v19  ;;  %v5872_v26 = vld [vmem:[%s7204_s6 + $0x40] ss:$8 sps:$4 sm:$0xff] (!%p245_p12)   ;;  %v5873_v27 = vld [vmem:[%s7204_s6 + $0x54] ss:$8 sps:$4 sm:$0xff] (!%p245_p12)   ;;  %v5875_v28 = vld [vmem:[%s7204_s6 + $0x50] ss:$8 sps:$4 sm:$0xff] (!%p245_p12)  }
  0x29   : > { %v5876_v29 = vld [vmem:[%s7204_s6 + $0x64] ss:$8 sps:$4 sm:$0xff] (!%p245_p12)   ;;  %v5878_v30 = vld [vmem:[%s7204_s6 + $0x60] ss:$8 sps:$4 sm:$0xff] (!%p245_p12)   ;;  %v5879_v31 = vld [vmem:[%s7204_s6 + $0x74] ss:$8 sps:$4 sm:$0xff] (!%p245_p12)  }
  0x2a   : > { %v5881_v32 = vld [vmem:[%s7204_s6 + $0x70] ss:$8 sps:$4 sm:$0xff]   ;;  %v5891_v42 = vld [vmem:[%s8562_s0 + $0x220] sm:$0xff]   ;;  %v5893_v44 = vld [vmem:[%s8562_s0 + $0x228] sm:$0xff]   ;;  %p280_p13 = scmp.lt.s32.totalorder %s5135_s5, 3  ;;  %s5134_s8 = sshll.u32 %s7199_s4, 11 }
  0x2b   : > { %1421 = vmatpush1.bf16.msra.mxu0 %v5863_v20  ;;  %5808 = vmatpush1.bf16.msra.mxu1 %v5863_v20  ;;  %v5889_v40 = vld [vmem:[%s8562_s0 + $0x218] sm:$0xff]   ;;  %v5894_v45 = vld [vmem:[%s8562_s0 + $0x30] sm:$0xff]   ;;  %v5898_v49 = vld [vmem:[%s8562_s0 + $0x40] sm:$0xff]   ;;  %s7487_s19 = scalar_lea.vmem [#allocation3], %s5134_s8 }
  0x2c   : > { %1422 = vmatprep.subr.bf16.mxu0 %v5864_v21  ;;  %5801 = vmatprep.subr.bf16.mxu1 %v5864_v21  ;;  %v5895_v46 = vld [vmem:[%s8562_s0 + $0x230] sm:$0xff]   ;;  %v5896_v47 = vld [vmem:[%s8562_s0 + $0x38] sm:$0xff]   ;;  %v5899_v50 = vld [vmem:[%s8562_s0 + $0x240] sm:$0xff]   ;;  %s8573_s5 = smov (!%p280_p13, %s5135_s5), 3  ;;  %s5049_s6 = sshll.u32 %s7487_s19, 4  ;;  %s8516_s6 = int_to_ptr.vmem [resolvable:$true] %s5049_s6 }
  0x2d   : > { %v5897_v48 = vld [vmem:[%s8562_s0 + $0x238] sm:$0xff]   ;;  %v5900_v51 = vld [vmem:[%s8562_s0 + $0x48] sm:$0xff]   ;;  %v5902_v53 = vld [vmem:[%s8562_s0 + $0x50] sm:$0xff]   ;;  %s282_s17 = scalar_lea.vmem %s8564_s2, %s8573_s5  ;;  %s5798_s5 = sshll.u32 %s7144_s16, 7 }
  0x2e   : > { %v5901_v52 = vld [vmem:[%s8562_s0 + $0x248] sm:$0xff]   ;;  %v5903_v54 = vld [vmem:[%s8562_s0 + $0x250] sm:$0xff]   ;;  %v5904_v55 = vld [vmem:[%s8562_s0 + $0x58] sm:$0xff]   ;;  %s8514_s9 = scalar_lea.hbm %s8565_s3, %s5798_s5  ;;  %s5036_s16 = scalar_lea.sflag [#allocation4], %s7199_s4 }
  0x2f   : > { %1423 = vmatpush1.bf16.msra.mxu0 %v5866_v22  ;;  %5809 = vmatpush1.bf16.msra.mxu1 %v5866_v22  ;;  %v5905_v56 = vld [vmem:[%s8562_s0 + $0x258] sm:$0xff]   ;;  %v5906_v57 = vld [vmem:[%s8562_s0 + $0x60] sm:$0xff]   ;;  %v5908_v59 = vld [vmem:[%s8562_s0 + $0x68] sm:$0xff]   ;;  %v560_v22 = vlaneseq  ;;  %s7034_s10 = scalar_lea.vmem %s8516_s6, 32768 }
  0x30   : > { %1424 = vmatprep.subr.bf16.mxu0 %v5867_v23  ;;  %5802 = vmatprep.subr.bf16.mxu1 %v5867_v23  ;;  %v5907_v58 = vld [vmem:[%s8562_s0 + $0x260] sm:$0xff]   ;;  %v5909_v60 = vld [vmem:[%s8562_s0 + $0x268] sm:$0xff]   ;;  %v5910_v61 = vld [vmem:[%s8562_s0 + $0x70] sm:$0xff]   ;;  %p7035_p0 = scmp.ne.s32.totalorder %s8516_s6, %s7034_s10 }
  0x31   : > { %v5911_v62 = vld [vmem:[%s8562_s0 + $0x270] sm:$0xff]   ;;  %v5912_v63 = vld [vmem:[%s8562_s0 + $0x78] sm:$0xff]   ;;  %v5914_v1 = vld [vmem:[%s8562_s0 + $0x80] sm:$0xff]   ;;  %v561_v23 = vshrl.u32 %v560_v22, 7 }
  0x32   : > { %v5913_v0 = vld [vmem:[%s8562_s0 + $0x278] sm:$0xff]   ;;  %v5915_v2 = vld [vmem:[%s8562_s0 + $0x280] sm:$0xff]   ;;  %v5916_v3 = vld [vmem:[%s8562_s0 + $0x88] sm:$0xff]   ;;  %p7036_p1 = pnand %p7035_p0, %p7162_p6 }
  0x33   : > { %1425 = vmatpush1.bf16.msra.mxu0 %v5869_v24  ;;  %5810 = vmatpush1.bf16.msra.mxu1 %v5869_v24  ;;  %v5917_v4 = vld [vmem:[%s8562_s0 + $0x288] sm:$0xff]   ;;  %v5918_v5 = vld [vmem:[%s8562_s0 + $0x90] sm:$0xff]   ;;  %v5920_v7 = vld [vmem:[%s8562_s0 + $0x98] sm:$0xff]  }
  0x34   : > { %1426 = vmatprep.subr.bf16.mxu0 %v5870_v25  ;;  %5803 = vmatprep.subr.bf16.mxu1 %v5870_v25  ;;  %v5919_v6 = vld [vmem:[%s8562_s0 + $0x290] sm:$0xff]   ;;  %v5921_v8 = vld [vmem:[%s8562_s0 + $0x298] sm:$0xff]   ;;  %v5922_v9 = vld [vmem:[%s8562_s0 + $0xa0] sm:$0xff]   ;;  %p7037_p2 = pneg %p7036_p1 }
  0x35   : > { %v5923_v10 = vld [vmem:[%s8562_s0 + $0x2a0] sm:$0xff]   ;;  %v5924_v11 = vld [vmem:[%s8562_s0 + $0xa8] sm:$0xff]   ;;  %v5926_v13 = vld [vmem:[%s8562_s0 + $0xb0] sm:$0xff]  }
  0x36   : > { %v5925_v12 = vld [vmem:[%s8562_s0 + $0x2a8] sm:$0xff]   ;;  %v5927_v14 = vld [vmem:[%s8562_s0 + $0x2b0] sm:$0xff]   ;;  %v5928_v15 = vld [vmem:[%s8562_s0 + $0xb8] sm:$0xff]  }
  0x37   : > { %1427 = vmatpush1.bf16.msra.mxu0 %v5872_v26  ;;  %5811 = vmatpush1.bf16.msra.mxu1 %v5872_v26  ;;  %v5929_v17 = vld [vmem:[%s8562_s0 + $0x2b8] sm:$0xff]   ;;  %v5930_v18 = vld [vmem:[%s8562_s0 + $0xc0] sm:$0xff]   ;;  %v5932_v20 = vld [vmem:[%s8562_s0 + $0xc8] sm:$0xff]   ;;  %v562_v26 = vsub.s32 0, %v561_v23 }
  0x38   : > { %1428 = vmatprep.subr.bf16.mxu0 %v5873_v27  ;;  %5804 = vmatprep.subr.bf16.mxu1 %v5873_v27  ;;  %v5931_v19 = vld [vmem:[%s8562_s0 + $0x2c0] sm:$0xff]   ;;  %v5933_v21 = vld [vmem:[%s8562_s0 + $0x2c8] sm:$0xff]   ;;  %v5934_v24 = vld [vmem:[%s8562_s0 + $0xd0] sm:$0xff]  }
  0x39   : > { %v5935_v25 = vld [vmem:[%s8562_s0 + $0x2d0] sm:$0xff]   ;;  %v558_v27 = vld [vmem:[%s282_s17] sm:$0x3]  ;;  %s7038_s17 = sshll.u32 %s7099_s11, 4  ;;  %s7039_s17 = int_to_ptr.vmem [resolvable:$false] %s7038_s17 }
  0x3a   : > { %s7040_s20 = scalar_lea.vmem %s7039_s17, 65536  ;;  %p7041_p3 = scmp.lt.s32.totalorder %s8516_s6, %s7039_s17 }
  0x3b   : > { %1429 = vmatpush1.bf16.msra.mxu0 %v5875_v28  ;;  %5812 = vmatpush1.bf16.msra.mxu1 %v5875_v28  ;;  %v566_v28 = vsub.s32 1, %v561_v23  ;;  %p7042_p4 = scmp.lt.s32.totalorder %s7040_s20, %s7034_s10 }
  0x3c   : > { %1430 = vmatprep.subr.bf16.mxu0 %v5876_v29  ;;  %5805 = vmatprep.subr.bf16.mxu1 %v5876_v29  ;;  %v7440_v29 = vrot.slane %v558_v27, %v562_v26 }
  0x3d   : > { %p7043_p5 = por %p7042_p4, %p7041_p3 }
  0x3f   : > { %1431 = vmatpush1.bf16.msra.mxu0 %v5878_v30  ;;  %5813 = vmatpush1.bf16.msra.mxu1 %v5878_v30  ;;  %v7442_v30 = vrot.slane %v558_v27, %v566_v28  ;;  %p7044_p7 = pnand %p7043_p5, %p7037_p2 }
  0x40   : > { %1432 = vmatprep.subr.bf16.mxu0 %v5879_v31  ;;  %5806 = vmatprep.subr.bf16.mxu1 %v5879_v31 }
  0x43   : > { %1433 = vmatpush1.bf16.msra.mxu0 %v5881_v32  ;;  %5814 = vmatpush1.bf16.msra.mxu1 %v5881_v32 }
  0x46   : > { %1451 = vmatmul.mubr.bf16.vlgmr.msra.gmra.mrb[0].mxu0 %v5882_v33  ;;  %2091 = vmatmul.mubr.bf16.vlgmr.msra.gmra.mrb[0].mxu1 %v5883_v34 }
  0x47   : > { %1460 = vmatprep.mubr.bf16.mxu0 %v7098_v16  ;;  %2100 = vmatprep.mubr.bf16.mxu1 %v7098_v16 }
  0x4e   : > { %1461 = vmatmul.mubr.bf16.gmra.mrb[4].mxu0 %v5884_v35  ;;  %2101 = vmatmul.mubr.bf16.gmra.mrb[4].mxu1 %v5885_v36 }
  0x4f   : > { %1470 = vmatprep.mubr.bf16.mxu0 %v7098_v16  ;;  %2110 = vmatprep.mubr.bf16.mxu1 %v7098_v16 }
  0x56   : > { %1471 = vmatmul.mubr.bf16.gmra.mrb[8].mxu0 %v5886_v37  ;;  %2111 = vmatmul.mubr.bf16.gmra.mrb[8].mxu1 %v5887_v38  ;;  %v5936_v37 = vld [vmem:[%s8562_s0 + $0xd8] sm:$0xff]  }
  0x57   : > { %1480 = vmatprep.mubr.bf16.mxu0 %v7098_v16  ;;  %2120 = vmatprep.mubr.bf16.mxu1 %v7098_v16  ;;  %v5937_v38 = vld [vmem:[%s8562_s0 + $0x2d8] sm:$0xff]  }
  0x5e   : > { %1481 = vmatmul.mubr.bf16.gmra.mrb[12].mxu0 %v5888_v39  ;;  %2121 = vmatmul.mubr.bf16.gmra.mrb[12].mxu1 %v5889_v40 }
  0x5f   : > { %1490 = vmatprep.mubr.bf16.mxu0 %v7098_v16  ;;  %2130 = vmatprep.mubr.bf16.mxu1 %v7098_v16 }
  0x66   : > { %1491 = vmatmul.mubr.bf16.gmra.mrb[16].mxu0 %v5890_v41  ;;  %2131 = vmatmul.mubr.bf16.gmra.mrb[16].mxu1 %v5891_v42 }
  0x67   : > { %1500 = vmatprep.mubr.bf16.mxu0 %v7098_v16  ;;  %2140 = vmatprep.mubr.bf16.mxu1 %v7098_v16 }
  0x6e   : > { %1501 = vmatmul.mubr.bf16.gmra.mrb[20].mxu0 %v5892_v43  ;;  %2141 = vmatmul.mubr.bf16.gmra.mrb[20].mxu1 %v5893_v44 }
  0x6f   : > { %1510 = vmatprep.mubr.bf16.mxu0 %v7098_v16  ;;  %2150 = vmatprep.mubr.bf16.mxu1 %v7098_v16 }
  0x76   : > { %1511 = vmatmul.mubr.bf16.gmra.mrb[24].mxu0 %v5894_v45  ;;  %2151 = vmatmul.mubr.bf16.gmra.mrb[24].mxu1 %v5895_v46 }
  0x77   : > { %1520 = vmatprep.mubr.bf16.mxu0 %v7098_v16  ;;  %2160 = vmatprep.mubr.bf16.mxu1 %v7098_v16 }
  0x7e   : > { %1521 = vmatmul.mubr.bf16.gmra.mrb[28].mxu0 %v5896_v47  ;;  %2161 = vmatmul.mubr.bf16.gmra.mrb[28].mxu1 %v5897_v48 }
  0x7f   : > { %1530 = vmatprep.mubr.bf16.mxu0 %v7098_v16  ;;  %2170 = vmatprep.mubr.bf16.mxu1 %v7098_v16 }
  0x86   : > { %1531 = vmatmul.mubr.bf16.gmra.mrb[32].mxu0 %v5898_v49  ;;  %2171 = vmatmul.mubr.bf16.gmra.mrb[32].mxu1 %v5899_v50 }
  0x87   : > { %1540 = vmatprep.mubr.bf16.mxu0 %v7098_v16  ;;  %2180 = vmatprep.mubr.bf16.mxu1 %v7098_v16 }
  0x8e   : > { %1541 = vmatmul.mubr.bf16.gmra.mrb[36].mxu0 %v5900_v51  ;;  %2181 = vmatmul.mubr.bf16.gmra.mrb[36].mxu1 %v5901_v52 }
  0x8f   : > { %1550 = vmatprep.mubr.bf16.mxu0 %v7098_v16  ;;  %2190 = vmatprep.mubr.bf16.mxu1 %v7098_v16 }
  0x96   : > { %1551 = vmatmul.mubr.bf16.gmra.mrb[40].mxu0 %v5902_v53  ;;  %2191 = vmatmul.mubr.bf16.gmra.mrb[40].mxu1 %v5903_v54 }
  0x97   : > { %1560 = vmatprep.mubr.bf16.mxu0 %v7098_v16  ;;  %2200 = vmatprep.mubr.bf16.mxu1 %v7098_v16 }
  0x9e   : > { %1561 = vmatmul.mubr.bf16.gmra.mrb[44].mxu0 %v5904_v55  ;;  %2201 = vmatmul.mubr.bf16.gmra.mrb[44].mxu1 %v5905_v56  ;;  %v5938_v55 = vld [vmem:[%s8562_s0 + $0xe0] sm:$0xff]  }
  0x9f   : > { %1570 = vmatprep.mubr.bf16.mxu0 %v7098_v16  ;;  %2210 = vmatprep.mubr.bf16.mxu1 %v7098_v16  ;;  %v5939_v56 = vld [vmem:[%s8562_s0 + $0x2e0] sm:$0xff]  }
  0xa6   : > { %1571 = vmatmul.mubr.bf16.gmra.mrb[48].mxu0 %v5906_v57  ;;  %2211 = vmatmul.mubr.bf16.gmra.mrb[48].mxu1 %v5907_v58 }
  0xa7   : > { %1580 = vmatprep.mubr.bf16.mxu0 %v7098_v16  ;;  %2220 = vmatprep.mubr.bf16.mxu1 %v7098_v16 }
  0xae   : > { %1581 = vmatmul.mubr.bf16.gmra.mrb[52].mxu0 %v5908_v59  ;;  %2221 = vmatmul.mubr.bf16.gmra.mrb[52].mxu1 %v5909_v60 }
  0xaf   : > { %1590 = vmatprep.mubr.bf16.mxu0 %v7098_v16  ;;  %2230 = vmatprep.mubr.bf16.mxu1 %v7098_v16 }
  0xb6   : > { %1591 = vmatmul.mubr.bf16.gmra.mrb[56].mxu0 %v5910_v61  ;;  %2231 = vmatmul.mubr.bf16.gmra.mrb[56].mxu1 %v5911_v62 }
  0xb7   : > { %1600 = vmatprep.mubr.bf16.mxu0 %v7098_v16  ;;  %2240 = vmatprep.mubr.bf16.mxu1 %v7098_v16 }
  0xbe   : > { %1601 = vmatmul.mubr.bf16.gmra.mrb[60].mxu0 %v5912_v63  ;;  %2241 = vmatmul.mubr.bf16.gmra.mrb[60].mxu1 %v5913_v0 }
  0xbf   : > { %1610 = vmatprep.mubr.bf16.mxu0 %v7098_v16  ;;  %2250 = vmatprep.mubr.bf16.mxu1 %v7098_v16 }
  0xc6   : > { %1611 = vmatmul.mubr.bf16.gmra.mrb[64].mxu0 %v5914_v1  ;;  %2251 = vmatmul.mubr.bf16.gmra.mrb[64].mxu1 %v5915_v2 }
  0xc7   : > { %1620 = vmatprep.mubr.bf16.mxu0 %v7098_v16  ;;  %2260 = vmatprep.mubr.bf16.mxu1 %v7098_v16 }
  0xce   : > { %1621 = vmatmul.mubr.bf16.gmra.mrb[68].mxu0 %v5916_v3  ;;  %2261 = vmatmul.mubr.bf16.gmra.mrb[68].mxu1 %v5917_v4 }
  0xcf   : > { %1630 = vmatprep.mubr.bf16.mxu0 %v7098_v16  ;;  %2270 = vmatprep.mubr.bf16.mxu1 %v7098_v16 }
  0xd6   : > { %1631 = vmatmul.mubr.bf16.gmra.mrb[72].mxu0 %v5918_v5  ;;  %2271 = vmatmul.mubr.bf16.gmra.mrb[72].mxu1 %v5919_v6 }
  0xd7   : > { %1640 = vmatprep.mubr.bf16.mxu0 %v7098_v16  ;;  %2280 = vmatprep.mubr.bf16.mxu1 %v7098_v16 }
  0xde   : > { %1641 = vmatmul.mubr.bf16.gmra.mrb[76].mxu0 %v5920_v7  ;;  %2281 = vmatmul.mubr.bf16.gmra.mrb[76].mxu1 %v5921_v8 }
  0xdf   : > { %1650 = vmatprep.mubr.bf16.mxu0 %v7098_v16  ;;  %2290 = vmatprep.mubr.bf16.mxu1 %v7098_v16 }
  0xe6   : > { %1651 = vmatmul.mubr.bf16.gmra.mrb[80].mxu0 %v5922_v9  ;;  %2291 = vmatmul.mubr.bf16.gmra.mrb[80].mxu1 %v5923_v10 }
  0xe7   : > { %1660 = vmatprep.mubr.bf16.mxu0 %v7098_v16  ;;  %2300 = vmatprep.mubr.bf16.mxu1 %v7098_v16 }
  0xee   : > { %1661 = vmatmul.mubr.bf16.gmra.mrb[84].mxu0 %v5924_v11  ;;  %2301 = vmatmul.mubr.bf16.gmra.mrb[84].mxu1 %v5925_v12 }
  0xef   : > { %1670 = vmatprep.mubr.bf16.mxu0 %v7098_v16  ;;  %2310 = vmatprep.mubr.bf16.mxu1 %v7098_v16 }
  0xf6   : > { %1671 = vmatmul.mubr.bf16.gmra.mrb[88].mxu0 %v5926_v13  ;;  %2311 = vmatmul.mubr.bf16.gmra.mrb[88].mxu1 %v5927_v14 }
  0xf7   : > { %1680 = vmatprep.mubr.bf16.mxu0 %v7098_v16  ;;  %2320 = vmatprep.mubr.bf16.mxu1 %v7098_v16 }
  0xfe   : > { %1681 = vmatmul.mubr.bf16.gmra.mrb[92].mxu0 %v5928_v15  ;;  %2321 = vmatmul.mubr.bf16.gmra.mrb[92].mxu1 %v5929_v17  ;;  %v5940_v17 = vld [vmem:[%s8562_s0 + $0xe8] sm:$0xff]  }
  0xff   : > { %1690 = vmatprep.mubr.bf16.mxu0 %v7098_v16  ;;  %2330 = vmatprep.mubr.bf16.mxu1 %v7098_v16 }
 0x106   : > { %1691 = vmatmul.mubr.bf16.gmra.mrb[96].mxu0 %v5930_v18  ;;  %2331 = vmatmul.mubr.bf16.gmra.mrb[96].mxu1 %v5931_v19  ;;  %v5941_v18 = vld [vmem:[%s8562_s0 + $0x2e8] sm:$0xff]  }
 0x107   : > { %1700 = vmatprep.mubr.bf16.mxu0 %v7098_v16  ;;  %2340 = vmatprep.mubr.bf16.mxu1 %v7098_v16 }
 0x10e   : > { %1701 = vmatmul.mubr.bf16.gmra.mrb[100].mxu0 %v5932_v20  ;;  %2341 = vmatmul.mubr.bf16.gmra.mrb[100].mxu1 %v5933_v21 }
 0x10f   : > { %1710 = vmatprep.mubr.bf16.mxu0 %v7098_v16  ;;  %2350 = vmatprep.mubr.bf16.mxu1 %v7098_v16 }
 0x116   : > { %1711 = vmatmul.mubr.bf16.gmra.mrb[104].mxu0 %v5934_v24  ;;  %2351 = vmatmul.mubr.bf16.gmra.mrb[104].mxu1 %v5935_v25 }
 0x117   : > { %1720 = vmatprep.mubr.bf16.mxu0 %v7098_v16  ;;  %2360 = vmatprep.mubr.bf16.mxu1 %v7098_v16 }
 0x119   : > { %v1452_v31 = vpop.f32.mrb[0].mxu0  ;;  %v2092_v32 = vpop.f32.mrb[0].mxu1 }
 0x11a   : > { %v1453_v33 = vadd.f32 %v1452_v31, %v7440_v29  ;;  %v2093_v34 = vadd.f32 %v2092_v32, %v7440_v29  ;;  %v1454_v35 = vpop.f32.mrb[1].mxu0  ;;  %v2094_v36 = vpop.f32.mrb[1].mxu1 }
 0x11b   : > { %v1455_v39 = vadd.f32 %v1454_v35, %v7442_v30  ;;  %v2095_v40 = vadd.f32 %v2094_v36, %v7442_v30  ;;  %v1456_v41 = vpop.f32.mrb[2].mxu0  ;;  %v2096_v42 = vpop.f32.mrb[2].mxu1 }
 0x11c   : > { %6010 = vtanh.f32 %v1453_v33  ;;  %v1457_v43 = vadd.f32 %v1456_v41, %v7440_v29  ;;  %v1458_v44 = vpop.f32.mrb[3].mxu0  ;;  %v2098_v45 = vpop.f32.mrb[3].mxu1  ;;  %v2097_v46 = vadd.f32 %v2096_v42, %v7440_v29 }
 0x11d   : > { %6012 = vtanh.f32 %v2093_v34  ;;  %v1459_v47 = vadd.f32 %v1458_v44, %v7442_v30  ;;  %v2099_v48 = vadd.f32 %v2098_v45, %v7442_v30 }
 0x11e   : > { %6014 = vtanh.f32 %v1455_v39  ;;  %1721 = vmatmul.mubr.bf16.gmra.mrb[108].mxu0 %v5936_v37  ;;  %2361 = vmatmul.mubr.bf16.gmra.mrb[108].mxu1 %v5937_v38 }
 0x11f   : > { %6016 = vtanh.f32 %v2095_v40  ;;  %1730 = vmatprep.mubr.bf16.mxu0 %v7098_v16  ;;  %2370 = vmatprep.mubr.bf16.mxu1 %v7098_v16 }
 0x120   : > { %6018 = vtanh.f32 %v1457_v43 }
 0x121   : > { %6020 = vtanh.f32 %v2097_v46  ;;  %v1462_v49 = vpop.f32.mrb[4].mxu0  ;;  %v2102_v50 = vpop.f32.mrb[4].mxu1 }
 0x122   : > { %6022 = vtanh.f32 %v1459_v47  ;;  %v1463_v51 = vadd.f32 %v1462_v49, %v7440_v29  ;;  %v2103_v52 = vadd.f32 %v2102_v50, %v7440_v29  ;;  %v1464_v53 = vpop.f32.mrb[5].mxu0  ;;  %v2104_v54 = vpop.f32.mrb[5].mxu1  ;;  %v5942_v49 = vld [vmem:[%s8562_s0 + $0xf0] sm:$0xff]  }
 0x123   : > { %6024 = vtanh.f32 %v2099_v48  ;;  %v1465_v57 = vadd.f32 %v1464_v53, %v7442_v30  ;;  %v2105_v58 = vadd.f32 %v2104_v54, %v7442_v30  ;;  %v1466_v59 = vpop.f32.mrb[6].mxu0  ;;  %v2106_v60 = vpop.f32.mrb[6].mxu1  ;;  %v5943_v50 = vld [vmem:[%s8562_s0 + $0x2f0] sm:$0xff]  }
 0x124   : > { %6026 = vtanh.f32 %v1463_v51  ;;  %v1467_v61 = vadd.f32 %v1466_v59, %v7440_v29  ;;  %v1468_v62 = vpop.f32.mrb[7].mxu0  ;;  %v2108_v63 = vpop.f32.mrb[7].mxu1  ;;  %v2107_v0 = vadd.f32 %v2106_v60, %v7440_v29 }
 0x125   : > { %6028 = vtanh.f32 %v2103_v52  ;;  %v1469_v2 = vadd.f32 %v1468_v62, %v7442_v30  ;;  %v2109_v4 = vadd.f32 %v2108_v63, %v7442_v30 }
 0x126   : > { %v6011_v1 = vpop.eup %6010  ;;  %6030 = vtanh.f32 %v1465_v57  ;;  %1731 = vmatmul.mubr.bf16.gmra.mrb[112].mxu0 %v5938_v55  ;;  %2371 = vmatmul.mubr.bf16.gmra.mrb[112].mxu1 %v5939_v56 }
 0x127   : > { %v6013_v3 = vpop.eup %6012  ;;  %6032 = vtanh.f32 %v2105_v58  ;;  %1740 = vmatprep.mubr.bf16.mxu0 %v7098_v16  ;;  %2380 = vmatprep.mubr.bf16.mxu1 %v7098_v16 }
 0x128   : > { %v6015_v5 = vpop.eup %6014  ;;  %6034 = vtanh.f32 %v1467_v61 }
 0x129   : > { %v6017_v6 = vpop.eup %6016  ;;  %v5542_v7 = vpack.c.bf16 %v6015_v5, %v6011_v1  ;;  %6036 = vtanh.f32 %v2107_v0  ;;  %v1472_v8 = vpop.f32.mrb[8].mxu0 }
 0x12a   : > { %v2112_v9 = vpop.f32.mrb[8].mxu1  ;;  %v6019_v10 = vpop.eup %6018  ;;  %v5670_v11 = vpack.c.bf16 %v6017_v6, %v6013_v3  ;;  %6038 = vtanh.f32 %v1469_v2  ;;  %v1473_v12 = vadd.f32 %v1472_v8, %v7440_v29 }
 0x12b   : > { %v2113_v13 = vadd.f32 %v2112_v9, %v7440_v29  ;;  %v1474_v14 = vpop.f32.mrb[9].mxu0  ;;  %v2114_v15 = vpop.f32.mrb[9].mxu1  ;;  %4779 = vst [vmem:[%s7487_s19] sm:$0xff] %v5542_v7  ;;  %6040 = vtanh.f32 %v2109_v4 }
 0x12c   : > { %v6021_v19 = vpop.eup %6020  ;;  %v1475_v20 = vadd.f32 %v1474_v14, %v7442_v30  ;;  %v2115_v21 = vadd.f32 %v2114_v15, %v7442_v30  ;;  %v1476_v22 = vpop.f32.mrb[10].mxu0  ;;  %4907 = vst [vmem:[%s7487_s19 + $0x400] sm:$0xff] %v5670_v11  ;;  %6042 = vtanh.f32 %v1473_v12  ;;  %v5944_v15 = vld [vmem:[%s8562_s0 + $0xf8] sm:$0xff]  }
 0x12d   : > { %v2116_v23 = vpop.f32.mrb[10].mxu1  ;;  %v6023_v24 = vpop.eup %6022  ;;  %v1477_v25 = vadd.f32 %v1476_v22, %v7440_v29  ;;  %6044 = vtanh.f32 %v2113_v13 }
 0x12e   : > { %v1478_v26 = vpop.f32.mrb[11].mxu0  ;;  %v2118_v27 = vpop.f32.mrb[11].mxu1  ;;  %v5543_v31 = vpack.c.bf16 %v6023_v24, %v6019_v10  ;;  %v2117_v32 = vadd.f32 %v2116_v23, %v7440_v29  ;;  %6046 = vtanh.f32 %v1475_v20  ;;  %1741 = vmatmul.mubr.bf16.gmra.mrb[116].mxu0 %v5940_v17  ;;  %2381 = vmatmul.mubr.bf16.gmra.mrb[116].mxu1 %v5941_v18  ;;  %v5945_v17 = vld [vmem:[%s8562_s0 + $0x2f8] sm:$0xff]  }
 0x12f   : > { %v6025_v28 = vpop.eup %6024  ;;  %v1479_v35 = vadd.f32 %v1478_v26, %v7442_v30  ;;  %6048 = vtanh.f32 %v2115_v21  ;;  %v2119_v37 = vadd.f32 %v2118_v27, %v7442_v30  ;;  %1750 = vmatprep.mubr.bf16.mxu0 %v7098_v16  ;;  %2390 = vmatprep.mubr.bf16.mxu1 %v7098_v16 }
 0x130   : > { %v6027_v33 = vpop.eup %6026  ;;  %v5671_v34 = vpack.c.bf16 %v6025_v28, %v6021_v19  ;;  %4780 = vst [vmem:[%s7487_s19 + $0x8] sm:$0xff] %v5543_v31  ;;  %6050 = vtanh.f32 %v1477_v25 }
 0x131   : > { %v6029_v36 = vpop.eup %6028  ;;  %6052 = vtanh.f32 %v2117_v32  ;;  %v1482_v41 = vpop.f32.mrb[12].mxu0 }
 0x132   : > { %v6031_v38 = vpop.eup %6030  ;;  %4908 = vst [vmem:[%s7487_s19 + $0x408] sm:$0xff] %v5671_v34  ;;  %v2122_v42 = vpop.f32.mrb[12].mxu1  ;;  %6054 = vtanh.f32 %v1479_v35  ;;  %v1483_v45 = vadd.f32 %v1482_v41, %v7440_v29 }
 0x133   : > { %v6033_v39 = vpop.eup %6032  ;;  %v5544_v40 = vpack.c.bf16 %v6031_v38, %v6027_v33  ;;  %v2123_v46 = vadd.f32 %v2122_v42, %v7440_v29  ;;  %v1484_v47 = vpop.f32.mrb[13].mxu0  ;;  %6056 = vtanh.f32 %v2119_v37 }
 0x134   : > { %v6035_v43 = vpop.eup %6034  ;;  %v5672_v44 = vpack.c.bf16 %v6033_v39, %v6029_v36  ;;  %v2124_v48 = vpop.f32.mrb[13].mxu1  ;;  %v1485_v52 = vadd.f32 %v1484_v47, %v7442_v30  ;;  %6058 = vtanh.f32 %v1483_v45 }
 0x135   : > { %v6037_v51 = vpop.eup %6036  ;;  %4781 = vst [vmem:[%s7487_s19 + $0x10] sm:$0xff] %v5544_v40  ;;  %v2125_v53 = vadd.f32 %v2124_v48, %v7442_v30  ;;  %v1486_v54 = vpop.f32.mrb[14].mxu0  ;;  %6060 = vtanh.f32 %v2123_v46  ;;  %v5946_v48 = vld [vmem:[%s8562_s0 + $0x100] sm:$0xff]  }
 0x136   : > { %v2126_v55 = vpop.f32.mrb[14].mxu1  ;;  %v6039_v56 = vpop.eup %6038  ;;  %4909 = vst [vmem:[%s7487_s19 + $0x410] sm:$0xff] %v5672_v44  ;;  %v1487_v57 = vadd.f32 %v1486_v54, %v7440_v29  ;;  %6062 = vtanh.f32 %v1485_v52  ;;  %1751 = vmatmul.mubr.bf16.gmra.mrb[120].mxu0 %v5942_v49  ;;  %2391 = vmatmul.mubr.bf16.gmra.mrb[120].mxu1 %v5943_v50  ;;  %v5947_v49 = vld [vmem:[%s8562_s0 + $0x300] sm:$0xff]  }
 0x137   : > { %v1488_v58 = vpop.f32.mrb[15].mxu0  ;;  %v2128_v59 = vpop.f32.mrb[15].mxu1  ;;  %v5545_v61 = vpack.c.bf16 %v6039_v56, %v6035_v43  ;;  %v2127_v62 = vadd.f32 %v2126_v55, %v7440_v29  ;;  %6064 = vtanh.f32 %v2125_v53  ;;  %1760 = vmatprep.mubr.bf16.mxu0 %v7098_v16  ;;  %2400 = vmatprep.mubr.bf16.mxu1 %v7098_v16 }
 0x138   : > { %v6041_v60 = vpop.eup %6040  ;;  %v1489_v1 = vadd.f32 %v1488_v58, %v7442_v30  ;;  %v2129_v3 = vadd.f32 %v2128_v59, %v7442_v30  ;;  %6066 = vtanh.f32 %v1487_v57 }
 0x139   : > { %v6043_v63 = vpop.eup %6042  ;;  %v5673_v0 = vpack.c.bf16 %v6041_v60, %v6037_v51  ;;  %4782 = vst [vmem:[%s7487_s19 + $0x18] sm:$0xff] %v5545_v61  ;;  %6068 = vtanh.f32 %v2127_v62  ;;  %v1492_v7 = vpop.f32.mrb[16].mxu0 }
 0x13a   : > { %v6045_v2 = vpop.eup %6044  ;;  %v2132_v8 = vpop.f32.mrb[16].mxu1  ;;  %6070 = vtanh.f32 %v1489_v1  ;;  %v1493_v11 = vadd.f32 %v1492_v7, %v7440_v29 }
 0x13b   : > { %v6047_v4 = vpop.eup %6046  ;;  %4910 = vst [vmem:[%s7487_s19 + $0x418] sm:$0xff] %v5673_v0  ;;  %v2133_v12 = vadd.f32 %v2132_v8, %v7440_v29  ;;  %v1494_v13 = vpop.f32.mrb[17].mxu0  ;;  %6072 = vtanh.f32 %v2129_v3 }
 0x13c   : > { %v6049_v5 = vpop.eup %6048  ;;  %v5546_v6 = vpack.c.bf16 %v6047_v4, %v6043_v63  ;;  %v2134_v14 = vpop.f32.mrb[17].mxu1  ;;  %v1495_v19 = vadd.f32 %v1494_v13, %v7442_v30  ;;  %6074 = vtanh.f32 %v1493_v11 }
 0x13d   : > { %v6051_v9 = vpop.eup %6050  ;;  %v5674_v10 = vpack.c.bf16 %v6049_v5, %v6045_v2  ;;  %v2135_v20 = vadd.f32 %v2134_v14, %v7442_v30  ;;  %v1496_v21 = vpop.f32.mrb[18].mxu0  ;;  %6076 = vtanh.f32 %v2133_v12  ;;  %v5948_v14 = vld [vmem:[%s8562_s0 + $0x108] sm:$0xff]  }
 0x13e   : > { %v6053_v18 = vpop.eup %6052  ;;  %4783 = vst [vmem:[%s7487_s19 + $0x20] sm:$0xff] %v5546_v6  ;;  %v2136_v22 = vpop.f32.mrb[18].mxu1  ;;  %v1497_v24 = vadd.f32 %v1496_v21, %v7440_v29  ;;  %6078 = vtanh.f32 %v1495_v19  ;;  %1761 = vmatmul.mubr.bf16.gmra.mrb[124].mxu0 %v5944_v15  ;;  %2401 = vmatmul.mubr.bf16.gmra.mrb[124].mxu1 %v5945_v17  ;;  %v5949_v15 = vld [vmem:[%s8562_s0 + $0x308] sm:$0xff]  }
 0x13f   : > { %v6055_v23 = vpop.eup %6054  ;;  %4911 = vst [vmem:[%s7487_s19 + $0x420] sm:$0xff] %v5674_v10  ;;  %v1498_v25 = vpop.f32.mrb[19].mxu0  ;;  %v2137_v31 = vadd.f32 %v2136_v22, %v7440_v29  ;;  %6080 = vtanh.f32 %v2135_v20  ;;  %1770 = vmatprep.mubr.bf16.mxu0 %v7098_v16  ;;  %2410 = vmatprep.mubr.bf16.mxu1 %v7098_v16 }
 0x140   : > { %v2138_v26 = vpop.f32.mrb[19].mxu1  ;;  %v6057_v27 = vpop.eup %6056  ;;  %v5547_v28 = vpack.c.bf16 %v6055_v23, %v6051_v9  ;;  %v1499_v34 = vadd.f32 %v1498_v25, %v7442_v30  ;;  %6082 = vtanh.f32 %v1497_v24 }
 0x141   : > { %v6059_v32 = vpop.eup %6058  ;;  %v5675_v33 = vpack.c.bf16 %v6057_v27, %v6053_v18  ;;  %v2139_v36 = vadd.f32 %v2138_v26, %v7442_v30  ;;  %6084 = vtanh.f32 %v2137_v31  ;;  %v1502_v40 = vpop.f32.mrb[20].mxu0 }
 0x142   : > { %v6061_v35 = vpop.eup %6060  ;;  %4784 = vst [vmem:[%s7487_s19 + $0x28] sm:$0xff] %v5547_v28  ;;  %v2142_v41 = vpop.f32.mrb[20].mxu1  ;;  %6086 = vtanh.f32 %v1499_v34  ;;  %v1503_v44 = vadd.f32 %v1502_v40, %v7440_v29 }
 0x143   : > { %v6063_v37 = vpop.eup %6062  ;;  %4912 = vst [vmem:[%s7487_s19 + $0x428] sm:$0xff] %v5675_v33  ;;  %v2143_v45 = vadd.f32 %v2142_v41, %v7440_v29  ;;  %v1504_v46 = vpop.f32.mrb[21].mxu0  ;;  %6088 = vtanh.f32 %v2139_v36 }
 0x144   : > { %v6065_v38 = vpop.eup %6064  ;;  %v5548_v39 = vpack.c.bf16 %v6063_v37, %v6059_v32  ;;  %v2144_v47 = vpop.f32.mrb[21].mxu1  ;;  %v1505_v51 = vadd.f32 %v1504_v46, %v7442_v30  ;;  %6090 = vtanh.f32 %v1503_v44 }
 0x145   : > { %v6067_v42 = vpop.eup %6066  ;;  %v5676_v43 = vpack.c.bf16 %v6065_v38, %v6061_v35  ;;  %v2145_v52 = vadd.f32 %v2144_v47, %v7442_v30  ;;  %v1506_v53 = vpop.f32.mrb[22].mxu0  ;;  %6092 = vtanh.f32 %v2143_v45  ;;  %v5950_v47 = vld [vmem:[%s8562_s0 + $0x110] sm:$0xff]  }
 0x146   : > { %v6069_v50 = vpop.eup %6068  ;;  %4785 = vst [vmem:[%s7487_s19 + $0x30] sm:$0xff] %v5548_v39  ;;  %v2146_v54 = vpop.f32.mrb[22].mxu1  ;;  %v1507_v56 = vadd.f32 %v1506_v53, %v7440_v29  ;;  %6094 = vtanh.f32 %v1505_v51  ;;  %1771 = vmatmul.mubr.bf16.gmra.mrb[128].mxu0 %v5946_v48  ;;  %2411 = vmatmul.mubr.bf16.gmra.mrb[128].mxu1 %v5947_v49  ;;  %v5951_v48 = vld [vmem:[%s8562_s0 + $0x310] sm:$0xff]  }
 0x147   : > { %v6071_v55 = vpop.eup %6070  ;;  %4913 = vst [vmem:[%s7487_s19 + $0x430] sm:$0xff] %v5676_v43  ;;  %v1508_v57 = vpop.f32.mrb[23].mxu0  ;;  %v2147_v61 = vadd.f32 %v2146_v54, %v7440_v29  ;;  %6096 = vtanh.f32 %v2145_v52  ;;  %1780 = vmatprep.mubr.bf16.mxu0 %v7098_v16  ;;  %2420 = vmatprep.mubr.bf16.mxu1 %v7098_v16 }
 0x148   : > { %v2148_v58 = vpop.f32.mrb[23].mxu1  ;;  %v6073_v59 = vpop.eup %6072  ;;  %v5549_v60 = vpack.c.bf16 %v6071_v55, %v6067_v42  ;;  %v1509_v0 = vadd.f32 %v1508_v57, %v7442_v30  ;;  %6098 = vtanh.f32 %v1507_v56 }
 0x149   : > { %v6075_v62 = vpop.eup %6074  ;;  %v5677_v63 = vpack.c.bf16 %v6073_v59, %v6069_v50  ;;  %v2149_v2 = vadd.f32 %v2148_v58, %v7442_v30  ;;  %6100 = vtanh.f32 %v2147_v61  ;;  %v1512_v6 = vpop.f32.mrb[24].mxu0 }
 0x14a   : > { %v6077_v1 = vpop.eup %6076  ;;  %4786 = vst [vmem:[%s7487_s19 + $0x38] sm:$0xff] %v5549_v60  ;;  %v2152_v7 = vpop.f32.mrb[24].mxu1  ;;  %6102 = vtanh.f32 %v1509_v0  ;;  %v1513_v10 = vadd.f32 %v1512_v6, %v7440_v29 }
 0x14b   : > { %v6079_v3 = vpop.eup %6078  ;;  %4914 = vst [vmem:[%s7487_s19 + $0x438] sm:$0xff] %v5677_v63  ;;  %v2153_v11 = vadd.f32 %v2152_v7, %v7440_v29  ;;  %v1514_v12 = vpop.f32.mrb[25].mxu0  ;;  %6104 = vtanh.f32 %v2149_v2 }
 0x14c   : > { %v6081_v4 = vpop.eup %6080  ;;  %v5550_v5 = vpack.c.bf16 %v6079_v3, %v6075_v62  ;;  %v2154_v13 = vpop.f32.mrb[25].mxu1  ;;  %v1515_v18 = vadd.f32 %v1514_v12, %v7442_v30  ;;  %6106 = vtanh.f32 %v1513_v10 }
 0x14d   : > { %v6083_v8 = vpop.eup %6082  ;;  %v5678_v9 = vpack.c.bf16 %v6081_v4, %v6077_v1  ;;  %v2155_v19 = vadd.f32 %v2154_v13, %v7442_v30  ;;  %v1516_v20 = vpop.f32.mrb[26].mxu0  ;;  %6108 = vtanh.f32 %v2153_v11  ;;  %v5952_v13 = vld [vmem:[%s8562_s0 + $0x118] sm:$0xff]  }
 0x14e   : > { %v6085_v17 = vpop.eup %6084  ;;  %4787 = vst [vmem:[%s7487_s19 + $0x40] sm:$0xff] %v5550_v5  ;;  %v2156_v21 = vpop.f32.mrb[26].mxu1  ;;  %v1517_v23 = vadd.f32 %v1516_v20, %v7440_v29  ;;  %6110 = vtanh.f32 %v1515_v18  ;;  %1781 = vmatmul.mubr.bf16.gmra.mrb[132].mxu0 %v5948_v14  ;;  %2421 = vmatmul.mubr.bf16.gmra.mrb[132].mxu1 %v5949_v15  ;;  %v5953_v14 = vld [vmem:[%s8562_s0 + $0x318] sm:$0xff]  }
 0x14f   : > { %v6087_v22 = vpop.eup %6086  ;;  %4915 = vst [vmem:[%s7487_s19 + $0x440] sm:$0xff] %v5678_v9  ;;  %v1518_v24 = vpop.f32.mrb[27].mxu0  ;;  %v2157_v28 = vadd.f32 %v2156_v21, %v7440_v29  ;;  %6112 = vtanh.f32 %v2155_v19  ;;  %1790 = vmatprep.mubr.bf16.mxu0 %v7098_v16  ;;  %2430 = vmatprep.mubr.bf16.mxu1 %v7098_v16 }
 0x150   : > { %v2158_v25 = vpop.f32.mrb[27].mxu1  ;;  %v6089_v26 = vpop.eup %6088  ;;  %v5551_v27 = vpack.c.bf16 %v6087_v22, %v6083_v8  ;;  %v1519_v33 = vadd.f32 %v1518_v24, %v7442_v30  ;;  %6114 = vtanh.f32 %v1517_v23 }
 0x151   : > { %v6091_v31 = vpop.eup %6090  ;;  %v5679_v32 = vpack.c.bf16 %v6089_v26, %v6085_v17  ;;  %v2159_v35 = vadd.f32 %v2158_v25, %v7442_v30  ;;  %6116 = vtanh.f32 %v2157_v28  ;;  %v1522_v39 = vpop.f32.mrb[28].mxu0 }
 0x152   : > { %v6093_v34 = vpop.eup %6092  ;;  %4788 = vst [vmem:[%s7487_s19 + $0x48] sm:$0xff] %v5551_v27  ;;  %v2162_v40 = vpop.f32.mrb[28].mxu1  ;;  %6118 = vtanh.f32 %v1519_v33  ;;  %v1523_v43 = vadd.f32 %v1522_v39, %v7440_v29 }
 0x153   : > { %v6095_v36 = vpop.eup %6094  ;;  %4916 = vst [vmem:[%s7487_s19 + $0x448] sm:$0xff] %v5679_v32  ;;  %v2163_v44 = vadd.f32 %v2162_v40, %v7440_v29  ;;  %v1524_v45 = vpop.f32.mrb[29].mxu0  ;;  %6120 = vtanh.f32 %v2159_v35 }
 0x154   : > { %v6097_v37 = vpop.eup %6096  ;;  %v5552_v38 = vpack.c.bf16 %v6095_v36, %v6091_v31  ;;  %v2164_v46 = vpop.f32.mrb[29].mxu1  ;;  %v1525_v50 = vadd.f32 %v1524_v45, %v7442_v30  ;;  %6122 = vtanh.f32 %v1523_v43 }
 0x155   : > { %v6099_v41 = vpop.eup %6098  ;;  %v5680_v42 = vpack.c.bf16 %v6097_v37, %v6093_v34  ;;  %v2165_v51 = vadd.f32 %v2164_v46, %v7442_v30  ;;  %v1526_v52 = vpop.f32.mrb[30].mxu0  ;;  %6124 = vtanh.f32 %v2163_v44  ;;  %v5954_v46 = vld [vmem:[%s8562_s0 + $0x120] sm:$0xff]  }
 0x156   : > { %v6101_v49 = vpop.eup %6100  ;;  %4789 = vst [vmem:[%s7487_s19 + $0x50] sm:$0xff] %v5552_v38  ;;  %v2166_v53 = vpop.f32.mrb[30].mxu1  ;;  %v1527_v55 = vadd.f32 %v1526_v52, %v7440_v29  ;;  %6126 = vtanh.f32 %v1525_v50  ;;  %1791 = vmatmul.mubr.bf16.gmra.mrb[136].mxu0 %v5950_v47  ;;  %2431 = vmatmul.mubr.bf16.gmra.mrb[136].mxu1 %v5951_v48  ;;  %v5955_v47 = vld [vmem:[%s8562_s0 + $0x320] sm:$0xff]  }
 0x157   : > { %v6103_v54 = vpop.eup %6102  ;;  %4917 = vst [vmem:[%s7487_s19 + $0x450] sm:$0xff] %v5680_v42  ;;  %v1528_v56 = vpop.f32.mrb[31].mxu0  ;;  %v2167_v60 = vadd.f32 %v2166_v53, %v7440_v29  ;;  %6128 = vtanh.f32 %v2165_v51  ;;  %1800 = vmatprep.mubr.bf16.mxu0 %v7098_v16  ;;  %2440 = vmatprep.mubr.bf16.mxu1 %v7098_v16 }
 0x158   : > { %v2168_v57 = vpop.f32.mrb[31].mxu1  ;;  %v6105_v58 = vpop.eup %6104  ;;  %v5553_v59 = vpack.c.bf16 %v6103_v54, %v6099_v41  ;;  %v1529_v63 = vadd.f32 %v1528_v56, %v7442_v30  ;;  %6130 = vtanh.f32 %v1527_v55 }
 0x159   : > { %v6107_v61 = vpop.eup %6106  ;;  %v5681_v62 = vpack.c.bf16 %v6105_v58, %v6101_v49  ;;  %v2169_v1 = vadd.f32 %v2168_v57, %v7442_v30  ;;  %6132 = vtanh.f32 %v2167_v60  ;;  %v1532_v5 = vpop.f32.mrb[32].mxu0 }
 0x15a   : > { %v6109_v0 = vpop.eup %6108  ;;  %4790 = vst [vmem:[%s7487_s19 + $0x58] sm:$0xff] %v5553_v59  ;;  %v2172_v6 = vpop.f32.mrb[32].mxu1  ;;  %6134 = vtanh.f32 %v1529_v63  ;;  %v1533_v9 = vadd.f32 %v1532_v5, %v7440_v29 }
 0x15b   : > { %v6111_v2 = vpop.eup %6110  ;;  %4918 = vst [vmem:[%s7487_s19 + $0x458] sm:$0xff] %v5681_v62  ;;  %v2173_v10 = vadd.f32 %v2172_v6, %v7440_v29  ;;  %v1534_v11 = vpop.f32.mrb[33].mxu0  ;;  %6136 = vtanh.f32 %v2169_v1 }
 0x15c   : > { %v6113_v3 = vpop.eup %6112  ;;  %v5554_v4 = vpack.c.bf16 %v6111_v2, %v6107_v61  ;;  %v2174_v12 = vpop.f32.mrb[33].mxu1  ;;  %v1535_v17 = vadd.f32 %v1534_v11, %v7442_v30  ;;  %6138 = vtanh.f32 %v1533_v9 }
 0x15d   : > { %v6115_v7 = vpop.eup %6114  ;;  %v5682_v8 = vpack.c.bf16 %v6113_v3, %v6109_v0  ;;  %v2175_v18 = vadd.f32 %v2174_v12, %v7442_v30  ;;  %v1536_v19 = vpop.f32.mrb[34].mxu0  ;;  %6140 = vtanh.f32 %v2173_v10  ;;  %v5956_v12 = vld [vmem:[%s8562_s0 + $0x128] sm:$0xff]  }
 0x15e   : > { %v6117_v15 = vpop.eup %6116  ;;  %4791 = vst [vmem:[%s7487_s19 + $0x60] sm:$0xff] %v5554_v4  ;;  %v2176_v20 = vpop.f32.mrb[34].mxu1  ;;  %v1537_v22 = vadd.f32 %v1536_v19, %v7440_v29  ;;  %6142 = vtanh.f32 %v1535_v17  ;;  %1801 = vmatmul.mubr.bf16.gmra.mrb[140].mxu0 %v5952_v13  ;;  %2441 = vmatmul.mubr.bf16.gmra.mrb[140].mxu1 %v5953_v14  ;;  %v5957_v13 = vld [vmem:[%s8562_s0 + $0x328] sm:$0xff]  }
 0x15f   : > { %v6119_v21 = vpop.eup %6118  ;;  %4919 = vst [vmem:[%s7487_s19 + $0x460] sm:$0xff] %v5682_v8  ;;  %v1538_v23 = vpop.f32.mrb[35].mxu0  ;;  %v2177_v27 = vadd.f32 %v2176_v20, %v7440_v29  ;;  %6144 = vtanh.f32 %v2175_v18  ;;  %1810 = vmatprep.mubr.bf16.mxu0 %v7098_v16  ;;  %2450 = vmatprep.mubr.bf16.mxu1 %v7098_v16 }
 0x160   : > { %v2178_v24 = vpop.f32.mrb[35].mxu1  ;;  %v6121_v25 = vpop.eup %6120  ;;  %v5555_v26 = vpack.c.bf16 %v6119_v21, %v6115_v7  ;;  %v1539_v32 = vadd.f32 %v1538_v23, %v7442_v30  ;;  %6146 = vtanh.f32 %v1537_v22 }
 0x161   : > { %v6123_v28 = vpop.eup %6122  ;;  %v5683_v31 = vpack.c.bf16 %v6121_v25, %v6117_v15  ;;  %v2179_v34 = vadd.f32 %v2178_v24, %v7442_v30  ;;  %6148 = vtanh.f32 %v2177_v27  ;;  %v1542_v38 = vpop.f32.mrb[36].mxu0 }
 0x162   : > { %v6125_v33 = vpop.eup %6124  ;;  %4792 = vst [vmem:[%s7487_s19 + $0x68] sm:$0xff] %v5555_v26  ;;  %v2182_v39 = vpop.f32.mrb[36].mxu1  ;;  %6150 = vtanh.f32 %v1539_v32  ;;  %v1543_v42 = vadd.f32 %v1542_v38, %v7440_v29 }
 0x163   : > { %v6127_v35 = vpop.eup %6126  ;;  %4920 = vst [vmem:[%s7487_s19 + $0x468] sm:$0xff] %v5683_v31  ;;  %v2183_v43 = vadd.f32 %v2182_v39, %v7440_v29  ;;  %v1544_v44 = vpop.f32.mrb[37].mxu0  ;;  %6152 = vtanh.f32 %v2179_v34 }
 0x164   : > { %v6129_v36 = vpop.eup %6128  ;;  %v5556_v37 = vpack.c.bf16 %v6127_v35, %v6123_v28  ;;  %v2184_v45 = vpop.f32.mrb[37].mxu1  ;;  %v1545_v49 = vadd.f32 %v1544_v44, %v7442_v30  ;;  %6154 = vtanh.f32 %v1543_v42 }
 0x165   : > { %v6131_v40 = vpop.eup %6130  ;;  %v5684_v41 = vpack.c.bf16 %v6129_v36, %v6125_v33  ;;  %v2185_v50 = vadd.f32 %v2184_v45, %v7442_v30  ;;  %v1546_v51 = vpop.f32.mrb[38].mxu0  ;;  %6156 = vtanh.f32 %v2183_v43  ;;  %v5958_v45 = vld [vmem:[%s8562_s0 + $0x130] sm:$0xff]  }
 0x166   : > { %v6133_v48 = vpop.eup %6132  ;;  %4793 = vst [vmem:[%s7487_s19 + $0x70] sm:$0xff] %v5556_v37  ;;  %v2186_v52 = vpop.f32.mrb[38].mxu1  ;;  %v1547_v54 = vadd.f32 %v1546_v51, %v7440_v29  ;;  %6158 = vtanh.f32 %v1545_v49  ;;  %1811 = vmatmul.mubr.bf16.gmra.mrb[144].mxu0 %v5954_v46  ;;  %2451 = vmatmul.mubr.bf16.gmra.mrb[144].mxu1 %v5955_v47  ;;  %v5959_v46 = vld [vmem:[%s8562_s0 + $0x330] sm:$0xff]  }
 0x167   : > { %v6135_v53 = vpop.eup %6134  ;;  %4921 = vst [vmem:[%s7487_s19 + $0x470] sm:$0xff] %v5684_v41  ;;  %v1548_v55 = vpop.f32.mrb[39].mxu0  ;;  %v2187_v59 = vadd.f32 %v2186_v52, %v7440_v29  ;;  %6160 = vtanh.f32 %v2185_v50  ;;  %1820 = vmatprep.mubr.bf16.mxu0 %v7098_v16  ;;  %2460 = vmatprep.mubr.bf16.mxu1 %v7098_v16 }
 0x168   : > { %v2188_v56 = vpop.f32.mrb[39].mxu1  ;;  %v6137_v57 = vpop.eup %6136  ;;  %v5557_v58 = vpack.c.bf16 %v6135_v53, %v6131_v40  ;;  %v1549_v62 = vadd.f32 %v1548_v55, %v7442_v30  ;;  %6162 = vtanh.f32 %v1547_v54 }
 0x169   : > { %v6139_v60 = vpop.eup %6138  ;;  %v5685_v61 = vpack.c.bf16 %v6137_v57, %v6133_v48  ;;  %v2189_v0 = vadd.f32 %v2188_v56, %v7442_v30  ;;  %6164 = vtanh.f32 %v2187_v59  ;;  %v1552_v4 = vpop.f32.mrb[40].mxu0 }
 0x16a   : > { %v6141_v63 = vpop.eup %6140  ;;  %4794 = vst [vmem:[%s7487_s19 + $0x78] sm:$0xff] %v5557_v58  ;;  %v2192_v5 = vpop.f32.mrb[40].mxu1  ;;  %6166 = vtanh.f32 %v1549_v62  ;;  %v1553_v8 = vadd.f32 %v1552_v4, %v7440_v29 }
 0x16b   : > { %v6143_v1 = vpop.eup %6142  ;;  %4922 = vst [vmem:[%s7487_s19 + $0x478] sm:$0xff] %v5685_v61  ;;  %v2193_v9 = vadd.f32 %v2192_v5, %v7440_v29  ;;  %v1554_v10 = vpop.f32.mrb[41].mxu0  ;;  %6168 = vtanh.f32 %v2189_v0 }
 0x16c   : > { %v6145_v2 = vpop.eup %6144  ;;  %v5558_v3 = vpack.c.bf16 %v6143_v1, %v6139_v60  ;;  %v2194_v11 = vpop.f32.mrb[41].mxu1  ;;  %v1555_v15 = vadd.f32 %v1554_v10, %v7442_v30  ;;  %6170 = vtanh.f32 %v1553_v8 }
 0x16d   : > { %v6147_v6 = vpop.eup %6146  ;;  %v5686_v7 = vpack.c.bf16 %v6145_v2, %v6141_v63  ;;  %v2195_v17 = vadd.f32 %v2194_v11, %v7442_v30  ;;  %v1556_v18 = vpop.f32.mrb[42].mxu0  ;;  %6172 = vtanh.f32 %v2193_v9  ;;  %v5960_v11 = vld [vmem:[%s8562_s0 + $0x138] sm:$0xff]  }
 0x16e   : > { %v6149_v14 = vpop.eup %6148  ;;  %4795 = vst [vmem:[%s7487_s19 + $0x80] sm:$0xff] %v5558_v3  ;;  %v2196_v19 = vpop.f32.mrb[42].mxu1  ;;  %v1557_v21 = vadd.f32 %v1556_v18, %v7440_v29  ;;  %6174 = vtanh.f32 %v1555_v15  ;;  %1821 = vmatmul.mubr.bf16.gmra.mrb[148].mxu0 %v5956_v12  ;;  %2461 = vmatmul.mubr.bf16.gmra.mrb[148].mxu1 %v5957_v13  ;;  %v5961_v12 = vld [vmem:[%s8562_s0 + $0x338] sm:$0xff]  }
 0x16f   : > { %v6151_v20 = vpop.eup %6150  ;;  %4923 = vst [vmem:[%s7487_s19 + $0x480] sm:$0xff] %v5686_v7  ;;  %v1558_v22 = vpop.f32.mrb[43].mxu0  ;;  %v2197_v26 = vadd.f32 %v2196_v19, %v7440_v29  ;;  %6176 = vtanh.f32 %v2195_v17  ;;  %1830 = vmatprep.mubr.bf16.mxu0 %v7098_v16  ;;  %2470 = vmatprep.mubr.bf16.mxu1 %v7098_v16 }
 0x170   : > { %v2198_v23 = vpop.f32.mrb[43].mxu1  ;;  %v6153_v24 = vpop.eup %6152  ;;  %v5559_v25 = vpack.c.bf16 %v6151_v20, %v6147_v6  ;;  %v1559_v31 = vadd.f32 %v1558_v22, %v7442_v30  ;;  %6178 = vtanh.f32 %v1557_v21 }
 0x171   : > { %v6155_v27 = vpop.eup %6154  ;;  %v5687_v28 = vpack.c.bf16 %v6153_v24, %v6149_v14  ;;  %v2199_v33 = vadd.f32 %v2198_v23, %v7442_v30  ;;  %6180 = vtanh.f32 %v2197_v26  ;;  %v1562_v37 = vpop.f32.mrb[44].mxu0 }
 0x172   : > { %v6157_v32 = vpop.eup %6156  ;;  %4796 = vst [vmem:[%s7487_s19 + $0x88] sm:$0xff] %v5559_v25  ;;  %v2202_v38 = vpop.f32.mrb[44].mxu1  ;;  %6182 = vtanh.f32 %v1559_v31  ;;  %v1563_v41 = vadd.f32 %v1562_v37, %v7440_v29 }
 0x173   : > { %v6159_v34 = vpop.eup %6158  ;;  %4924 = vst [vmem:[%s7487_s19 + $0x488] sm:$0xff] %v5687_v28  ;;  %v2203_v42 = vadd.f32 %v2202_v38, %v7440_v29  ;;  %v1564_v43 = vpop.f32.mrb[45].mxu0  ;;  %6184 = vtanh.f32 %v2199_v33 }
 0x174   : > { %v6161_v35 = vpop.eup %6160  ;;  %v5560_v36 = vpack.c.bf16 %v6159_v34, %v6155_v27  ;;  %v2204_v44 = vpop.f32.mrb[45].mxu1  ;;  %v1565_v48 = vadd.f32 %v1564_v43, %v7442_v30  ;;  %6186 = vtanh.f32 %v1563_v41 }
 0x175   : > { %v6163_v39 = vpop.eup %6162  ;;  %v5688_v40 = vpack.c.bf16 %v6161_v35, %v6157_v32  ;;  %v2205_v49 = vadd.f32 %v2204_v44, %v7442_v30  ;;  %v1566_v50 = vpop.f32.mrb[46].mxu0  ;;  %6188 = vtanh.f32 %v2203_v42  ;;  %v5962_v44 = vld [vmem:[%s8562_s0 + $0x140] sm:$0xff]  }
 0x176   : > { %v6165_v47 = vpop.eup %6164  ;;  %4797 = vst [vmem:[%s7487_s19 + $0x90] sm:$0xff] %v5560_v36  ;;  %v2206_v51 = vpop.f32.mrb[46].mxu1  ;;  %v1567_v53 = vadd.f32 %v1566_v50, %v7440_v29  ;;  %6190 = vtanh.f32 %v1565_v48  ;;  %1831 = vmatmul.mubr.bf16.gmra.mrb[152].mxu0 %v5958_v45  ;;  %2471 = vmatmul.mubr.bf16.gmra.mrb[152].mxu1 %v5959_v46  ;;  %v5963_v45 = vld [vmem:[%s8562_s0 + $0x340] sm:$0xff]  }
 0x177   : > { %v6167_v52 = vpop.eup %6166  ;;  %4925 = vst [vmem:[%s7487_s19 + $0x490] sm:$0xff] %v5688_v40  ;;  %v1568_v54 = vpop.f32.mrb[47].mxu0  ;;  %v2207_v58 = vadd.f32 %v2206_v51, %v7440_v29  ;;  %6192 = vtanh.f32 %v2205_v49  ;;  %1840 = vmatprep.mubr.bf16.mxu0 %v7098_v16  ;;  %2480 = vmatprep.mubr.bf16.mxu1 %v7098_v16 }
 0x178   : > { %v2208_v55 = vpop.f32.mrb[47].mxu1  ;;  %v6169_v56 = vpop.eup %6168  ;;  %v5561_v57 = vpack.c.bf16 %v6167_v52, %v6163_v39  ;;  %v1569_v61 = vadd.f32 %v1568_v54, %v7442_v30  ;;  %6194 = vtanh.f32 %v1567_v53 }
 0x179   : > { %v6171_v59 = vpop.eup %6170  ;;  %v5689_v60 = vpack.c.bf16 %v6169_v56, %v6165_v47  ;;  %v2209_v63 = vadd.f32 %v2208_v55, %v7442_v30  ;;  %6196 = vtanh.f32 %v2207_v58  ;;  %v1572_v3 = vpop.f32.mrb[48].mxu0 }
 0x17a   : > { %v6173_v62 = vpop.eup %6172  ;;  %4798 = vst [vmem:[%s7487_s19 + $0x98] sm:$0xff] %v5561_v57  ;;  %v2212_v4 = vpop.f32.mrb[48].mxu1  ;;  %6198 = vtanh.f32 %v1569_v61  ;;  %v1573_v7 = vadd.f32 %v1572_v3, %v7440_v29 }
 0x17b   : > { %v6175_v0 = vpop.eup %6174  ;;  %4926 = vst [vmem:[%s7487_s19 + $0x498] sm:$0xff] %v5689_v60  ;;  %v2213_v8 = vadd.f32 %v2212_v4, %v7440_v29  ;;  %v1574_v9 = vpop.f32.mrb[49].mxu0  ;;  %6200 = vtanh.f32 %v2209_v63 }
 0x17c   : > { %v6177_v1 = vpop.eup %6176  ;;  %v5562_v2 = vpack.c.bf16 %v6175_v0, %v6171_v59  ;;  %v2214_v10 = vpop.f32.mrb[49].mxu1  ;;  %v1575_v14 = vadd.f32 %v1574_v9, %v7442_v30  ;;  %6202 = vtanh.f32 %v1573_v7 }
 0x17d   : > { %v6179_v5 = vpop.eup %6178  ;;  %v5690_v6 = vpack.c.bf16 %v6177_v1, %v6173_v62  ;;  %v2215_v15 = vadd.f32 %v2214_v10, %v7442_v30  ;;  %v1576_v17 = vpop.f32.mrb[50].mxu0  ;;  %6204 = vtanh.f32 %v2213_v8  ;;  %v5964_v10 = vld [vmem:[%s8562_s0 + $0x148] sm:$0xff]  }
 0x17e   : > { %v6181_v13 = vpop.eup %6180  ;;  %4799 = vst [vmem:[%s7487_s19 + $0xa0] sm:$0xff] %v5562_v2  ;;  %v2216_v18 = vpop.f32.mrb[50].mxu1  ;;  %v1577_v20 = vadd.f32 %v1576_v17, %v7440_v29  ;;  %6206 = vtanh.f32 %v1575_v14  ;;  %1841 = vmatmul.mubr.bf16.gmra.mrb[156].mxu0 %v5960_v11  ;;  %2481 = vmatmul.mubr.bf16.gmra.mrb[156].mxu1 %v5961_v12  ;;  %v5965_v11 = vld [vmem:[%s8562_s0 + $0x348] sm:$0xff]  }
 0x17f   : > { %v6183_v19 = vpop.eup %6182  ;;  %4927 = vst [vmem:[%s7487_s19 + $0x4a0] sm:$0xff] %v5690_v6  ;;  %v1578_v21 = vpop.f32.mrb[51].mxu0  ;;  %v2217_v25 = vadd.f32 %v2216_v18, %v7440_v29  ;;  %6208 = vtanh.f32 %v2215_v15  ;;  %1850 = vmatprep.mubr.bf16.mxu0 %v7098_v16  ;;  %2490 = vmatprep.mubr.bf16.mxu1 %v7098_v16 }
 0x180   : > { %v2218_v22 = vpop.f32.mrb[51].mxu1  ;;  %v6185_v23 = vpop.eup %6184  ;;  %v5563_v24 = vpack.c.bf16 %v6183_v19, %v6179_v5  ;;  %v1579_v28 = vadd.f32 %v1578_v21, %v7442_v30  ;;  %6210 = vtanh.f32 %v1577_v20 }
 0x181   : > { %v6187_v26 = vpop.eup %6186  ;;  %v5691_v27 = vpack.c.bf16 %v6185_v23, %v6181_v13  ;;  %v2219_v32 = vadd.f32 %v2218_v22, %v7442_v30  ;;  %6212 = vtanh.f32 %v2217_v25  ;;  %v1582_v36 = vpop.f32.mrb[52].mxu0 }
 0x182   : > { %v6189_v31 = vpop.eup %6188  ;;  %4800 = vst [vmem:[%s7487_s19 + $0xa8] sm:$0xff] %v5563_v24  ;;  %v2222_v37 = vpop.f32.mrb[52].mxu1  ;;  %6214 = vtanh.f32 %v1579_v28  ;;  %v1583_v40 = vadd.f32 %v1582_v36, %v7440_v29 }
 0x183   : > { %v6191_v33 = vpop.eup %6190  ;;  %4928 = vst [vmem:[%s7487_s19 + $0x4a8] sm:$0xff] %v5691_v27  ;;  %v2223_v41 = vadd.f32 %v2222_v37, %v7440_v29  ;;  %v1584_v42 = vpop.f32.mrb[53].mxu0  ;;  %6216 = vtanh.f32 %v2219_v32 }
 0x184   : > { %v6193_v34 = vpop.eup %6192  ;;  %v5564_v35 = vpack.c.bf16 %v6191_v33, %v6187_v26  ;;  %v2224_v43 = vpop.f32.mrb[53].mxu1  ;;  %v1585_v47 = vadd.f32 %v1584_v42, %v7442_v30  ;;  %6218 = vtanh.f32 %v1583_v40 }
 0x185   : > { %v6195_v38 = vpop.eup %6194  ;;  %v5692_v39 = vpack.c.bf16 %v6193_v34, %v6189_v31  ;;  %v2225_v48 = vadd.f32 %v2224_v43, %v7442_v30  ;;  %v1586_v49 = vpop.f32.mrb[54].mxu0  ;;  %6220 = vtanh.f32 %v2223_v41  ;;  %v5966_v43 = vld [vmem:[%s8562_s0 + $0x150] sm:$0xff]  }
 0x186   : > { %v6197_v46 = vpop.eup %6196  ;;  %4801 = vst [vmem:[%s7487_s19 + $0xb0] sm:$0xff] %v5564_v35  ;;  %v2226_v50 = vpop.f32.mrb[54].mxu1  ;;  %v1587_v52 = vadd.f32 %v1586_v49, %v7440_v29  ;;  %6222 = vtanh.f32 %v1585_v47  ;;  %1851 = vmatmul.mubr.bf16.gmra.mrb[160].mxu0 %v5962_v44  ;;  %2491 = vmatmul.mubr.bf16.gmra.mrb[160].mxu1 %v5963_v45  ;;  %v5967_v44 = vld [vmem:[%s8562_s0 + $0x350] sm:$0xff]  }
 0x187   : > { %v6199_v51 = vpop.eup %6198  ;;  %4929 = vst [vmem:[%s7487_s19 + $0x4b0] sm:$0xff] %v5692_v39  ;;  %v1588_v53 = vpop.f32.mrb[55].mxu0  ;;  %v2227_v57 = vadd.f32 %v2226_v50, %v7440_v29  ;;  %6224 = vtanh.f32 %v2225_v48  ;;  %1860 = vmatprep.mubr.bf16.mxu0 %v7098_v16  ;;  %2500 = vmatprep.mubr.bf16.mxu1 %v7098_v16 }
 0x188   : > { %v2228_v54 = vpop.f32.mrb[55].mxu1  ;;  %v6201_v55 = vpop.eup %6200  ;;  %v5565_v56 = vpack.c.bf16 %v6199_v51, %v6195_v38  ;;  %v1589_v60 = vadd.f32 %v1588_v53, %v7442_v30  ;;  %6226 = vtanh.f32 %v1587_v52 }
 0x189   : > { %v6203_v58 = vpop.eup %6202  ;;  %v5693_v59 = vpack.c.bf16 %v6201_v55, %v6197_v46  ;;  %v2229_v62 = vadd.f32 %v2228_v54, %v7442_v30  ;;  %6228 = vtanh.f32 %v2227_v57  ;;  %v1592_v2 = vpop.f32.mrb[56].mxu0 }
 0x18a   : > { %v6205_v61 = vpop.eup %6204  ;;  %4802 = vst [vmem:[%s7487_s19 + $0xb8] sm:$0xff] %v5565_v56  ;;  %v2232_v3 = vpop.f32.mrb[56].mxu1  ;;  %6230 = vtanh.f32 %v1589_v60  ;;  %v1593_v6 = vadd.f32 %v1592_v2, %v7440_v29 }
 0x18b   : > { %v6207_v63 = vpop.eup %6206  ;;  %4930 = vst [vmem:[%s7487_s19 + $0x4b8] sm:$0xff] %v5693_v59  ;;  %v2233_v7 = vadd.f32 %v2232_v3, %v7440_v29  ;;  %v1594_v8 = vpop.f32.mrb[57].mxu0  ;;  %6232 = vtanh.f32 %v2229_v62 }
 0x18c   : > { %v6209_v0 = vpop.eup %6208  ;;  %v5566_v1 = vpack.c.bf16 %v6207_v63, %v6203_v58  ;;  %v2234_v9 = vpop.f32.mrb[57].mxu1  ;;  %v1595_v13 = vadd.f32 %v1594_v8, %v7442_v30  ;;  %6234 = vtanh.f32 %v1593_v6 }
 0x18d   : > { %v6211_v4 = vpop.eup %6210  ;;  %v5694_v5 = vpack.c.bf16 %v6209_v0, %v6205_v61  ;;  %v2235_v14 = vadd.f32 %v2234_v9, %v7442_v30  ;;  %v1596_v15 = vpop.f32.mrb[58].mxu0  ;;  %6236 = vtanh.f32 %v2233_v7  ;;  %v5968_v9 = vld [vmem:[%s8562_s0 + $0x158] sm:$0xff]  }
 0x18e   : > { %v6213_v12 = vpop.eup %6212  ;;  %4803 = vst [vmem:[%s7487_s19 + $0xc0] sm:$0xff] %v5566_v1  ;;  %v2236_v17 = vpop.f32.mrb[58].mxu1  ;;  %v1597_v19 = vadd.f32 %v1596_v15, %v7440_v29  ;;  %6238 = vtanh.f32 %v1595_v13  ;;  %1861 = vmatmul.mubr.bf16.gmra.mrb[164].mxu0 %v5964_v10  ;;  %2501 = vmatmul.mubr.bf16.gmra.mrb[164].mxu1 %v5965_v11  ;;  %v5969_v10 = vld [vmem:[%s8562_s0 + $0x358] sm:$0xff]  }
 0x18f   : > { %v6215_v18 = vpop.eup %6214  ;;  %4931 = vst [vmem:[%s7487_s19 + $0x4c0] sm:$0xff] %v5694_v5  ;;  %v1598_v20 = vpop.f32.mrb[59].mxu0  ;;  %v2237_v24 = vadd.f32 %v2236_v17, %v7440_v29  ;;  %6240 = vtanh.f32 %v2235_v14  ;;  %1870 = vmatprep.mubr.bf16.mxu0 %v7098_v16  ;;  %2510 = vmatprep.mubr.bf16.mxu1 %v7098_v16 }
 0x190   : > { %v2238_v21 = vpop.f32.mrb[59].mxu1  ;;  %v6217_v22 = vpop.eup %6216  ;;  %v5567_v23 = vpack.c.bf16 %v6215_v18, %v6211_v4  ;;  %v1599_v27 = vadd.f32 %v1598_v20, %v7442_v30  ;;  %6242 = vtanh.f32 %v1597_v19 }
 0x191   : > { %v6219_v25 = vpop.eup %6218  ;;  %v5695_v26 = vpack.c.bf16 %v6217_v22, %v6213_v12  ;;  %v2239_v31 = vadd.f32 %v2238_v21, %v7442_v30  ;;  %6244 = vtanh.f32 %v2237_v24  ;;  %v1602_v35 = vpop.f32.mrb[60].mxu0 }
 0x192   : > { %v6221_v28 = vpop.eup %6220  ;;  %4804 = vst [vmem:[%s7487_s19 + $0xc8] sm:$0xff] %v5567_v23  ;;  %v2242_v36 = vpop.f32.mrb[60].mxu1  ;;  %6246 = vtanh.f32 %v1599_v27  ;;  %v1603_v39 = vadd.f32 %v1602_v35, %v7440_v29 }
 0x193   : > { %v6223_v32 = vpop.eup %6222  ;;  %4932 = vst [vmem:[%s7487_s19 + $0x4c8] sm:$0xff] %v5695_v26  ;;  %v2243_v40 = vadd.f32 %v2242_v36, %v7440_v29  ;;  %v1604_v41 = vpop.f32.mrb[61].mxu0  ;;  %6248 = vtanh.f32 %v2239_v31 }
 0x194   : > { %v6225_v33 = vpop.eup %6224  ;;  %v5568_v34 = vpack.c.bf16 %v6223_v32, %v6219_v25  ;;  %v2244_v42 = vpop.f32.mrb[61].mxu1  ;;  %v1605_v46 = vadd.f32 %v1604_v41, %v7442_v30  ;;  %6250 = vtanh.f32 %v1603_v39 }
 0x195   : > { %v6227_v37 = vpop.eup %6226  ;;  %v5696_v38 = vpack.c.bf16 %v6225_v33, %v6221_v28  ;;  %v2245_v47 = vadd.f32 %v2244_v42, %v7442_v30  ;;  %v1606_v48 = vpop.f32.mrb[62].mxu0  ;;  %6252 = vtanh.f32 %v2243_v40  ;;  %v5970_v42 = vld [vmem:[%s8562_s0 + $0x160] sm:$0xff]  }
 0x196   : > { %v6229_v45 = vpop.eup %6228  ;;  %4805 = vst [vmem:[%s7487_s19 + $0xd0] sm:$0xff] %v5568_v34  ;;  %v2246_v49 = vpop.f32.mrb[62].mxu1  ;;  %v1607_v51 = vadd.f32 %v1606_v48, %v7440_v29  ;;  %6254 = vtanh.f32 %v1605_v46  ;;  %1871 = vmatmul.mubr.bf16.gmra.mrb[168].mxu0 %v5966_v43  ;;  %2511 = vmatmul.mubr.bf16.gmra.mrb[168].mxu1 %v5967_v44  ;;  %v5971_v43 = vld [vmem:[%s8562_s0 + $0x360] sm:$0xff]  }
 0x197   : > { %v6231_v50 = vpop.eup %6230  ;;  %4933 = vst [vmem:[%s7487_s19 + $0x4d0] sm:$0xff] %v5696_v38  ;;  %v1608_v52 = vpop.f32.mrb[63].mxu0  ;;  %v2247_v56 = vadd.f32 %v2246_v49, %v7440_v29  ;;  %6256 = vtanh.f32 %v2245_v47  ;;  %1880 = vmatprep.mubr.bf16.mxu0 %v7098_v16  ;;  %2520 = vmatprep.mubr.bf16.mxu1 %v7098_v16 }
 0x198   : > { %v2248_v53 = vpop.f32.mrb[63].mxu1  ;;  %v6233_v54 = vpop.eup %6232  ;;  %v5569_v55 = vpack.c.bf16 %v6231_v50, %v6227_v37  ;;  %v1609_v59 = vadd.f32 %v1608_v52, %v7442_v30  ;;  %6258 = vtanh.f32 %v1607_v51 }
 0x199   : > { %v6235_v57 = vpop.eup %6234  ;;  %v5697_v58 = vpack.c.bf16 %v6233_v54, %v6229_v45  ;;  %v2249_v61 = vadd.f32 %v2248_v53, %v7442_v30  ;;  %6260 = vtanh.f32 %v2247_v56  ;;  %v1612_v1 = vpop.f32.mrb[64].mxu0 }
 0x19a   : > { %v6237_v60 = vpop.eup %6236  ;;  %4806 = vst [vmem:[%s7487_s19 + $0xd8] sm:$0xff] %v5569_v55  ;;  %v2252_v2 = vpop.f32.mrb[64].mxu1  ;;  %6262 = vtanh.f32 %v1609_v59  ;;  %v1613_v5 = vadd.f32 %v1612_v1, %v7440_v29 }
 0x19b   : > { %v6239_v62 = vpop.eup %6238  ;;  %4934 = vst [vmem:[%s7487_s19 + $0x4d8] sm:$0xff] %v5697_v58  ;;  %v2253_v6 = vadd.f32 %v2252_v2, %v7440_v29  ;;  %v1614_v7 = vpop.f32.mrb[65].mxu0  ;;  %6264 = vtanh.f32 %v2249_v61 }
 0x19c   : > { %v6241_v63 = vpop.eup %6240  ;;  %v5570_v0 = vpack.c.bf16 %v6239_v62, %v6235_v57  ;;  %v2254_v8 = vpop.f32.mrb[65].mxu1  ;;  %v1615_v12 = vadd.f32 %v1614_v7, %v7442_v30  ;;  %6266 = vtanh.f32 %v1613_v5 }
 0x19d   : > { %v6243_v3 = vpop.eup %6242  ;;  %v5698_v4 = vpack.c.bf16 %v6241_v63, %v6237_v60  ;;  %v2255_v13 = vadd.f32 %v2254_v8, %v7442_v30  ;;  %v1616_v14 = vpop.f32.mrb[66].mxu0  ;;  %6268 = vtanh.f32 %v2253_v6  ;;  %v5972_v8 = vld [vmem:[%s8562_s0 + $0x168] sm:$0xff]  }
 0x19e   : > { %v6245_v11 = vpop.eup %6244  ;;  %4807 = vst [vmem:[%s7487_s19 + $0xe0] sm:$0xff] %v5570_v0  ;;  %v2256_v15 = vpop.f32.mrb[66].mxu1  ;;  %v1617_v18 = vadd.f32 %v1616_v14, %v7440_v29  ;;  %6270 = vtanh.f32 %v1615_v12  ;;  %1881 = vmatmul.mubr.bf16.gmra.mrb[172].mxu0 %v5968_v9  ;;  %2521 = vmatmul.mubr.bf16.gmra.mrb[172].mxu1 %v5969_v10  ;;  %v5973_v9 = vld [vmem:[%s8562_s0 + $0x368] sm:$0xff]  }
 0x19f   : > { %v6247_v17 = vpop.eup %6246  ;;  %4935 = vst [vmem:[%s7487_s19 + $0x4e0] sm:$0xff] %v5698_v4  ;;  %v1618_v19 = vpop.f32.mrb[67].mxu0  ;;  %v2257_v23 = vadd.f32 %v2256_v15, %v7440_v29  ;;  %6272 = vtanh.f32 %v2255_v13  ;;  %1890 = vmatprep.mubr.bf16.mxu0 %v7098_v16  ;;  %2530 = vmatprep.mubr.bf16.mxu1 %v7098_v16 }
 0x1a0   : > { %v2258_v20 = vpop.f32.mrb[67].mxu1  ;;  %v6249_v21 = vpop.eup %6248  ;;  %v5571_v22 = vpack.c.bf16 %v6247_v17, %v6243_v3  ;;  %v1619_v26 = vadd.f32 %v1618_v19, %v7442_v30  ;;  %6274 = vtanh.f32 %v1617_v18 }
 0x1a1   : > { %v6251_v24 = vpop.eup %6250  ;;  %v5699_v25 = vpack.c.bf16 %v6249_v21, %v6245_v11  ;;  %v2259_v28 = vadd.f32 %v2258_v20, %v7442_v30  ;;  %6276 = vtanh.f32 %v2257_v23  ;;  %v1622_v34 = vpop.f32.mrb[68].mxu0 }
 0x1a2   : > { %v6253_v27 = vpop.eup %6252  ;;  %4808 = vst [vmem:[%s7487_s19 + $0xe8] sm:$0xff] %v5571_v22  ;;  %v2262_v35 = vpop.f32.mrb[68].mxu1  ;;  %6278 = vtanh.f32 %v1619_v26  ;;  %v1623_v38 = vadd.f32 %v1622_v34, %v7440_v29 }
 0x1a3   : > { %v6255_v31 = vpop.eup %6254  ;;  %4936 = vst [vmem:[%s7487_s19 + $0x4e8] sm:$0xff] %v5699_v25  ;;  %v2263_v39 = vadd.f32 %v2262_v35, %v7440_v29  ;;  %v1624_v40 = vpop.f32.mrb[69].mxu0  ;;  %6280 = vtanh.f32 %v2259_v28 }
 0x1a4   : > { %v6257_v32 = vpop.eup %6256  ;;  %v5572_v33 = vpack.c.bf16 %v6255_v31, %v6251_v24  ;;  %v2264_v41 = vpop.f32.mrb[69].mxu1  ;;  %v1625_v45 = vadd.f32 %v1624_v40, %v7442_v30  ;;  %6282 = vtanh.f32 %v1623_v38 }
 0x1a5   : > { %v6259_v36 = vpop.eup %6258  ;;  %v5700_v37 = vpack.c.bf16 %v6257_v32, %v6253_v27  ;;  %v2265_v46 = vadd.f32 %v2264_v41, %v7442_v30  ;;  %v1626_v47 = vpop.f32.mrb[70].mxu0  ;;  %6284 = vtanh.f32 %v2263_v39  ;;  %v5974_v41 = vld [vmem:[%s8562_s0 + $0x170] sm:$0xff]  }
 0x1a6   : > { %v6261_v44 = vpop.eup %6260  ;;  %4809 = vst [vmem:[%s7487_s19 + $0xf0] sm:$0xff] %v5572_v33  ;;  %v2266_v48 = vpop.f32.mrb[70].mxu1  ;;  %v1627_v50 = vadd.f32 %v1626_v47, %v7440_v29  ;;  %6286 = vtanh.f32 %v1625_v45  ;;  %1891 = vmatmul.mubr.bf16.gmra.mrb[176].mxu0 %v5970_v42  ;;  %2531 = vmatmul.mubr.bf16.gmra.mrb[176].mxu1 %v5971_v43  ;;  %v5975_v42 = vld [vmem:[%s8562_s0 + $0x370] sm:$0xff]  }
 0x1a7   : > { %v6263_v49 = vpop.eup %6262  ;;  %4937 = vst [vmem:[%s7487_s19 + $0x4f0] sm:$0xff] %v5700_v37  ;;  %v1628_v51 = vpop.f32.mrb[71].mxu0  ;;  %v2267_v55 = vadd.f32 %v2266_v48, %v7440_v29  ;;  %6288 = vtanh.f32 %v2265_v46  ;;  %1900 = vmatprep.mubr.bf16.mxu0 %v7098_v16  ;;  %2540 = vmatprep.mubr.bf16.mxu1 %v7098_v16 }
 0x1a8   : > { %v2268_v52 = vpop.f32.mrb[71].mxu1  ;;  %v6265_v53 = vpop.eup %6264  ;;  %v5573_v54 = vpack.c.bf16 %v6263_v49, %v6259_v36  ;;  %v1629_v58 = vadd.f32 %v1628_v51, %v7442_v30  ;;  %6290 = vtanh.f32 %v1627_v50 }
 0x1a9   : > { %v6267_v56 = vpop.eup %6266  ;;  %v5701_v57 = vpack.c.bf16 %v6265_v53, %v6261_v44  ;;  %v2269_v60 = vadd.f32 %v2268_v52, %v7442_v30  ;;  %6292 = vtanh.f32 %v2267_v55  ;;  %v1632_v0 = vpop.f32.mrb[72].mxu0 }
 0x1aa   : > { %v6269_v59 = vpop.eup %6268  ;;  %4810 = vst [vmem:[%s7487_s19 + $0xf8] sm:$0xff] %v5573_v54  ;;  %v2272_v1 = vpop.f32.mrb[72].mxu1  ;;  %6294 = vtanh.f32 %v1629_v58  ;;  %v1633_v4 = vadd.f32 %v1632_v0, %v7440_v29 }
 0x1ab   : > { %v6271_v61 = vpop.eup %6270  ;;  %4938 = vst [vmem:[%s7487_s19 + $0x4f8] sm:$0xff] %v5701_v57  ;;  %v2273_v5 = vadd.f32 %v2272_v1, %v7440_v29  ;;  %v1634_v6 = vpop.f32.mrb[73].mxu0  ;;  %6296 = vtanh.f32 %v2269_v60 }
 0x1ac   : > { %v6273_v62 = vpop.eup %6272  ;;  %v5574_v63 = vpack.c.bf16 %v6271_v61, %v6267_v56  ;;  %v2274_v7 = vpop.f32.mrb[73].mxu1  ;;  %v1635_v11 = vadd.f32 %v1634_v6, %v7442_v30  ;;  %6298 = vtanh.f32 %v1633_v4 }
 0x1ad   : > { %v6275_v2 = vpop.eup %6274  ;;  %v5702_v3 = vpack.c.bf16 %v6273_v62, %v6269_v59  ;;  %v2275_v12 = vadd.f32 %v2274_v7, %v7442_v30  ;;  %v1636_v13 = vpop.f32.mrb[74].mxu0  ;;  %6300 = vtanh.f32 %v2273_v5  ;;  %v5976_v7 = vld [vmem:[%s8562_s0 + $0x178] sm:$0xff]  }
 0x1ae   : > { %v6277_v10 = vpop.eup %6276  ;;  %4811 = vst [vmem:[%s7487_s19 + $0x100] sm:$0xff] %v5574_v63  ;;  %v2276_v14 = vpop.f32.mrb[74].mxu1  ;;  %v1637_v17 = vadd.f32 %v1636_v13, %v7440_v29  ;;  %6302 = vtanh.f32 %v1635_v11  ;;  %1901 = vmatmul.mubr.bf16.gmra.mrb[180].mxu0 %v5972_v8  ;;  %2541 = vmatmul.mubr.bf16.gmra.mrb[180].mxu1 %v5973_v9  ;;  %v5977_v8 = vld [vmem:[%s8562_s0 + $0x378] sm:$0xff]  }
 0x1af   : > { %v6279_v15 = vpop.eup %6278  ;;  %4939 = vst [vmem:[%s7487_s19 + $0x500] sm:$0xff] %v5702_v3  ;;  %v1638_v18 = vpop.f32.mrb[75].mxu0  ;;  %v2277_v22 = vadd.f32 %v2276_v14, %v7440_v29  ;;  %6304 = vtanh.f32 %v2275_v12  ;;  %1910 = vmatprep.mubr.bf16.mxu0 %v7098_v16  ;;  %2550 = vmatprep.mubr.bf16.mxu1 %v7098_v16 }
 0x1b0   : > { %v2278_v19 = vpop.f32.mrb[75].mxu1  ;;  %v6281_v20 = vpop.eup %6280  ;;  %v5575_v21 = vpack.c.bf16 %v6279_v15, %v6275_v2  ;;  %v1639_v25 = vadd.f32 %v1638_v18, %v7442_v30  ;;  %6306 = vtanh.f32 %v1637_v17 }
 0x1b1   : > { %v6283_v23 = vpop.eup %6282  ;;  %v5703_v24 = vpack.c.bf16 %v6281_v20, %v6277_v10  ;;  %v2279_v27 = vadd.f32 %v2278_v19, %v7442_v30  ;;  %6308 = vtanh.f32 %v2277_v22  ;;  %v1642_v33 = vpop.f32.mrb[76].mxu0 }
 0x1b2   : > { %v6285_v26 = vpop.eup %6284  ;;  %4812 = vst [vmem:[%s7487_s19 + $0x108] sm:$0xff] %v5575_v21  ;;  %v2282_v34 = vpop.f32.mrb[76].mxu1  ;;  %6310 = vtanh.f32 %v1639_v25  ;;  %v1643_v37 = vadd.f32 %v1642_v33, %v7440_v29 }
 0x1b3   : > { %v6287_v28 = vpop.eup %6286  ;;  %4940 = vst [vmem:[%s7487_s19 + $0x508] sm:$0xff] %v5703_v24  ;;  %v2283_v38 = vadd.f32 %v2282_v34, %v7440_v29  ;;  %v1644_v39 = vpop.f32.mrb[77].mxu0  ;;  %6312 = vtanh.f32 %v2279_v27 }
 0x1b4   : > { %v6289_v31 = vpop.eup %6288  ;;  %v5576_v32 = vpack.c.bf16 %v6287_v28, %v6283_v23  ;;  %v2284_v40 = vpop.f32.mrb[77].mxu1  ;;  %v1645_v44 = vadd.f32 %v1644_v39, %v7442_v30  ;;  %6314 = vtanh.f32 %v1643_v37 }
 0x1b5   : > { %v6291_v35 = vpop.eup %6290  ;;  %v5704_v36 = vpack.c.bf16 %v6289_v31, %v6285_v26  ;;  %v2285_v45 = vadd.f32 %v2284_v40, %v7442_v30  ;;  %v1646_v46 = vpop.f32.mrb[78].mxu0  ;;  %6316 = vtanh.f32 %v2283_v38  ;;  %v5978_v40 = vld [vmem:[%s8562_s0 + $0x180] sm:$0xff]  }
 0x1b6   : > { %v6293_v43 = vpop.eup %6292  ;;  %4813 = vst [vmem:[%s7487_s19 + $0x110] sm:$0xff] %v5576_v32  ;;  %v2286_v47 = vpop.f32.mrb[78].mxu1  ;;  %v1647_v49 = vadd.f32 %v1646_v46, %v7440_v29  ;;  %6318 = vtanh.f32 %v1645_v44  ;;  %1911 = vmatmul.mubr.bf16.gmra.mrb[184].mxu0 %v5974_v41  ;;  %2551 = vmatmul.mubr.bf16.gmra.mrb[184].mxu1 %v5975_v42  ;;  %v5979_v41 = vld [vmem:[%s8562_s0 + $0x380] sm:$0xff]  }
 0x1b7   : > { %v6295_v48 = vpop.eup %6294  ;;  %4941 = vst [vmem:[%s7487_s19 + $0x510] sm:$0xff] %v5704_v36  ;;  %v1648_v50 = vpop.f32.mrb[79].mxu0  ;;  %v2287_v54 = vadd.f32 %v2286_v47, %v7440_v29  ;;  %6320 = vtanh.f32 %v2285_v45  ;;  %1920 = vmatprep.mubr.bf16.mxu0 %v7098_v16  ;;  %2560 = vmatprep.mubr.bf16.mxu1 %v7098_v16 }
 0x1b8   : > { %v2288_v51 = vpop.f32.mrb[79].mxu1  ;;  %v6297_v52 = vpop.eup %6296  ;;  %v5577_v53 = vpack.c.bf16 %v6295_v48, %v6291_v35  ;;  %v1649_v57 = vadd.f32 %v1648_v50, %v7442_v30  ;;  %6322 = vtanh.f32 %v1647_v49 }
 0x1b9   : > { %v6299_v55 = vpop.eup %6298  ;;  %v5705_v56 = vpack.c.bf16 %v6297_v52, %v6293_v43  ;;  %v2289_v59 = vadd.f32 %v2288_v51, %v7442_v30  ;;  %6324 = vtanh.f32 %v2287_v54  ;;  %v1652_v63 = vpop.f32.mrb[80].mxu0 }
 0x1ba   : > { %v6301_v58 = vpop.eup %6300  ;;  %4814 = vst [vmem:[%s7487_s19 + $0x118] sm:$0xff] %v5577_v53  ;;  %v2292_v0 = vpop.f32.mrb[80].mxu1  ;;  %6326 = vtanh.f32 %v1649_v57  ;;  %v1653_v3 = vadd.f32 %v1652_v63, %v7440_v29 }
 0x1bb   : > { %v6303_v60 = vpop.eup %6302  ;;  %4942 = vst [vmem:[%s7487_s19 + $0x518] sm:$0xff] %v5705_v56  ;;  %v2293_v4 = vadd.f32 %v2292_v0, %v7440_v29  ;;  %v1654_v5 = vpop.f32.mrb[81].mxu0  ;;  %6328 = vtanh.f32 %v2289_v59 }
 0x1bc   : > { %v6305_v61 = vpop.eup %6304  ;;  %v5578_v62 = vpack.c.bf16 %v6303_v60, %v6299_v55  ;;  %v2294_v6 = vpop.f32.mrb[81].mxu1  ;;  %v1655_v10 = vadd.f32 %v1654_v5, %v7442_v30  ;;  %6330 = vtanh.f32 %v1653_v3 }
 0x1bd   : > { %v6307_v1 = vpop.eup %6306  ;;  %v5706_v2 = vpack.c.bf16 %v6305_v61, %v6301_v58  ;;  %v2295_v11 = vadd.f32 %v2294_v6, %v7442_v30  ;;  %v1656_v12 = vpop.f32.mrb[82].mxu0  ;;  %6332 = vtanh.f32 %v2293_v4  ;;  %v5980_v6 = vld [vmem:[%s8562_s0 + $0x188] sm:$0xff]  }
 0x1be   : > { %v6309_v9 = vpop.eup %6308  ;;  %4815 = vst [vmem:[%s7487_s19 + $0x120] sm:$0xff] %v5578_v62  ;;  %v2296_v13 = vpop.f32.mrb[82].mxu1  ;;  %v1657_v15 = vadd.f32 %v1656_v12, %v7440_v29  ;;  %6334 = vtanh.f32 %v1655_v10  ;;  %1921 = vmatmul.mubr.bf16.gmra.mrb[188].mxu0 %v5976_v7  ;;  %2561 = vmatmul.mubr.bf16.gmra.mrb[188].mxu1 %v5977_v8  ;;  %v5981_v7 = vld [vmem:[%s8562_s0 + $0x388] sm:$0xff]  }
 0x1bf   : > { %v6311_v14 = vpop.eup %6310  ;;  %4943 = vst [vmem:[%s7487_s19 + $0x520] sm:$0xff] %v5706_v2  ;;  %v1658_v17 = vpop.f32.mrb[83].mxu0  ;;  %v2297_v21 = vadd.f32 %v2296_v13, %v7440_v29  ;;  %6336 = vtanh.f32 %v2295_v11  ;;  %1930 = vmatprep.mubr.bf16.mxu0 %v7098_v16  ;;  %2570 = vmatprep.mubr.bf16.mxu1 %v7098_v16 }
 0x1c0   : > { %v2298_v18 = vpop.f32.mrb[83].mxu1  ;;  %v6313_v19 = vpop.eup %6312  ;;  %v5579_v20 = vpack.c.bf16 %v6311_v14, %v6307_v1  ;;  %v1659_v24 = vadd.f32 %v1658_v17, %v7442_v30  ;;  %6338 = vtanh.f32 %v1657_v15 }
 0x1c1   : > { %v6315_v22 = vpop.eup %6314  ;;  %v5707_v23 = vpack.c.bf16 %v6313_v19, %v6309_v9  ;;  %v2299_v26 = vadd.f32 %v2298_v18, %v7442_v30  ;;  %6340 = vtanh.f32 %v2297_v21  ;;  %v1662_v32 = vpop.f32.mrb[84].mxu0 }
 0x1c2   : > { %v6317_v25 = vpop.eup %6316  ;;  %4816 = vst [vmem:[%s7487_s19 + $0x128] sm:$0xff] %v5579_v20  ;;  %v2302_v33 = vpop.f32.mrb[84].mxu1  ;;  %6342 = vtanh.f32 %v1659_v24  ;;  %v1663_v36 = vadd.f32 %v1662_v32, %v7440_v29 }
 0x1c3   : > { %v6319_v27 = vpop.eup %6318  ;;  %4944 = vst [vmem:[%s7487_s19 + $0x528] sm:$0xff] %v5707_v23  ;;  %v2303_v37 = vadd.f32 %v2302_v33, %v7440_v29  ;;  %v1664_v38 = vpop.f32.mrb[85].mxu0  ;;  %6344 = vtanh.f32 %v2299_v26 }
 0x1c4   : > { %v6321_v28 = vpop.eup %6320  ;;  %v5580_v31 = vpack.c.bf16 %v6319_v27, %v6315_v22  ;;  %v2304_v39 = vpop.f32.mrb[85].mxu1  ;;  %v1665_v43 = vadd.f32 %v1664_v38, %v7442_v30  ;;  %6346 = vtanh.f32 %v1663_v36 }
 0x1c5   : > { %v6323_v34 = vpop.eup %6322  ;;  %v5708_v35 = vpack.c.bf16 %v6321_v28, %v6317_v25  ;;  %v2305_v44 = vadd.f32 %v2304_v39, %v7442_v30  ;;  %v1666_v45 = vpop.f32.mrb[86].mxu0  ;;  %6348 = vtanh.f32 %v2303_v37  ;;  %v5982_v39 = vld [vmem:[%s8562_s0 + $0x190] sm:$0xff]  }
 0x1c6   : > { %v6325_v42 = vpop.eup %6324  ;;  %4817 = vst [vmem:[%s7487_s19 + $0x130] sm:$0xff] %v5580_v31  ;;  %v2306_v46 = vpop.f32.mrb[86].mxu1  ;;  %v1667_v48 = vadd.f32 %v1666_v45, %v7440_v29  ;;  %6350 = vtanh.f32 %v1665_v43  ;;  %1931 = vmatmul.mubr.bf16.gmra.mrb[192].mxu0 %v5978_v40  ;;  %2571 = vmatmul.mubr.bf16.gmra.mrb[192].mxu1 %v5979_v41  ;;  %v5983_v40 = vld [vmem:[%s8562_s0 + $0x390] sm:$0xff]  }
 0x1c7   : > { %v6327_v47 = vpop.eup %6326  ;;  %4945 = vst [vmem:[%s7487_s19 + $0x530] sm:$0xff] %v5708_v35  ;;  %v1668_v49 = vpop.f32.mrb[87].mxu0  ;;  %v2307_v53 = vadd.f32 %v2306_v46, %v7440_v29  ;;  %6352 = vtanh.f32 %v2305_v44  ;;  %1940 = vmatprep.mubr.bf16.mxu0 %v7098_v16  ;;  %2580 = vmatprep.mubr.bf16.mxu1 %v7098_v16 }
 0x1c8   : > { %v2308_v50 = vpop.f32.mrb[87].mxu1  ;;  %v6329_v51 = vpop.eup %6328  ;;  %v5581_v52 = vpack.c.bf16 %v6327_v47, %v6323_v34  ;;  %v1669_v56 = vadd.f32 %v1668_v49, %v7442_v30  ;;  %6354 = vtanh.f32 %v1667_v48 }
 0x1c9   : > { %v6331_v54 = vpop.eup %6330  ;;  %v5709_v55 = vpack.c.bf16 %v6329_v51, %v6325_v42  ;;  %v2309_v58 = vadd.f32 %v2308_v50, %v7442_v30  ;;  %6356 = vtanh.f32 %v2307_v53  ;;  %v1672_v62 = vpop.f32.mrb[88].mxu0 }
 0x1ca   : > { %v6333_v57 = vpop.eup %6332  ;;  %4818 = vst [vmem:[%s7487_s19 + $0x138] sm:$0xff] %v5581_v52  ;;  %v2312_v63 = vpop.f32.mrb[88].mxu1  ;;  %6358 = vtanh.f32 %v1669_v56  ;;  %v1673_v2 = vadd.f32 %v1672_v62, %v7440_v29 }
 0x1cb   : > { %v6335_v59 = vpop.eup %6334  ;;  %4946 = vst [vmem:[%s7487_s19 + $0x538] sm:$0xff] %v5709_v55  ;;  %v2313_v3 = vadd.f32 %v2312_v63, %v7440_v29  ;;  %v1674_v4 = vpop.f32.mrb[89].mxu0  ;;  %6360 = vtanh.f32 %v2309_v58 }
 0x1cc   : > { %v6337_v60 = vpop.eup %6336  ;;  %v5582_v61 = vpack.c.bf16 %v6335_v59, %v6331_v54  ;;  %v2314_v5 = vpop.f32.mrb[89].mxu1  ;;  %v1675_v9 = vadd.f32 %v1674_v4, %v7442_v30  ;;  %6362 = vtanh.f32 %v1673_v2 }
 0x1cd   : > { %v6339_v0 = vpop.eup %6338  ;;  %v5710_v1 = vpack.c.bf16 %v6337_v60, %v6333_v57  ;;  %v2315_v10 = vadd.f32 %v2314_v5, %v7442_v30  ;;  %v1676_v11 = vpop.f32.mrb[90].mxu0  ;;  %6364 = vtanh.f32 %v2313_v3  ;;  %v5984_v5 = vld [vmem:[%s8562_s0 + $0x198] sm:$0xff]  }
 0x1ce   : > { %v6341_v8 = vpop.eup %6340  ;;  %4819 = vst [vmem:[%s7487_s19 + $0x140] sm:$0xff] %v5582_v61  ;;  %v2316_v12 = vpop.f32.mrb[90].mxu1  ;;  %v1677_v14 = vadd.f32 %v1676_v11, %v7440_v29  ;;  %6366 = vtanh.f32 %v1675_v9  ;;  %1941 = vmatmul.mubr.bf16.gmra.mrb[196].mxu0 %v5980_v6  ;;  %2581 = vmatmul.mubr.bf16.gmra.mrb[196].mxu1 %v5981_v7  ;;  %v5985_v6 = vld [vmem:[%s8562_s0 + $0x398] sm:$0xff]  }
 0x1cf   : > { %v6343_v13 = vpop.eup %6342  ;;  %4947 = vst [vmem:[%s7487_s19 + $0x540] sm:$0xff] %v5710_v1  ;;  %v1678_v15 = vpop.f32.mrb[91].mxu0  ;;  %v2317_v20 = vadd.f32 %v2316_v12, %v7440_v29  ;;  %6368 = vtanh.f32 %v2315_v10  ;;  %1950 = vmatprep.mubr.bf16.mxu0 %v7098_v16  ;;  %2590 = vmatprep.mubr.bf16.mxu1 %v7098_v16 }
 0x1d0   : > { %v2318_v17 = vpop.f32.mrb[91].mxu1  ;;  %v6345_v18 = vpop.eup %6344  ;;  %v5583_v19 = vpack.c.bf16 %v6343_v13, %v6339_v0  ;;  %v1679_v23 = vadd.f32 %v1678_v15, %v7442_v30  ;;  %6370 = vtanh.f32 %v1677_v14 }
 0x1d1   : > { %v6347_v21 = vpop.eup %6346  ;;  %v5711_v22 = vpack.c.bf16 %v6345_v18, %v6341_v8  ;;  %v2319_v25 = vadd.f32 %v2318_v17, %v7442_v30  ;;  %6372 = vtanh.f32 %v2317_v20  ;;  %v1682_v31 = vpop.f32.mrb[92].mxu0 }
 0x1d2   : > { %v6349_v24 = vpop.eup %6348  ;;  %4820 = vst [vmem:[%s7487_s19 + $0x148] sm:$0xff] %v5583_v19  ;;  %v2322_v32 = vpop.f32.mrb[92].mxu1  ;;  %6374 = vtanh.f32 %v1679_v23  ;;  %v1683_v35 = vadd.f32 %v1682_v31, %v7440_v29 }
 0x1d3   : > { %v6351_v26 = vpop.eup %6350  ;;  %4948 = vst [vmem:[%s7487_s19 + $0x548] sm:$0xff] %v5711_v22  ;;  %v2323_v36 = vadd.f32 %v2322_v32, %v7440_v29  ;;  %v1684_v37 = vpop.f32.mrb[93].mxu0  ;;  %6376 = vtanh.f32 %v2319_v25 }
 0x1d4   : > { %v6353_v27 = vpop.eup %6352  ;;  %v5584_v28 = vpack.c.bf16 %v6351_v26, %v6347_v21  ;;  %v2324_v38 = vpop.f32.mrb[93].mxu1  ;;  %v1685_v42 = vadd.f32 %v1684_v37, %v7442_v30  ;;  %6378 = vtanh.f32 %v1683_v35 }
 0x1d5   : > { %v6355_v33 = vpop.eup %6354  ;;  %v5712_v34 = vpack.c.bf16 %v6353_v27, %v6349_v24  ;;  %v2325_v43 = vadd.f32 %v2324_v38, %v7442_v30  ;;  %v1686_v44 = vpop.f32.mrb[94].mxu0  ;;  %6380 = vtanh.f32 %v2323_v36  ;;  %v5986_v38 = vld [vmem:[%s8562_s0 + $0x1a0] sm:$0xff]  }
 0x1d6   : > { %v6357_v41 = vpop.eup %6356  ;;  %4821 = vst [vmem:[%s7487_s19 + $0x150] sm:$0xff] %v5584_v28  ;;  %v2326_v45 = vpop.f32.mrb[94].mxu1  ;;  %v1687_v47 = vadd.f32 %v1686_v44, %v7440_v29  ;;  %6382 = vtanh.f32 %v1685_v42  ;;  %1951 = vmatmul.mubr.bf16.gmra.mrb[200].mxu0 %v5982_v39  ;;  %2591 = vmatmul.mubr.bf16.gmra.mrb[200].mxu1 %v5983_v40  ;;  %v5987_v39 = vld [vmem:[%s8562_s0 + $0x3a0] sm:$0xff]  }
 0x1d7   : > { %v6359_v46 = vpop.eup %6358  ;;  %4949 = vst [vmem:[%s7487_s19 + $0x550] sm:$0xff] %v5712_v34  ;;  %v1688_v48 = vpop.f32.mrb[95].mxu0  ;;  %v2327_v52 = vadd.f32 %v2326_v45, %v7440_v29  ;;  %6384 = vtanh.f32 %v2325_v43  ;;  %1960 = vmatprep.mubr.bf16.mxu0 %v7098_v16  ;;  %2600 = vmatprep.mubr.bf16.mxu1 %v7098_v16 }
 0x1d8   : > { %v2328_v49 = vpop.f32.mrb[95].mxu1  ;;  %v6361_v50 = vpop.eup %6360  ;;  %v5585_v51 = vpack.c.bf16 %v6359_v46, %v6355_v33  ;;  %v1689_v55 = vadd.f32 %v1688_v48, %v7442_v30  ;;  %6386 = vtanh.f32 %v1687_v47 }
 0x1d9   : > { %v6363_v53 = vpop.eup %6362  ;;  %v5713_v54 = vpack.c.bf16 %v6361_v50, %v6357_v41  ;;  %v2329_v57 = vadd.f32 %v2328_v49, %v7442_v30  ;;  %6388 = vtanh.f32 %v2327_v52  ;;  %v1692_v61 = vpop.f32.mrb[96].mxu0 }
 0x1da   : > { %v6365_v56 = vpop.eup %6364  ;;  %4822 = vst [vmem:[%s7487_s19 + $0x158] sm:$0xff] %v5585_v51  ;;  %v2332_v62 = vpop.f32.mrb[96].mxu1  ;;  %6390 = vtanh.f32 %v1689_v55  ;;  %v1693_v1 = vadd.f32 %v1692_v61, %v7440_v29 }
 0x1db   : > { %v6367_v58 = vpop.eup %6366  ;;  %4950 = vst [vmem:[%s7487_s19 + $0x558] sm:$0xff] %v5713_v54  ;;  %v2333_v2 = vadd.f32 %v2332_v62, %v7440_v29  ;;  %v1694_v3 = vpop.f32.mrb[97].mxu0  ;;  %6392 = vtanh.f32 %v2329_v57 }
 0x1dc   : > { %v6369_v59 = vpop.eup %6368  ;;  %v5586_v60 = vpack.c.bf16 %v6367_v58, %v6363_v53  ;;  %v2334_v4 = vpop.f32.mrb[97].mxu1  ;;  %v1695_v8 = vadd.f32 %v1694_v3, %v7442_v30  ;;  %6394 = vtanh.f32 %v1693_v1 }
 0x1dd   : > { %v6371_v63 = vpop.eup %6370  ;;  %v5714_v0 = vpack.c.bf16 %v6369_v59, %v6365_v56  ;;  %v2335_v9 = vadd.f32 %v2334_v4, %v7442_v30  ;;  %v1696_v10 = vpop.f32.mrb[98].mxu0  ;;  %6396 = vtanh.f32 %v2333_v2  ;;  %v5988_v4 = vld [vmem:[%s8562_s0 + $0x1a8] sm:$0xff]  }
 0x1de   : > { %v6373_v7 = vpop.eup %6372  ;;  %4823 = vst [vmem:[%s7487_s19 + $0x160] sm:$0xff] %v5586_v60  ;;  %v2336_v11 = vpop.f32.mrb[98].mxu1  ;;  %v1697_v13 = vadd.f32 %v1696_v10, %v7440_v29  ;;  %6398 = vtanh.f32 %v1695_v8  ;;  %1961 = vmatmul.mubr.bf16.gmra.mrb[204].mxu0 %v5984_v5  ;;  %2601 = vmatmul.mubr.bf16.gmra.mrb[204].mxu1 %v5985_v6  ;;  %v5989_v5 = vld [vmem:[%s8562_s0 + $0x3a8] sm:$0xff]  }
 0x1df   : > { %v6375_v12 = vpop.eup %6374  ;;  %4951 = vst [vmem:[%s7487_s19 + $0x560] sm:$0xff] %v5714_v0  ;;  %v1698_v14 = vpop.f32.mrb[99].mxu0  ;;  %v2337_v19 = vadd.f32 %v2336_v11, %v7440_v29  ;;  %6400 = vtanh.f32 %v2335_v9  ;;  %1970 = vmatprep.mubr.bf16.mxu0 %v7098_v16  ;;  %2610 = vmatprep.mubr.bf16.mxu1 %v7098_v16 }
 0x1e0   : > { %v2338_v15 = vpop.f32.mrb[99].mxu1  ;;  %v6377_v17 = vpop.eup %6376  ;;  %v5587_v18 = vpack.c.bf16 %v6375_v12, %v6371_v63  ;;  %v1699_v22 = vadd.f32 %v1698_v14, %v7442_v30  ;;  %6402 = vtanh.f32 %v1697_v13 }
 0x1e1   : > { %v6379_v20 = vpop.eup %6378  ;;  %v5715_v21 = vpack.c.bf16 %v6377_v17, %v6373_v7  ;;  %v2339_v24 = vadd.f32 %v2338_v15, %v7442_v30  ;;  %6404 = vtanh.f32 %v2337_v19  ;;  %v1702_v28 = vpop.f32.mrb[100].mxu0 }
 0x1e2   : > { %v6381_v23 = vpop.eup %6380  ;;  %4824 = vst [vmem:[%s7487_s19 + $0x168] sm:$0xff] %v5587_v18  ;;  %v2342_v31 = vpop.f32.mrb[100].mxu1  ;;  %6406 = vtanh.f32 %v1699_v22  ;;  %v1703_v34 = vadd.f32 %v1702_v28, %v7440_v29 }
 0x1e3   : > { %v6383_v25 = vpop.eup %6382  ;;  %4952 = vst [vmem:[%s7487_s19 + $0x568] sm:$0xff] %v5715_v21  ;;  %v2343_v35 = vadd.f32 %v2342_v31, %v7440_v29  ;;  %v1704_v36 = vpop.f32.mrb[101].mxu0  ;;  %6408 = vtanh.f32 %v2339_v24 }
 0x1e4   : > { %v6385_v26 = vpop.eup %6384  ;;  %v5588_v27 = vpack.c.bf16 %v6383_v25, %v6379_v20  ;;  %v2344_v37 = vpop.f32.mrb[101].mxu1  ;;  %v1705_v41 = vadd.f32 %v1704_v36, %v7442_v30  ;;  %6410 = vtanh.f32 %v1703_v34 }
 0x1e5   : > { %v6387_v32 = vpop.eup %6386  ;;  %v5716_v33 = vpack.c.bf16 %v6385_v26, %v6381_v23  ;;  %v2345_v42 = vadd.f32 %v2344_v37, %v7442_v30  ;;  %v1706_v43 = vpop.f32.mrb[102].mxu0  ;;  %6412 = vtanh.f32 %v2343_v35  ;;  %v5990_v37 = vld [vmem:[%s8562_s0 + $0x1b0] sm:$0xff]  }
 0x1e6   : > { %v6389_v40 = vpop.eup %6388  ;;  %4825 = vst [vmem:[%s7487_s19 + $0x170] sm:$0xff] %v5588_v27  ;;  %v2346_v44 = vpop.f32.mrb[102].mxu1  ;;  %v1707_v46 = vadd.f32 %v1706_v43, %v7440_v29  ;;  %6414 = vtanh.f32 %v1705_v41  ;;  %1971 = vmatmul.mubr.bf16.gmra.mrb[208].mxu0 %v5986_v38  ;;  %2611 = vmatmul.mubr.bf16.gmra.mrb[208].mxu1 %v5987_v39  ;;  %v5991_v38 = vld [vmem:[%s8562_s0 + $0x3b0] sm:$0xff]  }
 0x1e7   : > { %v6391_v45 = vpop.eup %6390  ;;  %4953 = vst [vmem:[%s7487_s19 + $0x570] sm:$0xff] %v5716_v33  ;;  %v1708_v47 = vpop.f32.mrb[103].mxu0  ;;  %v2347_v51 = vadd.f32 %v2346_v44, %v7440_v29  ;;  %6416 = vtanh.f32 %v2345_v42  ;;  %1980 = vmatprep.mubr.bf16.mxu0 %v7098_v16  ;;  %2620 = vmatprep.mubr.bf16.mxu1 %v7098_v16 }
 0x1e8   : > { %v2348_v48 = vpop.f32.mrb[103].mxu1  ;;  %v6393_v49 = vpop.eup %6392  ;;  %v5589_v50 = vpack.c.bf16 %v6391_v45, %v6387_v32  ;;  %v1709_v54 = vadd.f32 %v1708_v47, %v7442_v30  ;;  %6418 = vtanh.f32 %v1707_v46 }
 0x1e9   : > { %v6395_v52 = vpop.eup %6394  ;;  %v5717_v53 = vpack.c.bf16 %v6393_v49, %v6389_v40  ;;  %v2349_v56 = vadd.f32 %v2348_v48, %v7442_v30  ;;  %6420 = vtanh.f32 %v2347_v51  ;;  %v1712_v60 = vpop.f32.mrb[104].mxu0 }
 0x1ea   : > { %v6397_v55 = vpop.eup %6396  ;;  %4826 = vst [vmem:[%s7487_s19 + $0x178] sm:$0xff] %v5589_v50  ;;  %v2352_v61 = vpop.f32.mrb[104].mxu1  ;;  %6422 = vtanh.f32 %v1709_v54  ;;  %v1713_v0 = vadd.f32 %v1712_v60, %v7440_v29 }
 0x1eb   : > { %v6399_v57 = vpop.eup %6398  ;;  %4954 = vst [vmem:[%s7487_s19 + $0x578] sm:$0xff] %v5717_v53  ;;  %v2353_v1 = vadd.f32 %v2352_v61, %v7440_v29  ;;  %v1714_v2 = vpop.f32.mrb[105].mxu0  ;;  %6424 = vtanh.f32 %v2349_v56 }
 0x1ec   : > { %v6401_v58 = vpop.eup %6400  ;;  %v5590_v59 = vpack.c.bf16 %v6399_v57, %v6395_v52  ;;  %v2354_v3 = vpop.f32.mrb[105].mxu1  ;;  %v1715_v7 = vadd.f32 %v1714_v2, %v7442_v30  ;;  %6426 = vtanh.f32 %v1713_v0 }
 0x1ed   : > { %v6403_v62 = vpop.eup %6402  ;;  %v5718_v63 = vpack.c.bf16 %v6401_v58, %v6397_v55  ;;  %v2355_v8 = vadd.f32 %v2354_v3, %v7442_v30  ;;  %v1716_v9 = vpop.f32.mrb[106].mxu0  ;;  %6428 = vtanh.f32 %v2353_v1  ;;  %v5992_v3 = vld [vmem:[%s8562_s0 + $0x1b8] sm:$0xff]  }
 0x1ee   : > { %v6405_v6 = vpop.eup %6404  ;;  %4827 = vst [vmem:[%s7487_s19 + $0x180] sm:$0xff] %v5590_v59  ;;  %v2356_v10 = vpop.f32.mrb[106].mxu1  ;;  %v1717_v12 = vadd.f32 %v1716_v9, %v7440_v29  ;;  %6430 = vtanh.f32 %v1715_v7  ;;  %1981 = vmatmul.mubr.bf16.gmra.mrb[212].mxu0 %v5988_v4  ;;  %2621 = vmatmul.mubr.bf16.gmra.mrb[212].mxu1 %v5989_v5  ;;  %v5993_v4 = vld [vmem:[%s8562_s0 + $0x3b8] sm:$0xff]  }
 0x1ef   : > { %v6407_v11 = vpop.eup %6406  ;;  %4955 = vst [vmem:[%s7487_s19 + $0x580] sm:$0xff] %v5718_v63  ;;  %v1718_v13 = vpop.f32.mrb[107].mxu0  ;;  %v2357_v18 = vadd.f32 %v2356_v10, %v7440_v29  ;;  %6432 = vtanh.f32 %v2355_v8  ;;  %1990 = vmatprep.mubr.bf16.mxu0 %v7098_v16  ;;  %2630 = vmatprep.mubr.bf16.mxu1 %v7098_v16 }
 0x1f0   : > { %v2358_v14 = vpop.f32.mrb[107].mxu1  ;;  %v6409_v15 = vpop.eup %6408  ;;  %v5591_v17 = vpack.c.bf16 %v6407_v11, %v6403_v62  ;;  %v1719_v21 = vadd.f32 %v1718_v13, %v7442_v30  ;;  %6434 = vtanh.f32 %v1717_v12 }
 0x1f1   : > { %v6411_v19 = vpop.eup %6410  ;;  %v5719_v20 = vpack.c.bf16 %v6409_v15, %v6405_v6  ;;  %v2359_v23 = vadd.f32 %v2358_v14, %v7442_v30  ;;  %6436 = vtanh.f32 %v2357_v18  ;;  %v1722_v27 = vpop.f32.mrb[108].mxu0 }
 0x1f2   : > { %v6413_v22 = vpop.eup %6412  ;;  %4828 = vst [vmem:[%s7487_s19 + $0x188] sm:$0xff] %v5591_v17  ;;  %v2362_v28 = vpop.f32.mrb[108].mxu1  ;;  %6438 = vtanh.f32 %v1719_v21  ;;  %v1723_v33 = vadd.f32 %v1722_v27, %v7440_v29 }
 0x1f3   : > { %v6415_v24 = vpop.eup %6414  ;;  %4956 = vst [vmem:[%s7487_s19 + $0x588] sm:$0xff] %v5719_v20  ;;  %v2363_v34 = vadd.f32 %v2362_v28, %v7440_v29  ;;  %v1724_v35 = vpop.f32.mrb[109].mxu0  ;;  %6440 = vtanh.f32 %v2359_v23 }
 0x1f4   : > { %v6417_v25 = vpop.eup %6416  ;;  %v5592_v26 = vpack.c.bf16 %v6415_v24, %v6411_v19  ;;  %v2364_v36 = vpop.f32.mrb[109].mxu1  ;;  %v1725_v40 = vadd.f32 %v1724_v35, %v7442_v30  ;;  %6442 = vtanh.f32 %v1723_v33 }
 0x1f5   : > { %v6419_v31 = vpop.eup %6418  ;;  %v5720_v32 = vpack.c.bf16 %v6417_v25, %v6413_v22  ;;  %v2365_v41 = vadd.f32 %v2364_v36, %v7442_v30  ;;  %v1726_v42 = vpop.f32.mrb[110].mxu0  ;;  %6444 = vtanh.f32 %v2363_v34  ;;  %v5994_v36 = vld [vmem:[%s8562_s0 + $0x1c0] sm:$0xff]  }
 0x1f6   : > { %v6421_v39 = vpop.eup %6420  ;;  %4829 = vst [vmem:[%s7487_s19 + $0x190] sm:$0xff] %v5592_v26  ;;  %v2366_v43 = vpop.f32.mrb[110].mxu1  ;;  %v1727_v45 = vadd.f32 %v1726_v42, %v7440_v29  ;;  %6446 = vtanh.f32 %v1725_v40  ;;  %1991 = vmatmul.mubr.bf16.gmra.mrb[216].mxu0 %v5990_v37  ;;  %2631 = vmatmul.mubr.bf16.gmra.mrb[216].mxu1 %v5991_v38  ;;  %v5995_v37 = vld [vmem:[%s8562_s0 + $0x3c0] sm:$0xff]  }
 0x1f7   : > { %v6423_v44 = vpop.eup %6422  ;;  %4957 = vst [vmem:[%s7487_s19 + $0x590] sm:$0xff] %v5720_v32  ;;  %v1728_v46 = vpop.f32.mrb[111].mxu0  ;;  %v2367_v50 = vadd.f32 %v2366_v43, %v7440_v29  ;;  %6448 = vtanh.f32 %v2365_v41  ;;  %2000 = vmatprep.mubr.bf16.mxu0 %v7098_v16  ;;  %2640 = vmatprep.mubr.bf16.mxu1 %v7098_v16 }
 0x1f8   : > { %v2368_v47 = vpop.f32.mrb[111].mxu1  ;;  %v6425_v48 = vpop.eup %6424  ;;  %v5593_v49 = vpack.c.bf16 %v6423_v44, %v6419_v31  ;;  %v1729_v53 = vadd.f32 %v1728_v46, %v7442_v30  ;;  %6450 = vtanh.f32 %v1727_v45 }
 0x1f9   : > { %v6427_v51 = vpop.eup %6426  ;;  %v5721_v52 = vpack.c.bf16 %v6425_v48, %v6421_v39  ;;  %v2369_v55 = vadd.f32 %v2368_v47, %v7442_v30  ;;  %6452 = vtanh.f32 %v2367_v50  ;;  %v1732_v59 = vpop.f32.mrb[112].mxu0 }
 0x1fa   : > { %v6429_v54 = vpop.eup %6428  ;;  %4830 = vst [vmem:[%s7487_s19 + $0x198] sm:$0xff] %v5593_v49  ;;  %v2372_v60 = vpop.f32.mrb[112].mxu1  ;;  %6454 = vtanh.f32 %v1729_v53  ;;  %v1733_v63 = vadd.f32 %v1732_v59, %v7440_v29 }
 0x1fb   : > { %v6431_v56 = vpop.eup %6430  ;;  %4958 = vst [vmem:[%s7487_s19 + $0x598] sm:$0xff] %v5721_v52  ;;  %v2373_v0 = vadd.f32 %v2372_v60, %v7440_v29  ;;  %v1734_v1 = vpop.f32.mrb[113].mxu0  ;;  %6456 = vtanh.f32 %v2369_v55 }
 0x1fc   : > { %v6433_v57 = vpop.eup %6432  ;;  %v5594_v58 = vpack.c.bf16 %v6431_v56, %v6427_v51  ;;  %v2374_v2 = vpop.f32.mrb[113].mxu1  ;;  %v1735_v6 = vadd.f32 %v1734_v1, %v7442_v30  ;;  %6458 = vtanh.f32 %v1733_v63 }
 0x1fd   : > { %v6435_v61 = vpop.eup %6434  ;;  %v5722_v62 = vpack.c.bf16 %v6433_v57, %v6429_v54  ;;  %v2375_v7 = vadd.f32 %v2374_v2, %v7442_v30  ;;  %v1736_v8 = vpop.f32.mrb[114].mxu0  ;;  %6460 = vtanh.f32 %v2373_v0  ;;  %v5996_v2 = vld [vmem:[%s8562_s0 + $0x1c8] sm:$0xff]  }
 0x1fe   : > { %v6437_v5 = vpop.eup %6436  ;;  %4831 = vst [vmem:[%s7487_s19 + $0x1a0] sm:$0xff] %v5594_v58  ;;  %v2376_v9 = vpop.f32.mrb[114].mxu1  ;;  %v1737_v11 = vadd.f32 %v1736_v8, %v7440_v29  ;;  %6462 = vtanh.f32 %v1735_v6  ;;  %2001 = vmatmul.mubr.bf16.gmra.mrb[220].mxu0 %v5992_v3  ;;  %2641 = vmatmul.mubr.bf16.gmra.mrb[220].mxu1 %v5993_v4  ;;  %v5997_v3 = vld [vmem:[%s8562_s0 + $0x3c8] sm:$0xff]  }
 0x1ff   : > { %v6439_v10 = vpop.eup %6438  ;;  %4959 = vst [vmem:[%s7487_s19 + $0x5a0] sm:$0xff] %v5722_v62  ;;  %v1738_v12 = vpop.f32.mrb[115].mxu0  ;;  %v2377_v17 = vadd.f32 %v2376_v9, %v7440_v29  ;;  %6464 = vtanh.f32 %v2375_v7  ;;  %2010 = vmatprep.mubr.bf16.mxu0 %v7098_v16  ;;  %2650 = vmatprep.mubr.bf16.mxu1 %v7098_v16 }
 0x200   : > { %v2378_v13 = vpop.f32.mrb[115].mxu1  ;;  %v6441_v14 = vpop.eup %6440  ;;  %v5595_v15 = vpack.c.bf16 %v6439_v10, %v6435_v61  ;;  %v1739_v20 = vadd.f32 %v1738_v12, %v7442_v30  ;;  %6466 = vtanh.f32 %v1737_v11 }
 0x201   : > { %v6443_v18 = vpop.eup %6442  ;;  %v5723_v19 = vpack.c.bf16 %v6441_v14, %v6437_v5  ;;  %v2379_v22 = vadd.f32 %v2378_v13, %v7442_v30  ;;  %6468 = vtanh.f32 %v2377_v17  ;;  %v1742_v26 = vpop.f32.mrb[116].mxu0 }
 0x202   : > { %v6445_v21 = vpop.eup %6444  ;;  %4832 = vst [vmem:[%s7487_s19 + $0x1a8] sm:$0xff] %v5595_v15  ;;  %v2382_v27 = vpop.f32.mrb[116].mxu1  ;;  %6470 = vtanh.f32 %v1739_v20  ;;  %v1743_v32 = vadd.f32 %v1742_v26, %v7440_v29 }
 0x203   : > { %v6447_v23 = vpop.eup %6446  ;;  %4960 = vst [vmem:[%s7487_s19 + $0x5a8] sm:$0xff] %v5723_v19  ;;  %v2383_v33 = vadd.f32 %v2382_v27, %v7440_v29  ;;  %v1744_v34 = vpop.f32.mrb[117].mxu0  ;;  %6472 = vtanh.f32 %v2379_v22 }
 0x204   : > { %v6449_v24 = vpop.eup %6448  ;;  %v5596_v25 = vpack.c.bf16 %v6447_v23, %v6443_v18  ;;  %v2384_v35 = vpop.f32.mrb[117].mxu1  ;;  %v1745_v39 = vadd.f32 %v1744_v34, %v7442_v30  ;;  %6474 = vtanh.f32 %v1743_v32 }
 0x205   : > { %v6451_v28 = vpop.eup %6450  ;;  %v5724_v31 = vpack.c.bf16 %v6449_v24, %v6445_v21  ;;  %v2385_v40 = vadd.f32 %v2384_v35, %v7442_v30  ;;  %v1746_v41 = vpop.f32.mrb[118].mxu0  ;;  %6476 = vtanh.f32 %v2383_v33  ;;  %v5998_v35 = vld [vmem:[%s8562_s0 + $0x1d0] sm:$0xff]  }
 0x206   : > { %v6453_v38 = vpop.eup %6452  ;;  %4833 = vst [vmem:[%s7487_s19 + $0x1b0] sm:$0xff] %v5596_v25  ;;  %v2386_v42 = vpop.f32.mrb[118].mxu1  ;;  %v1747_v44 = vadd.f32 %v1746_v41, %v7440_v29  ;;  %6478 = vtanh.f32 %v1745_v39  ;;  %2011 = vmatmul.mubr.bf16.gmra.mrb[224].mxu0 %v5994_v36  ;;  %2651 = vmatmul.mubr.bf16.gmra.mrb[224].mxu1 %v5995_v37  ;;  %v5999_v36 = vld [vmem:[%s8562_s0 + $0x3d0] sm:$0xff]  }
 0x207   : > { %v6455_v43 = vpop.eup %6454  ;;  %4961 = vst [vmem:[%s7487_s19 + $0x5b0] sm:$0xff] %v5724_v31  ;;  %v1748_v45 = vpop.f32.mrb[119].mxu0  ;;  %v2387_v49 = vadd.f32 %v2386_v42, %v7440_v29  ;;  %6480 = vtanh.f32 %v2385_v40  ;;  %2020 = vmatprep.mubr.bf16.mxu0 %v7098_v16  ;;  %2660 = vmatprep.mubr.bf16.mxu1 %v7098_v16 }
 0x208   : > { %v2388_v46 = vpop.f32.mrb[119].mxu1  ;;  %v6457_v47 = vpop.eup %6456  ;;  %v5597_v48 = vpack.c.bf16 %v6455_v43, %v6451_v28  ;;  %v1749_v52 = vadd.f32 %v1748_v45, %v7442_v30  ;;  %6482 = vtanh.f32 %v1747_v44 }
 0x209   : > { %v6459_v50 = vpop.eup %6458  ;;  %v5725_v51 = vpack.c.bf16 %v6457_v47, %v6453_v38  ;;  %v2389_v54 = vadd.f32 %v2388_v46, %v7442_v30  ;;  %6484 = vtanh.f32 %v2387_v49  ;;  %v1752_v58 = vpop.f32.mrb[120].mxu0 }
 0x20a   : > { %v6461_v53 = vpop.eup %6460  ;;  %4834 = vst [vmem:[%s7487_s19 + $0x1b8] sm:$0xff] %v5597_v48  ;;  %v2392_v59 = vpop.f32.mrb[120].mxu1  ;;  %6486 = vtanh.f32 %v1749_v52  ;;  %v1753_v62 = vadd.f32 %v1752_v58, %v7440_v29 }
 0x20b   : > { %v6463_v55 = vpop.eup %6462  ;;  %4962 = vst [vmem:[%s7487_s19 + $0x5b8] sm:$0xff] %v5725_v51  ;;  %v2393_v63 = vadd.f32 %v2392_v59, %v7440_v29  ;;  %v1754_v0 = vpop.f32.mrb[121].mxu0  ;;  %6488 = vtanh.f32 %v2389_v54 }
 0x20c   : > { %v6465_v56 = vpop.eup %6464  ;;  %v5598_v57 = vpack.c.bf16 %v6463_v55, %v6459_v50  ;;  %v2394_v1 = vpop.f32.mrb[121].mxu1  ;;  %v1755_v5 = vadd.f32 %v1754_v0, %v7442_v30  ;;  %6490 = vtanh.f32 %v1753_v62 }
 0x20d   : > { %v6467_v60 = vpop.eup %6466  ;;  %v5726_v61 = vpack.c.bf16 %v6465_v56, %v6461_v53  ;;  %v2395_v6 = vadd.f32 %v2394_v1, %v7442_v30  ;;  %v1756_v7 = vpop.f32.mrb[122].mxu0  ;;  %6492 = vtanh.f32 %v2393_v63  ;;  %v6000_v1 = vld [vmem:[%s8562_s0 + $0x1d8] sm:$0xff]  }
 0x20e   : > { %v6469_v4 = vpop.eup %6468  ;;  %4835 = vst [vmem:[%s7487_s19 + $0x1c0] sm:$0xff] %v5598_v57  ;;  %v2396_v8 = vpop.f32.mrb[122].mxu1  ;;  %v1757_v10 = vadd.f32 %v1756_v7, %v7440_v29  ;;  %6494 = vtanh.f32 %v1755_v5  ;;  %2021 = vmatmul.mubr.bf16.gmra.mrb[228].mxu0 %v5996_v2  ;;  %2661 = vmatmul.mubr.bf16.gmra.mrb[228].mxu1 %v5997_v3  ;;  %v6001_v2 = vld [vmem:[%s8562_s0 + $0x3d8] sm:$0xff]  }
 0x20f   : > { %v6471_v9 = vpop.eup %6470  ;;  %4963 = vst [vmem:[%s7487_s19 + $0x5c0] sm:$0xff] %v5726_v61  ;;  %v1758_v11 = vpop.f32.mrb[123].mxu0  ;;  %v2397_v15 = vadd.f32 %v2396_v8, %v7440_v29  ;;  %6496 = vtanh.f32 %v2395_v6  ;;  %2030 = vmatprep.mubr.bf16.mxu0 %v7098_v16  ;;  %2670 = vmatprep.mubr.bf16.mxu1 %v7098_v16 }
 0x210   : > { %v2398_v12 = vpop.f32.mrb[123].mxu1  ;;  %v6473_v13 = vpop.eup %6472  ;;  %v5599_v14 = vpack.c.bf16 %v6471_v9, %v6467_v60  ;;  %v1759_v19 = vadd.f32 %v1758_v11, %v7442_v30  ;;  %6498 = vtanh.f32 %v1757_v10 }
 0x211   : > { %v6475_v17 = vpop.eup %6474  ;;  %v5727_v18 = vpack.c.bf16 %v6473_v13, %v6469_v4  ;;  %v2399_v21 = vadd.f32 %v2398_v12, %v7442_v30  ;;  %6500 = vtanh.f32 %v2397_v15  ;;  %v1762_v25 = vpop.f32.mrb[124].mxu0 }
 0x212   : > { %v6477_v20 = vpop.eup %6476  ;;  %4836 = vst [vmem:[%s7487_s19 + $0x1c8] sm:$0xff] %v5599_v14  ;;  %v2402_v26 = vpop.f32.mrb[124].mxu1  ;;  %6502 = vtanh.f32 %v1759_v19  ;;  %v1763_v31 = vadd.f32 %v1762_v25, %v7440_v29 }
 0x213   : > { %v6479_v22 = vpop.eup %6478  ;;  %4964 = vst [vmem:[%s7487_s19 + $0x5c8] sm:$0xff] %v5727_v18  ;;  %v2403_v32 = vadd.f32 %v2402_v26, %v7440_v29  ;;  %v1764_v33 = vpop.f32.mrb[125].mxu0  ;;  %6504 = vtanh.f32 %v2399_v21 }
 0x214   : > { %v6481_v23 = vpop.eup %6480  ;;  %v5600_v24 = vpack.c.bf16 %v6479_v22, %v6475_v17  ;;  %v2404_v34 = vpop.f32.mrb[125].mxu1  ;;  %v1765_v38 = vadd.f32 %v1764_v33, %v7442_v30  ;;  %6506 = vtanh.f32 %v1763_v31 }
 0x215   : > { %v6483_v27 = vpop.eup %6482  ;;  %v5728_v28 = vpack.c.bf16 %v6481_v23, %v6477_v20  ;;  %v2405_v39 = vadd.f32 %v2404_v34, %v7442_v30  ;;  %v1766_v40 = vpop.f32.mrb[126].mxu0  ;;  %6508 = vtanh.f32 %v2403_v32  ;;  %v6002_v34 = vld [vmem:[%s8562_s0 + $0x1e0] sm:$0xff]  }
 0x216   : > { %v6485_v37 = vpop.eup %6484  ;;  %4837 = vst [vmem:[%s7487_s19 + $0x1d0] sm:$0xff] %v5600_v24  ;;  %v2406_v41 = vpop.f32.mrb[126].mxu1  ;;  %v1767_v43 = vadd.f32 %v1766_v40, %v7440_v29  ;;  %6510 = vtanh.f32 %v1765_v38  ;;  %2031 = vmatmul.mubr.bf16.gmra.mrb[232].mxu0 %v5998_v35  ;;  %2671 = vmatmul.mubr.bf16.gmra.mrb[232].mxu1 %v5999_v36  ;;  %v6003_v35 = vld [vmem:[%s8562_s0 + $0x3e0] sm:$0xff]  }
 0x217   : > { %v6487_v42 = vpop.eup %6486  ;;  %4965 = vst [vmem:[%s7487_s19 + $0x5d0] sm:$0xff] %v5728_v28  ;;  %v1768_v44 = vpop.f32.mrb[127].mxu0  ;;  %v2407_v48 = vadd.f32 %v2406_v41, %v7440_v29  ;;  %6512 = vtanh.f32 %v2405_v39  ;;  %2040 = vmatprep.mubr.bf16.mxu0 %v7098_v16  ;;  %2680 = vmatprep.mubr.bf16.mxu1 %v7098_v16 }
 0x218   : > { %v2408_v45 = vpop.f32.mrb[127].mxu1  ;;  %v6489_v46 = vpop.eup %6488  ;;  %v5601_v47 = vpack.c.bf16 %v6487_v42, %v6483_v27  ;;  %v1769_v51 = vadd.f32 %v1768_v44, %v7442_v30  ;;  %6514 = vtanh.f32 %v1767_v43 }
 0x219   : > { %v6491_v49 = vpop.eup %6490  ;;  %v5729_v50 = vpack.c.bf16 %v6489_v46, %v6485_v37  ;;  %v2409_v53 = vadd.f32 %v2408_v45, %v7442_v30  ;;  %6516 = vtanh.f32 %v2407_v48  ;;  %v1772_v57 = vpop.f32.mrb[128].mxu0 }
 0x21a   : > { %v6493_v52 = vpop.eup %6492  ;;  %4838 = vst [vmem:[%s7487_s19 + $0x1d8] sm:$0xff] %v5601_v47  ;;  %v2412_v58 = vpop.f32.mrb[128].mxu1  ;;  %6518 = vtanh.f32 %v1769_v51  ;;  %v1773_v61 = vadd.f32 %v1772_v57, %v7440_v29 }
 0x21b   : > { %v6495_v54 = vpop.eup %6494  ;;  %4966 = vst [vmem:[%s7487_s19 + $0x5d8] sm:$0xff] %v5729_v50  ;;  %v2413_v62 = vadd.f32 %v2412_v58, %v7440_v29  ;;  %v1774_v63 = vpop.f32.mrb[129].mxu0  ;;  %6520 = vtanh.f32 %v2409_v53 }
 0x21c   : > { %v6497_v55 = vpop.eup %6496  ;;  %v5602_v56 = vpack.c.bf16 %v6495_v54, %v6491_v49  ;;  %v2414_v0 = vpop.f32.mrb[129].mxu1  ;;  %v1775_v4 = vadd.f32 %v1774_v63, %v7442_v30  ;;  %6522 = vtanh.f32 %v1773_v61 }
 0x21d   : > { %v6499_v59 = vpop.eup %6498  ;;  %v5730_v60 = vpack.c.bf16 %v6497_v55, %v6493_v52  ;;  %v2415_v5 = vadd.f32 %v2414_v0, %v7442_v30  ;;  %v1776_v6 = vpop.f32.mrb[130].mxu0  ;;  %6524 = vtanh.f32 %v2413_v62  ;;  %v6004_v0 = vld [vmem:[%s8562_s0 + $0x1e8] sm:$0xff]  }
 0x21e   : > { %v6501_v3 = vpop.eup %6500  ;;  %4839 = vst [vmem:[%s7487_s19 + $0x1e0] sm:$0xff] %v5602_v56  ;;  %v2416_v7 = vpop.f32.mrb[130].mxu1  ;;  %v1777_v9 = vadd.f32 %v1776_v6, %v7440_v29  ;;  %6526 = vtanh.f32 %v1775_v4  ;;  %2041 = vmatmul.mubr.bf16.gmra.mrb[236].mxu0 %v6000_v1  ;;  %2681 = vmatmul.mubr.bf16.gmra.mrb[236].mxu1 %v6001_v2  ;;  %v6005_v1 = vld [vmem:[%s8562_s0 + $0x3e8] sm:$0xff]  }
 0x21f   : > { %v6503_v8 = vpop.eup %6502  ;;  %4967 = vst [vmem:[%s7487_s19 + $0x5e0] sm:$0xff] %v5730_v60  ;;  %v1778_v10 = vpop.f32.mrb[131].mxu0  ;;  %v2417_v14 = vadd.f32 %v2416_v7, %v7440_v29  ;;  %6528 = vtanh.f32 %v2415_v5  ;;  %2050 = vmatprep.mubr.bf16.mxu0 %v7098_v16  ;;  %2690 = vmatprep.mubr.bf16.mxu1 %v7098_v16 }
 0x220   : > { %v2418_v11 = vpop.f32.mrb[131].mxu1  ;;  %v6505_v12 = vpop.eup %6504  ;;  %v5603_v13 = vpack.c.bf16 %v6503_v8, %v6499_v59  ;;  %v1779_v18 = vadd.f32 %v1778_v10, %v7442_v30  ;;  %6530 = vtanh.f32 %v1777_v9 }
 0x221   : > { %v6507_v15 = vpop.eup %6506  ;;  %v5731_v17 = vpack.c.bf16 %v6505_v12, %v6501_v3  ;;  %v2419_v20 = vadd.f32 %v2418_v11, %v7442_v30  ;;  %6532 = vtanh.f32 %v2417_v14  ;;  %v1782_v24 = vpop.f32.mrb[132].mxu0 }
 0x222   : > { %v6509_v19 = vpop.eup %6508  ;;  %4840 = vst [vmem:[%s7487_s19 + $0x1e8] sm:$0xff] %v5603_v13  ;;  %v2422_v25 = vpop.f32.mrb[132].mxu1  ;;  %6534 = vtanh.f32 %v1779_v18  ;;  %v1783_v28 = vadd.f32 %v1782_v24, %v7440_v29 }
 0x223   : > { %v6511_v21 = vpop.eup %6510  ;;  %4968 = vst [vmem:[%s7487_s19 + $0x5e8] sm:$0xff] %v5731_v17  ;;  %v2423_v31 = vadd.f32 %v2422_v25, %v7440_v29  ;;  %v1784_v32 = vpop.f32.mrb[133].mxu0  ;;  %6536 = vtanh.f32 %v2419_v20 }
 0x224   : > { %v6513_v22 = vpop.eup %6512  ;;  %v5604_v23 = vpack.c.bf16 %v6511_v21, %v6507_v15  ;;  %v2424_v33 = vpop.f32.mrb[133].mxu1  ;;  %v1785_v37 = vadd.f32 %v1784_v32, %v7442_v30  ;;  %6538 = vtanh.f32 %v1783_v28 }
 0x225   : > { %v6515_v26 = vpop.eup %6514  ;;  %v5732_v27 = vpack.c.bf16 %v6513_v22, %v6509_v19  ;;  %v2425_v38 = vadd.f32 %v2424_v33, %v7442_v30  ;;  %v1786_v39 = vpop.f32.mrb[134].mxu0  ;;  %6540 = vtanh.f32 %v2423_v31  ;;  %v6006_v33 = vld [vmem:[%s8562_s0 + $0x1f0] sm:$0xff]  }
 0x226   : > { %v6517_v36 = vpop.eup %6516  ;;  %4841 = vst [vmem:[%s7487_s19 + $0x1f0] sm:$0xff] %v5604_v23  ;;  %v2426_v40 = vpop.f32.mrb[134].mxu1  ;;  %v1787_v42 = vadd.f32 %v1786_v39, %v7440_v29  ;;  %6542 = vtanh.f32 %v1785_v37  ;;  %2051 = vmatmul.mubr.bf16.gmra.mrb[240].mxu0 %v6002_v34  ;;  %2691 = vmatmul.mubr.bf16.gmra.mrb[240].mxu1 %v6003_v35  ;;  %v6007_v34 = vld [vmem:[%s8562_s0 + $0x3f0] sm:$0xff]  }
 0x227   : > { %v6519_v41 = vpop.eup %6518  ;;  %4969 = vst [vmem:[%s7487_s19 + $0x5f0] sm:$0xff] %v5732_v27  ;;  %v1788_v43 = vpop.f32.mrb[135].mxu0  ;;  %v2427_v47 = vadd.f32 %v2426_v40, %v7440_v29  ;;  %6544 = vtanh.f32 %v2425_v38  ;;  %2060 = vmatprep.mubr.bf16.mxu0 %v7098_v16  ;;  %2700 = vmatprep.mubr.bf16.mxu1 %v7098_v16 }
 0x228   : > { %v2428_v44 = vpop.f32.mrb[135].mxu1  ;;  %v6521_v45 = vpop.eup %6520  ;;  %v5605_v46 = vpack.c.bf16 %v6519_v41, %v6515_v26  ;;  %v1789_v50 = vadd.f32 %v1788_v43, %v7442_v30  ;;  %6546 = vtanh.f32 %v1787_v42 }
 0x229   : > { %v6523_v48 = vpop.eup %6522  ;;  %v5733_v49 = vpack.c.bf16 %v6521_v45, %v6517_v36  ;;  %v2429_v52 = vadd.f32 %v2428_v44, %v7442_v30  ;;  %6548 = vtanh.f32 %v2427_v47  ;;  %v1792_v56 = vpop.f32.mrb[136].mxu0 }
 0x22a   : > { %v6525_v51 = vpop.eup %6524  ;;  %4842 = vst [vmem:[%s7487_s19 + $0x1f8] sm:$0xff] %v5605_v46  ;;  %v2432_v57 = vpop.f32.mrb[136].mxu1  ;;  %6550 = vtanh.f32 %v1789_v50  ;;  %v1793_v60 = vadd.f32 %v1792_v56, %v7440_v29 }
 0x22b   : > { %v6527_v53 = vpop.eup %6526  ;;  %4970 = vst [vmem:[%s7487_s19 + $0x5f8] sm:$0xff] %v5733_v49  ;;  %v2433_v61 = vadd.f32 %v2432_v57, %v7440_v29  ;;  %v1794_v62 = vpop.f32.mrb[137].mxu0  ;;  %6552 = vtanh.f32 %v2429_v52 }
 0x22c   : > { %v6529_v54 = vpop.eup %6528  ;;  %v5606_v55 = vpack.c.bf16 %v6527_v53, %v6523_v48  ;;  %v2434_v63 = vpop.f32.mrb[137].mxu1  ;;  %v1795_v3 = vadd.f32 %v1794_v62, %v7442_v30  ;;  %6554 = vtanh.f32 %v1793_v60 }
 0x22d   : > { %v6531_v58 = vpop.eup %6530  ;;  %v5734_v59 = vpack.c.bf16 %v6529_v54, %v6525_v51  ;;  %v2435_v4 = vadd.f32 %v2434_v63, %v7442_v30  ;;  %v1796_v5 = vpop.f32.mrb[138].mxu0  ;;  %6556 = vtanh.f32 %v2433_v61  ;;  %v6009_v63 = vld [vmem:[%s8562_s0 + $0x3f8] sm:$0xff]  }
 0x22e   : > { %v6533_v2 = vpop.eup %6532  ;;  %4843 = vst [vmem:[%s7487_s19 + $0x200] sm:$0xff] %v5606_v55  ;;  %v2436_v6 = vpop.f32.mrb[138].mxu1  ;;  %v1797_v8 = vadd.f32 %v1796_v5, %v7440_v29  ;;  %6558 = vtanh.f32 %v1795_v3  ;;  %2061 = vmatmul.mubr.bf16.gmra.mrb[244].mxu0 %v6004_v0  ;;  %2701 = vmatmul.mubr.bf16.gmra.mrb[244].mxu1 %v6005_v1 }
 0x22f   : > { %v6535_v7 = vpop.eup %6534  ;;  %4971 = vst [vmem:[%s7487_s19 + $0x600] sm:$0xff] %v5734_v59  ;;  %v1798_v9 = vpop.f32.mrb[139].mxu0  ;;  %v2437_v13 = vadd.f32 %v2436_v6, %v7440_v29  ;;  %6560 = vtanh.f32 %v2435_v4  ;;  %2070 = vmatprep.mubr.bf16.mxu0 %v7098_v16  ;;  %2710 = vmatprep.mubr.bf16.mxu1 %v7098_v16 }
 0x230   : > { %v2438_v10 = vpop.f32.mrb[139].mxu1  ;;  %v6537_v11 = vpop.eup %6536  ;;  %v5607_v12 = vpack.c.bf16 %v6535_v7, %v6531_v58  ;;  %v1799_v17 = vadd.f32 %v1798_v9, %v7442_v30  ;;  %6562 = vtanh.f32 %v1797_v8 }
 0x231   : > { %v6539_v14 = vpop.eup %6538  ;;  %v5735_v15 = vpack.c.bf16 %v6537_v11, %v6533_v2  ;;  %v2439_v19 = vadd.f32 %v2438_v10, %v7442_v30  ;;  %6564 = vtanh.f32 %v2437_v13  ;;  %v1802_v23 = vpop.f32.mrb[140].mxu0 }
 0x232   : > { %v6541_v18 = vpop.eup %6540  ;;  %4844 = vst [vmem:[%s7487_s19 + $0x208] sm:$0xff] %v5607_v12  ;;  %v2442_v24 = vpop.f32.mrb[140].mxu1  ;;  %6566 = vtanh.f32 %v1799_v17  ;;  %v1803_v27 = vadd.f32 %v1802_v23, %v7440_v29 }
 0x233   : > { %v6543_v20 = vpop.eup %6542  ;;  %4972 = vst [vmem:[%s7487_s19 + $0x608] sm:$0xff] %v5735_v15  ;;  %v2443_v28 = vadd.f32 %v2442_v24, %v7440_v29  ;;  %v1804_v31 = vpop.f32.mrb[141].mxu0  ;;  %6568 = vtanh.f32 %v2439_v19 }
 0x234   : > { %v6545_v21 = vpop.eup %6544  ;;  %v5608_v22 = vpack.c.bf16 %v6543_v20, %v6539_v14  ;;  %v2444_v32 = vpop.f32.mrb[141].mxu1  ;;  %v1805_v36 = vadd.f32 %v1804_v31, %v7442_v30  ;;  %6570 = vtanh.f32 %v1803_v27 }
 0x235   : > { %v6547_v25 = vpop.eup %6546  ;;  %v5736_v26 = vpack.c.bf16 %v6545_v21, %v6541_v18  ;;  %v2445_v37 = vadd.f32 %v2444_v32, %v7442_v30  ;;  %v1806_v38 = vpop.f32.mrb[142].mxu0  ;;  %6572 = vtanh.f32 %v2443_v28 }
 0x236   : > { %v6549_v35 = vpop.eup %6548  ;;  %4845 = vst [vmem:[%s7487_s19 + $0x210] sm:$0xff] %v5608_v22  ;;  %v2446_v39 = vpop.f32.mrb[142].mxu1  ;;  %v1807_v41 = vadd.f32 %v1806_v38, %v7440_v29  ;;  %6574 = vtanh.f32 %v1805_v36  ;;  %2071 = vmatmul.mubr.bf16.gmra.mrb[248].mxu0 %v6006_v33  ;;  %2711 = vmatmul.mubr.bf16.gmra.mrb[248].mxu1 %v6007_v34 }
 0x237   : > { %v6551_v40 = vpop.eup %6550  ;;  %4973 = vst [vmem:[%s7487_s19 + $0x610] sm:$0xff] %v5736_v26  ;;  %v1808_v42 = vpop.f32.mrb[143].mxu0  ;;  %v2447_v46 = vadd.f32 %v2446_v39, %v7440_v29  ;;  %6576 = vtanh.f32 %v2445_v37  ;;  %2080 = vmatprep.mubr.bf16.mxu0 %v7098_v16  ;;  %2720 = vmatprep.mubr.bf16.mxu1 %v7098_v16  ;;  %v6008_v16 = vld [vmem:[%s8562_s0 + $0x1f8] sm:$0xff]  }
 0x238   : > { %v2448_v43 = vpop.f32.mrb[143].mxu1  ;;  %v6553_v44 = vpop.eup %6552  ;;  %v5609_v45 = vpack.c.bf16 %v6551_v40, %v6547_v25  ;;  %v1809_v49 = vadd.f32 %v1808_v42, %v7442_v30  ;;  %6578 = vtanh.f32 %v1807_v41 }
 0x239   : > { %v6555_v47 = vpop.eup %6554  ;;  %v5737_v48 = vpack.c.bf16 %v6553_v44, %v6549_v35  ;;  %v2449_v51 = vadd.f32 %v2448_v43, %v7442_v30  ;;  %6580 = vtanh.f32 %v2447_v46  ;;  %v1812_v55 = vpop.f32.mrb[144].mxu0 }
 0x23a   : > { %v6557_v50 = vpop.eup %6556  ;;  %4846 = vst [vmem:[%s7487_s19 + $0x218] sm:$0xff] %v5609_v45  ;;  %v2452_v56 = vpop.f32.mrb[144].mxu1  ;;  %6582 = vtanh.f32 %v1809_v49  ;;  %v1813_v59 = vadd.f32 %v1812_v55, %v7440_v29 }
 0x23b   : > { %v6559_v52 = vpop.eup %6558  ;;  %4974 = vst [vmem:[%s7487_s19 + $0x618] sm:$0xff] %v5737_v48  ;;  %v2453_v60 = vadd.f32 %v2452_v56, %v7440_v29  ;;  %v1814_v61 = vpop.f32.mrb[145].mxu0  ;;  %6584 = vtanh.f32 %v2449_v51 }
 0x23c   : > { %v6561_v53 = vpop.eup %6560  ;;  %v5610_v54 = vpack.c.bf16 %v6559_v52, %v6555_v47  ;;  %v2454_v62 = vpop.f32.mrb[145].mxu1  ;;  %v1815_v1 = vadd.f32 %v1814_v61, %v7442_v30  ;;  %6586 = vtanh.f32 %v1813_v59 }
 0x23d   : > { %v6563_v57 = vpop.eup %6562  ;;  %v5738_v58 = vpack.c.bf16 %v6561_v53, %v6557_v50  ;;  %v2455_v2 = vadd.f32 %v2454_v62, %v7442_v30  ;;  %v1816_v3 = vpop.f32.mrb[146].mxu0  ;;  %6588 = vtanh.f32 %v2453_v60 }
 0x23e   : > { %v6565_v0 = vpop.eup %6564  ;;  %4847 = vst [vmem:[%s7487_s19 + $0x220] sm:$0xff] %v5610_v54  ;;  %v2456_v4 = vpop.f32.mrb[146].mxu1  ;;  %v1817_v6 = vadd.f32 %v1816_v3, %v7440_v29  ;;  %6590 = vtanh.f32 %v1815_v1  ;;  %2081 = vmatmul.mubr.bf16.gmra.mrb[252].mxu0 %v6008_v16  ;;  %2721 = vmatmul.mubr.bf16.gmra.mrb[252].mxu1 %v6009_v63 }
 0x23f   : > { %v6567_v5 = vpop.eup %6566  ;;  %4975 = vst [vmem:[%s7487_s19 + $0x620] sm:$0xff] %v5738_v58  ;;  %v1818_v7 = vpop.f32.mrb[147].mxu0  ;;  %v2457_v11 = vadd.f32 %v2456_v4, %v7440_v29  ;;  %6592 = vtanh.f32 %v2455_v2 }
 0x240   : > { %v2458_v8 = vpop.f32.mrb[147].mxu1  ;;  %v6569_v9 = vpop.eup %6568  ;;  %v5611_v10 = vpack.c.bf16 %v6567_v5, %v6563_v57  ;;  %v1819_v14 = vadd.f32 %v1818_v7, %v7442_v30  ;;  %6594 = vtanh.f32 %v1817_v6 }
 0x241   : > { %v6571_v12 = vpop.eup %6570  ;;  %v5739_v13 = vpack.c.bf16 %v6569_v9, %v6565_v0  ;;  %v2459_v17 = vadd.f32 %v2458_v8, %v7442_v30  ;;  %6596 = vtanh.f32 %v2457_v11  ;;  %v1822_v21 = vpop.f32.mrb[148].mxu0 }
 0x242   : > { %v6573_v15 = vpop.eup %6572  ;;  %4848 = vst [vmem:[%s7487_s19 + $0x228] sm:$0xff] %v5611_v10  ;;  %v2462_v22 = vpop.f32.mrb[148].mxu1  ;;  %6598 = vtanh.f32 %v1819_v14  ;;  %v1823_v25 = vadd.f32 %v1822_v21, %v7440_v29 }
 0x243   : > { %v6575_v18 = vpop.eup %6574  ;;  %4976 = vst [vmem:[%s7487_s19 + $0x628] sm:$0xff] %v5739_v13  ;;  %v2463_v26 = vadd.f32 %v2462_v22, %v7440_v29  ;;  %v1824_v27 = vpop.f32.mrb[149].mxu0  ;;  %6600 = vtanh.f32 %v2459_v17 }
 0x244   : > { %v6577_v19 = vpop.eup %6576  ;;  %v5612_v20 = vpack.c.bf16 %v6575_v18, %v6571_v12  ;;  %v2464_v28 = vpop.f32.mrb[149].mxu1  ;;  %v1825_v32 = vadd.f32 %v1824_v27, %v7442_v30  ;;  %6602 = vtanh.f32 %v1823_v25 }
 0x245   : > { %v6579_v23 = vpop.eup %6578  ;;  %v5740_v24 = vpack.c.bf16 %v6577_v19, %v6573_v15  ;;  %v2465_v33 = vadd.f32 %v2464_v28, %v7442_v30  ;;  %v1826_v34 = vpop.f32.mrb[150].mxu0  ;;  %6604 = vtanh.f32 %v2463_v26 }
 0x246   : > { %v6581_v31 = vpop.eup %6580  ;;  %4849 = vst [vmem:[%s7487_s19 + $0x230] sm:$0xff] %v5612_v20  ;;  %v2466_v35 = vpop.f32.mrb[150].mxu1  ;;  %v1827_v37 = vadd.f32 %v1826_v34, %v7440_v29  ;;  %6606 = vtanh.f32 %v1825_v32 }
 0x247   : > { %v6583_v36 = vpop.eup %6582  ;;  %4977 = vst [vmem:[%s7487_s19 + $0x630] sm:$0xff] %v5740_v24  ;;  %v1828_v38 = vpop.f32.mrb[151].mxu0  ;;  %v2467_v42 = vadd.f32 %v2466_v35, %v7440_v29  ;;  %6608 = vtanh.f32 %v2465_v33 }
 0x248   : > { %v2468_v39 = vpop.f32.mrb[151].mxu1  ;;  %v6585_v40 = vpop.eup %6584  ;;  %v5613_v41 = vpack.c.bf16 %v6583_v36, %v6579_v23  ;;  %v1829_v45 = vadd.f32 %v1828_v38, %v7442_v30  ;;  %6610 = vtanh.f32 %v1827_v37 }
 0x249   : > { %v6587_v43 = vpop.eup %6586  ;;  %v5741_v44 = vpack.c.bf16 %v6585_v40, %v6581_v31  ;;  %v2469_v47 = vadd.f32 %v2468_v39, %v7442_v30  ;;  %6612 = vtanh.f32 %v2467_v42  ;;  %v1832_v51 = vpop.f32.mrb[152].mxu0 }
 0x24a   : > { %v6589_v46 = vpop.eup %6588  ;;  %4850 = vst [vmem:[%s7487_s19 + $0x238] sm:$0xff] %v5613_v41  ;;  %v2472_v52 = vpop.f32.mrb[152].mxu1  ;;  %6614 = vtanh.f32 %v1829_v45  ;;  %v1833_v55 = vadd.f32 %v1832_v51, %v7440_v29 }
 0x24b   : > { %v6591_v48 = vpop.eup %6590  ;;  %4978 = vst [vmem:[%s7487_s19 + $0x638] sm:$0xff] %v5741_v44  ;;  %v2473_v56 = vadd.f32 %v2472_v52, %v7440_v29  ;;  %v1834_v57 = vpop.f32.mrb[153].mxu0  ;;  %6616 = vtanh.f32 %v2469_v47 }
 0x24c   : > { %v6593_v49 = vpop.eup %6592  ;;  %v5614_v50 = vpack.c.bf16 %v6591_v48, %v6587_v43  ;;  %v2474_v58 = vpop.f32.mrb[153].mxu1  ;;  %v1835_v60 = vadd.f32 %v1834_v57, %v7442_v30  ;;  %6618 = vtanh.f32 %v1833_v55 }
 0x24d   : > { %v6595_v53 = vpop.eup %6594  ;;  %v5742_v54 = vpack.c.bf16 %v6593_v49, %v6589_v46  ;;  %v2475_v61 = vadd.f32 %v2474_v58, %v7442_v30  ;;  %v1836_v62 = vpop.f32.mrb[154].mxu0  ;;  %6620 = vtanh.f32 %v2473_v56 }
 0x24e   : > { %v6597_v59 = vpop.eup %6596  ;;  %4851 = vst [vmem:[%s7487_s19 + $0x240] sm:$0xff] %v5614_v50  ;;  %v2476_v16 = vpop.f32.mrb[154].mxu1  ;;  %v1837_v0 = vadd.f32 %v1836_v62, %v7440_v29  ;;  %6622 = vtanh.f32 %v1835_v60 }
 0x24f   : > { %v6599_v63 = vpop.eup %6598  ;;  %4979 = vst [vmem:[%s7487_s19 + $0x640] sm:$0xff] %v5742_v54  ;;  %v1838_v1 = vpop.f32.mrb[155].mxu0  ;;  %v2477_v5 = vadd.f32 %v2476_v16, %v7440_v29  ;;  %6624 = vtanh.f32 %v2475_v61 }
 0x250   : > { %v2478_v2 = vpop.f32.mrb[155].mxu1  ;;  %v6601_v3 = vpop.eup %6600  ;;  %v5615_v4 = vpack.c.bf16 %v6599_v63, %v6595_v53  ;;  %v1839_v8 = vadd.f32 %v1838_v1, %v7442_v30  ;;  %6626 = vtanh.f32 %v1837_v0 }
 0x251   : > { %v6603_v6 = vpop.eup %6602  ;;  %v5743_v7 = vpack.c.bf16 %v6601_v3, %v6597_v59  ;;  %v2479_v10 = vadd.f32 %v2478_v2, %v7442_v30  ;;  %6628 = vtanh.f32 %v2477_v5  ;;  %v1842_v14 = vpop.f32.mrb[156].mxu0 }
 0x252   : > { %v6605_v9 = vpop.eup %6604  ;;  %4852 = vst [vmem:[%s7487_s19 + $0x248] sm:$0xff] %v5615_v4  ;;  %v2482_v15 = vpop.f32.mrb[156].mxu1  ;;  %6630 = vtanh.f32 %v1839_v8  ;;  %v1843_v19 = vadd.f32 %v1842_v14, %v7440_v29 }
 0x253   : > { %v6607_v11 = vpop.eup %6606  ;;  %4980 = vst [vmem:[%s7487_s19 + $0x648] sm:$0xff] %v5743_v7  ;;  %v2483_v20 = vadd.f32 %v2482_v15, %v7440_v29  ;;  %v1844_v21 = vpop.f32.mrb[157].mxu0  ;;  %6632 = vtanh.f32 %v2479_v10 }
 0x254   : > { %v6609_v12 = vpop.eup %6608  ;;  %v5616_v13 = vpack.c.bf16 %v6607_v11, %v6603_v6  ;;  %v2484_v22 = vpop.f32.mrb[157].mxu1  ;;  %v1845_v24 = vadd.f32 %v1844_v21, %v7442_v30  ;;  %6634 = vtanh.f32 %v1843_v19 }
 0x255   : > { %v6611_v17 = vpop.eup %6610  ;;  %v5744_v18 = vpack.c.bf16 %v6609_v12, %v6605_v9  ;;  %v2485_v25 = vadd.f32 %v2484_v22, %v7442_v30  ;;  %v1846_v26 = vpop.f32.mrb[158].mxu0  ;;  %6636 = vtanh.f32 %v2483_v20 }
 0x256   : > { %v6613_v23 = vpop.eup %6612  ;;  %4853 = vst [vmem:[%s7487_s19 + $0x250] sm:$0xff] %v5616_v13  ;;  %v2486_v27 = vpop.f32.mrb[158].mxu1  ;;  %v1847_v31 = vadd.f32 %v1846_v26, %v7440_v29  ;;  %6638 = vtanh.f32 %v1845_v24 }
 0x257   : > { %v6615_v28 = vpop.eup %6614  ;;  %4981 = vst [vmem:[%s7487_s19 + $0x650] sm:$0xff] %v5744_v18  ;;  %v1848_v32 = vpop.f32.mrb[159].mxu0  ;;  %v2487_v36 = vadd.f32 %v2486_v27, %v7440_v29  ;;  %6640 = vtanh.f32 %v2485_v25 }
 0x258   : > { %v2488_v33 = vpop.f32.mrb[159].mxu1  ;;  %v6617_v34 = vpop.eup %6616  ;;  %v5617_v35 = vpack.c.bf16 %v6615_v28, %v6611_v17  ;;  %v1849_v39 = vadd.f32 %v1848_v32, %v7442_v30  ;;  %6642 = vtanh.f32 %v1847_v31 }
 0x259   : > { %v6619_v37 = vpop.eup %6618  ;;  %v5745_v38 = vpack.c.bf16 %v6617_v34, %v6613_v23  ;;  %v2489_v41 = vadd.f32 %v2488_v33, %v7442_v30  ;;  %6644 = vtanh.f32 %v2487_v36  ;;  %v1852_v45 = vpop.f32.mrb[160].mxu0 }
 0x25a   : > { %v6621_v40 = vpop.eup %6620  ;;  %4854 = vst [vmem:[%s7487_s19 + $0x258] sm:$0xff] %v5617_v35  ;;  %v2492_v46 = vpop.f32.mrb[160].mxu1  ;;  %6646 = vtanh.f32 %v1849_v39  ;;  %v1853_v49 = vadd.f32 %v1852_v45, %v7440_v29 }
 0x25b   : > { %v6623_v42 = vpop.eup %6622  ;;  %4982 = vst [vmem:[%s7487_s19 + $0x658] sm:$0xff] %v5745_v38  ;;  %v2493_v50 = vadd.f32 %v2492_v46, %v7440_v29  ;;  %v1854_v51 = vpop.f32.mrb[161].mxu0  ;;  %6648 = vtanh.f32 %v2489_v41 }
 0x25c   : > { %v6625_v43 = vpop.eup %6624  ;;  %v5618_v44 = vpack.c.bf16 %v6623_v42, %v6619_v37  ;;  %v2494_v52 = vpop.f32.mrb[161].mxu1  ;;  %v1855_v54 = vadd.f32 %v1854_v51, %v7442_v30  ;;  %6650 = vtanh.f32 %v1853_v49 }
 0x25d   : > { %v6627_v47 = vpop.eup %6626  ;;  %v5746_v48 = vpack.c.bf16 %v6625_v43, %v6621_v40  ;;  %v2495_v55 = vadd.f32 %v2494_v52, %v7442_v30  ;;  %v1856_v56 = vpop.f32.mrb[162].mxu0  ;;  %6652 = vtanh.f32 %v2493_v50 }
 0x25e   : > { %v6629_v53 = vpop.eup %6628  ;;  %4855 = vst [vmem:[%s7487_s19 + $0x260] sm:$0xff] %v5618_v44  ;;  %v2496_v57 = vpop.f32.mrb[162].mxu1  ;;  %v1857_v59 = vadd.f32 %v1856_v56, %v7440_v29  ;;  %6654 = vtanh.f32 %v1855_v54 }
 0x25f   : > { %v6631_v58 = vpop.eup %6630  ;;  %4983 = vst [vmem:[%s7487_s19 + $0x660] sm:$0xff] %v5746_v48  ;;  %v1858_v60 = vpop.f32.mrb[163].mxu0  ;;  %v2497_v63 = vadd.f32 %v2496_v57, %v7440_v29  ;;  %6656 = vtanh.f32 %v2495_v55 }
 0x260   : > { %v2498_v61 = vpop.f32.mrb[163].mxu1  ;;  %v6633_v62 = vpop.eup %6632  ;;  %v5619_v16 = vpack.c.bf16 %v6631_v58, %v6627_v47  ;;  %v1859_v2 = vadd.f32 %v1858_v60, %v7442_v30  ;;  %6658 = vtanh.f32 %v1857_v59 }
 0x261   : > { %v6635_v0 = vpop.eup %6634  ;;  %v5747_v1 = vpack.c.bf16 %v6633_v62, %v6629_v53  ;;  %v2499_v4 = vadd.f32 %v2498_v61, %v7442_v30  ;;  %6660 = vtanh.f32 %v2497_v63  ;;  %v1862_v8 = vpop.f32.mrb[164].mxu0 }
 0x262   : > { %v6637_v3 = vpop.eup %6636  ;;  %4856 = vst [vmem:[%s7487_s19 + $0x268] sm:$0xff] %v5619_v16  ;;  %v2502_v9 = vpop.f32.mrb[164].mxu1  ;;  %6662 = vtanh.f32 %v1859_v2  ;;  %v1863_v12 = vadd.f32 %v1862_v8, %v7440_v29 }
 0x263   : > { %v6639_v5 = vpop.eup %6638  ;;  %4984 = vst [vmem:[%s7487_s19 + $0x668] sm:$0xff] %v5747_v1  ;;  %v2503_v13 = vadd.f32 %v2502_v9, %v7440_v29  ;;  %v1864_v14 = vpop.f32.mrb[165].mxu0  ;;  %6664 = vtanh.f32 %v2499_v4 }
 0x264   : > { %v6641_v6 = vpop.eup %6640  ;;  %v5620_v7 = vpack.c.bf16 %v6639_v5, %v6635_v0  ;;  %v2504_v15 = vpop.f32.mrb[165].mxu1  ;;  %v1865_v18 = vadd.f32 %v1864_v14, %v7442_v30  ;;  %6666 = vtanh.f32 %v1863_v12 }
 0x265   : > { %v6643_v10 = vpop.eup %6642  ;;  %v5748_v11 = vpack.c.bf16 %v6641_v6, %v6637_v3  ;;  %v2505_v19 = vadd.f32 %v2504_v15, %v7442_v30  ;;  %v1866_v20 = vpop.f32.mrb[166].mxu0  ;;  %6668 = vtanh.f32 %v2503_v13 }
 0x266   : > { %v6645_v17 = vpop.eup %6644  ;;  %4857 = vst [vmem:[%s7487_s19 + $0x270] sm:$0xff] %v5620_v7  ;;  %v2506_v21 = vpop.f32.mrb[166].mxu1  ;;  %v1867_v23 = vadd.f32 %v1866_v20, %v7440_v29  ;;  %6670 = vtanh.f32 %v1865_v18 }
 0x267   : > { %v6647_v22 = vpop.eup %6646  ;;  %4985 = vst [vmem:[%s7487_s19 + $0x670] sm:$0xff] %v5748_v11  ;;  %v1868_v24 = vpop.f32.mrb[167].mxu0  ;;  %v2507_v28 = vadd.f32 %v2506_v21, %v7440_v29  ;;  %6672 = vtanh.f32 %v2505_v19 }
 0x268   : > { %v2508_v25 = vpop.f32.mrb[167].mxu1  ;;  %v6649_v26 = vpop.eup %6648  ;;  %v5621_v27 = vpack.c.bf16 %v6647_v22, %v6643_v10  ;;  %v1869_v33 = vadd.f32 %v1868_v24, %v7442_v30  ;;  %6674 = vtanh.f32 %v1867_v23 }
 0x269   : > { %v6651_v31 = vpop.eup %6650  ;;  %v5749_v32 = vpack.c.bf16 %v6649_v26, %v6645_v17  ;;  %v2509_v35 = vadd.f32 %v2508_v25, %v7442_v30  ;;  %6676 = vtanh.f32 %v2507_v28  ;;  %v1872_v39 = vpop.f32.mrb[168].mxu0 }
 0x26a   : > { %v6653_v34 = vpop.eup %6652  ;;  %4858 = vst [vmem:[%s7487_s19 + $0x278] sm:$0xff] %v5621_v27  ;;  %v2512_v40 = vpop.f32.mrb[168].mxu1  ;;  %6678 = vtanh.f32 %v1869_v33  ;;  %v1873_v43 = vadd.f32 %v1872_v39, %v7440_v29 }
 0x26b   : > { %v6655_v36 = vpop.eup %6654  ;;  %4986 = vst [vmem:[%s7487_s19 + $0x678] sm:$0xff] %v5749_v32  ;;  %v2513_v44 = vadd.f32 %v2512_v40, %v7440_v29  ;;  %v1874_v45 = vpop.f32.mrb[169].mxu0  ;;  %6680 = vtanh.f32 %v2509_v35 }
 0x26c   : > { %v6657_v37 = vpop.eup %6656  ;;  %v5622_v38 = vpack.c.bf16 %v6655_v36, %v6651_v31  ;;  %v2514_v46 = vpop.f32.mrb[169].mxu1  ;;  %v1875_v48 = vadd.f32 %v1874_v45, %v7442_v30  ;;  %6682 = vtanh.f32 %v1873_v43 }
 0x26d   : > { %v6659_v41 = vpop.eup %6658  ;;  %v5750_v42 = vpack.c.bf16 %v6657_v37, %v6653_v34  ;;  %v2515_v49 = vadd.f32 %v2514_v46, %v7442_v30  ;;  %v1876_v50 = vpop.f32.mrb[170].mxu0  ;;  %6684 = vtanh.f32 %v2513_v44 }
 0x26e   : > { %v6661_v47 = vpop.eup %6660  ;;  %4859 = vst [vmem:[%s7487_s19 + $0x280] sm:$0xff] %v5622_v38  ;;  %v2516_v51 = vpop.f32.mrb[170].mxu1  ;;  %v1877_v53 = vadd.f32 %v1876_v50, %v7440_v29  ;;  %6686 = vtanh.f32 %v1875_v48 }
 0x26f   : > { %v6663_v52 = vpop.eup %6662  ;;  %4987 = vst [vmem:[%s7487_s19 + $0x680] sm:$0xff] %v5750_v42  ;;  %v1878_v54 = vpop.f32.mrb[171].mxu0  ;;  %v2517_v58 = vadd.f32 %v2516_v51, %v7440_v29  ;;  %6688 = vtanh.f32 %v2515_v49 }
 0x270   : > { %v2518_v55 = vpop.f32.mrb[171].mxu1  ;;  %v6665_v56 = vpop.eup %6664  ;;  %v5623_v57 = vpack.c.bf16 %v6663_v52, %v6659_v41  ;;  %v1879_v61 = vadd.f32 %v1878_v54, %v7442_v30  ;;  %6690 = vtanh.f32 %v1877_v53 }
 0x271   : > { %v6667_v59 = vpop.eup %6666  ;;  %v5751_v60 = vpack.c.bf16 %v6665_v56, %v6661_v47  ;;  %v2519_v16 = vadd.f32 %v2518_v55, %v7442_v30  ;;  %6692 = vtanh.f32 %v2517_v58  ;;  %v1882_v2 = vpop.f32.mrb[172].mxu0 }
 0x272   : > { %v6669_v62 = vpop.eup %6668  ;;  %4860 = vst [vmem:[%s7487_s19 + $0x288] sm:$0xff] %v5623_v57  ;;  %v2522_v3 = vpop.f32.mrb[172].mxu1  ;;  %6694 = vtanh.f32 %v1879_v61  ;;  %v1883_v6 = vadd.f32 %v1882_v2, %v7440_v29 }
 0x273   : > { %v6671_v63 = vpop.eup %6670  ;;  %4988 = vst [vmem:[%s7487_s19 + $0x688] sm:$0xff] %v5751_v60  ;;  %v2523_v7 = vadd.f32 %v2522_v3, %v7440_v29  ;;  %v1884_v8 = vpop.f32.mrb[173].mxu0  ;;  %6696 = vtanh.f32 %v2519_v16 }
 0x274   : > { %v6673_v0 = vpop.eup %6672  ;;  %v5624_v1 = vpack.c.bf16 %v6671_v63, %v6667_v59  ;;  %v2524_v9 = vpop.f32.mrb[173].mxu1  ;;  %v1885_v11 = vadd.f32 %v1884_v8, %v7442_v30  ;;  %6698 = vtanh.f32 %v1883_v6 }
 0x275   : > { %v6675_v4 = vpop.eup %6674  ;;  %v5752_v5 = vpack.c.bf16 %v6673_v0, %v6669_v62  ;;  %v2525_v12 = vadd.f32 %v2524_v9, %v7442_v30  ;;  %v1886_v13 = vpop.f32.mrb[174].mxu0  ;;  %6700 = vtanh.f32 %v2523_v7 }
 0x276   : > { %v6677_v10 = vpop.eup %6676  ;;  %4861 = vst [vmem:[%s7487_s19 + $0x290] sm:$0xff] %v5624_v1  ;;  %v2526_v14 = vpop.f32.mrb[174].mxu1  ;;  %v1887_v17 = vadd.f32 %v1886_v13, %v7440_v29  ;;  %6702 = vtanh.f32 %v1885_v11 }
 0x277   : > { %v6679_v15 = vpop.eup %6678  ;;  %4989 = vst [vmem:[%s7487_s19 + $0x690] sm:$0xff] %v5752_v5  ;;  %v1888_v18 = vpop.f32.mrb[175].mxu0  ;;  %v2527_v22 = vadd.f32 %v2526_v14, %v7440_v29  ;;  %6704 = vtanh.f32 %v2525_v12 }
 0x278   : > { %v2528_v19 = vpop.f32.mrb[175].mxu1  ;;  %v6681_v20 = vpop.eup %6680  ;;  %v5625_v21 = vpack.c.bf16 %v6679_v15, %v6675_v4  ;;  %v1889_v25 = vadd.f32 %v1888_v18, %v7442_v30  ;;  %6706 = vtanh.f32 %v1887_v17 }
 0x279   : > { %v6683_v23 = vpop.eup %6682  ;;  %v5753_v24 = vpack.c.bf16 %v6681_v20, %v6677_v10  ;;  %v2529_v27 = vadd.f32 %v2528_v19, %v7442_v30  ;;  %6708 = vtanh.f32 %v2527_v22  ;;  %v1892_v33 = vpop.f32.mrb[176].mxu0 }
 0x27a   : > { %v6685_v26 = vpop.eup %6684  ;;  %4862 = vst [vmem:[%s7487_s19 + $0x298] sm:$0xff] %v5625_v21  ;;  %v2532_v34 = vpop.f32.mrb[176].mxu1  ;;  %6710 = vtanh.f32 %v1889_v25  ;;  %v1893_v37 = vadd.f32 %v1892_v33, %v7440_v29 }
 0x27b   : > { %v6687_v28 = vpop.eup %6686  ;;  %4990 = vst [vmem:[%s7487_s19 + $0x698] sm:$0xff] %v5753_v24  ;;  %v2533_v38 = vadd.f32 %v2532_v34, %v7440_v29  ;;  %v1894_v39 = vpop.f32.mrb[177].mxu0  ;;  %6712 = vtanh.f32 %v2529_v27 }
 0x27c   : > { %v6689_v31 = vpop.eup %6688  ;;  %v5626_v32 = vpack.c.bf16 %v6687_v28, %v6683_v23  ;;  %v2534_v40 = vpop.f32.mrb[177].mxu1  ;;  %v1895_v42 = vadd.f32 %v1894_v39, %v7442_v30  ;;  %6714 = vtanh.f32 %v1893_v37 }
 0x27d   : > { %v6691_v35 = vpop.eup %6690  ;;  %v5754_v36 = vpack.c.bf16 %v6689_v31, %v6685_v26  ;;  %v2535_v43 = vadd.f32 %v2534_v40, %v7442_v30  ;;  %v1896_v44 = vpop.f32.mrb[178].mxu0  ;;  %6716 = vtanh.f32 %v2533_v38 }
 0x27e   : > { %v6693_v41 = vpop.eup %6692  ;;  %4863 = vst [vmem:[%s7487_s19 + $0x2a0] sm:$0xff] %v5626_v32  ;;  %v2536_v45 = vpop.f32.mrb[178].mxu1  ;;  %v1897_v47 = vadd.f32 %v1896_v44, %v7440_v29  ;;  %6718 = vtanh.f32 %v1895_v42 }
 0x27f   : > { %v6695_v46 = vpop.eup %6694  ;;  %4991 = vst [vmem:[%s7487_s19 + $0x6a0] sm:$0xff] %v5754_v36  ;;  %v1898_v48 = vpop.f32.mrb[179].mxu0  ;;  %v2537_v52 = vadd.f32 %v2536_v45, %v7440_v29  ;;  %6720 = vtanh.f32 %v2535_v43 }
 0x280   : > { %v2538_v49 = vpop.f32.mrb[179].mxu1  ;;  %v6697_v50 = vpop.eup %6696  ;;  %v5627_v51 = vpack.c.bf16 %v6695_v46, %v6691_v35  ;;  %v1899_v55 = vadd.f32 %v1898_v48, %v7442_v30  ;;  %6722 = vtanh.f32 %v1897_v47 }
 0x281   : > { %v6699_v53 = vpop.eup %6698  ;;  %v5755_v54 = vpack.c.bf16 %v6697_v50, %v6693_v41  ;;  %v2539_v57 = vadd.f32 %v2538_v49, %v7442_v30  ;;  %6724 = vtanh.f32 %v2537_v52  ;;  %v1902_v61 = vpop.f32.mrb[180].mxu0 }
 0x282   : > { %v6701_v56 = vpop.eup %6700  ;;  %4864 = vst [vmem:[%s7487_s19 + $0x2a8] sm:$0xff] %v5627_v51  ;;  %v2542_v62 = vpop.f32.mrb[180].mxu1  ;;  %6726 = vtanh.f32 %v1899_v55  ;;  %v1903_v0 = vadd.f32 %v1902_v61, %v7440_v29 }
 0x283   : > { %v6703_v58 = vpop.eup %6702  ;;  %4992 = vst [vmem:[%s7487_s19 + $0x6a8] sm:$0xff] %v5755_v54  ;;  %v2543_v1 = vadd.f32 %v2542_v62, %v7440_v29  ;;  %v1904_v2 = vpop.f32.mrb[181].mxu0  ;;  %6728 = vtanh.f32 %v2539_v57 }
 0x284   : > { %v6705_v59 = vpop.eup %6704  ;;  %v5628_v60 = vpack.c.bf16 %v6703_v58, %v6699_v53  ;;  %v2544_v3 = vpop.f32.mrb[181].mxu1  ;;  %v1905_v5 = vadd.f32 %v1904_v2, %v7442_v30  ;;  %6730 = vtanh.f32 %v1903_v0 }
 0x285   : > { %v6707_v16 = vpop.eup %6706  ;;  %v5756_v63 = vpack.c.bf16 %v6705_v59, %v6701_v56  ;;  %v2545_v6 = vadd.f32 %v2544_v3, %v7442_v30  ;;  %v1906_v7 = vpop.f32.mrb[182].mxu0  ;;  %6732 = vtanh.f32 %v2543_v1 }
 0x286   : > { %v6709_v4 = vpop.eup %6708  ;;  %4865 = vst [vmem:[%s7487_s19 + $0x2b0] sm:$0xff] %v5628_v60  ;;  %v2546_v8 = vpop.f32.mrb[182].mxu1  ;;  %v1907_v10 = vadd.f32 %v1906_v7, %v7440_v29  ;;  %6734 = vtanh.f32 %v1905_v5 }
 0x287   : > { %v6711_v9 = vpop.eup %6710  ;;  %4993 = vst [vmem:[%s7487_s19 + $0x6b0] sm:$0xff] %v5756_v63  ;;  %v1908_v11 = vpop.f32.mrb[183].mxu0  ;;  %v2547_v15 = vadd.f32 %v2546_v8, %v7440_v29  ;;  %6736 = vtanh.f32 %v2545_v6 }
 0x288   : > { %v2548_v12 = vpop.f32.mrb[183].mxu1  ;;  %v6713_v13 = vpop.eup %6712  ;;  %v5629_v14 = vpack.c.bf16 %v6711_v9, %v6707_v16  ;;  %v1909_v19 = vadd.f32 %v1908_v11, %v7442_v30  ;;  %6738 = vtanh.f32 %v1907_v10 }
 0x289   : > { %v6715_v17 = vpop.eup %6714  ;;  %v5757_v18 = vpack.c.bf16 %v6713_v13, %v6709_v4  ;;  %v2549_v21 = vadd.f32 %v2548_v12, %v7442_v30  ;;  %6740 = vtanh.f32 %v2547_v15  ;;  %v1912_v25 = vpop.f32.mrb[184].mxu0 }
 0x28a   : > { %v6717_v20 = vpop.eup %6716  ;;  %4866 = vst [vmem:[%s7487_s19 + $0x2b8] sm:$0xff] %v5629_v14  ;;  %v2552_v26 = vpop.f32.mrb[184].mxu1  ;;  %6742 = vtanh.f32 %v1909_v19  ;;  %v1913_v31 = vadd.f32 %v1912_v25, %v7440_v29 }
 0x28b   : > { %v6719_v22 = vpop.eup %6718  ;;  %4994 = vst [vmem:[%s7487_s19 + $0x6b8] sm:$0xff] %v5757_v18  ;;  %v2553_v32 = vadd.f32 %v2552_v26, %v7440_v29  ;;  %v1914_v33 = vpop.f32.mrb[185].mxu0  ;;  %6744 = vtanh.f32 %v2549_v21 }
 0x28c   : > { %v6721_v23 = vpop.eup %6720  ;;  %v5630_v24 = vpack.c.bf16 %v6719_v22, %v6715_v17  ;;  %v2554_v34 = vpop.f32.mrb[185].mxu1  ;;  %v1915_v36 = vadd.f32 %v1914_v33, %v7442_v30  ;;  %6746 = vtanh.f32 %v1913_v31 }
 0x28d   : > { %v6723_v27 = vpop.eup %6722  ;;  %v5758_v28 = vpack.c.bf16 %v6721_v23, %v6717_v20  ;;  %v2555_v37 = vadd.f32 %v2554_v34, %v7442_v30  ;;  %v1916_v38 = vpop.f32.mrb[186].mxu0  ;;  %6748 = vtanh.f32 %v2553_v32 }
 0x28e   : > { %v6725_v35 = vpop.eup %6724  ;;  %4867 = vst [vmem:[%s7487_s19 + $0x2c0] sm:$0xff] %v5630_v24  ;;  %v2556_v39 = vpop.f32.mrb[186].mxu1  ;;  %v1917_v41 = vadd.f32 %v1916_v38, %v7440_v29  ;;  %6750 = vtanh.f32 %v1915_v36 }
 0x28f   : > { %v6727_v40 = vpop.eup %6726  ;;  %4995 = vst [vmem:[%s7487_s19 + $0x6c0] sm:$0xff] %v5758_v28  ;;  %v1918_v42 = vpop.f32.mrb[187].mxu0  ;;  %v2557_v46 = vadd.f32 %v2556_v39, %v7440_v29  ;;  %6752 = vtanh.f32 %v2555_v37 }
 0x290   : > { %v2558_v43 = vpop.f32.mrb[187].mxu1  ;;  %v6729_v44 = vpop.eup %6728  ;;  %v5631_v45 = vpack.c.bf16 %v6727_v40, %v6723_v27  ;;  %v1919_v49 = vadd.f32 %v1918_v42, %v7442_v30  ;;  %6754 = vtanh.f32 %v1917_v41 }
 0x291   : > { %v6731_v47 = vpop.eup %6730  ;;  %v5759_v48 = vpack.c.bf16 %v6729_v44, %v6725_v35  ;;  %v2559_v51 = vadd.f32 %v2558_v43, %v7442_v30  ;;  %6756 = vtanh.f32 %v2557_v46  ;;  %v1922_v55 = vpop.f32.mrb[188].mxu0 }
 0x292   : > { %v6733_v50 = vpop.eup %6732  ;;  %4868 = vst [vmem:[%s7487_s19 + $0x2c8] sm:$0xff] %v5631_v45  ;;  %v2562_v56 = vpop.f32.mrb[188].mxu1  ;;  %6758 = vtanh.f32 %v1919_v49  ;;  %v1923_v59 = vadd.f32 %v1922_v55, %v7440_v29 }
 0x293   : > { %v6735_v52 = vpop.eup %6734  ;;  %4996 = vst [vmem:[%s7487_s19 + $0x6c8] sm:$0xff] %v5759_v48  ;;  %v2563_v60 = vadd.f32 %v2562_v56, %v7440_v29  ;;  %v1924_v61 = vpop.f32.mrb[189].mxu0  ;;  %6760 = vtanh.f32 %v2559_v51 }
 0x294   : > { %v6737_v53 = vpop.eup %6736  ;;  %v5632_v54 = vpack.c.bf16 %v6735_v52, %v6731_v47  ;;  %v2564_v62 = vpop.f32.mrb[189].mxu1  ;;  %v1925_v63 = vadd.f32 %v1924_v61, %v7442_v30  ;;  %6762 = vtanh.f32 %v1923_v59 }
 0x295   : > { %v6739_v57 = vpop.eup %6738  ;;  %v5760_v58 = vpack.c.bf16 %v6737_v53, %v6733_v50  ;;  %v2565_v0 = vadd.f32 %v2564_v62, %v7442_v30  ;;  %v1926_v1 = vpop.f32.mrb[190].mxu0  ;;  %6764 = vtanh.f32 %v2563_v60 }
 0x296   : > { %v6741_v16 = vpop.eup %6740  ;;  %4869 = vst [vmem:[%s7487_s19 + $0x2d0] sm:$0xff] %v5632_v54  ;;  %v2566_v2 = vpop.f32.mrb[190].mxu1  ;;  %v1927_v4 = vadd.f32 %v1926_v1, %v7440_v29  ;;  %6766 = vtanh.f32 %v1925_v63 }
 0x297   : > { %v6743_v3 = vpop.eup %6742  ;;  %4997 = vst [vmem:[%s7487_s19 + $0x6d0] sm:$0xff] %v5760_v58  ;;  %v1928_v5 = vpop.f32.mrb[191].mxu0  ;;  %v2567_v9 = vadd.f32 %v2566_v2, %v7440_v29  ;;  %6768 = vtanh.f32 %v2565_v0 }
 0x298   : > { %v2568_v6 = vpop.f32.mrb[191].mxu1  ;;  %v6745_v7 = vpop.eup %6744  ;;  %v5633_v8 = vpack.c.bf16 %v6743_v3, %v6739_v57  ;;  %v1929_v12 = vadd.f32 %v1928_v5, %v7442_v30  ;;  %6770 = vtanh.f32 %v1927_v4 }
 0x299   : > { %v6747_v10 = vpop.eup %6746  ;;  %v5761_v11 = vpack.c.bf16 %v6745_v7, %v6741_v16  ;;  %v2569_v14 = vadd.f32 %v2568_v6, %v7442_v30  ;;  %6772 = vtanh.f32 %v2567_v9  ;;  %v1932_v19 = vpop.f32.mrb[192].mxu0 }
 0x29a   : > { %v6749_v13 = vpop.eup %6748  ;;  %4870 = vst [vmem:[%s7487_s19 + $0x2d8] sm:$0xff] %v5633_v8  ;;  %v2572_v20 = vpop.f32.mrb[192].mxu1  ;;  %6774 = vtanh.f32 %v1929_v12  ;;  %v1933_v23 = vadd.f32 %v1932_v19, %v7440_v29 }
 0x29b   : > { %v6751_v15 = vpop.eup %6750  ;;  %4998 = vst [vmem:[%s7487_s19 + $0x6d8] sm:$0xff] %v5761_v11  ;;  %v2573_v24 = vadd.f32 %v2572_v20, %v7440_v29  ;;  %v1934_v25 = vpop.f32.mrb[193].mxu0  ;;  %6776 = vtanh.f32 %v2569_v14 }
 0x29c   : > { %v6753_v17 = vpop.eup %6752  ;;  %v5634_v18 = vpack.c.bf16 %v6751_v15, %v6747_v10  ;;  %v2574_v26 = vpop.f32.mrb[193].mxu1  ;;  %v1935_v28 = vadd.f32 %v1934_v25, %v7442_v30  ;;  %6778 = vtanh.f32 %v1933_v23 }
 0x29d   : > { %v6755_v21 = vpop.eup %6754  ;;  %v5762_v22 = vpack.c.bf16 %v6753_v17, %v6749_v13  ;;  %v2575_v31 = vadd.f32 %v2574_v26, %v7442_v30  ;;  %v1936_v32 = vpop.f32.mrb[194].mxu0  ;;  %6780 = vtanh.f32 %v2573_v24 }
 0x29e   : > { %v6757_v27 = vpop.eup %6756  ;;  %4871 = vst [vmem:[%s7487_s19 + $0x2e0] sm:$0xff] %v5634_v18  ;;  %v2576_v33 = vpop.f32.mrb[194].mxu1  ;;  %v1937_v35 = vadd.f32 %v1936_v32, %v7440_v29  ;;  %6782 = vtanh.f32 %v1935_v28 }
 0x29f   : > { %v6759_v34 = vpop.eup %6758  ;;  %4999 = vst [vmem:[%s7487_s19 + $0x6e0] sm:$0xff] %v5762_v22  ;;  %v1938_v36 = vpop.f32.mrb[195].mxu0  ;;  %v2577_v40 = vadd.f32 %v2576_v33, %v7440_v29  ;;  %6784 = vtanh.f32 %v2575_v31 }
 0x2a0   : > { %v2578_v37 = vpop.f32.mrb[195].mxu1  ;;  %v6761_v38 = vpop.eup %6760  ;;  %v5635_v39 = vpack.c.bf16 %v6759_v34, %v6755_v21  ;;  %v1939_v43 = vadd.f32 %v1938_v36, %v7442_v30  ;;  %6786 = vtanh.f32 %v1937_v35 }
 0x2a1   : > { %v6763_v41 = vpop.eup %6762  ;;  %v5763_v42 = vpack.c.bf16 %v6761_v38, %v6757_v27  ;;  %v2579_v45 = vadd.f32 %v2578_v37, %v7442_v30  ;;  %6788 = vtanh.f32 %v2577_v40  ;;  %v1942_v49 = vpop.f32.mrb[196].mxu0 }
 0x2a2   : > { %v6765_v44 = vpop.eup %6764  ;;  %4872 = vst [vmem:[%s7487_s19 + $0x2e8] sm:$0xff] %v5635_v39  ;;  %v2582_v50 = vpop.f32.mrb[196].mxu1  ;;  %6790 = vtanh.f32 %v1939_v43  ;;  %v1943_v53 = vadd.f32 %v1942_v49, %v7440_v29 }
 0x2a3   : > { %v6767_v46 = vpop.eup %6766  ;;  %5000 = vst [vmem:[%s7487_s19 + $0x6e8] sm:$0xff] %v5763_v42  ;;  %v2583_v54 = vadd.f32 %v2582_v50, %v7440_v29  ;;  %v1944_v55 = vpop.f32.mrb[197].mxu0  ;;  %6792 = vtanh.f32 %v2579_v45 }
 0x2a4   : > { %v6769_v47 = vpop.eup %6768  ;;  %v5636_v48 = vpack.c.bf16 %v6767_v46, %v6763_v41  ;;  %v2584_v56 = vpop.f32.mrb[197].mxu1  ;;  %v1945_v58 = vadd.f32 %v1944_v55, %v7442_v30  ;;  %6794 = vtanh.f32 %v1943_v53 }
 0x2a5   : > { %v6771_v51 = vpop.eup %6770  ;;  %v5764_v52 = vpack.c.bf16 %v6769_v47, %v6765_v44  ;;  %v2585_v59 = vadd.f32 %v2584_v56, %v7442_v30  ;;  %v1946_v60 = vpop.f32.mrb[198].mxu0  ;;  %6796 = vtanh.f32 %v2583_v54 }
 0x2a6   : > { %v6773_v57 = vpop.eup %6772  ;;  %4873 = vst [vmem:[%s7487_s19 + $0x2f0] sm:$0xff] %v5636_v48  ;;  %v2586_v61 = vpop.f32.mrb[198].mxu1  ;;  %v1947_v16 = vadd.f32 %v1946_v60, %v7440_v29  ;;  %6798 = vtanh.f32 %v1945_v58 }
 0x2a7   : > { %v6775_v62 = vpop.eup %6774  ;;  %5001 = vst [vmem:[%s7487_s19 + $0x6f0] sm:$0xff] %v5764_v52  ;;  %v1948_v63 = vpop.f32.mrb[199].mxu0  ;;  %v2587_v3 = vadd.f32 %v2586_v61, %v7440_v29  ;;  %6800 = vtanh.f32 %v2585_v59 }
 0x2a8   : > { %v2588_v0 = vpop.f32.mrb[199].mxu1  ;;  %v6777_v1 = vpop.eup %6776  ;;  %v5637_v2 = vpack.c.bf16 %v6775_v62, %v6771_v51  ;;  %v1949_v6 = vadd.f32 %v1948_v63, %v7442_v30  ;;  %6802 = vtanh.f32 %v1947_v16 }
 0x2a9   : > { %v6779_v4 = vpop.eup %6778  ;;  %v5765_v5 = vpack.c.bf16 %v6777_v1, %v6773_v57  ;;  %v2589_v8 = vadd.f32 %v2588_v0, %v7442_v30  ;;  %6804 = vtanh.f32 %v2587_v3  ;;  %v1952_v12 = vpop.f32.mrb[200].mxu0 }
 0x2aa   : > { %v6781_v7 = vpop.eup %6780  ;;  %4874 = vst [vmem:[%s7487_s19 + $0x2f8] sm:$0xff] %v5637_v2  ;;  %v2592_v13 = vpop.f32.mrb[200].mxu1  ;;  %6806 = vtanh.f32 %v1949_v6  ;;  %v1953_v17 = vadd.f32 %v1952_v12, %v7440_v29 }
 0x2ab   : > { %v6783_v9 = vpop.eup %6782  ;;  %5002 = vst [vmem:[%s7487_s19 + $0x6f8] sm:$0xff] %v5765_v5  ;;  %v2593_v18 = vadd.f32 %v2592_v13, %v7440_v29  ;;  %v1954_v19 = vpop.f32.mrb[201].mxu0  ;;  %6808 = vtanh.f32 %v2589_v8 }
 0x2ac   : > { %v6785_v10 = vpop.eup %6784  ;;  %v5638_v11 = vpack.c.bf16 %v6783_v9, %v6779_v4  ;;  %v2594_v20 = vpop.f32.mrb[201].mxu1  ;;  %v1955_v22 = vadd.f32 %v1954_v19, %v7442_v30  ;;  %6810 = vtanh.f32 %v1953_v17 }
 0x2ad   : > { %v6787_v14 = vpop.eup %6786  ;;  %v5766_v15 = vpack.c.bf16 %v6785_v10, %v6781_v7  ;;  %v2595_v23 = vadd.f32 %v2594_v20, %v7442_v30  ;;  %v1956_v24 = vpop.f32.mrb[202].mxu0  ;;  %6812 = vtanh.f32 %v2593_v18 }
 0x2ae   : > { %v6789_v21 = vpop.eup %6788  ;;  %4875 = vst [vmem:[%s7487_s19 + $0x300] sm:$0xff] %v5638_v11  ;;  %v2596_v25 = vpop.f32.mrb[202].mxu1  ;;  %v1957_v27 = vadd.f32 %v1956_v24, %v7440_v29  ;;  %6814 = vtanh.f32 %v1955_v22 }
 0x2af   : > { %v6791_v26 = vpop.eup %6790  ;;  %5003 = vst [vmem:[%s7487_s19 + $0x700] sm:$0xff] %v5766_v15  ;;  %v1958_v28 = vpop.f32.mrb[203].mxu0  ;;  %v2597_v34 = vadd.f32 %v2596_v25, %v7440_v29  ;;  %6816 = vtanh.f32 %v2595_v23 }
 0x2b0   : > { %v2598_v31 = vpop.f32.mrb[203].mxu1  ;;  %v6793_v32 = vpop.eup %6792  ;;  %v5639_v33 = vpack.c.bf16 %v6791_v26, %v6787_v14  ;;  %v1959_v37 = vadd.f32 %v1958_v28, %v7442_v30  ;;  %6818 = vtanh.f32 %v1957_v27 }
 0x2b1   : > { %v6795_v35 = vpop.eup %6794  ;;  %v5767_v36 = vpack.c.bf16 %v6793_v32, %v6789_v21  ;;  %v2599_v39 = vadd.f32 %v2598_v31, %v7442_v30  ;;  %6820 = vtanh.f32 %v2597_v34  ;;  %v1962_v43 = vpop.f32.mrb[204].mxu0 }
 0x2b2   : > { %v6797_v38 = vpop.eup %6796  ;;  %4876 = vst [vmem:[%s7487_s19 + $0x308] sm:$0xff] %v5639_v33  ;;  %v2602_v44 = vpop.f32.mrb[204].mxu1  ;;  %6822 = vtanh.f32 %v1959_v37  ;;  %v1963_v47 = vadd.f32 %v1962_v43, %v7440_v29 }
 0x2b3   : > { %v6799_v40 = vpop.eup %6798  ;;  %5004 = vst [vmem:[%s7487_s19 + $0x708] sm:$0xff] %v5767_v36  ;;  %v2603_v48 = vadd.f32 %v2602_v44, %v7440_v29  ;;  %v1964_v49 = vpop.f32.mrb[205].mxu0  ;;  %6824 = vtanh.f32 %v2599_v39 }
 0x2b4   : > { %v6801_v41 = vpop.eup %6800  ;;  %v5640_v42 = vpack.c.bf16 %v6799_v40, %v6795_v35  ;;  %v2604_v50 = vpop.f32.mrb[205].mxu1  ;;  %v1965_v52 = vadd.f32 %v1964_v49, %v7442_v30  ;;  %6826 = vtanh.f32 %v1963_v47 }
 0x2b5   : > { %v6803_v45 = vpop.eup %6802  ;;  %v5768_v46 = vpack.c.bf16 %v6801_v41, %v6797_v38  ;;  %v2605_v53 = vadd.f32 %v2604_v50, %v7442_v30  ;;  %v1966_v54 = vpop.f32.mrb[206].mxu0  ;;  %6828 = vtanh.f32 %v2603_v48 }
 0x2b6   : > { %v6805_v51 = vpop.eup %6804  ;;  %4877 = vst [vmem:[%s7487_s19 + $0x310] sm:$0xff] %v5640_v42  ;;  %v2606_v55 = vpop.f32.mrb[206].mxu1  ;;  %v1967_v57 = vadd.f32 %v1966_v54, %v7440_v29  ;;  %6830 = vtanh.f32 %v1965_v52 }
 0x2b7   : > { %v6807_v56 = vpop.eup %6806  ;;  %5005 = vst [vmem:[%s7487_s19 + $0x710] sm:$0xff] %v5768_v46  ;;  %v1968_v58 = vpop.f32.mrb[207].mxu0  ;;  %v2607_v62 = vadd.f32 %v2606_v55, %v7440_v29  ;;  %6832 = vtanh.f32 %v2605_v53 }
 0x2b8   : > { %v2608_v59 = vpop.f32.mrb[207].mxu1  ;;  %v6809_v60 = vpop.eup %6808  ;;  %v5641_v61 = vpack.c.bf16 %v6807_v56, %v6803_v45  ;;  %v1969_v0 = vadd.f32 %v1968_v58, %v7442_v30  ;;  %6834 = vtanh.f32 %v1967_v57 }
 0x2b9   : > { %v6811_v16 = vpop.eup %6810  ;;  %v5769_v63 = vpack.c.bf16 %v6809_v60, %v6805_v51  ;;  %v2609_v2 = vadd.f32 %v2608_v59, %v7442_v30  ;;  %6836 = vtanh.f32 %v2607_v62  ;;  %v1972_v6 = vpop.f32.mrb[208].mxu0 }
 0x2ba   : > { %v6813_v1 = vpop.eup %6812  ;;  %4878 = vst [vmem:[%s7487_s19 + $0x318] sm:$0xff] %v5641_v61  ;;  %v2612_v7 = vpop.f32.mrb[208].mxu1  ;;  %6838 = vtanh.f32 %v1969_v0  ;;  %v1973_v10 = vadd.f32 %v1972_v6, %v7440_v29 }
 0x2bb   : > { %v6815_v3 = vpop.eup %6814  ;;  %5006 = vst [vmem:[%s7487_s19 + $0x718] sm:$0xff] %v5769_v63  ;;  %v2613_v11 = vadd.f32 %v2612_v7, %v7440_v29  ;;  %v1974_v12 = vpop.f32.mrb[209].mxu0  ;;  %6840 = vtanh.f32 %v2609_v2 }
 0x2bc   : > { %v6817_v4 = vpop.eup %6816  ;;  %v5642_v5 = vpack.c.bf16 %v6815_v3, %v6811_v16  ;;  %v2614_v13 = vpop.f32.mrb[209].mxu1  ;;  %v1975_v15 = vadd.f32 %v1974_v12, %v7442_v30  ;;  %6842 = vtanh.f32 %v1973_v10 }
 0x2bd   : > { %v6819_v8 = vpop.eup %6818  ;;  %v5770_v9 = vpack.c.bf16 %v6817_v4, %v6813_v1  ;;  %v2615_v17 = vadd.f32 %v2614_v13, %v7442_v30  ;;  %v1976_v18 = vpop.f32.mrb[210].mxu0  ;;  %6844 = vtanh.f32 %v2613_v11 }
 0x2be   : > { %v6821_v14 = vpop.eup %6820  ;;  %4879 = vst [vmem:[%s7487_s19 + $0x320] sm:$0xff] %v5642_v5  ;;  %v2616_v19 = vpop.f32.mrb[210].mxu1  ;;  %v1977_v21 = vadd.f32 %v1976_v18, %v7440_v29  ;;  %6846 = vtanh.f32 %v1975_v15 }
 0x2bf   : > { %v6823_v20 = vpop.eup %6822  ;;  %5007 = vst [vmem:[%s7487_s19 + $0x720] sm:$0xff] %v5770_v9  ;;  %v1978_v22 = vpop.f32.mrb[211].mxu0  ;;  %v2617_v26 = vadd.f32 %v2616_v19, %v7440_v29  ;;  %6848 = vtanh.f32 %v2615_v17 }
 0x2c0   : > { %v2618_v23 = vpop.f32.mrb[211].mxu1  ;;  %v6825_v24 = vpop.eup %6824  ;;  %v5643_v25 = vpack.c.bf16 %v6823_v20, %v6819_v8  ;;  %v1979_v31 = vadd.f32 %v1978_v22, %v7442_v30  ;;  %6850 = vtanh.f32 %v1977_v21 }
 0x2c1   : > { %v6827_v27 = vpop.eup %6826  ;;  %v5771_v28 = vpack.c.bf16 %v6825_v24, %v6821_v14  ;;  %v2619_v33 = vadd.f32 %v2618_v23, %v7442_v30  ;;  %6852 = vtanh.f32 %v2617_v26  ;;  %v1982_v37 = vpop.f32.mrb[212].mxu0 }
 0x2c2   : > { %v6829_v32 = vpop.eup %6828  ;;  %4880 = vst [vmem:[%s7487_s19 + $0x328] sm:$0xff] %v5643_v25  ;;  %v2622_v38 = vpop.f32.mrb[212].mxu1  ;;  %6854 = vtanh.f32 %v1979_v31  ;;  %v1983_v41 = vadd.f32 %v1982_v37, %v7440_v29 }
 0x2c3   : > { %v6831_v34 = vpop.eup %6830  ;;  %5008 = vst [vmem:[%s7487_s19 + $0x728] sm:$0xff] %v5771_v28  ;;  %v2623_v42 = vadd.f32 %v2622_v38, %v7440_v29  ;;  %v1984_v43 = vpop.f32.mrb[213].mxu0  ;;  %6856 = vtanh.f32 %v2619_v33 }
 0x2c4   : > { %v6833_v35 = vpop.eup %6832  ;;  %v5644_v36 = vpack.c.bf16 %v6831_v34, %v6827_v27  ;;  %v2624_v44 = vpop.f32.mrb[213].mxu1  ;;  %v1985_v46 = vadd.f32 %v1984_v43, %v7442_v30  ;;  %6858 = vtanh.f32 %v1983_v41 }
 0x2c5   : > { %v6835_v39 = vpop.eup %6834  ;;  %v5772_v40 = vpack.c.bf16 %v6833_v35, %v6829_v32  ;;  %v2625_v47 = vadd.f32 %v2624_v44, %v7442_v30  ;;  %v1986_v48 = vpop.f32.mrb[214].mxu0  ;;  %6860 = vtanh.f32 %v2623_v42 }
 0x2c6   : > { %v6837_v45 = vpop.eup %6836  ;;  %4881 = vst [vmem:[%s7487_s19 + $0x330] sm:$0xff] %v5644_v36  ;;  %v2626_v49 = vpop.f32.mrb[214].mxu1  ;;  %v1987_v51 = vadd.f32 %v1986_v48, %v7440_v29  ;;  %6862 = vtanh.f32 %v1985_v46 }
 0x2c7   : > { %v6839_v50 = vpop.eup %6838  ;;  %5009 = vst [vmem:[%s7487_s19 + $0x730] sm:$0xff] %v5772_v40  ;;  %v1988_v52 = vpop.f32.mrb[215].mxu0  ;;  %v2627_v56 = vadd.f32 %v2626_v49, %v7440_v29  ;;  %6864 = vtanh.f32 %v2625_v47 }
 0x2c8   : > { %v2628_v53 = vpop.f32.mrb[215].mxu1  ;;  %v6841_v54 = vpop.eup %6840  ;;  %v5645_v55 = vpack.c.bf16 %v6839_v50, %v6835_v39  ;;  %v1989_v59 = vadd.f32 %v1988_v52, %v7442_v30  ;;  %6866 = vtanh.f32 %v1987_v51 }
 0x2c9   : > { %v6843_v57 = vpop.eup %6842  ;;  %v5773_v58 = vpack.c.bf16 %v6841_v54, %v6837_v45  ;;  %v2629_v61 = vadd.f32 %v2628_v53, %v7442_v30  ;;  %6868 = vtanh.f32 %v2627_v56  ;;  %v1992_v0 = vpop.f32.mrb[216].mxu0 }
 0x2ca   : > { %v6845_v60 = vpop.eup %6844  ;;  %4882 = vst [vmem:[%s7487_s19 + $0x338] sm:$0xff] %v5645_v55  ;;  %v2632_v1 = vpop.f32.mrb[216].mxu1  ;;  %6870 = vtanh.f32 %v1989_v59  ;;  %v1993_v4 = vadd.f32 %v1992_v0, %v7440_v29 }
 0x2cb   : > { %v6847_v62 = vpop.eup %6846  ;;  %5010 = vst [vmem:[%s7487_s19 + $0x738] sm:$0xff] %v5773_v58  ;;  %v2633_v5 = vadd.f32 %v2632_v1, %v7440_v29  ;;  %v1994_v6 = vpop.f32.mrb[217].mxu0  ;;  %6872 = vtanh.f32 %v2629_v61 }
 0x2cc   : > { %v6849_v16 = vpop.eup %6848  ;;  %v5646_v63 = vpack.c.bf16 %v6847_v62, %v6843_v57  ;;  %v2634_v7 = vpop.f32.mrb[217].mxu1  ;;  %v1995_v9 = vadd.f32 %v1994_v6, %v7442_v30  ;;  %6874 = vtanh.f32 %v1993_v4 }
 0x2cd   : > { %v6851_v2 = vpop.eup %6850  ;;  %v5774_v3 = vpack.c.bf16 %v6849_v16, %v6845_v60  ;;  %v2635_v10 = vadd.f32 %v2634_v7, %v7442_v30  ;;  %v1996_v11 = vpop.f32.mrb[218].mxu0  ;;  %6876 = vtanh.f32 %v2633_v5 }
 0x2ce   : > { %v6853_v8 = vpop.eup %6852  ;;  %4883 = vst [vmem:[%s7487_s19 + $0x340] sm:$0xff] %v5646_v63  ;;  %v2636_v12 = vpop.f32.mrb[218].mxu1  ;;  %v1997_v14 = vadd.f32 %v1996_v11, %v7440_v29  ;;  %6878 = vtanh.f32 %v1995_v9 }
 0x2cf   : > { %v6855_v13 = vpop.eup %6854  ;;  %5011 = vst [vmem:[%s7487_s19 + $0x740] sm:$0xff] %v5774_v3  ;;  %v1998_v15 = vpop.f32.mrb[219].mxu0  ;;  %v2637_v20 = vadd.f32 %v2636_v12, %v7440_v29  ;;  %6880 = vtanh.f32 %v2635_v10 }
 0x2d0   : > { %v2638_v17 = vpop.f32.mrb[219].mxu1  ;;  %v6857_v18 = vpop.eup %6856  ;;  %v5647_v19 = vpack.c.bf16 %v6855_v13, %v6851_v2  ;;  %v1999_v23 = vadd.f32 %v1998_v15, %v7442_v30  ;;  %6882 = vtanh.f32 %v1997_v14 }
 0x2d1   : > { %v6859_v21 = vpop.eup %6858  ;;  %v5775_v22 = vpack.c.bf16 %v6857_v18, %v6853_v8  ;;  %v2639_v25 = vadd.f32 %v2638_v17, %v7442_v30  ;;  %6884 = vtanh.f32 %v2637_v20  ;;  %v2002_v31 = vpop.f32.mrb[220].mxu0 }
 0x2d2   : > { %v6861_v24 = vpop.eup %6860  ;;  %4884 = vst [vmem:[%s7487_s19 + $0x348] sm:$0xff] %v5647_v19  ;;  %v2642_v32 = vpop.f32.mrb[220].mxu1  ;;  %6886 = vtanh.f32 %v1999_v23  ;;  %v2003_v35 = vadd.f32 %v2002_v31, %v7440_v29 }
 0x2d3   : > { %v6863_v26 = vpop.eup %6862  ;;  %5012 = vst [vmem:[%s7487_s19 + $0x748] sm:$0xff] %v5775_v22  ;;  %v2643_v36 = vadd.f32 %v2642_v32, %v7440_v29  ;;  %v2004_v37 = vpop.f32.mrb[221].mxu0  ;;  %6888 = vtanh.f32 %v2639_v25 }
 0x2d4   : > { %v6865_v27 = vpop.eup %6864  ;;  %v5648_v28 = vpack.c.bf16 %v6863_v26, %v6859_v21  ;;  %v2644_v38 = vpop.f32.mrb[221].mxu1  ;;  %v2005_v40 = vadd.f32 %v2004_v37, %v7442_v30  ;;  %6890 = vtanh.f32 %v2003_v35 }
 0x2d5   : > { %v6867_v33 = vpop.eup %6866  ;;  %v5776_v34 = vpack.c.bf16 %v6865_v27, %v6861_v24  ;;  %v2645_v41 = vadd.f32 %v2644_v38, %v7442_v30  ;;  %v2006_v42 = vpop.f32.mrb[222].mxu0  ;;  %6892 = vtanh.f32 %v2643_v36 }
 0x2d6   : > { %v6869_v39 = vpop.eup %6868  ;;  %4885 = vst [vmem:[%s7487_s19 + $0x350] sm:$0xff] %v5648_v28  ;;  %v2646_v43 = vpop.f32.mrb[222].mxu1  ;;  %v2007_v45 = vadd.f32 %v2006_v42, %v7440_v29  ;;  %6894 = vtanh.f32 %v2005_v40 }
 0x2d7   : > { %v6871_v44 = vpop.eup %6870  ;;  %5013 = vst [vmem:[%s7487_s19 + $0x750] sm:$0xff] %v5776_v34  ;;  %v2008_v46 = vpop.f32.mrb[223].mxu0  ;;  %v2647_v50 = vadd.f32 %v2646_v43, %v7440_v29  ;;  %6896 = vtanh.f32 %v2645_v41 }
 0x2d8   : > { %v2648_v47 = vpop.f32.mrb[223].mxu1  ;;  %v6873_v48 = vpop.eup %6872  ;;  %v5649_v49 = vpack.c.bf16 %v6871_v44, %v6867_v33  ;;  %v2009_v53 = vadd.f32 %v2008_v46, %v7442_v30  ;;  %6898 = vtanh.f32 %v2007_v45 }
 0x2d9   : > { %v6875_v51 = vpop.eup %6874  ;;  %v5777_v52 = vpack.c.bf16 %v6873_v48, %v6869_v39  ;;  %v2649_v55 = vadd.f32 %v2648_v47, %v7442_v30  ;;  %6900 = vtanh.f32 %v2647_v50  ;;  %v2012_v59 = vpop.f32.mrb[224].mxu0 }
 0x2da   : > { %v6877_v54 = vpop.eup %6876  ;;  %4886 = vst [vmem:[%s7487_s19 + $0x358] sm:$0xff] %v5649_v49  ;;  %v2652_v60 = vpop.f32.mrb[224].mxu1  ;;  %6902 = vtanh.f32 %v2009_v53  ;;  %v2013_v16 = vadd.f32 %v2012_v59, %v7440_v29 }
 0x2db   : > { %v6879_v56 = vpop.eup %6878  ;;  %5014 = vst [vmem:[%s7487_s19 + $0x758] sm:$0xff] %v5777_v52  ;;  %v2653_v63 = vadd.f32 %v2652_v60, %v7440_v29  ;;  %v2014_v0 = vpop.f32.mrb[225].mxu0  ;;  %6904 = vtanh.f32 %v2649_v55 }
 0x2dc   : > { %v6881_v57 = vpop.eup %6880  ;;  %v5650_v58 = vpack.c.bf16 %v6879_v56, %v6875_v51  ;;  %v2654_v1 = vpop.f32.mrb[225].mxu1  ;;  %v2015_v3 = vadd.f32 %v2014_v0, %v7442_v30  ;;  %6906 = vtanh.f32 %v2013_v16 }
 0x2dd   : > { %v6883_v61 = vpop.eup %6882  ;;  %v5778_v62 = vpack.c.bf16 %v6881_v57, %v6877_v54  ;;  %v2655_v4 = vadd.f32 %v2654_v1, %v7442_v30  ;;  %v2016_v5 = vpop.f32.mrb[226].mxu0  ;;  %6908 = vtanh.f32 %v2653_v63 }
 0x2de   : > { %v6885_v2 = vpop.eup %6884  ;;  %4887 = vst [vmem:[%s7487_s19 + $0x360] sm:$0xff] %v5650_v58  ;;  %v2656_v6 = vpop.f32.mrb[226].mxu1  ;;  %v2017_v8 = vadd.f32 %v2016_v5, %v7440_v29  ;;  %6910 = vtanh.f32 %v2015_v3 }
 0x2df   : > { %v6887_v7 = vpop.eup %6886  ;;  %5015 = vst [vmem:[%s7487_s19 + $0x760] sm:$0xff] %v5778_v62  ;;  %v2018_v9 = vpop.f32.mrb[227].mxu0  ;;  %v2657_v13 = vadd.f32 %v2656_v6, %v7440_v29  ;;  %6912 = vtanh.f32 %v2655_v4 }
 0x2e0   : > { %v2658_v10 = vpop.f32.mrb[227].mxu1  ;;  %v6889_v11 = vpop.eup %6888  ;;  %v5651_v12 = vpack.c.bf16 %v6887_v7, %v6883_v61  ;;  %v2019_v17 = vadd.f32 %v2018_v9, %v7442_v30  ;;  %6914 = vtanh.f32 %v2017_v8 }
 0x2e1   : > { %v6891_v14 = vpop.eup %6890  ;;  %v5779_v15 = vpack.c.bf16 %v6889_v11, %v6885_v2  ;;  %v2659_v19 = vadd.f32 %v2658_v10, %v7442_v30  ;;  %6916 = vtanh.f32 %v2657_v13  ;;  %v2022_v23 = vpop.f32.mrb[228].mxu0 }
 0x2e2   : > { %v6893_v18 = vpop.eup %6892  ;;  %4888 = vst [vmem:[%s7487_s19 + $0x368] sm:$0xff] %v5651_v12  ;;  %v2662_v24 = vpop.f32.mrb[228].mxu1  ;;  %6918 = vtanh.f32 %v2019_v17  ;;  %v2023_v27 = vadd.f32 %v2022_v23, %v7440_v29 }
 0x2e3   : > { %v6895_v20 = vpop.eup %6894  ;;  %5016 = vst [vmem:[%s7487_s19 + $0x768] sm:$0xff] %v5779_v15  ;;  %v2663_v28 = vadd.f32 %v2662_v24, %v7440_v29  ;;  %v2024_v31 = vpop.f32.mrb[229].mxu0  ;;  %6920 = vtanh.f32 %v2659_v19 }
 0x2e4   : > { %v6897_v21 = vpop.eup %6896  ;;  %v5652_v22 = vpack.c.bf16 %v6895_v20, %v6891_v14  ;;  %v2664_v32 = vpop.f32.mrb[229].mxu1  ;;  %v2025_v34 = vadd.f32 %v2024_v31, %v7442_v30  ;;  %6922 = vtanh.f32 %v2023_v27 }
 0x2e5   : > { %v6899_v25 = vpop.eup %6898  ;;  %v5780_v26 = vpack.c.bf16 %v6897_v21, %v6893_v18  ;;  %v2665_v35 = vadd.f32 %v2664_v32, %v7442_v30  ;;  %v2026_v36 = vpop.f32.mrb[230].mxu0  ;;  %6924 = vtanh.f32 %v2663_v28 }
 0x2e6   : > { %v6901_v33 = vpop.eup %6900  ;;  %4889 = vst [vmem:[%s7487_s19 + $0x370] sm:$0xff] %v5652_v22  ;;  %v2666_v37 = vpop.f32.mrb[230].mxu1  ;;  %v2027_v39 = vadd.f32 %v2026_v36, %v7440_v29  ;;  %6926 = vtanh.f32 %v2025_v34 }
 0x2e7   : > { %v6903_v38 = vpop.eup %6902  ;;  %5017 = vst [vmem:[%s7487_s19 + $0x770] sm:$0xff] %v5780_v26  ;;  %v2028_v40 = vpop.f32.mrb[231].mxu0  ;;  %v2667_v44 = vadd.f32 %v2666_v37, %v7440_v29  ;;  %6928 = vtanh.f32 %v2665_v35 }
 0x2e8   : > { %v2668_v41 = vpop.f32.mrb[231].mxu1  ;;  %v6905_v42 = vpop.eup %6904  ;;  %v5653_v43 = vpack.c.bf16 %v6903_v38, %v6899_v25  ;;  %v2029_v47 = vadd.f32 %v2028_v40, %v7442_v30  ;;  %6930 = vtanh.f32 %v2027_v39 }
 0x2e9   : > { %v6907_v45 = vpop.eup %6906  ;;  %v5781_v46 = vpack.c.bf16 %v6905_v42, %v6901_v33  ;;  %v2669_v49 = vadd.f32 %v2668_v41, %v7442_v30  ;;  %6932 = vtanh.f32 %v2667_v44  ;;  %v2032_v53 = vpop.f32.mrb[232].mxu0 }
 0x2ea   : > { %v6909_v48 = vpop.eup %6908  ;;  %4890 = vst [vmem:[%s7487_s19 + $0x378] sm:$0xff] %v5653_v43  ;;  %v2672_v54 = vpop.f32.mrb[232].mxu1  ;;  %6934 = vtanh.f32 %v2029_v47  ;;  %v2033_v57 = vadd.f32 %v2032_v53, %v7440_v29 }
 0x2eb   : > { %v6911_v50 = vpop.eup %6910  ;;  %5018 = vst [vmem:[%s7487_s19 + $0x778] sm:$0xff] %v5781_v46  ;;  %v2673_v58 = vadd.f32 %v2672_v54, %v7440_v29  ;;  %v2034_v59 = vpop.f32.mrb[233].mxu0  ;;  %6936 = vtanh.f32 %v2669_v49 }
 0x2ec   : > { %v6913_v51 = vpop.eup %6912  ;;  %v5654_v52 = vpack.c.bf16 %v6911_v50, %v6907_v45  ;;  %v2674_v60 = vpop.f32.mrb[233].mxu1  ;;  %v2035_v62 = vadd.f32 %v2034_v59, %v7442_v30  ;;  %6938 = vtanh.f32 %v2033_v57 }
 0x2ed   : > { %v6915_v55 = vpop.eup %6914  ;;  %v5782_v56 = vpack.c.bf16 %v6913_v51, %v6909_v48  ;;  %v2675_v16 = vadd.f32 %v2674_v60, %v7442_v30  ;;  %v2036_v63 = vpop.f32.mrb[234].mxu0  ;;  %6940 = vtanh.f32 %v2673_v58 }
 0x2ee   : > { %v6917_v61 = vpop.eup %6916  ;;  %4891 = vst [vmem:[%s7487_s19 + $0x380] sm:$0xff] %v5654_v52  ;;  %v2676_v0 = vpop.f32.mrb[234].mxu1  ;;  %v2037_v2 = vadd.f32 %v2036_v63, %v7440_v29  ;;  %6942 = vtanh.f32 %v2035_v62 }
 0x2ef   : > { %v6919_v1 = vpop.eup %6918  ;;  %5019 = vst [vmem:[%s7487_s19 + $0x780] sm:$0xff] %v5782_v56  ;;  %v2038_v3 = vpop.f32.mrb[235].mxu0  ;;  %v2677_v7 = vadd.f32 %v2676_v0, %v7440_v29  ;;  %6944 = vtanh.f32 %v2675_v16 }
 0x2f0   : > { %v2678_v4 = vpop.f32.mrb[235].mxu1  ;;  %v6921_v5 = vpop.eup %6920  ;;  %v5655_v6 = vpack.c.bf16 %v6919_v1, %v6915_v55  ;;  %v2039_v10 = vadd.f32 %v2038_v3, %v7442_v30  ;;  %6946 = vtanh.f32 %v2037_v2 }
 0x2f1   : > { %v6923_v8 = vpop.eup %6922  ;;  %v5783_v9 = vpack.c.bf16 %v6921_v5, %v6917_v61  ;;  %v2679_v12 = vadd.f32 %v2678_v4, %v7442_v30  ;;  %6948 = vtanh.f32 %v2677_v7  ;;  %v2042_v17 = vpop.f32.mrb[236].mxu0 }
 0x2f2   : > { %v6925_v11 = vpop.eup %6924  ;;  %4892 = vst [vmem:[%s7487_s19 + $0x388] sm:$0xff] %v5655_v6  ;;  %v2682_v18 = vpop.f32.mrb[236].mxu1  ;;  %6950 = vtanh.f32 %v2039_v10  ;;  %v2043_v21 = vadd.f32 %v2042_v17, %v7440_v29 }
 0x2f3   : > { %v6927_v13 = vpop.eup %6926  ;;  %5020 = vst [vmem:[%s7487_s19 + $0x788] sm:$0xff] %v5783_v9  ;;  %v2683_v22 = vadd.f32 %v2682_v18, %v7440_v29  ;;  %v2044_v23 = vpop.f32.mrb[237].mxu0  ;;  %6952 = vtanh.f32 %v2679_v12 }
 0x2f4   : > { %v6929_v14 = vpop.eup %6928  ;;  %v5656_v15 = vpack.c.bf16 %v6927_v13, %v6923_v8  ;;  %v2684_v24 = vpop.f32.mrb[237].mxu1  ;;  %v2045_v26 = vadd.f32 %v2044_v23, %v7442_v30  ;;  %6954 = vtanh.f32 %v2043_v21 }
 0x2f5   : > { %v6931_v19 = vpop.eup %6930  ;;  %v5784_v20 = vpack.c.bf16 %v6929_v14, %v6925_v11  ;;  %v2685_v27 = vadd.f32 %v2684_v24, %v7442_v30  ;;  %v2046_v28 = vpop.f32.mrb[238].mxu0  ;;  %6956 = vtanh.f32 %v2683_v22 }
 0x2f6   : > { %v6933_v25 = vpop.eup %6932  ;;  %4893 = vst [vmem:[%s7487_s19 + $0x390] sm:$0xff] %v5656_v15  ;;  %v2686_v31 = vpop.f32.mrb[238].mxu1  ;;  %v2047_v33 = vadd.f32 %v2046_v28, %v7440_v29  ;;  %6958 = vtanh.f32 %v2045_v26 }
 0x2f7   : > { %v6935_v32 = vpop.eup %6934  ;;  %5021 = vst [vmem:[%s7487_s19 + $0x790] sm:$0xff] %v5784_v20  ;;  %v2048_v34 = vpop.f32.mrb[239].mxu0  ;;  %v2687_v38 = vadd.f32 %v2686_v31, %v7440_v29  ;;  %6960 = vtanh.f32 %v2685_v27 }
 0x2f8   : > { %v2688_v35 = vpop.f32.mrb[239].mxu1  ;;  %v6937_v36 = vpop.eup %6936  ;;  %v5657_v37 = vpack.c.bf16 %v6935_v32, %v6931_v19  ;;  %v2049_v41 = vadd.f32 %v2048_v34, %v7442_v30  ;;  %6962 = vtanh.f32 %v2047_v33 }
 0x2f9   : > { %v6939_v39 = vpop.eup %6938  ;;  %v5785_v40 = vpack.c.bf16 %v6937_v36, %v6933_v25  ;;  %v2689_v43 = vadd.f32 %v2688_v35, %v7442_v30  ;;  %6964 = vtanh.f32 %v2687_v38  ;;  %v2052_v47 = vpop.f32.mrb[240].mxu0 }
 0x2fa   : > { %v6941_v42 = vpop.eup %6940  ;;  %4894 = vst [vmem:[%s7487_s19 + $0x398] sm:$0xff] %v5657_v37  ;;  %v2692_v48 = vpop.f32.mrb[240].mxu1  ;;  %6966 = vtanh.f32 %v2049_v41  ;;  %v2053_v51 = vadd.f32 %v2052_v47, %v7440_v29 }
 0x2fb   : > { %v6943_v44 = vpop.eup %6942  ;;  %5022 = vst [vmem:[%s7487_s19 + $0x798] sm:$0xff] %v5785_v40  ;;  %v2693_v52 = vadd.f32 %v2692_v48, %v7440_v29  ;;  %v2054_v53 = vpop.f32.mrb[241].mxu0  ;;  %6968 = vtanh.f32 %v2689_v43 }
 0x2fc   : > { %v6945_v45 = vpop.eup %6944  ;;  %v5658_v46 = vpack.c.bf16 %v6943_v44, %v6939_v39  ;;  %v2694_v54 = vpop.f32.mrb[241].mxu1  ;;  %v2055_v56 = vadd.f32 %v2054_v53, %v7442_v30  ;;  %6970 = vtanh.f32 %v2053_v51 }
 0x2fd   : > { %v6947_v49 = vpop.eup %6946  ;;  %v5786_v50 = vpack.c.bf16 %v6945_v45, %v6941_v42  ;;  %v2695_v57 = vadd.f32 %v2694_v54, %v7442_v30  ;;  %v2056_v58 = vpop.f32.mrb[242].mxu0  ;;  %6972 = vtanh.f32 %v2693_v52 }
 0x2fe   : > { %v6949_v55 = vpop.eup %6948  ;;  %4895 = vst [vmem:[%s7487_s19 + $0x3a0] sm:$0xff] %v5658_v46  ;;  %v2696_v59 = vpop.f32.mrb[242].mxu1  ;;  %v2057_v61 = vadd.f32 %v2056_v58, %v7440_v29  ;;  %6974 = vtanh.f32 %v2055_v56 }
 0x2ff   : > { %v6951_v60 = vpop.eup %6950  ;;  %5023 = vst [vmem:[%s7487_s19 + $0x7a0] sm:$0xff] %v5786_v50  ;;  %v2058_v62 = vpop.f32.mrb[243].mxu0  ;;  %v2697_v1 = vadd.f32 %v2696_v59, %v7440_v29  ;;  %6976 = vtanh.f32 %v2695_v57 }
 0x300   : > { %v2698_v16 = vpop.f32.mrb[243].mxu1  ;;  %v6953_v63 = vpop.eup %6952  ;;  %v5659_v0 = vpack.c.bf16 %v6951_v60, %v6947_v49  ;;  %v2059_v4 = vadd.f32 %v2058_v62, %v7442_v30  ;;  %6978 = vtanh.f32 %v2057_v61 }
 0x301   : > { %v6955_v2 = vpop.eup %6954  ;;  %v5787_v3 = vpack.c.bf16 %v6953_v63, %v6949_v55  ;;  %v2699_v6 = vadd.f32 %v2698_v16, %v7442_v30  ;;  %6980 = vtanh.f32 %v2697_v1  ;;  %v2062_v10 = vpop.f32.mrb[244].mxu0 }
 0x302   : > { %v6957_v5 = vpop.eup %6956  ;;  %4896 = vst [vmem:[%s7487_s19 + $0x3a8] sm:$0xff] %v5659_v0  ;;  %v2702_v11 = vpop.f32.mrb[244].mxu1  ;;  %6982 = vtanh.f32 %v2059_v4  ;;  %v2063_v14 = vadd.f32 %v2062_v10, %v7440_v29 }
 0x303   : > { %v6959_v7 = vpop.eup %6958  ;;  %5024 = vst [vmem:[%s7487_s19 + $0x7a8] sm:$0xff] %v5787_v3  ;;  %v2703_v15 = vadd.f32 %v2702_v11, %v7440_v29  ;;  %v2064_v17 = vpop.f32.mrb[245].mxu0  ;;  %6984 = vtanh.f32 %v2699_v6 }
 0x304   : > { %v6961_v8 = vpop.eup %6960  ;;  %v5660_v9 = vpack.c.bf16 %v6959_v7, %v6955_v2  ;;  %v2704_v18 = vpop.f32.mrb[245].mxu1  ;;  %v2065_v20 = vadd.f32 %v2064_v17, %v7442_v30  ;;  %6986 = vtanh.f32 %v2063_v14 }
 0x305   : > { %v6963_v12 = vpop.eup %6962  ;;  %v5788_v13 = vpack.c.bf16 %v6961_v8, %v6957_v5  ;;  %v2705_v21 = vadd.f32 %v2704_v18, %v7442_v30  ;;  %v2066_v22 = vpop.f32.mrb[246].mxu0  ;;  %6988 = vtanh.f32 %v2703_v15 }
 0x306   : > { %v6965_v19 = vpop.eup %6964  ;;  %4897 = vst [vmem:[%s7487_s19 + $0x3b0] sm:$0xff] %v5660_v9  ;;  %v2706_v23 = vpop.f32.mrb[246].mxu1  ;;  %v2067_v25 = vadd.f32 %v2066_v22, %v7440_v29  ;;  %6990 = vtanh.f32 %v2065_v20 }
 0x307   : > { %v6967_v24 = vpop.eup %6966  ;;  %5025 = vst [vmem:[%s7487_s19 + $0x7b0] sm:$0xff] %v5788_v13  ;;  %v2068_v26 = vpop.f32.mrb[247].mxu0  ;;  %v2707_v32 = vadd.f32 %v2706_v23, %v7440_v29  ;;  %6992 = vtanh.f32 %v2705_v21 }
 0x308   : > { %v2708_v27 = vpop.f32.mrb[247].mxu1  ;;  %v6969_v28 = vpop.eup %6968  ;;  %v5661_v31 = vpack.c.bf16 %v6967_v24, %v6963_v12  ;;  %v2069_v35 = vadd.f32 %v2068_v26, %v7442_v30  ;;  %6994 = vtanh.f32 %v2067_v25 }
 0x309   : > { %v6971_v33 = vpop.eup %6970  ;;  %v5789_v34 = vpack.c.bf16 %v6969_v28, %v6965_v19  ;;  %v2709_v37 = vadd.f32 %v2708_v27, %v7442_v30  ;;  %6996 = vtanh.f32 %v2707_v32  ;;  %v2072_v41 = vpop.f32.mrb[248].mxu0 }
 0x30a   : > { %v6973_v36 = vpop.eup %6972  ;;  %4898 = vst [vmem:[%s7487_s19 + $0x3b8] sm:$0xff] %v5661_v31  ;;  %v2712_v42 = vpop.f32.mrb[248].mxu1  ;;  %6998 = vtanh.f32 %v2069_v35  ;;  %v2073_v45 = vadd.f32 %v2072_v41, %v7440_v29 }
 0x30b   : > { %v6975_v38 = vpop.eup %6974  ;;  %5026 = vst [vmem:[%s7487_s19 + $0x7b8] sm:$0xff] %v5789_v34  ;;  %v2713_v46 = vadd.f32 %v2712_v42, %v7440_v29  ;;  %v2074_v47 = vpop.f32.mrb[249].mxu0  ;;  %7000 = vtanh.f32 %v2709_v37 }
 0x30c   : > { %v6977_v39 = vpop.eup %6976  ;;  %v5662_v40 = vpack.c.bf16 %v6975_v38, %v6971_v33  ;;  %v2714_v48 = vpop.f32.mrb[249].mxu1  ;;  %v2075_v50 = vadd.f32 %v2074_v47, %v7442_v30  ;;  %7002 = vtanh.f32 %v2073_v45 }
 0x30d   : > { %v6979_v43 = vpop.eup %6978  ;;  %v5790_v44 = vpack.c.bf16 %v6977_v39, %v6973_v36  ;;  %v2715_v51 = vadd.f32 %v2714_v48, %v7442_v30  ;;  %v2076_v52 = vpop.f32.mrb[250].mxu0  ;;  %7004 = vtanh.f32 %v2713_v46 }
 0x30e   : > { %v6981_v49 = vpop.eup %6980  ;;  %4899 = vst [vmem:[%s7487_s19 + $0x3c0] sm:$0xff] %v5662_v40  ;;  %v2716_v53 = vpop.f32.mrb[250].mxu1  ;;  %v2077_v55 = vadd.f32 %v2076_v52, %v7440_v29  ;;  %7006 = vtanh.f32 %v2075_v50 }
 0x30f   : > { %v6983_v54 = vpop.eup %6982  ;;  %5027 = vst [vmem:[%s7487_s19 + $0x7c0] sm:$0xff] %v5790_v44  ;;  %v2078_v56 = vpop.f32.mrb[251].mxu0  ;;  %v2717_v60 = vadd.f32 %v2716_v53, %v7440_v29  ;;  %7008 = vtanh.f32 %v2715_v51 }
 0x310   : > { %v2718_v57 = vpop.f32.mrb[251].mxu1  ;;  %v6985_v58 = vpop.eup %6984  ;;  %v5663_v59 = vpack.c.bf16 %v6983_v54, %v6979_v43  ;;  %v2079_v16 = vadd.f32 %v2078_v56, %v7442_v30  ;;  %7010 = vtanh.f32 %v2077_v55 }
 0x311   : > { %v6987_v61 = vpop.eup %6986  ;;  %v5791_v62 = vpack.c.bf16 %v6985_v58, %v6981_v49  ;;  %v2719_v0 = vadd.f32 %v2718_v57, %v7442_v30  ;;  %7012 = vtanh.f32 %v2717_v60  ;;  %v2082_v4 = vpop.f32.mrb[252].mxu0 }
 0x312   : > { %v6989_v63 = vpop.eup %6988  ;;  %4900 = vst [vmem:[%s7487_s19 + $0x3c8] sm:$0xff] %v5663_v59  ;;  %v2722_v5 = vpop.f32.mrb[252].mxu1  ;;  %7014 = vtanh.f32 %v2079_v16  ;;  %v2083_v8 = vadd.f32 %v2082_v4, %v7440_v29 }
 0x313   : > { %v6991_v1 = vpop.eup %6990  ;;  %5028 = vst [vmem:[%s7487_s19 + $0x7c8] sm:$0xff] %v5791_v62  ;;  %v2723_v9 = vadd.f32 %v2722_v5, %v7440_v29  ;;  %v2084_v10 = vpop.f32.mrb[253].mxu0  ;;  %7016 = vtanh.f32 %v2719_v0 }
 0x314   : > { %v6993_v2 = vpop.eup %6992  ;;  %v5664_v3 = vpack.c.bf16 %v6991_v1, %v6987_v61  ;;  %v2724_v11 = vpop.f32.mrb[253].mxu1  ;;  %v2085_v13 = vadd.f32 %v2084_v10, %v7442_v30  ;;  %7018 = vtanh.f32 %v2083_v8 }
 0x315   : > { %v6995_v6 = vpop.eup %6994  ;;  %v5792_v7 = vpack.c.bf16 %v6993_v2, %v6989_v63  ;;  %v2725_v14 = vadd.f32 %v2724_v11, %v7442_v30  ;;  %v2086_v15 = vpop.f32.mrb[254].mxu0  ;;  %7020 = vtanh.f32 %v2723_v9 }
 0x316   : > { %v6997_v12 = vpop.eup %6996  ;;  %4901 = vst [vmem:[%s7487_s19 + $0x3d0] sm:$0xff] %v5664_v3  ;;  %v2726_v17 = vpop.f32.mrb[254].mxu1  ;;  %v2087_v19 = vadd.f32 %v2086_v15, %v7440_v29  ;;  %7022 = vtanh.f32 %v2085_v13 }
 0x317   : > { %v6999_v18 = vpop.eup %6998  ;;  %5029 = vst [vmem:[%s7487_s19 + $0x7d0] sm:$0xff] %v5792_v7  ;;  %v2088_v20 = vpop.f32.mrb[255].mxu0  ;;  %v2727_v24 = vadd.f32 %v2726_v17, %v7440_v29  ;;  %7024 = vtanh.f32 %v2725_v14 }
 0x318   : > { %v2728_v21 = vpop.f32.mrb[255].mxu1  ;;  %v7001_v22 = vpop.eup %7000  ;;  %v5665_v23 = vpack.c.bf16 %v6999_v18, %v6995_v6  ;;  %v2089_v27 = vadd.f32 %v2088_v20, %v7442_v30  ;;  %7026 = vtanh.f32 %v2087_v19 }
 0x319   : > { %v7003_v25 = vpop.eup %7002  ;;  %v5793_v26 = vpack.c.bf16 %v7001_v22, %v6997_v12  ;;  %v2729_v31 = vadd.f32 %v2728_v21, %v7442_v30  ;;  %7028 = vtanh.f32 %v2727_v24 }
 0x31a   : > { %v7005_v28 = vpop.eup %7004  ;;  %4902 = vst [vmem:[%s7487_s19 + $0x3d8] sm:$0xff] %v5665_v23  ;;  %7030 = vtanh.f32 %v2089_v27 }
 0x31b   : > { %v7007_v32 = vpop.eup %7006  ;;  %5030 = vst [vmem:[%s7487_s19 + $0x7d8] sm:$0xff] %v5793_v26  ;;  %7032 = vtanh.f32 %v2729_v31 }
 0x31c   : > { %v7009_v33 = vpop.eup %7008  ;;  %v5666_v34 = vpack.c.bf16 %v7007_v32, %v7003_v25 }
 0x31d   : > { %v7011_v29 = vpop.eup %7010  ;;  %v5794_v35 = vpack.c.bf16 %v7009_v33, %v7005_v28 }
 0x31e   : > { %v7013_v36 = vpop.eup %7012  ;;  %4903 = vst [vmem:[%s7487_s19 + $0x3e0] sm:$0xff] %v5666_v34 }
 0x31f   : > { %v7015_v37 = vpop.eup %7014  ;;  %5031 = vst [vmem:[%s7487_s19 + $0x7e0] sm:$0xff] %v5794_v35 }
 0x320   : > { %v7017_v30 = vpop.eup %7016  ;;  %v5667_v38 = vpack.c.bf16 %v7015_v37, %v7011_v29 }
 0x321   : > { %v7019_v39 = vpop.eup %7018  ;;  %v5795_v40 = vpack.c.bf16 %v7017_v30, %v7013_v36 }
 0x322   : > { %v7021_v41 = vpop.eup %7020  ;;  %4904 = vst [vmem:[%s7487_s19 + $0x3e8] sm:$0xff] %v5667_v38 }
 0x323   : > { %v7023_v42 = vpop.eup %7022  ;;  %5032 = vst [vmem:[%s7487_s19 + $0x7e8] sm:$0xff] %v5795_v40 }
 0x324   : > { %v7025_v43 = vpop.eup %7024  ;;  %v5668_v44 = vpack.c.bf16 %v7023_v42, %v7019_v39 }
 0x325   : > { %v7027_v45 = vpop.eup %7026  ;;  %v5796_v46 = vpack.c.bf16 %v7025_v43, %v7021_v41 }
 0x326   : > { %v7029_v47 = vpop.eup %7028  ;;  %4905 = vst [vmem:[%s7487_s19 + $0x3f0] sm:$0xff] %v5668_v44 }
 0x327   : > { %v7031_v48 = vpop.eup %7030  ;;  %5033 = vst [vmem:[%s7487_s19 + $0x7f0] sm:$0xff] %v5796_v46 }
 0x328   : > { %v7033_v49 = vpop.eup %7032  ;;  %v5669_v50 = vpack.c.bf16 %v7031_v48, %v7027_v45 }
 0x329   : > { %v5797_v51 = vpack.c.bf16 %v7033_v49, %v7029_v47 }
 0x32a   : > { %4906 = vst [vmem:[%s7487_s19 + $0x3f8] sm:$0xff] %v5669_v50 }
 0x32b   : > { %5034 = vst [vmem:[%s7487_s19 + $0x7f8] sm:$0xff] %v5797_v51 }
 0x32c   : > { %7047 = shalt.err (!%p7044_p7)
}
 0x32d   : > { %s7048_s19 = scalar_lea.hbm %s8514_s9, 32768  ;;  %s7052_s26 = scalar_lea.hbm %s8565_s3, 65536 }
 0x32e   : > { %p7049_p10 = scmp.ne.s32.totalorder %s8514_s9, %s7048_s19  ;;  %p7053_p13 = scmp.lt.u32.totalorder %s8514_s9, %s8565_s3 }
 0x32f   : > { %p7054_p0 = scmp.lt.u32.totalorder %s7052_s26, %s7048_s19  ;;  %p7056_p2 = scmp.lt.u32.totalorder %s7048_s19, %s8514_s9 }
 0x330   : > { %p7050_p11 = pnand %p7049_p10, %p7162_p6 }
 0x331   : > { %p7055_p1 = por %p7054_p0, %p7053_p13 }
 0x332   : > { %p7051_p12 = pneg %p7050_p11 }
 0x333   : > { %p7057_p3 = por %p7056_p2, %p7055_p1 }
 0x335   : > { %p7058_p4 = pnand %p7057_p3, %p7051_p12 }
 0x337   : > { %7061 = shalt.err (!%p7058_p4)
}
 0x338   : > { %s7100_s29 = smov 128   ;;  %s7101_s30 = smov 256  }
 0x339   : > { %s7102_s5 = smov 8  }
 0x33a   : > { %5815 = dma.vmem_to_hbm [thread:$0]  (%p7162_p6), %s8516_s6, 32768, %s8514_s9, %s5036_s16, %s7100_s29, %s7101_s30, %s7102_s5  }
 0x33b PF: > { %s5064_s7 = sand.u32 1, %s7084_s12   ;;  %p5818_p5 = pnand %p5128_p9, %p7166_p8 }
 0x33c   : > { %s5065_s8 = scalar_lea.sflag [#allocation4], %s5064_s7 }
 0x33d   : > { %7079 = dma.done.wait (!%p5818_p5), %s5065_s8, 32768  }
 0x33e   : > { %7081 = vsyncadd (!%p5818_p5), %s5065_s8, 4294934528  ;;  %p13_p7 = scmp.ge.s32.totalorder %s7148_s18, 4   ;;  %s8568_s12 = smov %s7088_s13 }
 0x33f   : > { %s8569_s13 = smov %s7092_s14  ;;  %s8570_s14 = smov %s7160_s21 }
 0x340   : > { %s8571_s15 = smov %s7148_s18  ;;  %15 = sbr.rel (!%p13_p7) target bundleno = 3 (0x3), region = 113 }
 0x347   :  { %5070 = vsyncpa [#allocation4], 1 }
 0x348   :  { %5072 = vsyncpa [#allocation4 + $0x1], 1 }

</bundles_post_ra>
